<compile_context>
chip_gen: v6e
topology: v6e:2x2x1
jax: 0.10.0
libtpu: 0.0.40
codegen_flags: <defaults>
</compile_context>

<pallas_src>
import jax
import jax.numpy as jnp
import numpy as np
from jax.experimental import pallas as pl
from jax.experimental.pallas import tpu as pltpu

FEATURE_DIM = 64
HEAD_DIM = 4          # fused [sigma(1) | radiance(3)]
CHUNK = 256           # lane sub-chunk; fills the 256-wide MXU on v6e/v7x (2x128 on v5e)
MAX_TILE_M = 2048     # lanes per grid step (multiple of CHUNK); amortizes step overhead


def _round_up(x, n):
    return ((x + n - 1) // n) * n


def _radiance_kernel(x_ref,
                     w1, b1, w2, b2, w3, b3, w4, b4, w5, b5, w6, b6,
                     wh, bh,
                     out_ref):
    # x_ref: (3, TILE_M) f32.  out_ref: (4, TILE_M) f32 = [sigma | radiance] rows.
    tile_m = x_ref.shape[1]
    n_chunks = tile_m // CHUNK

    # Hoist all weight/bias loads out of the chunk loop (broadcasts are not CSE'd).
    w1c0, w1c1, w1c2 = w1[:, 0:1], w1[:, 1:2], w1[:, 2:3]   # (64,1) f32 columns
    b1v = b1[...]
    hidden = ((w2[...], b2[...]), (w3[...], b3[...]),
              (w4[...], b4[...]), (w5[...], b5[...]))
    w6v, b6v = w6[...], b6[...]
    whv, bhv = wh[...], bh[...]

    # Fully-unrolled sub-chunk loop with *static* slice starts: keeps each chunk's
    # (64, 256) activation in vregs instead of spilling a full (64, TILE_M) slab.
    for c in range(n_chunks):
        lo = c * CHUNK
        x = x_ref[:, lo:lo + CHUNK]                                   # (3, CHUNK) f32

        # Layer 1 (in_features = 3): three VPU broadcast FMAs; K=3 would waste an
        # MXU pass (3 of 256 rows), and the VALU slots are otherwise idle here.
        h = (w1c0 * x[0:1, :] + w1c1 * x[1:2, :] + w1c2 * x[2:3, :]) + b1v
        h = jnp.maximum(h, 0.0)                                       # (64, CHUNK) f32

        # Hidden layers 2..5: bf16 MXU operands, f32 accumulate; bias/ReLU in f32
        # (v5e has no bf16 VPU path).
        for w, b in hidden:
            h = jnp.dot(w, h.astype(jnp.bfloat16),
                        preferred_element_type=jnp.float32) + b
            h = jnp.maximum(h, 0.0)

        # Final scene_rep linear (no activation), then the shared head ReLU.
        feat = jnp.dot(w6v, h.astype(jnp.bfloat16),
                       preferred_element_type=jnp.float32) + b6v
        f = jnp.maximum(feat, 0.0)

        # Fused sigma|radiance head: one (4,64) x (64,CHUNK) matmul + ReLU,
        # stored lane-dense.
        head = jnp.dot(whv, f.astype(jnp.bfloat16),
                       preferred_element_type=jnp.float32) + bhv
        out_ref[:, lo:lo + CHUNK] = jnp.maximum(head, 0.0)


@jax.jit
def radiance_field_forward(xyz, params):
    """xyz: (batch, num_points, 3) float32 -> (sigma (b,n,1), rad (b,n,3))."""
    bsz, npts, _ = xyz.shape
    m = bsz * npts
    (w1, b1, w2, b2, w3, b3, w4, b4, w5, b5, w6, b6, ws, bs, wr, br) = params

    # Fuse the two heads: [sigma | radiance] -> (4, 64) weight + (4, 1) bias.
    wh = jnp.concatenate([ws, wr], axis=0)
    bh = jnp.concatenate([bs, br], axis=0)

    # bf16 MXU operands for the 64x64 layers and the fused head (f32 accumulate
    # in-kernel). Layer-1 weight stays f32 (it runs on the VPU).
    w2b, w3b, w4b, w5b, w6b, whb = (w.astype(jnp.bfloat16)
                                    for w in (w2, w3, w4, w5, w6, wh))

    # Adaptive lane tile: large tiles for big M (amortize per-step overhead),
    # shrink + pad for small / ragged M instead of asserting divisibility.
    tile_m = min(MAX_TILE_M, _round_up(m, CHUNK))
    m_pad = _round_up(m, tile_m)

    # Lane-dense layout: points on the lane axis -> (3, M).
    x_t = xyz.reshape(m, 3).astype(jnp.float32).T
    if m_pad != m:
        x_t = jnp.pad(x_t, ((0, 0), (0, m_pad - m)))

    flops = 2 * m_pad * (3 * FEATURE_DIM
                         + 5 * FEATURE_DIM * FEATURE_DIM
                         + FEATURE_DIM * HEAD_DIM)
    param_bytes = sum(int(np.prod(p.shape)) * p.dtype.itemsize for p in params)
    cost = pl.CostEstimate(flops=int(flops), transcendentals=0,
                           bytes_accessed=int(m_pad * (3 + HEAD_DIM) * 4
                                              + param_bytes))

    def rep(shape):
        # Whole-array block, replicated across the lane grid.
        return pl.BlockSpec(shape, lambda i: (0,) * len(shape))

    out = pl.pallas_call(
        _radiance_kernel,
        out_shape=jax.ShapeDtypeStruct((HEAD_DIM, m_pad), jnp.float32),
        grid=(m_pad // tile_m,),
        in_specs=[pl.BlockSpec((3, tile_m), lambda i: (0, i)),
                  rep(w1.shape), rep(b1.shape),
                  rep(w2b.shape), rep(b2.shape),
                  rep(w3b.shape), rep(b3.shape),
                  rep(w4b.shape), rep(b4.shape),
                  rep(w5b.shape), rep(b5.shape),
                  rep(w6b.shape), rep(b6.shape),
                  rep(whb.shape), rep(bh.shape)],
        out_specs=pl.BlockSpec((HEAD_DIM, tile_m), lambda i: (0, i)),
        compiler_params=pltpu.CompilerParams(
            dimension_semantics=("parallel",),
            vmem_limit_bytes=64 << 20),
        cost_estimate=cost,
    )(x_t, w1, b1, w2b, b2, w3b, b3, w4b, b4, w5b, b5, w6b, b6, whb, bh)

    out = out[:, :m].T                                   # (m, 4)
    sigma = out[:, 0:1].reshape(bsz, npts, 1)
    rad = out[:, 1:4].reshape(bsz, npts, 3)
    return sigma, rad


def init_params(key):
    """Kaiming-normal (fan_in, relu gain) init, zero biases.

    Weights are stored torch-style as (out_features, in_features); biases as
    (out_features, 1) so the transposed kernel computes W @ h + b directly.
    """
    def kaiming(k, out_f, in_f):
        std = np.sqrt(2.0 / in_f)
        return jax.random.normal(k, (out_f, in_f), jnp.float32) * std

    keys = jax.random.split(key, 8)
    w1 = kaiming(keys[0], FEATURE_DIM, 3)
    w2 = kaiming(keys[1], FEATURE_DIM, FEATURE_DIM)
    w3 = kaiming(keys[2], FEATURE_DIM, FEATURE_DIM)
    w4 = kaiming(keys[3], FEATURE_DIM, FEATURE_DIM)
    w5 = kaiming(keys[4], FEATURE_DIM, FEATURE_DIM)
    w6 = kaiming(keys[5], FEATURE_DIM, FEATURE_DIM)
    ws = kaiming(keys[6], 1, FEATURE_DIM)
    wr = kaiming(keys[7], 3, FEATURE_DIM)

    def zb(o):
        return jnp.zeros((o, 1), jnp.float32)

    return (w1, zb(FEATURE_DIM), w2, zb(FEATURE_DIM), w3, zb(FEATURE_DIM),
            w4, zb(FEATURE_DIM), w5, zb(FEATURE_DIM), w6, zb(FEATURE_DIM),
            ws, zb(1), wr, zb(3))


def reference_forward(xyz, params):
    """Pure-JAX f32 reference mirroring the PyTorch forward, for validation."""
    (w1, b1, w2, b2, w3, b3, w4, b4, w5, b5, w6, b6, ws, bs, wr, br) = params
    h = xyz.astype(jnp.float32)
    for w, b in ((w1, b1), (w2, b2), (w3, b3), (w4, b4), (w5, b5)):
        h = jnp.maximum(h @ w.T + b.T, 0.0)
    feat = h @ w6.T + b6.T
    f = jnp.maximum(feat, 0.0)
    sigma = jnp.maximum(f @ ws.T + bs.T, 0.0)
    rad = jnp.maximum(f @ wr.T + br.T, 0.0)
    return sigma, rad


if __name__ == "__main__":
    key = jax.random.PRNGKey(0)
    k_x, k_p = jax.random.split(key)
    params = init_params(k_p)

    # Main check: exercises the multi-grid-step (grid=2) and multi-chunk path.
    batch, num_points = 2, 2048
    xyz = jax.random.uniform(k_x, (batch, num_points, 3), jnp.float32,
                             minval=-1.0, maxval=1.0)
    sigma, rad = radiance_field_forward(xyz, params)
    jax.block_until_ready((sigma, rad))

    sigma_ref, rad_ref = reference_forward(xyz, params)
    assert sigma.shape == (batch, num_points, 1)
    assert rad.shape == (batch, num_points, 3)
    # bf16 MXU operands vs f32 reference -> loosened tolerance.
    np.testing.assert_allclose(np.asarray(sigma), np.asarray(sigma_ref),
                               rtol=5e-2, atol=5e-2)
    np.testing.assert_allclose(np.asarray(rad), np.asarray(rad_ref),
                               rtol=5e-2, atol=5e-2)

    # Ragged check: M = 200 is not a multiple of the tile (wrapper padding path).
    xyz2 = jax.random.uniform(jax.random.PRNGKey(1), (2, 100, 3), jnp.float32,
                              minval=-1.0, maxval=1.0)
    s2, r2 = radiance_field_forward(xyz2, params)
    jax.block_until_ready((s2, r2))
    s2_ref, r2_ref = reference_forward(xyz2, params)
    np.testing.assert_allclose(np.asarray(s2), np.asarray(s2_ref),
                               rtol=5e-2, atol=5e-2)
    np.testing.assert_allclose(np.asarray(r2), np.asarray(r2_ref),
                               rtol=5e-2, atol=5e-2)

    print("KERNEL_OK")
</pallas_src>

<mosaic_0001>
module attributes {stable_mosaic.version = 11 : i64} {
  func.func @_radiance_kernel(%arg0: i32, %arg1: memref<3x2048xf32, #tpu.memory_space<vmem>>, %arg2: memref<64x3xf32, #tpu.memory_space<vmem>>, %arg3: memref<64x1xf32, #tpu.memory_space<vmem>>, %arg4: memref<64x64xbf16, #tpu.memory_space<vmem>>, %arg5: memref<64x1xf32, #tpu.memory_space<vmem>>, %arg6: memref<64x64xbf16, #tpu.memory_space<vmem>>, %arg7: memref<64x1xf32, #tpu.memory_space<vmem>>, %arg8: memref<64x64xbf16, #tpu.memory_space<vmem>>, %arg9: memref<64x1xf32, #tpu.memory_space<vmem>>, %arg10: memref<64x64xbf16, #tpu.memory_space<vmem>>, %arg11: memref<64x1xf32, #tpu.memory_space<vmem>>, %arg12: memref<64x64xbf16, #tpu.memory_space<vmem>>, %arg13: memref<64x1xf32, #tpu.memory_space<vmem>>, %arg14: memref<4x64xbf16, #tpu.memory_space<vmem>>, %arg15: memref<4x1xf32, #tpu.memory_space<vmem>>, %arg16: memref<4x2048xf32, #tpu.memory_space<vmem>>) attributes {dimension_semantics = [#tpu.dimension_semantics<parallel>], iteration_bounds = array<i64: 2>, scalar_prefetch = 0 : i64, scratch_operands = 0 : i64, tpu.core_type = #tpu.core_type<tc>, window_params = [{transform_indices = @transform_0, window_bounds = array<i64: 3, 2048>}, {pipeline_mode = #tpu.pipeline_mode<synchronous>, transform_indices = @transform_1, window_bounds = array<i64: 64, 3>}, {pipeline_mode = #tpu.pipeline_mode<synchronous>, transform_indices = @transform_2, window_bounds = array<i64: 64, 1>}, {pipeline_mode = #tpu.pipeline_mode<synchronous>, transform_indices = @transform_3, window_bounds = array<i64: 64, 64>}, {pipeline_mode = #tpu.pipeline_mode<synchronous>, transform_indices = @transform_4, window_bounds = array<i64: 64, 1>}, {pipeline_mode = #tpu.pipeline_mode<synchronous>, transform_indices = @transform_5, window_bounds = array<i64: 64, 64>}, {pipeline_mode = #tpu.pipeline_mode<synchronous>, transform_indices = @transform_6, window_bounds = array<i64: 64, 1>}, {pipeline_mode = #tpu.pipeline_mode<synchronous>, transform_indices = @transform_7, window_bounds = array<i64: 64, 64>}, {pipeline_mode = #tpu.pipeline_mode<synchronous>, transform_indices = @transform_8, window_bounds = array<i64: 64, 1>}, {pipeline_mode = #tpu.pipeline_mode<synchronous>, transform_indices = @transform_9, window_bounds = array<i64: 64, 64>}, {pipeline_mode = #tpu.pipeline_mode<synchronous>, transform_indices = @transform_10, window_bounds = array<i64: 64, 1>}, {pipeline_mode = #tpu.pipeline_mode<synchronous>, transform_indices = @transform_11, window_bounds = array<i64: 64, 64>}, {pipeline_mode = #tpu.pipeline_mode<synchronous>, transform_indices = @transform_12, window_bounds = array<i64: 64, 1>}, {pipeline_mode = #tpu.pipeline_mode<synchronous>, transform_indices = @transform_13, window_bounds = array<i64: 4, 64>}, {pipeline_mode = #tpu.pipeline_mode<synchronous>, transform_indices = @transform_14, window_bounds = array<i64: 4, 1>}, {transform_indices = @transform_15, window_bounds = array<i64: 4, 2048>}]} {
    %c0 = arith.constant 0 : index
    %c0_0 = arith.constant 0 : index
    %0 = vector.load %arg2[%c0, %c0_0] : memref<64x3xf32, #tpu.memory_space<vmem>>, vector<64x1xf32>
    %c0_1 = arith.constant 0 : index
    %c1 = arith.constant 1 : index
    %1 = vector.load %arg2[%c0_1, %c1] : memref<64x3xf32, #tpu.memory_space<vmem>>, vector<64x1xf32>
    %c0_2 = arith.constant 0 : index
    %c2 = arith.constant 2 : index
    %2 = vector.load %arg2[%c0_2, %c2] : memref<64x3xf32, #tpu.memory_space<vmem>>, vector<64x1xf32>
    %c0_3 = arith.constant 0 : index
    %c0_4 = arith.constant 0 : index
    %3 = vector.load %arg3[%c0_3, %c0_4] : memref<64x1xf32, #tpu.memory_space<vmem>>, vector<64x1xf32>
    %c0_5 = arith.constant 0 : index
    %c0_6 = arith.constant 0 : index
    %4 = vector.load %arg4[%c0_5, %c0_6] : memref<64x64xbf16, #tpu.memory_space<vmem>>, vector<64x64xbf16>
    %c0_7 = arith.constant 0 : index
    %c0_8 = arith.constant 0 : index
    %5 = vector.load %arg5[%c0_7, %c0_8] : memref<64x1xf32, #tpu.memory_space<vmem>>, vector<64x1xf32>
    %c0_9 = arith.constant 0 : index
    %c0_10 = arith.constant 0 : index
    %6 = vector.load %arg6[%c0_9, %c0_10] : memref<64x64xbf16, #tpu.memory_space<vmem>>, vector<64x64xbf16>
    %c0_11 = arith.constant 0 : index
    %c0_12 = arith.constant 0 : index
    %7 = vector.load %arg7[%c0_11, %c0_12] : memref<64x1xf32, #tpu.memory_space<vmem>>, vector<64x1xf32>
    %c0_13 = arith.constant 0 : index
    %c0_14 = arith.constant 0 : index
    %8 = vector.load %arg8[%c0_13, %c0_14] : memref<64x64xbf16, #tpu.memory_space<vmem>>, vector<64x64xbf16>
    %c0_15 = arith.constant 0 : index
    %c0_16 = arith.constant 0 : index
    %9 = vector.load %arg9[%c0_15, %c0_16] : memref<64x1xf32, #tpu.memory_space<vmem>>, vector<64x1xf32>
    %c0_17 = arith.constant 0 : index
    %c0_18 = arith.constant 0 : index
    %10 = vector.load %arg10[%c0_17, %c0_18] : memref<64x64xbf16, #tpu.memory_space<vmem>>, vector<64x64xbf16>
    %c0_19 = arith.constant 0 : index
    %c0_20 = arith.constant 0 : index
    %11 = vector.load %arg11[%c0_19, %c0_20] : memref<64x1xf32, #tpu.memory_space<vmem>>, vector<64x1xf32>
    %c0_21 = arith.constant 0 : index
    %c0_22 = arith.constant 0 : index
    %12 = vector.load %arg12[%c0_21, %c0_22] : memref<64x64xbf16, #tpu.memory_space<vmem>>, vector<64x64xbf16>
    %c0_23 = arith.constant 0 : index
    %c0_24 = arith.constant 0 : index
    %13 = vector.load %arg13[%c0_23, %c0_24] : memref<64x1xf32, #tpu.memory_space<vmem>>, vector<64x1xf32>
    %c0_25 = arith.constant 0 : index
    %c0_26 = arith.constant 0 : index
    %14 = vector.load %arg14[%c0_25, %c0_26] : memref<4x64xbf16, #tpu.memory_space<vmem>>, vector<4x64xbf16>
    %c0_27 = arith.constant 0 : index
    %c0_28 = arith.constant 0 : index
    %15 = vector.load %arg15[%c0_27, %c0_28] : memref<4x1xf32, #tpu.memory_space<vmem>>, vector<4x1xf32>
    %c0_29 = arith.constant 0 : index
    %c0_30 = arith.constant 0 : index
    %16 = vector.load %arg1[%c0_29, %c0_30] : memref<3x2048xf32, #tpu.memory_space<vmem>>, vector<3x256xf32>
    %17 = vector.extract_strided_slice %16 {offsets = [0, 0], sizes = [1, 256], strides = [1, 1]} : vector<3x256xf32> to vector<1x256xf32>
    %18 = vector.broadcast %0 : vector<64x1xf32> to vector<64x256xf32>
    %19 = vector.broadcast %17 : vector<1x256xf32> to vector<64x256xf32>
    %20 = arith.mulf %18, %19 : vector<64x256xf32>
    %21 = vector.extract_strided_slice %16 {offsets = [1, 0], sizes = [1, 256], strides = [1, 1]} : vector<3x256xf32> to vector<1x256xf32>
    %22 = vector.broadcast %1 : vector<64x1xf32> to vector<64x256xf32>
    %23 = vector.broadcast %21 : vector<1x256xf32> to vector<64x256xf32>
    %24 = arith.mulf %22, %23 : vector<64x256xf32>
    %25 = arith.addf %20, %24 : vector<64x256xf32>
    %26 = vector.extract_strided_slice %16 {offsets = [2, 0], sizes = [1, 256], strides = [1, 1]} : vector<3x256xf32> to vector<1x256xf32>
    %27 = vector.broadcast %2 : vector<64x1xf32> to vector<64x256xf32>
    %28 = vector.broadcast %26 : vector<1x256xf32> to vector<64x256xf32>
    %29 = arith.mulf %27, %28 : vector<64x256xf32>
    %30 = arith.addf %25, %29 : vector<64x256xf32>
    %31 = vector.broadcast %3 : vector<64x1xf32> to vector<64x256xf32>
    %32 = arith.addf %30, %31 : vector<64x256xf32>
    %cst = arith.constant 0.000000e+00 : f32
    %33 = vector.broadcast %cst : f32 to vector<64x256xf32>
    %34 = arith.maximumf %32, %33 : vector<64x256xf32>
    %35 = arith.truncf %34 : vector<64x256xf32> to vector<64x256xbf16>
    %cst_31 = arith.constant dense<0.000000e+00> : vector<64x256xf32>
    %36 = tpu.matmul %4, %35, %cst_31 {dimension_numbers = #tpu.dot_dimension_numbers<[1], [0], [0], [1], [0, 0, 1, 1], [], []>} : vector<64x64xbf16>, vector<64x256xbf16>, vector<64x256xf32> -> vector<64x256xf32>
    %37 = vector.broadcast %5 : vector<64x1xf32> to vector<64x256xf32>
    %38 = arith.addf %36, %37 : vector<64x256xf32>
    %cst_32 = arith.constant 0.000000e+00 : f32
    %39 = vector.broadcast %cst_32 : f32 to vector<64x256xf32>
    %40 = arith.maximumf %38, %39 : vector<64x256xf32>
    %41 = arith.truncf %40 : vector<64x256xf32> to vector<64x256xbf16>
    %cst_33 = arith.constant dense<0.000000e+00> : vector<64x256xf32>
    %42 = tpu.matmul %6, %41, %cst_33 {dimension_numbers = #tpu.dot_dimension_numbers<[1], [0], [0], [1], [0, 0, 1, 1], [], []>} : vector<64x64xbf16>, vector<64x256xbf16>, vector<64x256xf32> -> vector<64x256xf32>
    %43 = vector.broadcast %7 : vector<64x1xf32> to vector<64x256xf32>
    %44 = arith.addf %42, %43 : vector<64x256xf32>
    %cst_34 = arith.constant 0.000000e+00 : f32
    %45 = vector.broadcast %cst_34 : f32 to vector<64x256xf32>
    %46 = arith.maximumf %44, %45 : vector<64x256xf32>
    %47 = arith.truncf %46 : vector<64x256xf32> to vector<64x256xbf16>
    %cst_35 = arith.constant dense<0.000000e+00> : vector<64x256xf32>
    %48 = tpu.matmul %8, %47, %cst_35 {dimension_numbers = #tpu.dot_dimension_numbers<[1], [0], [0], [1], [0, 0, 1, 1], [], []>} : vector<64x64xbf16>, vector<64x256xbf16>, vector<64x256xf32> -> vector<64x256xf32>
    %49 = vector.broadcast %9 : vector<64x1xf32> to vector<64x256xf32>
    %50 = arith.addf %48, %49 : vector<64x256xf32>
    %cst_36 = arith.constant 0.000000e+00 : f32
    %51 = vector.broadcast %cst_36 : f32 to vector<64x256xf32>
    %52 = arith.maximumf %50, %51 : vector<64x256xf32>
    %53 = arith.truncf %52 : vector<64x256xf32> to vector<64x256xbf16>
    %cst_37 = arith.constant dense<0.000000e+00> : vector<64x256xf32>
    %54 = tpu.matmul %10, %53, %cst_37 {dimension_numbers = #tpu.dot_dimension_numbers<[1], [0], [0], [1], [0, 0, 1, 1], [], []>} : vector<64x64xbf16>, vector<64x256xbf16>, vector<64x256xf32> -> vector<64x256xf32>
    %55 = vector.broadcast %11 : vector<64x1xf32> to vector<64x256xf32>
    %56 = arith.addf %54, %55 : vector<64x256xf32>
    %cst_38 = arith.constant 0.000000e+00 : f32
    %57 = vector.broadcast %cst_38 : f32 to vector<64x256xf32>
    %58 = arith.maximumf %56, %57 : vector<64x256xf32>
    %59 = arith.truncf %58 : vector<64x256xf32> to vector<64x256xbf16>
    %cst_39 = arith.constant dense<0.000000e+00> : vector<64x256xf32>
    %60 = tpu.matmul %12, %59, %cst_39 {dimension_numbers = #tpu.dot_dimension_numbers<[1], [0], [0], [1], [0, 0, 1, 1], [], []>} : vector<64x64xbf16>, vector<64x256xbf16>, vector<64x256xf32> -> vector<64x256xf32>
    %61 = vector.broadcast %13 : vector<64x1xf32> to vector<64x256xf32>
    %62 = arith.addf %60, %61 : vector<64x256xf32>
    %cst_40 = arith.constant 0.000000e+00 : f32
    %63 = vector.broadcast %cst_40 : f32 to vector<64x256xf32>
    %64 = arith.maximumf %62, %63 : vector<64x256xf32>
    %65 = arith.truncf %64 : vector<64x256xf32> to vector<64x256xbf16>
    %cst_41 = arith.constant dense<0.000000e+00> : vector<4x256xf32>
    %66 = tpu.matmul %14, %65, %cst_41 {dimension_numbers = #tpu.dot_dimension_numbers<[1], [0], [0], [1], [0, 0, 1, 1], [], []>} : vector<4x64xbf16>, vector<64x256xbf16>, vector<4x256xf32> -> vector<4x256xf32>
    %67 = vector.broadcast %15 : vector<4x1xf32> to vector<4x256xf32>
    %68 = arith.addf %66, %67 : vector<4x256xf32>
    %cst_42 = arith.constant 0.000000e+00 : f32
    %69 = vector.broadcast %cst_42 : f32 to vector<4x256xf32>
    %70 = arith.maximumf %68, %69 : vector<4x256xf32>
    %c0_43 = arith.constant 0 : index
    %c0_44 = arith.constant 0 : index
    %71 = vector.load %arg16[%c0_43, %c0_44] : memref<4x2048xf32, #tpu.memory_space<vmem>>, vector<4x256xf32>
    tpu.vector_store %arg16[%c0_43, %c0_44], %70 {strides = array<i32>} : memref<4x2048xf32, #tpu.memory_space<vmem>>, vector<4x256xf32>,
    %c0_45 = arith.constant 0 : index
    %c256 = arith.constant 256 : index
    %72 = vector.load %arg1[%c0_45, %c256] : memref<3x2048xf32, #tpu.memory_space<vmem>>, vector<3x256xf32>
    %73 = vector.extract_strided_slice %72 {offsets = [0, 0], sizes = [1, 256], strides = [1, 1]} : vector<3x256xf32> to vector<1x256xf32>
    %74 = vector.broadcast %0 : vector<64x1xf32> to vector<64x256xf32>
    %75 = vector.broadcast %73 : vector<1x256xf32> to vector<64x256xf32>
    %76 = arith.mulf %74, %75 : vector<64x256xf32>
    %77 = vector.extract_strided_slice %72 {offsets = [1, 0], sizes = [1, 256], strides = [1, 1]} : vector<3x256xf32> to vector<1x256xf32>
    %78 = vector.broadcast %1 : vector<64x1xf32> to vector<64x256xf32>
    %79 = vector.broadcast %77 : vector<1x256xf32> to vector<64x256xf32>
    %80 = arith.mulf %78, %79 : vector<64x256xf32>
    %81 = arith.addf %76, %80 : vector<64x256xf32>
    %82 = vector.extract_strided_slice %72 {offsets = [2, 0], sizes = [1, 256], strides = [1, 1]} : vector<3x256xf32> to vector<1x256xf32>
    %83 = vector.broadcast %2 : vector<64x1xf32> to vector<64x256xf32>
    %84 = vector.broadcast %82 : vector<1x256xf32> to vector<64x256xf32>
    %85 = arith.mulf %83, %84 : vector<64x256xf32>
    %86 = arith.addf %81, %85 : vector<64x256xf32>
    %87 = vector.broadcast %3 : vector<64x1xf32> to vector<64x256xf32>
    %88 = arith.addf %86, %87 : vector<64x256xf32>
    %cst_46 = arith.constant 0.000000e+00 : f32
    %89 = vector.broadcast %cst_46 : f32 to vector<64x256xf32>
    %90 = arith.maximumf %88, %89 : vector<64x256xf32>
    %91 = arith.truncf %90 : vector<64x256xf32> to vector<64x256xbf16>
    %cst_47 = arith.constant dense<0.000000e+00> : vector<64x256xf32>
    %92 = tpu.matmul %4, %91, %cst_47 {dimension_numbers = #tpu.dot_dimension_numbers<[1], [0], [0], [1], [0, 0, 1, 1], [], []>} : vector<64x64xbf16>, vector<64x256xbf16>, vector<64x256xf32> -> vector<64x256xf32>
    %93 = vector.broadcast %5 : vector<64x1xf32> to vector<64x256xf32>
    %94 = arith.addf %92, %93 : vector<64x256xf32>
    %cst_48 = arith.constant 0.000000e+00 : f32
    %95 = vector.broadcast %cst_48 : f32 to vector<64x256xf32>
    %96 = arith.maximumf %94, %95 : vector<64x256xf32>
    %97 = arith.truncf %96 : vector<64x256xf32> to vector<64x256xbf16>
    %cst_49 = arith.constant dense<0.000000e+00> : vector<64x256xf32>
    %98 = tpu.matmul %6, %97, %cst_49 {dimension_numbers = #tpu.dot_dimension_numbers<[1], [0], [0], [1], [0, 0, 1, 1], [], []>} : vector<64x64xbf16>, vector<64x256xbf16>, vector<64x256xf32> -> vector<64x256xf32>
    %99 = vector.broadcast %7 : vector<64x1xf32> to vector<64x256xf32>
    %100 = arith.addf %98, %99 : vector<64x256xf32>
    %cst_50 = arith.constant 0.000000e+00 : f32
    %101 = vector.broadcast %cst_50 : f32 to vector<64x256xf32>
    %102 = arith.maximumf %100, %101 : vector<64x256xf32>
    %103 = arith.truncf %102 : vector<64x256xf32> to vector<64x256xbf16>
    %cst_51 = arith.constant dense<0.000000e+00> : vector<64x256xf32>
    %104 = tpu.matmul %8, %103, %cst_51 {dimension_numbers = #tpu.dot_dimension_numbers<[1], [0], [0], [1], [0, 0, 1, 1], [], []>} : vector<64x64xbf16>, vector<64x256xbf16>, vector<64x256xf32> -> vector<64x256xf32>
    %105 = vector.broadcast %9 : vector<64x1xf32> to vector<64x256xf32>
    %106 = arith.addf %104, %105 : vector<64x256xf32>
    %cst_52 = arith.constant 0.000000e+00 : f32
    %107 = vector.broadcast %cst_52 : f32 to vector<64x256xf32>
    %108 = arith.maximumf %106, %107 : vector<64x256xf32>
    %109 = arith.truncf %108 : vector<64x256xf32> to vector<64x256xbf16>
    %cst_53 = arith.constant dense<0.000000e+00> : vector<64x256xf32>
    %110 = tpu.matmul %10, %109, %cst_53 {dimension_numbers = #tpu.dot_dimension_numbers<[1], [0], [0], [1], [0, 0, 1, 1], [], []>} : vector<64x64xbf16>, vector<64x256xbf16>, vector<64x256xf32> -> vector<64x256xf32>
    %111 = vector.broadcast %11 : vector<64x1xf32> to vector<64x256xf32>
    %112 = arith.addf %110, %111 : vector<64x256xf32>
    %cst_54 = arith.constant 0.000000e+00 : f32
    %113 = vector.broadcast %cst_54 : f32 to vector<64x256xf32>
    %114 = arith.maximumf %112, %113 : vector<64x256xf32>
    %115 = arith.truncf %114 : vector<64x256xf32> to vector<64x256xbf16>
    %cst_55 = arith.constant dense<0.000000e+00> : vector<64x256xf32>
    %116 = tpu.matmul %12, %115, %cst_55 {dimension_numbers = #tpu.dot_dimension_numbers<[1], [0], [0], [1], [0, 0, 1, 1], [], []>} : vector<64x64xbf16>, vector<64x256xbf16>, vector<64x256xf32> -> vector<64x256xf32>
    %117 = vector.broadcast %13 : vector<64x1xf32> to vector<64x256xf32>
    %118 = arith.addf %116, %117 : vector<64x256xf32>
    %cst_56 = arith.constant 0.000000e+00 : f32
    %119 = vector.broadcast %cst_56 : f32 to vector<64x256xf32>
    %120 = arith.maximumf %118, %119 : vector<64x256xf32>
    %121 = arith.truncf %120 : vector<64x256xf32> to vector<64x256xbf16>
    %cst_57 = arith.constant dense<0.000000e+00> : vector<4x256xf32>
    %122 = tpu.matmul %14, %121, %cst_57 {dimension_numbers = #tpu.dot_dimension_numbers<[1], [0], [0], [1], [0, 0, 1, 1], [], []>} : vector<4x64xbf16>, vector<64x256xbf16>, vector<4x256xf32> -> vector<4x256xf32>
    %123 = vector.broadcast %15 : vector<4x1xf32> to vector<4x256xf32>
    %124 = arith.addf %122, %123 : vector<4x256xf32>
    %cst_58 = arith.constant 0.000000e+00 : f32
    %125 = vector.broadcast %cst_58 : f32 to vector<4x256xf32>
    %126 = arith.maximumf %124, %125 : vector<4x256xf32>
    %c0_59 = arith.constant 0 : index
    %c256_60 = arith.constant 256 : index
    %127 = vector.load %arg16[%c0_59, %c256_60] : memref<4x2048xf32, #tpu.memory_space<vmem>>, vector<4x256xf32>
    tpu.vector_store %arg16[%c0_59, %c256_60], %126 {strides = array<i32>} : memref<4x2048xf32, #tpu.memory_space<vmem>>, vector<4x256xf32>,
    %c0_61 = arith.constant 0 : index
    %c512 = arith.constant 512 : index
    %128 = vector.load %arg1[%c0_61, %c512] : memref<3x2048xf32, #tpu.memory_space<vmem>>, vector<3x256xf32>
    %129 = vector.extract_strided_slice %128 {offsets = [0, 0], sizes = [1, 256], strides = [1, 1]} : vector<3x256xf32> to vector<1x256xf32>
    %130 = vector.broadcast %0 : vector<64x1xf32> to vector<64x256xf32>
    %131 = vector.broadcast %129 : vector<1x256xf32> to vector<64x256xf32>
    %132 = arith.mulf %130, %131 : vector<64x256xf32>
    %133 = vector.extract_strided_slice %128 {offsets = [1, 0], sizes = [1, 256], strides = [1, 1]} : vector<3x256xf32> to vector<1x256xf32>
    %134 = vector.broadcast %1 : vector<64x1xf32> to vector<64x256xf32>
    %135 = vector.broadcast %133 : vector<1x256xf32> to vector<64x256xf32>
    %136 = arith.mulf %134, %135 : vector<64x256xf32>
    %137 = arith.addf %132, %136 : vector<64x256xf32>
    %138 = vector.extract_strided_slice %128 {offsets = [2, 0], sizes = [1, 256], strides = [1, 1]} : vector<3x256xf32> to vector<1x256xf32>
    %139 = vector.broadcast %2 : vector<64x1xf32> to vector<64x256xf32>
    %140 = vector.broadcast %138 : vector<1x256xf32> to vector<64x256xf32>
    %141 = arith.mulf %139, %140 : vector<64x256xf32>
    %142 = arith.addf %137, %141 : vector<64x256xf32>
    %143 = vector.broadcast %3 : vector<64x1xf32> to vector<64x256xf32>
    %144 = arith.addf %142, %143 : vector<64x256xf32>
    %cst_62 = arith.constant 0.000000e+00 : f32
    %145 = vector.broadcast %cst_62 : f32 to vector<64x256xf32>
    %146 = arith.maximumf %144, %145 : vector<64x256xf32>
    %147 = arith.truncf %146 : vector<64x256xf32> to vector<64x256xbf16>
    %cst_63 = arith.constant dense<0.000000e+00> : vector<64x256xf32>
    %148 = tpu.matmul %4, %147, %cst_63 {dimension_numbers = #tpu.dot_dimension_numbers<[1], [0], [0], [1], [0, 0, 1, 1], [], []>} : vector<64x64xbf16>, vector<64x256xbf16>, vector<64x256xf32> -> vector<64x256xf32>
    %149 = vector.broadcast %5 : vector<64x1xf32> to vector<64x256xf32>
    %150 = arith.addf %148, %149 : vector<64x256xf32>
    %cst_64 = arith.constant 0.000000e+00 : f32
    %151 = vector.broadcast %cst_64 : f32 to vector<64x256xf32>
    %152 = arith.maximumf %150, %151 : vector<64x256xf32>
    %153 = arith.truncf %152 : vector<64x256xf32> to vector<64x256xbf16>
    %cst_65 = arith.constant dense<0.000000e+00> : vector<64x256xf32>
    %154 = tpu.matmul %6, %153, %cst_65 {dimension_numbers = #tpu.dot_dimension_numbers<[1], [0], [0], [1], [0, 0, 1, 1], [], []>} : vector<64x64xbf16>, vector<64x256xbf16>, vector<64x256xf32> -> vector<64x256xf32>
    %155 = vector.broadcast %7 : vector<64x1xf32> to vector<64x256xf32>
    %156 = arith.addf %154, %155 : vector<64x256xf32>
    %cst_66 = arith.constant 0.000000e+00 : f32
    %157 = vector.broadcast %cst_66 : f32 to vector<64x256xf32>
    %158 = arith.maximumf %156, %157 : vector<64x256xf32>
    %159 = arith.truncf %158 : vector<64x256xf32> to vector<64x256xbf16>
    %cst_67 = arith.constant dense<0.000000e+00> : vector<64x256xf32>
    %160 = tpu.matmul %8, %159, %cst_67 {dimension_numbers = #tpu.dot_dimension_numbers<[1], [0], [0], [1], [0, 0, 1, 1], [], []>} : vector<64x64xbf16>, vector<64x256xbf16>, vector<64x256xf32> -> vector<64x256xf32>
    %161 = vector.broadcast %9 : vector<64x1xf32> to vector<64x256xf32>
    %162 = arith.addf %160, %161 : vector<64x256xf32>
    %cst_68 = arith.constant 0.000000e+00 : f32
    %163 = vector.broadcast %cst_68 : f32 to vector<64x256xf32>
    %164 = arith.maximumf %162, %163 : vector<64x256xf32>
    %165 = arith.truncf %164 : vector<64x256xf32> to vector<64x256xbf16>
    %cst_69 = arith.constant dense<0.000000e+00> : vector<64x256xf32>
    %166 = tpu.matmul %10, %165, %cst_69 {dimension_numbers = #tpu.dot_dimension_numbers<[1], [0], [0], [1], [0, 0, 1, 1], [], []>} : vector<64x64xbf16>, vector<64x256xbf16>, vector<64x256xf32> -> vector<64x256xf32>
    %167 = vector.broadcast %11 : vector<64x1xf32> to vector<64x256xf32>
    %168 = arith.addf %166, %167 : vector<64x256xf32>
    %cst_70 = arith.constant 0.000000e+00 : f32
    %169 = vector.broadcast %cst_70 : f32 to vector<64x256xf32>
    %170 = arith.maximumf %168, %169 : vector<64x256xf32>
    %171 = arith.truncf %170 : vector<64x256xf32> to vector<64x256xbf16>
    %cst_71 = arith.constant dense<0.000000e+00> : vector<64x256xf32>
    %172 = tpu.matmul %12, %171, %cst_71 {dimension_numbers = #tpu.dot_dimension_numbers<[1], [0], [0], [1], [0, 0, 1, 1], [], []>} : vector<64x64xbf16>, vector<64x256xbf16>, vector<64x256xf32> -> vector<64x256xf32>
    %173 = vector.broadcast %13 : vector<64x1xf32> to vector<64x256xf32>
    %174 = arith.addf %172, %173 : vector<64x256xf32>
    %cst_72 = arith.constant 0.000000e+00 : f32
    %175 = vector.broadcast %cst_72 : f32 to vector<64x256xf32>
    %176 = arith.maximumf %174, %175 : vector<64x256xf32>
    %177 = arith.truncf %176 : vector<64x256xf32> to vector<64x256xbf16>
    %cst_73 = arith.constant dense<0.000000e+00> : vector<4x256xf32>
    %178 = tpu.matmul %14, %177, %cst_73 {dimension_numbers = #tpu.dot_dimension_numbers<[1], [0], [0], [1], [0, 0, 1, 1], [], []>} : vector<4x64xbf16>, vector<64x256xbf16>, vector<4x256xf32> -> vector<4x256xf32>
    %179 = vector.broadcast %15 : vector<4x1xf32> to vector<4x256xf32>
    %180 = arith.addf %178, %179 : vector<4x256xf32>
    %cst_74 = arith.constant 0.000000e+00 : f32
    %181 = vector.broadcast %cst_74 : f32 to vector<4x256xf32>
    %182 = arith.maximumf %180, %181 : vector<4x256xf32>
    %c0_75 = arith.constant 0 : index
    %c512_76 = arith.constant 512 : index
    %183 = vector.load %arg16[%c0_75, %c512_76] : memref<4x2048xf32, #tpu.memory_space<vmem>>, vector<4x256xf32>
    tpu.vector_store %arg16[%c0_75, %c512_76], %182 {strides = array<i32>} : memref<4x2048xf32, #tpu.memory_space<vmem>>, vector<4x256xf32>,
    %c0_77 = arith.constant 0 : index
    %c768 = arith.constant 768 : index
    %184 = vector.load %arg1[%c0_77, %c768] : memref<3x2048xf32, #tpu.memory_space<vmem>>, vector<3x256xf32>
    %185 = vector.extract_strided_slice %184 {offsets = [0, 0], sizes = [1, 256], strides = [1, 1]} : vector<3x256xf32> to vector<1x256xf32>
    %186 = vector.broadcast %0 : vector<64x1xf32> to vector<64x256xf32>
    %187 = vector.broadcast %185 : vector<1x256xf32> to vector<64x256xf32>
    %188 = arith.mulf %186, %187 : vector<64x256xf32>
    %189 = vector.extract_strided_slice %184 {offsets = [1, 0], sizes = [1, 256], strides = [1, 1]} : vector<3x256xf32> to vector<1x256xf32>
    %190 = vector.broadcast %1 : vector<64x1xf32> to vector<64x256xf32>
    %191 = vector.broadcast %189 : vector<1x256xf32> to vector<64x256xf32>
    %192 = arith.mulf %190, %191 : vector<64x256xf32>
    %193 = arith.addf %188, %192 : vector<64x256xf32>
    %194 = vector.extract_strided_slice %184 {offsets = [2, 0], sizes = [1, 256], strides = [1, 1]} : vector<3x256xf32> to vector<1x256xf32>
    %195 = vector.broadcast %2 : vector<64x1xf32> to vector<64x256xf32>
    %196 = vector.broadcast %194 : vector<1x256xf32> to vector<64x256xf32>
    %197 = arith.mulf %195, %196 : vector<64x256xf32>
    %198 = arith.addf %193, %197 : vector<64x256xf32>
    %199 = vector.broadcast %3 : vector<64x1xf32> to vector<64x256xf32>
    %200 = arith.addf %198, %199 : vector<64x256xf32>
    %cst_78 = arith.constant 0.000000e+00 : f32
    %201 = vector.broadcast %cst_78 : f32 to vector<64x256xf32>
    %202 = arith.maximumf %200, %201 : vector<64x256xf32>
    %203 = arith.truncf %202 : vector<64x256xf32> to vector<64x256xbf16>
    %cst_79 = arith.constant dense<0.000000e+00> : vector<64x256xf32>
    %204 = tpu.matmul %4, %203, %cst_79 {dimension_numbers = #tpu.dot_dimension_numbers<[1], [0], [0], [1], [0, 0, 1, 1], [], []>} : vector<64x64xbf16>, vector<64x256xbf16>, vector<64x256xf32> -> vector<64x256xf32>
    %205 = vector.broadcast %5 : vector<64x1xf32> to vector<64x256xf32>
    %206 = arith.addf %204, %205 : vector<64x256xf32>
    %cst_80 = arith.constant 0.000000e+00 : f32
    %207 = vector.broadcast %cst_80 : f32 to vector<64x256xf32>
    %208 = arith.maximumf %206, %207 : vector<64x256xf32>
    %209 = arith.truncf %208 : vector<64x256xf32> to vector<64x256xbf16>
    %cst_81 = arith.constant dense<0.000000e+00> : vector<64x256xf32>
    %210 = tpu.matmul %6, %209, %cst_81 {dimension_numbers = #tpu.dot_dimension_numbers<[1], [0], [0], [1], [0, 0, 1, 1], [], []>} : vector<64x64xbf16>, vector<64x256xbf16>, vector<64x256xf32> -> vector<64x256xf32>
    %211 = vector.broadcast %7 : vector<64x1xf32> to vector<64x256xf32>
    %212 = arith.addf %210, %211 : vector<64x256xf32>
    %cst_82 = arith.constant 0.000000e+00 : f32
    %213 = vector.broadcast %cst_82 : f32 to vector<64x256xf32>
    %214 = arith.maximumf %212, %213 : vector<64x256xf32>
    %215 = arith.truncf %214 : vector<64x256xf32> to vector<64x256xbf16>
    %cst_83 = arith.constant dense<0.000000e+00> : vector<64x256xf32>
    %216 = tpu.matmul %8, %215, %cst_83 {dimension_numbers = #tpu.dot_dimension_numbers<[1], [0], [0], [1], [0, 0, 1, 1], [], []>} : vector<64x64xbf16>, vector<64x256xbf16>, vector<64x256xf32> -> vector<64x256xf32>
    %217 = vector.broadcast %9 : vector<64x1xf32> to vector<64x256xf32>
    %218 = arith.addf %216, %217 : vector<64x256xf32>
    %cst_84 = arith.constant 0.000000e+00 : f32
    %219 = vector.broadcast %cst_84 : f32 to vector<64x256xf32>
    %220 = arith.maximumf %218, %219 : vector<64x256xf32>
    %221 = arith.truncf %220 : vector<64x256xf32> to vector<64x256xbf16>
    %cst_85 = arith.constant dense<0.000000e+00> : vector<64x256xf32>
    %222 = tpu.matmul %10, %221, %cst_85 {dimension_numbers = #tpu.dot_dimension_numbers<[1], [0], [0], [1], [0, 0, 1, 1], [], []>} : vector<64x64xbf16>, vector<64x256xbf16>, vector<64x256xf32> -> vector<64x256xf32>
    %223 = vector.broadcast %11 : vector<64x1xf32> to vector<64x256xf32>
    %224 = arith.addf %222, %223 : vector<64x256xf32>
    %cst_86 = arith.constant 0.000000e+00 : f32
    %225 = vector.broadcast %cst_86 : f32 to vector<64x256xf32>
    %226 = arith.maximumf %224, %225 : vector<64x256xf32>
    %227 = arith.truncf %226 : vector<64x256xf32> to vector<64x256xbf16>
    %cst_87 = arith.constant dense<0.000000e+00> : vector<64x256xf32>
    %228 = tpu.matmul %12, %227, %cst_87 {dimension_numbers = #tpu.dot_dimension_numbers<[1], [0], [0], [1], [0, 0, 1, 1], [], []>} : vector<64x64xbf16>, vector<64x256xbf16>, vector<64x256xf32> -> vector<64x256xf32>
    %229 = vector.broadcast %13 : vector<64x1xf32> to vector<64x256xf32>
    %230 = arith.addf %228, %229 : vector<64x256xf32>
    %cst_88 = arith.constant 0.000000e+00 : f32
    %231 = vector.broadcast %cst_88 : f32 to vector<64x256xf32>
    %232 = arith.maximumf %230, %231 : vector<64x256xf32>
    %233 = arith.truncf %232 : vector<64x256xf32> to vector<64x256xbf16>
    %cst_89 = arith.constant dense<0.000000e+00> : vector<4x256xf32>
    %234 = tpu.matmul %14, %233, %cst_89 {dimension_numbers = #tpu.dot_dimension_numbers<[1], [0], [0], [1], [0, 0, 1, 1], [], []>} : vector<4x64xbf16>, vector<64x256xbf16>, vector<4x256xf32> -> vector<4x256xf32>
    %235 = vector.broadcast %15 : vector<4x1xf32> to vector<4x256xf32>
    %236 = arith.addf %234, %235 : vector<4x256xf32>
    %cst_90 = arith.constant 0.000000e+00 : f32
    %237 = vector.broadcast %cst_90 : f32 to vector<4x256xf32>
    %238 = arith.maximumf %236, %237 : vector<4x256xf32>
    %c0_91 = arith.constant 0 : index
    %c768_92 = arith.constant 768 : index
    %239 = vector.load %arg16[%c0_91, %c768_92] : memref<4x2048xf32, #tpu.memory_space<vmem>>, vector<4x256xf32>
    tpu.vector_store %arg16[%c0_91, %c768_92], %238 {strides = array<i32>} : memref<4x2048xf32, #tpu.memory_space<vmem>>, vector<4x256xf32>,
    %c0_93 = arith.constant 0 : index
    %c1024 = arith.constant 1024 : index
    %240 = vector.load %arg1[%c0_93, %c1024] : memref<3x2048xf32, #tpu.memory_space<vmem>>, vector<3x256xf32>
    %241 = vector.extract_strided_slice %240 {offsets = [0, 0], sizes = [1, 256], strides = [1, 1]} : vector<3x256xf32> to vector<1x256xf32>
    %242 = vector.broadcast %0 : vector<64x1xf32> to vector<64x256xf32>
    %243 = vector.broadcast %241 : vector<1x256xf32> to vector<64x256xf32>
    %244 = arith.mulf %242, %243 : vector<64x256xf32>
    %245 = vector.extract_strided_slice %240 {offsets = [1, 0], sizes = [1, 256], strides = [1, 1]} : vector<3x256xf32> to vector<1x256xf32>
    %246 = vector.broadcast %1 : vector<64x1xf32> to vector<64x256xf32>
    %247 = vector.broadcast %245 : vector<1x256xf32> to vector<64x256xf32>
    %248 = arith.mulf %246, %247 : vector<64x256xf32>
    %249 = arith.addf %244, %248 : vector<64x256xf32>
    %250 = vector.extract_strided_slice %240 {offsets = [2, 0], sizes = [1, 256], strides = [1, 1]} : vector<3x256xf32> to vector<1x256xf32>
    %251 = vector.broadcast %2 : vector<64x1xf32> to vector<64x256xf32>
    %252 = vector.broadcast %250 : vector<1x256xf32> to vector<64x256xf32>
    %253 = arith.mulf %251, %252 : vector<64x256xf32>
    %254 = arith.addf %249, %253 : vector<64x256xf32>
    %255 = vector.broadcast %3 : vector<64x1xf32> to vector<64x256xf32>
    %256 = arith.addf %254, %255 : vector<64x256xf32>
    %cst_94 = arith.constant 0.000000e+00 : f32
    %257 = vector.broadcast %cst_94 : f32 to vector<64x256xf32>
    %258 = arith.maximumf %256, %257 : vector<64x256xf32>
    %259 = arith.truncf %258 : vector<64x256xf32> to vector<64x256xbf16>
    %cst_95 = arith.constant dense<0.000000e+00> : vector<64x256xf32>
    %260 = tpu.matmul %4, %259, %cst_95 {dimension_numbers = #tpu.dot_dimension_numbers<[1], [0], [0], [1], [0, 0, 1, 1], [], []>} : vector<64x64xbf16>, vector<64x256xbf16>, vector<64x256xf32> -> vector<64x256xf32>
    %261 = vector.broadcast %5 : vector<64x1xf32> to vector<64x256xf32>
    %262 = arith.addf %260, %261 : vector<64x256xf32>
    %cst_96 = arith.constant 0.000000e+00 : f32
    %263 = vector.broadcast %cst_96 : f32 to vector<64x256xf32>
    %264 = arith.maximumf %262, %263 : vector<64x256xf32>
    %265 = arith.truncf %264 : vector<64x256xf32> to vector<64x256xbf16>
    %cst_97 = arith.constant dense<0.000000e+00> : vector<64x256xf32>
    %266 = tpu.matmul %6, %265, %cst_97 {dimension_numbers = #tpu.dot_dimension_numbers<[1], [0], [0], [1], [0, 0, 1, 1], [], []>} : vector<64x64xbf16>, vector<64x256xbf16>, vector<64x256xf32> -> vector<64x256xf32>
    %267 = vector.broadcast %7 : vector<64x1xf32> to vector<64x256xf32>
    %268 = arith.addf %266, %267 : vector<64x256xf32>
    %cst_98 = arith.constant 0.000000e+00 : f32
    %269 = vector.broadcast %cst_98 : f32 to vector<64x256xf32>
    %270 = arith.maximumf %268, %269 : vector<64x256xf32>
    %271 = arith.truncf %270 : vector<64x256xf32> to vector<64x256xbf16>
    %cst_99 = arith.constant dense<0.000000e+00> : vector<64x256xf32>
    %272 = tpu.matmul %8, %271, %cst_99 {dimension_numbers = #tpu.dot_dimension_numbers<[1], [0], [0], [1], [0, 0, 1, 1], [], []>} : vector<64x64xbf16>, vector<64x256xbf16>, vector<64x256xf32> -> vector<64x256xf32>
    %273 = vector.broadcast %9 : vector<64x1xf32> to vector<64x256xf32>
    %274 = arith.addf %272, %273 : vector<64x256xf32>
    %cst_100 = arith.constant 0.000000e+00 : f32
    %275 = vector.broadcast %cst_100 : f32 to vector<64x256xf32>
    %276 = arith.maximumf %274, %275 : vector<64x256xf32>
    %277 = arith.truncf %276 : vector<64x256xf32> to vector<64x256xbf16>
    %cst_101 = arith.constant dense<0.000000e+00> : vector<64x256xf32>
    %278 = tpu.matmul %10, %277, %cst_101 {dimension_numbers = #tpu.dot_dimension_numbers<[1], [0], [0], [1], [0, 0, 1, 1], [], []>} : vector<64x64xbf16>, vector<64x256xbf16>, vector<64x256xf32> -> vector<64x256xf32>
    %279 = vector.broadcast %11 : vector<64x1xf32> to vector<64x256xf32>
    %280 = arith.addf %278, %279 : vector<64x256xf32>
    %cst_102 = arith.constant 0.000000e+00 : f32
    %281 = vector.broadcast %cst_102 : f32 to vector<64x256xf32>
    %282 = arith.maximumf %280, %281 : vector<64x256xf32>
    %283 = arith.truncf %282 : vector<64x256xf32> to vector<64x256xbf16>
    %cst_103 = arith.constant dense<0.000000e+00> : vector<64x256xf32>
    %284 = tpu.matmul %12, %283, %cst_103 {dimension_numbers = #tpu.dot_dimension_numbers<[1], [0], [0], [1], [0, 0, 1, 1], [], []>} : vector<64x64xbf16>, vector<64x256xbf16>, vector<64x256xf32> -> vector<64x256xf32>
    %285 = vector.broadcast %13 : vector<64x1xf32> to vector<64x256xf32>
    %286 = arith.addf %284, %285 : vector<64x256xf32>
    %cst_104 = arith.constant 0.000000e+00 : f32
    %287 = vector.broadcast %cst_104 : f32 to vector<64x256xf32>
    %288 = arith.maximumf %286, %287 : vector<64x256xf32>
    %289 = arith.truncf %288 : vector<64x256xf32> to vector<64x256xbf16>
    %cst_105 = arith.constant dense<0.000000e+00> : vector<4x256xf32>
    %290 = tpu.matmul %14, %289, %cst_105 {dimension_numbers = #tpu.dot_dimension_numbers<[1], [0], [0], [1], [0, 0, 1, 1], [], []>} : vector<4x64xbf16>, vector<64x256xbf16>, vector<4x256xf32> -> vector<4x256xf32>
    %291 = vector.broadcast %15 : vector<4x1xf32> to vector<4x256xf32>
    %292 = arith.addf %290, %291 : vector<4x256xf32>
    %cst_106 = arith.constant 0.000000e+00 : f32
    %293 = vector.broadcast %cst_106 : f32 to vector<4x256xf32>
    %294 = arith.maximumf %292, %293 : vector<4x256xf32>
    %c0_107 = arith.constant 0 : index
    %c1024_108 = arith.constant 1024 : index
    %295 = vector.load %arg16[%c0_107, %c1024_108] : memref<4x2048xf32, #tpu.memory_space<vmem>>, vector<4x256xf32>
    tpu.vector_store %arg16[%c0_107, %c1024_108], %294 {strides = array<i32>} : memref<4x2048xf32, #tpu.memory_space<vmem>>, vector<4x256xf32>,
    %c0_109 = arith.constant 0 : index
    %c1280 = arith.constant 1280 : index
    %296 = vector.load %arg1[%c0_109, %c1280] : memref<3x2048xf32, #tpu.memory_space<vmem>>, vector<3x256xf32>
    %297 = vector.extract_strided_slice %296 {offsets = [0, 0], sizes = [1, 256], strides = [1, 1]} : vector<3x256xf32> to vector<1x256xf32>
    %298 = vector.broadcast %0 : vector<64x1xf32> to vector<64x256xf32>
    %299 = vector.broadcast %297 : vector<1x256xf32> to vector<64x256xf32>
    %300 = arith.mulf %298, %299 : vector<64x256xf32>
    %301 = vector.extract_strided_slice %296 {offsets = [1, 0], sizes = [1, 256], strides = [1, 1]} : vector<3x256xf32> to vector<1x256xf32>
    %302 = vector.broadcast %1 : vector<64x1xf32> to vector<64x256xf32>
    %303 = vector.broadcast %301 : vector<1x256xf32> to vector<64x256xf32>
    %304 = arith.mulf %302, %303 : vector<64x256xf32>
    %305 = arith.addf %300, %304 : vector<64x256xf32>
    %306 = vector.extract_strided_slice %296 {offsets = [2, 0], sizes = [1, 256], strides = [1, 1]} : vector<3x256xf32> to vector<1x256xf32>
    %307 = vector.broadcast %2 : vector<64x1xf32> to vector<64x256xf32>
    %308 = vector.broadcast %306 : vector<1x256xf32> to vector<64x256xf32>
    %309 = arith.mulf %307, %308 : vector<64x256xf32>
    %310 = arith.addf %305, %309 : vector<64x256xf32>
    %311 = vector.broadcast %3 : vector<64x1xf32> to vector<64x256xf32>
    %312 = arith.addf %310, %311 : vector<64x256xf32>
    %cst_110 = arith.constant 0.000000e+00 : f32
    %313 = vector.broadcast %cst_110 : f32 to vector<64x256xf32>
    %314 = arith.maximumf %312, %313 : vector<64x256xf32>
    %315 = arith.truncf %314 : vector<64x256xf32> to vector<64x256xbf16>
    %cst_111 = arith.constant dense<0.000000e+00> : vector<64x256xf32>
    %316 = tpu.matmul %4, %315, %cst_111 {dimension_numbers = #tpu.dot_dimension_numbers<[1], [0], [0], [1], [0, 0, 1, 1], [], []>} : vector<64x64xbf16>, vector<64x256xbf16>, vector<64x256xf32> -> vector<64x256xf32>
    %317 = vector.broadcast %5 : vector<64x1xf32> to vector<64x256xf32>
    %318 = arith.addf %316, %317 : vector<64x256xf32>
    %cst_112 = arith.constant 0.000000e+00 : f32
    %319 = vector.broadcast %cst_112 : f32 to vector<64x256xf32>
    %320 = arith.maximumf %318, %319 : vector<64x256xf32>
    %321 = arith.truncf %320 : vector<64x256xf32> to vector<64x256xbf16>
    %cst_113 = arith.constant dense<0.000000e+00> : vector<64x256xf32>
    %322 = tpu.matmul %6, %321, %cst_113 {dimension_numbers = #tpu.dot_dimension_numbers<[1], [0], [0], [1], [0, 0, 1, 1], [], []>} : vector<64x64xbf16>, vector<64x256xbf16>, vector<64x256xf32> -> vector<64x256xf32>
    %323 = vector.broadcast %7 : vector<64x1xf32> to vector<64x256xf32>
    %324 = arith.addf %322, %323 : vector<64x256xf32>
    %cst_114 = arith.constant 0.000000e+00 : f32
    %325 = vector.broadcast %cst_114 : f32 to vector<64x256xf32>
    %326 = arith.maximumf %324, %325 : vector<64x256xf32>
    %327 = arith.truncf %326 : vector<64x256xf32> to vector<64x256xbf16>
    %cst_115 = arith.constant dense<0.000000e+00> : vector<64x256xf32>
    %328 = tpu.matmul %8, %327, %cst_115 {dimension_numbers = #tpu.dot_dimension_numbers<[1], [0], [0], [1], [0, 0, 1, 1], [], []>} : vector<64x64xbf16>, vector<64x256xbf16>, vector<64x256xf32> -> vector<64x256xf32>
    %329 = vector.broadcast %9 : vector<64x1xf32> to vector<64x256xf32>
    %330 = arith.addf %328, %329 : vector<64x256xf32>
    %cst_116 = arith.constant 0.000000e+00 : f32
    %331 = vector.broadcast %cst_116 : f32 to vector<64x256xf32>
    %332 = arith.maximumf %330, %331 : vector<64x256xf32>
    %333 = arith.truncf %332 : vector<64x256xf32> to vector<64x256xbf16>
    %cst_117 = arith.constant dense<0.000000e+00> : vector<64x256xf32>
    %334 = tpu.matmul %10, %333, %cst_117 {dimension_numbers = #tpu.dot_dimension_numbers<[1], [0], [0], [1], [0, 0, 1, 1], [], []>} : vector<64x64xbf16>, vector<64x256xbf16>, vector<64x256xf32> -> vector<64x256xf32>
    %335 = vector.broadcast %11 : vector<64x1xf32> to vector<64x256xf32>
    %336 = arith.addf %334, %335 : vector<64x256xf32>
    %cst_118 = arith.constant 0.000000e+00 : f32
    %337 = vector.broadcast %cst_118 : f32 to vector<64x256xf32>
    %338 = arith.maximumf %336, %337 : vector<64x256xf32>
    %339 = arith.truncf %338 : vector<64x256xf32> to vector<64x256xbf16>
    %cst_119 = arith.constant dense<0.000000e+00> : vector<64x256xf32>
    %340 = tpu.matmul %12, %339, %cst_119 {dimension_numbers = #tpu.dot_dimension_numbers<[1], [0], [0], [1], [0, 0, 1, 1], [], []>} : vector<64x64xbf16>, vector<64x256xbf16>, vector<64x256xf32> -> vector<64x256xf32>
    %341 = vector.broadcast %13 : vector<64x1xf32> to vector<64x256xf32>
    %342 = arith.addf %340, %341 : vector<64x256xf32>
    %cst_120 = arith.constant 0.000000e+00 : f32
    %343 = vector.broadcast %cst_120 : f32 to vector<64x256xf32>
    %344 = arith.maximumf %342, %343 : vector<64x256xf32>
    %345 = arith.truncf %344 : vector<64x256xf32> to vector<64x256xbf16>
    %cst_121 = arith.constant dense<0.000000e+00> : vector<4x256xf32>
    %346 = tpu.matmul %14, %345, %cst_121 {dimension_numbers = #tpu.dot_dimension_numbers<[1], [0], [0], [1], [0, 0, 1, 1], [], []>} : vector<4x64xbf16>, vector<64x256xbf16>, vector<4x256xf32> -> vector<4x256xf32>
    %347 = vector.broadcast %15 : vector<4x1xf32> to vector<4x256xf32>
    %348 = arith.addf %346, %347 : vector<4x256xf32>
    %cst_122 = arith.constant 0.000000e+00 : f32
    %349 = vector.broadcast %cst_122 : f32 to vector<4x256xf32>
    %350 = arith.maximumf %348, %349 : vector<4x256xf32>
    %c0_123 = arith.constant 0 : index
    %c1280_124 = arith.constant 1280 : index
    %351 = vector.load %arg16[%c0_123, %c1280_124] : memref<4x2048xf32, #tpu.memory_space<vmem>>, vector<4x256xf32>
    tpu.vector_store %arg16[%c0_123, %c1280_124], %350 {strides = array<i32>} : memref<4x2048xf32, #tpu.memory_space<vmem>>, vector<4x256xf32>,
    %c0_125 = arith.constant 0 : index
    %c1536 = arith.constant 1536 : index
    %352 = vector.load %arg1[%c0_125, %c1536] : memref<3x2048xf32, #tpu.memory_space<vmem>>, vector<3x256xf32>
    %353 = vector.extract_strided_slice %352 {offsets = [0, 0], sizes = [1, 256], strides = [1, 1]} : vector<3x256xf32> to vector<1x256xf32>
    %354 = vector.broadcast %0 : vector<64x1xf32> to vector<64x256xf32>
    %355 = vector.broadcast %353 : vector<1x256xf32> to vector<64x256xf32>
    %356 = arith.mulf %354, %355 : vector<64x256xf32>
    %357 = vector.extract_strided_slice %352 {offsets = [1, 0], sizes = [1, 256], strides = [1, 1]} : vector<3x256xf32> to vector<1x256xf32>
    %358 = vector.broadcast %1 : vector<64x1xf32> to vector<64x256xf32>
    %359 = vector.broadcast %357 : vector<1x256xf32> to vector<64x256xf32>
    %360 = arith.mulf %358, %359 : vector<64x256xf32>
    %361 = arith.addf %356, %360 : vector<64x256xf32>
    %362 = vector.extract_strided_slice %352 {offsets = [2, 0], sizes = [1, 256], strides = [1, 1]} : vector<3x256xf32> to vector<1x256xf32>
    %363 = vector.broadcast %2 : vector<64x1xf32> to vector<64x256xf32>
    %364 = vector.broadcast %362 : vector<1x256xf32> to vector<64x256xf32>
    %365 = arith.mulf %363, %364 : vector<64x256xf32>
    %366 = arith.addf %361, %365 : vector<64x256xf32>
    %367 = vector.broadcast %3 : vector<64x1xf32> to vector<64x256xf32>
    %368 = arith.addf %366, %367 : vector<64x256xf32>
    %cst_126 = arith.constant 0.000000e+00 : f32
    %369 = vector.broadcast %cst_126 : f32 to vector<64x256xf32>
    %370 = arith.maximumf %368, %369 : vector<64x256xf32>
    %371 = arith.truncf %370 : vector<64x256xf32> to vector<64x256xbf16>
    %cst_127 = arith.constant dense<0.000000e+00> : vector<64x256xf32>
    %372 = tpu.matmul %4, %371, %cst_127 {dimension_numbers = #tpu.dot_dimension_numbers<[1], [0], [0], [1], [0, 0, 1, 1], [], []>} : vector<64x64xbf16>, vector<64x256xbf16>, vector<64x256xf32> -> vector<64x256xf32>
    %373 = vector.broadcast %5 : vector<64x1xf32> to vector<64x256xf32>
    %374 = arith.addf %372, %373 : vector<64x256xf32>
    %cst_128 = arith.constant 0.000000e+00 : f32
    %375 = vector.broadcast %cst_128 : f32 to vector<64x256xf32>
    %376 = arith.maximumf %374, %375 : vector<64x256xf32>
    %377 = arith.truncf %376 : vector<64x256xf32> to vector<64x256xbf16>
    %cst_129 = arith.constant dense<0.000000e+00> : vector<64x256xf32>
    %378 = tpu.matmul %6, %377, %cst_129 {dimension_numbers = #tpu.dot_dimension_numbers<[1], [0], [0], [1], [0, 0, 1, 1], [], []>} : vector<64x64xbf16>, vector<64x256xbf16>, vector<64x256xf32> -> vector<64x256xf32>
    %379 = vector.broadcast %7 : vector<64x1xf32> to vector<64x256xf32>
    %380 = arith.addf %378, %379 : vector<64x256xf32>
    %cst_130 = arith.constant 0.000000e+00 : f32
    %381 = vector.broadcast %cst_130 : f32 to vector<64x256xf32>
    %382 = arith.maximumf %380, %381 : vector<64x256xf32>
    %383 = arith.truncf %382 : vector<64x256xf32> to vector<64x256xbf16>
    %cst_131 = arith.constant dense<0.000000e+00> : vector<64x256xf32>
    %384 = tpu.matmul %8, %383, %cst_131 {dimension_numbers = #tpu.dot_dimension_numbers<[1], [0], [0], [1], [0, 0, 1, 1], [], []>} : vector<64x64xbf16>, vector<64x256xbf16>, vector<64x256xf32> -> vector<64x256xf32>
    %385 = vector.broadcast %9 : vector<64x1xf32> to vector<64x256xf32>
    %386 = arith.addf %384, %385 : vector<64x256xf32>
    %cst_132 = arith.constant 0.000000e+00 : f32
    %387 = vector.broadcast %cst_132 : f32 to vector<64x256xf32>
    %388 = arith.maximumf %386, %387 : vector<64x256xf32>
    %389 = arith.truncf %388 : vector<64x256xf32> to vector<64x256xbf16>
    %cst_133 = arith.constant dense<0.000000e+00> : vector<64x256xf32>
    %390 = tpu.matmul %10, %389, %cst_133 {dimension_numbers = #tpu.dot_dimension_numbers<[1], [0], [0], [1], [0, 0, 1, 1], [], []>} : vector<64x64xbf16>, vector<64x256xbf16>, vector<64x256xf32> -> vector<64x256xf32>
    %391 = vector.broadcast %11 : vector<64x1xf32> to vector<64x256xf32>
    %392 = arith.addf %390, %391 : vector<64x256xf32>
    %cst_134 = arith.constant 0.000000e+00 : f32
    %393 = vector.broadcast %cst_134 : f32 to vector<64x256xf32>
    %394 = arith.maximumf %392, %393 : vector<64x256xf32>
    %395 = arith.truncf %394 : vector<64x256xf32> to vector<64x256xbf16>
    %cst_135 = arith.constant dense<0.000000e+00> : vector<64x256xf32>
    %396 = tpu.matmul %12, %395, %cst_135 {dimension_numbers = #tpu.dot_dimension_numbers<[1], [0], [0], [1], [0, 0, 1, 1], [], []>} : vector<64x64xbf16>, vector<64x256xbf16>, vector<64x256xf32> -> vector<64x256xf32>
    %397 = vector.broadcast %13 : vector<64x1xf32> to vector<64x256xf32>
    %398 = arith.addf %396, %397 : vector<64x256xf32>
    %cst_136 = arith.constant 0.000000e+00 : f32
    %399 = vector.broadcast %cst_136 : f32 to vector<64x256xf32>
    %400 = arith.maximumf %398, %399 : vector<64x256xf32>
    %401 = arith.truncf %400 : vector<64x256xf32> to vector<64x256xbf16>
    %cst_137 = arith.constant dense<0.000000e+00> : vector<4x256xf32>
    %402 = tpu.matmul %14, %401, %cst_137 {dimension_numbers = #tpu.dot_dimension_numbers<[1], [0], [0], [1], [0, 0, 1, 1], [], []>} : vector<4x64xbf16>, vector<64x256xbf16>, vector<4x256xf32> -> vector<4x256xf32>
    %403 = vector.broadcast %15 : vector<4x1xf32> to vector<4x256xf32>
    %404 = arith.addf %402, %403 : vector<4x256xf32>
    %cst_138 = arith.constant 0.000000e+00 : f32
    %405 = vector.broadcast %cst_138 : f32 to vector<4x256xf32>
    %406 = arith.maximumf %404, %405 : vector<4x256xf32>
    %c0_139 = arith.constant 0 : index
    %c1536_140 = arith.constant 1536 : index
    %407 = vector.load %arg16[%c0_139, %c1536_140] : memref<4x2048xf32, #tpu.memory_space<vmem>>, vector<4x256xf32>
    tpu.vector_store %arg16[%c0_139, %c1536_140], %406 {strides = array<i32>} : memref<4x2048xf32, #tpu.memory_space<vmem>>, vector<4x256xf32>,
    %c0_141 = arith.constant 0 : index
    %c1792 = arith.constant 1792 : index
    %408 = vector.load %arg1[%c0_141, %c1792] : memref<3x2048xf32, #tpu.memory_space<vmem>>, vector<3x256xf32>
    %409 = vector.extract_strided_slice %408 {offsets = [0, 0], sizes = [1, 256], strides = [1, 1]} : vector<3x256xf32> to vector<1x256xf32>
    %410 = vector.broadcast %0 : vector<64x1xf32> to vector<64x256xf32>
    %411 = vector.broadcast %409 : vector<1x256xf32> to vector<64x256xf32>
    %412 = arith.mulf %410, %411 : vector<64x256xf32>
    %413 = vector.extract_strided_slice %408 {offsets = [1, 0], sizes = [1, 256], strides = [1, 1]} : vector<3x256xf32> to vector<1x256xf32>
    %414 = vector.broadcast %1 : vector<64x1xf32> to vector<64x256xf32>
    %415 = vector.broadcast %413 : vector<1x256xf32> to vector<64x256xf32>
    %416 = arith.mulf %414, %415 : vector<64x256xf32>
    %417 = arith.addf %412, %416 : vector<64x256xf32>
    %418 = vector.extract_strided_slice %408 {offsets = [2, 0], sizes = [1, 256], strides = [1, 1]} : vector<3x256xf32> to vector<1x256xf32>
    %419 = vector.broadcast %2 : vector<64x1xf32> to vector<64x256xf32>
    %420 = vector.broadcast %418 : vector<1x256xf32> to vector<64x256xf32>
    %421 = arith.mulf %419, %420 : vector<64x256xf32>
    %422 = arith.addf %417, %421 : vector<64x256xf32>
    %423 = vector.broadcast %3 : vector<64x1xf32> to vector<64x256xf32>
    %424 = arith.addf %422, %423 : vector<64x256xf32>
    %cst_142 = arith.constant 0.000000e+00 : f32
    %425 = vector.broadcast %cst_142 : f32 to vector<64x256xf32>
    %426 = arith.maximumf %424, %425 : vector<64x256xf32>
    %427 = arith.truncf %426 : vector<64x256xf32> to vector<64x256xbf16>
    %cst_143 = arith.constant dense<0.000000e+00> : vector<64x256xf32>
    %428 = tpu.matmul %4, %427, %cst_143 {dimension_numbers = #tpu.dot_dimension_numbers<[1], [0], [0], [1], [0, 0, 1, 1], [], []>} : vector<64x64xbf16>, vector<64x256xbf16>, vector<64x256xf32> -> vector<64x256xf32>
    %429 = vector.broadcast %5 : vector<64x1xf32> to vector<64x256xf32>
    %430 = arith.addf %428, %429 : vector<64x256xf32>
    %cst_144 = arith.constant 0.000000e+00 : f32
    %431 = vector.broadcast %cst_144 : f32 to vector<64x256xf32>
    %432 = arith.maximumf %430, %431 : vector<64x256xf32>
    %433 = arith.truncf %432 : vector<64x256xf32> to vector<64x256xbf16>
    %cst_145 = arith.constant dense<0.000000e+00> : vector<64x256xf32>
    %434 = tpu.matmul %6, %433, %cst_145 {dimension_numbers = #tpu.dot_dimension_numbers<[1], [0], [0], [1], [0, 0, 1, 1], [], []>} : vector<64x64xbf16>, vector<64x256xbf16>, vector<64x256xf32> -> vector<64x256xf32>
    %435 = vector.broadcast %7 : vector<64x1xf32> to vector<64x256xf32>
    %436 = arith.addf %434, %435 : vector<64x256xf32>
    %cst_146 = arith.constant 0.000000e+00 : f32
    %437 = vector.broadcast %cst_146 : f32 to vector<64x256xf32>
    %438 = arith.maximumf %436, %437 : vector<64x256xf32>
    %439 = arith.truncf %438 : vector<64x256xf32> to vector<64x256xbf16>
    %cst_147 = arith.constant dense<0.000000e+00> : vector<64x256xf32>
    %440 = tpu.matmul %8, %439, %cst_147 {dimension_numbers = #tpu.dot_dimension_numbers<[1], [0], [0], [1], [0, 0, 1, 1], [], []>} : vector<64x64xbf16>, vector<64x256xbf16>, vector<64x256xf32> -> vector<64x256xf32>
    %441 = vector.broadcast %9 : vector<64x1xf32> to vector<64x256xf32>
    %442 = arith.addf %440, %441 : vector<64x256xf32>
    %cst_148 = arith.constant 0.000000e+00 : f32
    %443 = vector.broadcast %cst_148 : f32 to vector<64x256xf32>
    %444 = arith.maximumf %442, %443 : vector<64x256xf32>
    %445 = arith.truncf %444 : vector<64x256xf32> to vector<64x256xbf16>
    %cst_149 = arith.constant dense<0.000000e+00> : vector<64x256xf32>
    %446 = tpu.matmul %10, %445, %cst_149 {dimension_numbers = #tpu.dot_dimension_numbers<[1], [0], [0], [1], [0, 0, 1, 1], [], []>} : vector<64x64xbf16>, vector<64x256xbf16>, vector<64x256xf32> -> vector<64x256xf32>
    %447 = vector.broadcast %11 : vector<64x1xf32> to vector<64x256xf32>
    %448 = arith.addf %446, %447 : vector<64x256xf32>
    %cst_150 = arith.constant 0.000000e+00 : f32
    %449 = vector.broadcast %cst_150 : f32 to vector<64x256xf32>
    %450 = arith.maximumf %448, %449 : vector<64x256xf32>
    %451 = arith.truncf %450 : vector<64x256xf32> to vector<64x256xbf16>
    %cst_151 = arith.constant dense<0.000000e+00> : vector<64x256xf32>
    %452 = tpu.matmul %12, %451, %cst_151 {dimension_numbers = #tpu.dot_dimension_numbers<[1], [0], [0], [1], [0, 0, 1, 1], [], []>} : vector<64x64xbf16>, vector<64x256xbf16>, vector<64x256xf32> -> vector<64x256xf32>
    %453 = vector.broadcast %13 : vector<64x1xf32> to vector<64x256xf32>
    %454 = arith.addf %452, %453 : vector<64x256xf32>
    %cst_152 = arith.constant 0.000000e+00 : f32
    %455 = vector.broadcast %cst_152 : f32 to vector<64x256xf32>
    %456 = arith.maximumf %454, %455 : vector<64x256xf32>
    %457 = arith.truncf %456 : vector<64x256xf32> to vector<64x256xbf16>
    %cst_153 = arith.constant dense<0.000000e+00> : vector<4x256xf32>
    %458 = tpu.matmul %14, %457, %cst_153 {dimension_numbers = #tpu.dot_dimension_numbers<[1], [0], [0], [1], [0, 0, 1, 1], [], []>} : vector<4x64xbf16>, vector<64x256xbf16>, vector<4x256xf32> -> vector<4x256xf32>
    %459 = vector.broadcast %15 : vector<4x1xf32> to vector<4x256xf32>
    %460 = arith.addf %458, %459 : vector<4x256xf32>
    %cst_154 = arith.constant 0.000000e+00 : f32
    %461 = vector.broadcast %cst_154 : f32 to vector<4x256xf32>
    %462 = arith.maximumf %460, %461 : vector<4x256xf32>
    %c0_155 = arith.constant 0 : index
    %c1792_156 = arith.constant 1792 : index
    %463 = vector.load %arg16[%c0_155, %c1792_156] : memref<4x2048xf32, #tpu.memory_space<vmem>>, vector<4x256xf32>
    tpu.vector_store %arg16[%c0_155, %c1792_156], %462 {strides = array<i32>} : memref<4x2048xf32, #tpu.memory_space<vmem>>, vector<4x256xf32>,
    return
  }
  func.func @transform_0(%arg0: i32) -> (i32, i32) {
    %c0_i32 = arith.constant 0 : i32
    %c0_i32_0 = arith.constant 0 : i32
    return %c0_i32, %arg0 : i32, i32
  }
  func.func @transform_1(%arg0: i32) -> (i32, i32) {
    %c0_i32 = arith.constant 0 : i32
    %c0_i32_0 = arith.constant 0 : i32
    %c0_i32_1 = arith.constant 0 : i32
    return %c0_i32, %c0_i32_0 : i32, i32
  }
  func.func @transform_2(%arg0: i32) -> (i32, i32) {
    %c0_i32 = arith.constant 0 : i32
    %c0_i32_0 = arith.constant 0 : i32
    %c0_i32_1 = arith.constant 0 : i32
    return %c0_i32, %c0_i32_0 : i32, i32
  }
  func.func @transform_3(%arg0: i32) -> (i32, i32) {
    %c0_i32 = arith.constant 0 : i32
    %c0_i32_0 = arith.constant 0 : i32
    %c0_i32_1 = arith.constant 0 : i32
    return %c0_i32, %c0_i32_0 : i32, i32
  }
  func.func @transform_4(%arg0: i32) -> (i32, i32) {
    %c0_i32 = arith.constant 0 : i32
    %c0_i32_0 = arith.constant 0 : i32
    %c0_i32_1 = arith.constant 0 : i32
    return %c0_i32, %c0_i32_0 : i32, i32
  }
  func.func @transform_5(%arg0: i32) -> (i32, i32) {
    %c0_i32 = arith.constant 0 : i32
    %c0_i32_0 = arith.constant 0 : i32
    %c0_i32_1 = arith.constant 0 : i32
    return %c0_i32, %c0_i32_0 : i32, i32
  }
  func.func @transform_6(%arg0: i32) -> (i32, i32) {
    %c0_i32 = arith.constant 0 : i32
    %c0_i32_0 = arith.constant 0 : i32
    %c0_i32_1 = arith.constant 0 : i32
    return %c0_i32, %c0_i32_0 : i32, i32
  }
  func.func @transform_7(%arg0: i32) -> (i32, i32) {
    %c0_i32 = arith.constant 0 : i32
    %c0_i32_0 = arith.constant 0 : i32
    %c0_i32_1 = arith.constant 0 : i32
    return %c0_i32, %c0_i32_0 : i32, i32
  }
  func.func @transform_8(%arg0: i32) -> (i32, i32) {
    %c0_i32 = arith.constant 0 : i32
    %c0_i32_0 = arith.constant 0 : i32
    %c0_i32_1 = arith.constant 0 : i32
    return %c0_i32, %c0_i32_0 : i32, i32
  }
  func.func @transform_9(%arg0: i32) -> (i32, i32) {
    %c0_i32 = arith.constant 0 : i32
    %c0_i32_0 = arith.constant 0 : i32
    %c0_i32_1 = arith.constant 0 : i32
    return %c0_i32, %c0_i32_0 : i32, i32
  }
  func.func @transform_10(%arg0: i32) -> (i32, i32) {
    %c0_i32 = arith.constant 0 : i32
    %c0_i32_0 = arith.constant 0 : i32
    %c0_i32_1 = arith.constant 0 : i32
    return %c0_i32, %c0_i32_0 : i32, i32
  }
  func.func @transform_11(%arg0: i32) -> (i32, i32) {
    %c0_i32 = arith.constant 0 : i32
    %c0_i32_0 = arith.constant 0 : i32
    %c0_i32_1 = arith.constant 0 : i32
    return %c0_i32, %c0_i32_0 : i32, i32
  }
  func.func @transform_12(%arg0: i32) -> (i32, i32) {
    %c0_i32 = arith.constant 0 : i32
    %c0_i32_0 = arith.constant 0 : i32
    %c0_i32_1 = arith.constant 0 : i32
    return %c0_i32, %c0_i32_0 : i32, i32
  }
  func.func @transform_13(%arg0: i32) -> (i32, i32) {
    %c0_i32 = arith.constant 0 : i32
    %c0_i32_0 = arith.constant 0 : i32
    %c0_i32_1 = arith.constant 0 : i32
    return %c0_i32, %c0_i32_0 : i32, i32
  }
  func.func @transform_14(%arg0: i32) -> (i32, i32) {
    %c0_i32 = arith.constant 0 : i32
    %c0_i32_0 = arith.constant 0 : i32
    %c0_i32_1 = arith.constant 0 : i32
    return %c0_i32, %c0_i32_0 : i32, i32
  }
  func.func @transform_15(%arg0: i32) -> (i32, i32) {
    %c0_i32 = arith.constant 0 : i32
    %c0_i32_0 = arith.constant 0 : i32
    return %c0_i32, %arg0 : i32, i32
  }
}

</mosaic_0001>

<bundles_post_ra>
// kernel: radiance_field_forward.1
= control target key start
LH: loop header
LB: loop body
LE: loop exit
PB: predicated region body
PF: predicated region fallthrough
CT: control target
= control target key end

     0   :  { %s7320_s18 = smov 0   ;;  %s10674_s0 = inlined_call_operand.vmem [shape: f32[3,4096], index: 0, kind: input, shape index: {}]   ;;  %s10675_s1 = inlined_call_operand.vmem [shape: f32[64,3], index: 1, kind: input, shape index: {}]   ;;  %s10676_s2 = inlined_call_operand.vmem [shape: f32[64,1], index: 2, kind: input, shape index: {}]   ;;  %s10677_s3 = inlined_call_operand.vmem [shape: bf16[64,64], index: 3, kind: input, shape index: {}]   ;;  %s10678_s4 = inlined_call_operand.vmem [shape: f32[64,1], index: 4, kind: input, shape index: {}]   ;;  %s10679_s5 = inlined_call_operand.vmem [shape: bf16[64,64], index: 5, kind: input, shape index: {}]   ;;  %s10680_s6 = inlined_call_operand.vmem [shape: f32[64,1], index: 6, kind: input, shape index: {}]   ;;  %s10681_s7 = inlined_call_operand.vmem [shape: bf16[64,64], index: 7, kind: input, shape index: {}]   ;;  %s10682_s8 = inlined_call_operand.vmem [shape: f32[64,1], index: 8, kind: input, shape index: {}]   ;;  %s10683_s9 = inlined_call_operand.vmem [shape: bf16[64,64], index: 9, kind: input, shape index: {}]   ;;  %s10684_s10 = inlined_call_operand.vmem [shape: f32[64,1], index: 10, kind: input, shape index: {}]   ;;  %s10685_s11 = inlined_call_operand.vmem [shape: bf16[64,64], index: 11, kind: input, shape index: {}]   ;;  %s10686_s12 = inlined_call_operand.vmem [shape: f32[64,1], index: 12, kind: input, shape index: {}]   ;;  %s10687_s13 = inlined_call_operand.vmem [shape: bf16[4,64], index: 13, kind: input, shape index: {}]   ;;  %s10688_s14 = inlined_call_operand.vmem [shape: f32[4,1], index: 14, kind: input, shape index: {}]   ;;  %s10689_s15 = inlined_call_operand.vmem [shape: f32[4,4096], index: 15, kind: output, shape index: {}]  }
   0x1 LB: > { %s6838_s19 = sadd.s32 4294967295, %s7235_s18   ;;  %p6842_p0 = scmp.ge.s32.totalorder %s7235_s18, 1  ;;  %s7235_s18 = sphi %s7320_s18, %s25_s18  }
   0x2   : > { %p438_p1 = scmp.lt.s32.totalorder %s7235_s18, 3 }
   0x4   : > { %p439_p2 = pnand %p6842_p0, %p438_p1 }
   0x6   : > { %442 = sbr.rel (%p439_p2) target bundleno = 10348 (0x286c), region = 80 }
   0xb   : > { %v505_v0 = vld [vmem:[%s10675_s1 + $0x30] sm:$0xff]  ;;  %v7237_v1 = vmov 2   ;;  %v7238_v2 = vmov 1   ;;  %v506_v3 = vld [vmem:[%s10675_s1 + $0x38] sm:$0xff]  ;;  %v503_v4 = vld [vmem:[%s10675_s1 + $0x20] sm:$0xff]  ;;  %v10690_v5 = vmov 0   ;;  %v639_v54 = vlaneseq }
   0xc   : > { %7049 = vset.pattern.permute.xlu0 %v7237_v1  ;;  %7048 = vset.pattern.permute.xlu1 %v7238_v2  ;;  %v502_v6 = vld [vmem:[%s10675_s1 + $0x18] sm:$0xff]  ;;  %v501_v7 = vld [vmem:[%s10675_s1 + $0x10] sm:$0xff]  ;;  %v500_v8 = vld [vmem:[%s10675_s1 + $0x8] sm:$0xff]  ;;  %s6843_s30 = sshll.u32 %s6838_s19, 4  ;;  %vm977_vm0 = vcmask 523264  }
   0xd   : > { %780 = vperm.xlu0 %7049, %v505_v0   ;;  %698 = vperm.xlu1 %7048, %v505_v0   ;;  %v504_v9 = vld [vmem:[%s10675_s1 + $0x28] sm:$0xff]  ;;  %v513_v10 = vld [vmem:[%s10676_s2 + $0x30] sm:$0xff]  ;;  %v514_v11 = vld [vmem:[%s10676_s2 + $0x38] sm:$0xff]  ;;  %p487_p3 = scmp.lt.s32.totalorder %s6843_s30, 31  ;;  %v640_v58 = vshrl.u32 %v639_v54, 7 }
   0xe   : > { %1022 = vmatprep.mubr.bf16.mxu0 %v10690_v5  ;;  %1191 = vmatprep.mubr.bf16.mxu1 %v10690_v5  ;;  %v499_v12 = vld [vmem:[%s10675_s1] sm:$0xff]  ;;  %v509_v13 = vld [vmem:[%s10676_s2 + $0x10] sm:$0xff]  ;;  %v508_v14 = vld [vmem:[%s10676_s2 + $0x8] sm:$0xff] }
   0xf   : > { %v530_v15 = vld [vmem:[%s10678_s4 + $0x38] sm:$0xff]  ;;  %v528_v16 = vld [vmem:[%s10678_s4 + $0x28] sm:$0xff]  ;;  %v511_v17 = vld [vmem:[%s10676_s2 + $0x20] sm:$0xff]  ;;  %s11662_s30 = smov (!%p487_p3, %s6843_s30), 31  ;;  %v7520_v62 = vsub.s32 0, %v640_v58  ;;  %v7522_v63 = vsub.s32 4, %v640_v58 }
  0x10   : > { %v526_v18 = vld [vmem:[%s10678_s4 + $0x18] sm:$0xff]  ;;  %v512_v19 = vld [vmem:[%s10676_s2 + $0x28] sm:$0xff]  ;;  %v507_v28 = vld [vmem:[%s10676_s2] sm:$0xff]  ;;  %s6844_s25 = sshll.u32 %s11662_s30, 2 }
  0x11   : > { %702 = vperm.xlu1 %7048, %v506_v3   ;;  %772 = vperm.xlu0 %7049, %v503_v4   ;;  %v524_v20 = vld [vmem:[%s10678_s4 + $0x8] sm:$0xff]  ;;  %v546_v21 = vld [vmem:[%s10680_s6 + $0x38] sm:$0xff]  ;;  %v529_v30 = vld [vmem:[%s10678_s4 + $0x30] sm:$0xff]  ;;  %s7511_s28 = scalar_lea.vmem %s10674_s0, %s6844_s25  ;;  %11163 = vst [vmem:[#allocation10_spill] sm:$0xff] %v7520_v62  ;;  %s8226_s21 = scalar_lea.vmem %s10689_s15, %s6844_s25 }
  0x12   : > { %v544_v22 = vld [vmem:[%s10680_s6 + $0x28] sm:$0xff]  ;;  %v542_v23 = vld [vmem:[%s10680_s6 + $0x18] sm:$0xff]  ;;  %v527_v32 = vld [vmem:[%s10678_s4 + $0x20] sm:$0xff]  ;;  %11164 = vst [vmem:[#allocation11_spill] sm:$0xff] %v7522_v63 }
  0x13   : > { %v540_v24 = vld [vmem:[%s10680_s6 + $0x8] sm:$0xff]  ;;  %v562_v25 = vld [vmem:[%s10682_s8 + $0x38] sm:$0xff]  ;;  %v525_v34 = vld [vmem:[%s10678_s4 + $0x10] sm:$0xff] }
  0x14   : > { %v510_v26 = vld [vmem:[%s10676_s2 + $0x18] sm:$0xff]  ;;  %v560_v27 = vld [vmem:[%s10682_s8 + $0x28] sm:$0xff]  ;;  %v523_v36 = vld [vmem:[%s10678_s4] sm:$0xff] }
  0x15   : > { %7050 = vset.pattern.permute.xlu1 %v7237_v1  ;;  %768 = vperm.xlu0 %7049, %v502_v6   ;;  %v558_v29 = vld [vmem:[%s10682_s8 + $0x18] sm:$0xff]  ;;  %v556_v31 = vld [vmem:[%s10682_s8 + $0x8] sm:$0xff]  ;;  %v545_v38 = vld [vmem:[%s10680_s6 + $0x30] sm:$0xff] }
  0x16   : > { %784 = vperm.xlu1 %7050, %v506_v3   ;;  %v578_v33 = vld [vmem:[%s10684_s10 + $0x38] sm:$0xff]  ;;  %v576_v35 = vld [vmem:[%s10684_s10 + $0x28] sm:$0xff]  ;;  %v543_v40 = vld [vmem:[%s10680_s6 + $0x20] sm:$0xff] }
  0x17   : > { %v574_v37 = vld [vmem:[%s10684_s10 + $0x18] sm:$0xff]  ;;  %v572_v39 = vld [vmem:[%s10684_s10 + $0x8] sm:$0xff]  ;;  %v541_v42 = vld [vmem:[%s10680_s6 + $0x10] sm:$0xff] }
  0x18   : > { %v594_v41 = vld [vmem:[%s10686_s12 + $0x38] sm:$0xff]  ;;  %v592_v43 = vld [vmem:[%s10686_s12 + $0x28] sm:$0xff]  ;;  %v539_v44 = vld [vmem:[%s10680_s6] sm:$0xff] }
  0x19   : > { %7057 = vset.pattern.permute.xlu0 %v7238_v2  ;;  %v590_v45 = vld [vmem:[%s10686_s12 + $0x18] sm:$0xff]  ;;  %v561_v46 = vld [vmem:[%s10682_s8 + $0x30] sm:$0xff]  ;;  %v588_v49 = vld [vmem:[%s10686_s12 + $0x8] sm:$0xff] }
  0x1a   : > { %7051 = vset.pattern.permute.xlu1 %v10690_v5  ;;  %682 = vperm.xlu0 %7057, %v501_v7   ;;  %v559_v50 = vld [vmem:[%s10682_s8 + $0x20] sm:$0xff]  ;;  %v557_v53 = vld [vmem:[%s10682_s8 + $0x10] sm:$0xff] }
  0x1b   : > { %620 = vperm.xlu1 %7051, %v503_v4   ;;  %v555_v57 = vld [vmem:[%s10682_s8] sm:$0xff]  ;;  %v577_v60 = vld [vmem:[%s10684_s10 + $0x30] sm:$0xff] }
  0x1e   : > { %678 = vperm.xlu0 %7057, %v500_v8  }
  0x1f   : > { %7052 = vset.pattern.permute.xlu1 %v7238_v2 }
  0x20   : > { %690 = vperm.xlu1 %7052, %v503_v4   ;;  %v575_v4 = vld [vmem:[%s10684_s10 + $0x20] sm:$0xff] }
  0x22   : > { %7060 = vset.pattern.permute.xlu0 %v10690_v5 }
  0x23   : > { %630 = vperm.xlu0 %7060, %v505_v0   ;;  %v7524_v0 = vsub.s32 1, %v640_v58 }
  0x24   : > { %694 = vperm.xlu1 %7052, %v504_v9  }
  0x25   : > { %11165 = vst [vmem:[#allocation12_spill] sm:$0xff] %v7524_v0 }
  0x27   : > { %635 = vperm.xlu0 %7060, %v506_v3  }
  0x28   : > { %7053 = vset.pattern.permute.xlu1 %v7237_v1 }
  0x29   : > { %776 = vperm.xlu1 %7053, %v504_v9  }
  0x2b   : > { %625 = vperm.xlu0 %7060, %v504_v9  }
  0x2d   : > { %7054 = vset.pattern.permute.xlu1 %v10690_v5 }
  0x2e   : > { %869 = vperm.xlu1 %7054, %v513_v10  }
  0x2f   : > { %874 = vperm.xlu0 %7060, %v514_v11  }
  0x32   : > { %610 = vperm.xlu1 %7054, %v501_v7  }
  0x33   : > { %600 = vperm.xlu0 %7060, %v499_v12  }
  0x36   : > { %615 = vperm.xlu1 %7054, %v502_v6  }
  0x37   : > { %849 = vperm.xlu0 %7060, %v509_v13   ;;  %v573_v13 = vld [vmem:[%s10684_s10 + $0x10] sm:$0xff] }
  0x3a   : > { %7055 = vset.pattern.permute.xlu1 %v7238_v2 }
  0x3b   : > { %686 = vperm.xlu1 %7055, %v502_v6   ;;  %844 = vperm.xlu0 %7060, %v508_v14   ;;  %v7534_v6 = vsub.s32 2, %v640_v58 }
  0x3d   : > { %11168 = vst [vmem:[#allocation15_spill] sm:$0xff] %v7534_v6 }
  0x3f   : > { %7056 = vset.pattern.permute.xlu1 %v7237_v1  ;;  %954 = vperm.xlu0 %7060, %v530_v15  }
  0x40   : > { %764 = vperm.xlu1 %7056, %v501_v7   ;;  %v7536_v7 = vsub.s32 6, %v640_v58 }
  0x42   : > { %11169 = vst [vmem:[#allocation16_spill] sm:$0xff] %v7536_v7 }
  0x43   : > { %944 = vperm.xlu0 %7060, %v528_v16  }
  0x44   : > { %7058 = vset.pattern.permute.xlu1 %v10690_v5 }
  0x45   : > { %859 = vperm.xlu1 %7058, %v511_v17  }
  0x47   : > { %934 = vperm.xlu0 %7060, %v526_v18  }
  0x49   : > { %864 = vperm.xlu1 %7058, %v512_v19  }
  0x4b   : > { %924 = vperm.xlu0 %7060, %v524_v20  }
  0x4d   : > { %605 = vperm.xlu1 %7058, %v500_v8  }
  0x4f   : > { %1124 = vperm.xlu0 %7060, %v546_v21  }
  0x51   : > { %7059 = vset.pattern.permute.xlu1 %v7238_v2  ;;  %v597_v2 = vld [vmem:[%s7511_s28] sm:$0x77] }
  0x52   : > { %674 = vperm.xlu1 %7059, %v499_v12   ;;  %v642_v10 = vrot.slane %v597_v2, %v7520_v62  ;;  %v708_v11 = vrot.slane %v597_v2, %v7524_v0  ;;  %v794_v14 = vrot.slane %v597_v2, %v7536_v7  ;;  %v790_v15 = vrot.slane %v597_v2, %v7534_v6 }
  0x53   : > { %1114 = vperm.xlu0 %7060, %v544_v22  }
  0x54   : > { %v7558_v19 = vrot.slane %v642_v10, %v7520_v62  ;;  %v7561_v20 = vrot.slane %v708_v11, %v7524_v0  ;;  %v589_v11 = vld [vmem:[%s10686_s12 + $0x10] sm:$0xff] }
  0x56   : > { %7061 = vset.pattern.permute.xlu1 %v7237_v1  ;;  %v7526_v1 = vsub.s32 5, %v640_v58 }
  0x57   : > { %1104 = vperm.xlu0 %7060, %v542_v23   ;;  %756 = vperm.xlu1 %7061, %v499_v12  }
  0x58   : > { %11166 = vst [vmem:[#allocation13_spill] sm:$0xff] %v7526_v1  ;;  %v712_v9 = vrot.slane %v597_v2, %v7526_v1 }
  0x5a   : > { %v7555_v18 = vrot.slane %v712_v9, %v7524_v0 }
  0x5b   : > { %1094 = vperm.xlu0 %7060, %v540_v24   ;;  %760 = vperm.xlu1 %7061, %v500_v8   ;;  %v646_v8 = vrot.slane %v597_v2, %v7522_v63  ;;  %v571_v24 = vld [vmem:[%s10684_s10] sm:$0xff] }
  0x5d   : > { %v7552_v17 = vrot.slane %v646_v8, %v7520_v62 }
  0x5f   : > { %1293 = vperm.xlu0 %7060, %v562_v25   ;;  %7062 = vset.pattern.permute.xlu1 %v10690_v5 }
  0x60   : > { %854 = vperm.xlu1 %7062, %v510_v26  }
  0x63   : > { %1283 = vperm.xlu0 %7060, %v560_v27   ;;  %v7577_v27 = vrot.slane %v794_v14, %v7534_v6 }
  0x64   : > { %839 = vperm.xlu1 %7062, %v507_v28  }
  0x67   : > { %1273 = vperm.xlu0 %7060, %v558_v29   ;;  %v7582_v29 = vrot.slane %v790_v15, %v7534_v6 }
  0x68   : > { %949 = vperm.xlu1 %7062, %v529_v30  }
  0x6b   : > { %1263 = vperm.xlu0 %7060, %v556_v31  }
  0x6c   : > { %939 = vperm.xlu1 %7062, %v527_v32  }
  0x6f   : > { %1462 = vperm.xlu0 %7060, %v578_v33  }
  0x70   : > { %929 = vperm.xlu1 %7062, %v525_v34  }
  0x73   : > { %1452 = vperm.xlu0 %7060, %v576_v35  }
  0x74   : > { %919 = vperm.xlu1 %7062, %v523_v36  }
  0x77   : > { %1442 = vperm.xlu0 %7060, %v574_v37  }
  0x78   : > { %1119 = vperm.xlu1 %7062, %v545_v38  }
  0x7b   : > { %1432 = vperm.xlu0 %7060, %v572_v39   ;;  %v593_v39 = vld [vmem:[%s10686_s12 + $0x30] sm:$0xff] }
  0x7c   : > { %1109 = vperm.xlu1 %7062, %v543_v40  }
  0x7f   : > { %1631 = vperm.xlu0 %7060, %v594_v41  }
  0x80   : > { %1099 = vperm.xlu1 %7062, %v541_v42  }
  0x83   : > { %1621 = vperm.xlu0 %7060, %v592_v43  }
  0x84   : > { %1089 = vperm.xlu1 %7062, %v539_v44  }
  0x87   : > { %1611 = vperm.xlu0 %7060, %v590_v45  }
  0x88   : > { %v7479_v47 = vpop.permute.xlu1 %698  ;;  %1288 = vperm.xlu1 %7062, %v561_v46   ;;  %v7481_v48 = vpop.permute.xlu0 %780 }
  0x89   : > { %11155 = vst [vmem:[#allocation2_spill] sm:$0xff] %v7479_v47  ;;  %11156 = vst [vmem:[#allocation3_spill] sm:$0xff] %v7481_v48  ;;  %v736_v26 = vmul.f32 %v7555_v18, %v7479_v47  ;;  %v735_v28 = vmul.f32 %v7561_v20, %v7479_v47  ;;  %v818_v36 = vmul.f32 %v7577_v27, %v7481_v48 }
  0x8a   : > { %v817_v38 = vmul.f32 %v7582_v29, %v7481_v48 }
  0x8b   : > { %1601 = vperm.xlu0 %7060, %v588_v49  }
  0x8c   : > { %v7489_v51 = vpop.permute.xlu1 %702  ;;  %1278 = vperm.xlu1 %7062, %v559_v50   ;;  %v7491_v52 = vpop.permute.xlu0 %772  ;;  %v591_v50 = vld [vmem:[%s10686_s12 + $0x20] sm:$0xff] }
  0x8d   : > { %11157 = vst [vmem:[#allocation4_spill] sm:$0xff] %v7489_v51  ;;  %11158 = vst [vmem:[#allocation5_spill] sm:$0xff] %v7491_v52  ;;  %v738_v31 = vmul.f32 %v7555_v18, %v7489_v51  ;;  %v737_v33 = vmul.f32 %v7561_v20, %v7489_v51 }
  0x90   : > { %1268 = vperm.xlu1 %7062, %v557_v53   ;;  %v7498_v55 = vpop.permute.xlu0 %768 }
  0x91   : > { %11159 = vst [vmem:[#allocation6_spill] sm:$0xff] %v7498_v55  ;;  %v7500_v56 = vpop.permute.xlu1 %784 }
  0x92   : > { %11160 = vst [vmem:[#allocation7_spill] sm:$0xff] %v7500_v56  ;;  %v820_v43 = vmul.f32 %v7577_v27, %v7500_v56  ;;  %v819_v44 = vmul.f32 %v7582_v29, %v7500_v56 }
  0x94   : > { %1258 = vperm.xlu1 %7062, %v555_v57  }
  0x95   : > { %v7513_v59 = vpop.permute.xlu0 %682 }
  0x96   : > { %11161 = vst [vmem:[#allocation8_spill] sm:$0xff] %v7513_v59  ;;  %v7518_v61 = vpop.permute.xlu1 %620 }
  0x97   : > { %11162 = vst [vmem:[#allocation9_spill] sm:$0xff] %v7518_v61 }
  0x98   : > { %1457 = vperm.xlu1 %7062, %v577_v60  }
  0x99   : > { %v7529_v3 = vpop.permute.xlu0 %678 }
  0x9a   : > { %11167 = vst [vmem:[#allocation14_spill] sm:$0xff] %v7529_v3 }
  0x9b   : > { %v7542_v12 = vpop.permute.xlu1 %690 }
  0x9c   : > { %11170 = vst [vmem:[#allocation17_spill] sm:$0xff] %v7542_v12  ;;  %1447 = vperm.xlu1 %7062, %v575_v4  }
  0x9e   : > { %v7549_v16 = vpop.permute.xlu0 %630 }
  0x9f   : > { %11171 = vst [vmem:[#allocation18_spill] sm:$0xff] %v7549_v16  ;;  %v7563_v21 = vpop.permute.xlu1 %694  ;;  %v670_v22 = vmul.f32 %v7552_v17, %v7549_v16  ;;  %v669_v23 = vmul.f32 %v7558_v19, %v7549_v16 }
  0xa0   : > { %11172 = vst [vmem:[#allocation19_spill] sm:$0xff] %v7563_v21  ;;  %1437 = vperm.xlu1 %7062, %v573_v13  }
  0xa1   : > { %v752_v35 = vadd.f32 %v736_v26, %v670_v22  ;;  %v751_v37 = vadd.f32 %v735_v28, %v669_v23  ;;  %v596_v26 = vld [vmem:[%s10688_s14] sm:$0xf] }
  0xa2   : > { %v7572_v25 = vpop.permute.xlu0 %635 }
  0xa3   : > { %11173 = vst [vmem:[#allocation20_spill] sm:$0xff] %v7572_v25  ;;  %v672_v30 = vmul.f32 %v7552_v17, %v7572_v25  ;;  %v671_v32 = vmul.f32 %v7558_v19, %v7572_v25  ;;  %v834_v45 = vadd.f32 %v818_v36, %v752_v35  ;;  %v833_v46 = vadd.f32 %v817_v38, %v751_v37 }
  0xa4   : > { %v7592_v34 = vpop.permute.xlu1 %776  ;;  %1427 = vperm.xlu1 %7062, %v571_v24   ;;  %v587_v24 = vld [vmem:[%s10686_s12] sm:$0xff]  ;;  %v665_v36 = vmul.f32 %v7558_v19, %v7518_v61  ;;  %v814_v38 = vmul.f32 %v7577_v27, %v7491_v52 }
  0xa5   : > { %11174 = vst [vmem:[#allocation21_spill] sm:$0xff] %v7592_v34  ;;  %v754_v40 = vadd.f32 %v738_v31, %v672_v30  ;;  %v753_v41 = vadd.f32 %v737_v33, %v671_v32  ;;  %v732_v30 = vmul.f32 %v7555_v18, %v7542_v12  ;;  %v731_v31 = vmul.f32 %v7561_v20, %v7542_v12 }
  0xa6   : > { %v7601_v42 = vpop.permute.xlu0 %625  ;;  %v666_v33 = vmul.f32 %v7552_v17, %v7518_v61 }
  0xa7   : > { %11175 = vst [vmem:[#allocation22_spill] sm:$0xff] %v7601_v42  ;;  %v836_v53 = vadd.f32 %v820_v43, %v754_v40  ;;  %v835_v54 = vadd.f32 %v819_v44, %v753_v41  ;;  %v668_v35 = vmul.f32 %v7552_v17, %v7601_v42  ;;  %v667_v37 = vmul.f32 %v7558_v19, %v7601_v42 }
  0xa8   : > { %1626 = vperm.xlu1 %7062, %v593_v39   ;;  %v813_v39 = vmul.f32 %v7582_v29, %v7491_v52  ;;  %v734_v40 = vmul.f32 %v7555_v18, %v7563_v21  ;;  %v748_v41 = vadd.f32 %v732_v30, %v666_v33  ;;  %v733_v43 = vmul.f32 %v7561_v20, %v7563_v21 }
  0xa9   : > { %v7607_v49 = vpop.permute.xlu1 %869  ;;  %v747_v44 = vadd.f32 %v731_v31, %v665_v36 }
  0xaa   : > { %11176 = vst [vmem:[#allocation23_spill] sm:$0xff] %v7607_v49  ;;  %v7612_v57 = vpop.permute.xlu0 %874  ;;  %v890_v58 = vadd.f32 %v7607_v49, %v834_v45  ;;  %v889_v60 = vadd.f32 %v7607_v49, %v833_v46  ;;  %v750_v45 = vadd.f32 %v734_v40, %v668_v35  ;;  %v749_v46 = vadd.f32 %v733_v43, %v667_v37 }
  0xab   : > { %11177 = vst [vmem:[#allocation24_spill] sm:$0xff] %v7612_v57  ;;  %v892_v2 = vadd.f32 %v7612_v57, %v836_v53  ;;  %v891_v4 = vadd.f32 %v7612_v57, %v835_v54  ;;  %v816_v53 = vmul.f32 %v7577_v27, %v7592_v34  ;;  %v830_v54 = vadd.f32 %v814_v38, %v748_v41 }
  0xac   : > { %1616 = vperm.xlu1 %7062, %v591_v50   ;;  %v906_v8 = vmax.f32 %v890_v58, 0.0  ;;  %v905_v9 = vmax.f32 %v889_v60, 0.0  ;;  %v815_v58 = vmul.f32 %v7582_v29, %v7592_v34  ;;  %v829_v60 = vadd.f32 %v813_v39, %v747_v44 }
  0xad   : > { %v7618_v10 = vpop.permute.xlu1 %610  ;;  %v908_v13 = vmax.f32 %v892_v2, 0.0  ;;  %v907_v14 = vmax.f32 %v891_v4, 0.0  ;;  %v832_v2 = vadd.f32 %v816_v53, %v750_v45  ;;  %v728_v37 = vmul.f32 %v7555_v18, %v7513_v59 }
  0xae   : > { %v662_v36 = vmul.f32 %v7552_v17, %v7618_v10  ;;  %v661_v38 = vmul.f32 %v7558_v19, %v7618_v10  ;;  %v727_v39 = vmul.f32 %v7561_v20, %v7513_v59  ;;  %v7679_v40 = vpop.permute.xlu0 %600 }
  0xaf   : > { %v916_v15 = vpack.c.bf16 %v908_v13, %v906_v8  ;;  %v915_v22 = vpack.c.bf16 %v907_v14, %v905_v9  ;;  %v831_v8 = vadd.f32 %v815_v58, %v749_v46  ;;  %11182 = vst [vmem:[#allocation29_spill] sm:$0xff] %v7679_v40 }
  0xb0   : > { %1606 = vperm.xlu1 %7062, %v589_v11   ;;  %v744_v53 = vadd.f32 %v728_v37, %v662_v36 }
  0xb1   : > { %v7623_v23 = vpop.permute.xlu1 %615  ;;  %998 = vmatprep.subr.bf16.mxu0 %v916_v15 }
  0xb2   : > { %999 = vmatpush1.bf16.msra.mxu0 %v915_v22  ;;  %v664_v58 = vmul.f32 %v7552_v17, %v7623_v23 }
  0xb4   : > { %1596 = vperm.xlu1 %7062, %v587_v24  }
  0xb6   : > { %v7631_v28 = vpop.permute.xlu1 %686 }
  0xb7   : > { %v730_v45 = vmul.f32 %v7555_v18, %v7631_v28  ;;  %v729_v46 = vmul.f32 %v7561_v20, %v7631_v28 }
  0xb8   : > { %1765 = vperm.xlu1 %7062, %v596_v26  }
  0xbb   : > { %v7637_v32 = vpop.permute.xlu1 %764 }
  0xbc   : > { %v810_v41 = vmul.f32 %v7577_v27, %v7637_v32  ;;  %v809_v43 = vmul.f32 %v7582_v29, %v7637_v32 }
  0xc0   : > { %v7655_v50 = vpop.permute.xlu1 %859 }
  0xc1   : > { %11178 = vst [vmem:[#allocation25_spill] sm:$0xff] %v7655_v50  ;;  %v886_v4 = vadd.f32 %v7655_v50, %v830_v54  ;;  %v885_v9 = vadd.f32 %v7655_v50, %v829_v60  ;;  %v743_v54 = vadd.f32 %v727_v39, %v661_v38  ;;  %v663_v60 = vmul.f32 %v7558_v19, %v7623_v23 }
  0xc3   : > { %v902_v15 = vmax.f32 %v886_v4, 0.0  ;;  %v901_v24 = vmax.f32 %v885_v9, 0.0  ;;  %v826_v9 = vadd.f32 %v810_v41, %v744_v53  ;;  %v658_v41 = vmul.f32 %v7552_v17, %v7679_v40 }
  0xc4   : > { %v7663_v11 = vpop.permute.xlu1 %864 }
  0xc5   : > { %11179 = vst [vmem:[#allocation26_spill] sm:$0xff] %v7663_v11  ;;  %v888_v13 = vadd.f32 %v7663_v11, %v832_v2  ;;  %v887_v14 = vadd.f32 %v7663_v11, %v831_v8  ;;  %v812_v8 = vmul.f32 %v7577_v27, %v7498_v55 }
  0xc7   : > { %v904_v22 = vmax.f32 %v888_v13, 0.0  ;;  %v903_v26 = vmax.f32 %v887_v14, 0.0  ;;  %v811_v13 = vmul.f32 %v7582_v29, %v7498_v55  ;;  %v825_v14 = vadd.f32 %v809_v43, %v743_v54 }
  0xc8   : > { %v7667_v30 = vpop.permute.xlu1 %605 }
  0xc9   : > { %11180 = vst [vmem:[#allocation27_spill] sm:$0xff] %v7667_v30  ;;  %v914_v31 = vpack.c.bf16 %v904_v22, %v902_v15  ;;  %v913_v33 = vpack.c.bf16 %v903_v26, %v901_v24  ;;  %v660_v2 = vmul.f32 %v7552_v17, %v7667_v30  ;;  %v659_v4 = vmul.f32 %v7558_v19, %v7667_v30 }
  0xca   : > { %v746_v22 = vadd.f32 %v730_v45, %v664_v58  ;;  %v745_v24 = vadd.f32 %v729_v46, %v663_v60  ;;  %v726_v26 = vmul.f32 %v7555_v18, %v7529_v3  ;;  %v657_v45 = vmul.f32 %v7558_v19, %v7679_v40 }
  0xcb   : > { %1000 = vmatprep.subr.bf16.mxu0 %v914_v31  ;;  %v725_v31 = vmul.f32 %v7561_v20, %v7529_v3 }
  0xcc   : > { %1001 = vmatpush1.bf16.msra.mxu0 %v913_v33  ;;  %v7709_v33 = vpop.permute.xlu0 %849  ;;  %v742_v43 = vadd.f32 %v726_v26, %v660_v2  ;;  %v828_v58 = vadd.f32 %v812_v8, %v746_v22  ;;  %v827_v60 = vadd.f32 %v811_v13, %v745_v24 }
  0xcd   : > { %v7669_v35 = vpop.permute.xlu1 %674  ;;  %11185 = vst [vmem:[#allocation32_spill] sm:$0xff] %v7709_v33  ;;  %v741_v46 = vadd.f32 %v725_v31, %v659_v4  ;;  %v882_v53 = vadd.f32 %v7709_v33, %v826_v9 }
  0xce   : > { %11181 = vst [vmem:[#allocation28_spill] sm:$0xff] %v7669_v35  ;;  %v724_v36 = vmul.f32 %v7555_v18, %v7669_v35  ;;  %v723_v38 = vmul.f32 %v7561_v20, %v7669_v35  ;;  %v881_v18 = vadd.f32 %v7709_v33, %v825_v14 }
  0xcf   : > { %v898_v14 = vmax.f32 %v882_v53, 0.0 }
  0xd0   : > { %v740_v2 = vadd.f32 %v724_v36, %v658_v41  ;;  %v739_v26 = vadd.f32 %v723_v38, %v657_v45  ;;  %v7733_v9 = vpop.permute.xlu0 %844  ;;  %v897_v31 = vmax.f32 %v881_v18, 0.0  ;;  %v7066_v18 = vld [vmem:[%s10677_s3 + $0x18] sm:$0xff]  }
  0xd1   : > { %11187 = vst [vmem:[#allocation34_spill] sm:$0xff] %v7733_v9 }
  0xd2   : > { %v7685_v44 = vpop.permute.xlu1 %756 }
  0xd3   : > { %11183 = vst [vmem:[#allocation30_spill] sm:$0xff] %v7685_v44  ;;  %v806_v54 = vmul.f32 %v7577_v27, %v7685_v44  ;;  %v805_v20 = vmul.f32 %v7582_v29, %v7685_v44 }
  0xd5   : > { %v821_v33 = vadd.f32 %v805_v20, %v739_v26 }
  0xd6   : > { %v7703_v15 = vpop.permute.xlu1 %760 }
  0xd7   : > { %11184 = vst [vmem:[#allocation31_spill] sm:$0xff] %v7703_v15  ;;  %v808_v37 = vmul.f32 %v7577_v27, %v7703_v15  ;;  %v807_v39 = vmul.f32 %v7582_v29, %v7703_v15  ;;  %v822_v27 = vadd.f32 %v806_v54, %v740_v2 }
  0xd9   : > { %v824_v5 = vadd.f32 %v808_v37, %v742_v43  ;;  %v823_v15 = vadd.f32 %v807_v39, %v741_v46 }
  0xdb   : > { %v7729_v17 = vpop.permute.xlu1 %854  ;;  %v880_v8 = vadd.f32 %v7733_v9, %v824_v5  ;;  %v879_v13 = vadd.f32 %v7733_v9, %v823_v15  ;;  %v7063_v5 = vld [vmem:[%s10677_s3] sm:$0xff]   ;;  %v7064_v15 = vld [vmem:[%s10677_s3 + $0x8] sm:$0xff]  }
  0xdc   : > { %11186 = vst [vmem:[#allocation33_spill] sm:$0xff] %v7729_v17  ;;  %v884_v19 = vadd.f32 %v7729_v17, %v828_v58  ;;  %v883_v4 = vadd.f32 %v7729_v17, %v827_v60 }
  0xdd   : > { %v896_v41 = vmax.f32 %v880_v8, 0.0  ;;  %v895_v45 = vmax.f32 %v879_v13, 0.0 }
  0xde   : > { %v900_v50 = vmax.f32 %v884_v19, 0.0  ;;  %v899_v29 = vmax.f32 %v883_v4, 0.0 }
  0xdf   : > { %v7737_v22 = vpop.permute.xlu1 %839 }
  0xe0   : > { %11188 = vst [vmem:[#allocation35_spill] sm:$0xff] %v7737_v22  ;;  %v912_v24 = vpack.c.bf16 %v900_v50, %v898_v14  ;;  %v911_v36 = vpack.c.bf16 %v899_v29, %v897_v31  ;;  %v878_v37 = vadd.f32 %v7737_v22, %v822_v27  ;;  %v877_v38 = vadd.f32 %v7737_v22, %v821_v33  ;;  %v7065_v33 = vld [vmem:[%s10677_s3 + $0x10] sm:$0xff]   ;;  %v7761_v31 = vpop.permute.xlu0 %954 }
  0xe1   : > { %v11189_v50 = vmov 0   ;;  %11190 = vst [vmem:[#allocation36_spill] sm:$0xff] %v7761_v31 }
  0xe2   : > { %1002 = vmatprep.subr.bf16.mxu0 %v912_v24  ;;  %v894_v39 = vmax.f32 %v878_v37, 0.0  ;;  %v893_v43 = vmax.f32 %v877_v38, 0.0 }
  0xe3   : > { %1003 = vmatpush1.bf16.msra.mxu0 %v911_v36  ;;  %v7763_v29 = vpop.permute.xlu1 %949 }
  0xe4   : > { %v910_v46 = vpack.c.bf16 %v896_v41, %v894_v39  ;;  %v909_v53 = vpack.c.bf16 %v895_v45, %v893_v43  ;;  %11191 = vst [vmem:[#allocation37_spill] sm:$0xff] %v7763_v29  ;;  %v7765_v24 = vpop.permute.xlu0 %944 }
  0xe5   : > { %11192 = vst [vmem:[#allocation38_spill] sm:$0xff] %v7765_v24 }
  0xe6   : > { %1004 = vmatprep.subr.bf16.mxu0 %v910_v46 }
  0xe7   : > { %1005 = vmatpush1.bf16.msra.mxu0 %v909_v53  ;;  %v7767_v37 = vpop.permute.xlu1 %939 }
  0xe8   : > { %11193 = vst [vmem:[#allocation39_spill] sm:$0xff] %v7767_v37  ;;  %v7772_v46 = vpop.permute.xlu0 %934 }
  0xe9   : > { %11194 = vst [vmem:[#allocation40_spill] sm:$0xff] %v7772_v46 }
  0xea   : > { %6851 = vmatmul.mubr.msk.bf16.vlgmr.msra.gmra.mxu0 %vm977_vm0, %v7063_v5 }
  0xeb   : > { %1032 = vmatprep.mubr.bf16.mxu0 %v11189_v50 }
  0xf2   : > { %6852 = vmatmul.mubr.msk.bf16.gmra.mxu0 %vm977_vm0, %v7064_v15 }
  0xf3   : > { %1042 = vmatprep.mubr.bf16.mxu0 %v11189_v50 }
  0xfa   : > { %6853 = vmatmul.mubr.msk.bf16.gmra.mxu0 %vm977_vm0, %v7065_v33 }
  0xfb   : > { %1052 = vmatprep.mubr.bf16.mxu0 %v11189_v50 }
 0x102   : > { %6854 = vmatmul.mubr.msk.bf16.gmra.mxu0 %vm977_vm0, %v7066_v18  ;;  %v7777_v18 = vpop.permute.xlu1 %929 }
 0x103   : > { %1360 = vmatprep.mubr.bf16.mxu0 %v11189_v50  ;;  %11195 = vst [vmem:[#allocation41_spill] sm:$0xff] %v7777_v18 }
 0x1aa   : > { %v1024_v54 = vpop.f32.mrf.mxu0 }
 0x1ac   : > { %v1026_v20 = vpop.f32.mrf.mxu0 }
 0x1ae   : > { %v1028_v58 = vpop.f32.mrf.mxu0 }
 0x1b0   : > { %v1030_v60 = vpop.f32.mrf.mxu0 }
 0x1b2   : > { %v1034_v2 = vpop.f32.mrf.mxu0 }
 0x1b4   : > { %v1036_v26 = vpop.f32.mrf.mxu0 }
 0x1b6   : > { %v1038_v19 = vpop.f32.mrf.mxu0 }
 0x1b8   : > { %v1040_v4 = vpop.f32.mrf.mxu0 }
 0x1ba   : > { %v1044_v14 = vpop.f32.mrf.mxu0 }
 0x1bc   : > { %v1046_v27 = vpop.f32.mrf.mxu0 }
 0x1bd   : > { %v1047_v15 = vadd.f32 %v1046_v27, %v7767_v37  ;;  %v7783_v27 = vpop.permute.xlu0 %924 }
 0x1be   : > { %v1048_v8 = vpop.f32.mrf.mxu0  ;;  %11196 = vst [vmem:[#allocation42_spill] sm:$0xff] %v7783_v27 }
 0x1bf   : > { %v1049_v9 = vadd.f32 %v1048_v8, %v7765_v24  ;;  %v1031_v8 = vadd.f32 %v1030_v60, %v7783_v27 }
 0x1c0   : > { %v1050_v13 = vpop.f32.mrf.mxu0 }
 0x1c1   : > { %v1051_v41 = vadd.f32 %v1050_v13, %v7765_v24  ;;  %v1041_v13 = vadd.f32 %v1040_v4, %v7772_v46 }
 0x1c2   : > { %v1054_v36 = vpop.f32.mrf.mxu0 }
 0x1c3   : > { %v1055_v53 = vadd.f32 %v1054_v36, %v7763_v29  ;;  %v1074_v17 = vmax.f32 %v1051_v41, 0.0  ;;  %v1037_v36 = vadd.f32 %v1036_v26, %v7777_v18  ;;  %v7787_v41 = vpop.permute.xlu1 %919 }
 0x1c4   : > { %v1056_v38 = vpop.f32.mrf.mxu0  ;;  %11197 = vst [vmem:[#allocation43_spill] sm:$0xff] %v7787_v41  ;;  %v1027_v26 = vadd.f32 %v1026_v20, %v7787_v41  ;;  %v1025_v60 = vadd.f32 %v1024_v54, %v7787_v41  ;;  %v7068_v54 = vld [vmem:[%s10679_s5 + $0x8] sm:$0xff]  }
 0x1c5   : > { %v1057_v43 = vadd.f32 %v1056_v38, %v7763_v29  ;;  %v1075_v35 = vmax.f32 %v1055_v53, 0.0  ;;  %v1072_v29 = vmax.f32 %v1047_v15, 0.0  ;;  %v1029_v53 = vadd.f32 %v1028_v58, %v7783_v27  ;;  %v7067_v58 = vld [vmem:[%s10679_s5] sm:$0xff]  }
 0x1c6   : > { %v1058_v39 = vpop.f32.mrf.mxu0 }
 0x1c7   : > { %v1059_v45 = vadd.f32 %v1058_v39, %v7761_v31  ;;  %v1076_v38 = vmax.f32 %v1057_v43, 0.0  ;;  %v1045_v39 = vadd.f32 %v1044_v14, %v7767_v37  ;;  %v1084_v4 = vpack.c.bf16 %v1074_v17, %v1072_v29 }
 0x1c8   : > { %v1060_v5 = vpop.f32.mrf.mxu0  ;;  %v1035_v14 = vadd.f32 %v1034_v2, %v7777_v18  ;;  %v1064_v17 = vmax.f32 %v1027_v26, 0.0  ;;  %v1065_v29 = vmax.f32 %v1029_v53, 0.0 }
 0x1c9   : > { %v1061_v33 = vadd.f32 %v1060_v5, %v7761_v31  ;;  %v1077_v22 = vmax.f32 %v1059_v45, 0.0  ;;  %v1039_v5 = vadd.f32 %v1038_v19, %v7772_v46  ;;  %v1073_v31 = vmax.f32 %v1049_v9, 0.0 }
 0x1ca   : > { %v1070_v45 = vmax.f32 %v1041_v13, 0.0  ;;  %v1071_v43 = vmax.f32 %v1045_v39, 0.0 }
 0x1cb   : > { %v1078_v44 = vmax.f32 %v1061_v33, 0.0  ;;  %v1085_v11 = vpack.c.bf16 %v1077_v22, %v1075_v35  ;;  %v1069_v19 = vmax.f32 %v1039_v5, 0.0  ;;  %v1066_v35 = vmax.f32 %v1031_v8, 0.0  ;;  %v7070_v33 = vld [vmem:[%s10679_s5 + $0x18] sm:$0xff]  }
 0x1cc   : > { %v1083_v9 = vpack.c.bf16 %v1073_v31, %v1071_v43  ;;  %v7069_v31 = vld [vmem:[%s10679_s5 + $0x10] sm:$0xff]   ;;  %v7813_v43 = vpop.permute.xlu0 %1124 }
 0x1cd   : > { %v1086_v30 = vpack.c.bf16 %v1078_v44, %v1076_v38  ;;  %v1068_v44 = vmax.f32 %v1037_v36, 0.0  ;;  %v1080_v15 = vpack.c.bf16 %v1066_v35, %v1064_v17  ;;  %11198 = vst [vmem:[#allocation44_spill] sm:$0xff] %v7813_v43 }
 0x1cf   : > { %1167 = vmatprep.subr.bf16.mxu1 %v1086_v30  ;;  %v1082_v22 = vpack.c.bf16 %v1070_v45, %v1068_v44  ;;  %v1067_v30 = vmax.f32 %v1035_v14, 0.0  ;;  %v7815_v44 = vpop.permute.xlu1 %1119 }
 0x1d0   : > { %1168 = vmatpush1.bf16.msra.mxu1 %v1085_v11  ;;  %v1063_v11 = vmax.f32 %v1025_v60, 0.0  ;;  %11199 = vst [vmem:[#allocation45_spill] sm:$0xff] %v7815_v44 }
 0x1d1   : > { %1169 = vmatprep.subr.bf16.mxu1 %v1084_v4  ;;  %v1081_v2 = vpack.c.bf16 %v1069_v19, %v1067_v30 }
 0x1d2   : > { %v1079_v20 = vpack.c.bf16 %v1065_v29, %v1063_v11 }
 0x1d4   : > { %1170 = vmatpush1.bf16.msra.mxu1 %v1083_v9  ;;  %v7817_v9 = vpop.permute.xlu0 %1114 }
 0x1d5   : > { %1171 = vmatprep.subr.bf16.mxu1 %v1082_v22  ;;  %11200 = vst [vmem:[#allocation46_spill] sm:$0xff] %v7817_v9  ;;  %v7819_v22 = vpop.permute.xlu1 %1109 }
 0x1d6   : > { %11201 = vst [vmem:[#allocation47_spill] sm:$0xff] %v7819_v22 }
 0x1d8   : > { %1172 = vmatpush1.bf16.msra.mxu1 %v1081_v2 }
 0x1d9   : > { %1173 = vmatprep.subr.bf16.mxu1 %v1080_v15  ;;  %v7824_v15 = vpop.permute.xlu0 %1104 }
 0x1da   : > { %11202 = vst [vmem:[#allocation48_spill] sm:$0xff] %v7824_v15 }
 0x1dc   : > { %1174 = vmatpush1.bf16.msra.mxu1 %v1079_v20 }
 0x1df   : > { %6859 = vmatmul.mubr.msk.bf16.vlgmr.msra.gmra.mxu1 %vm977_vm0, %v7067_v58 }
 0x1e0   : > { %1201 = vmatprep.mubr.bf16.mxu1 %v11189_v50 }
 0x1e7   : > { %6860 = vmatmul.mubr.msk.bf16.gmra.mxu1 %vm977_vm0, %v7068_v54 }
 0x1e8   : > { %1211 = vmatprep.mubr.bf16.mxu1 %v11189_v50 }
 0x1ef   : > { %6861 = vmatmul.mubr.msk.bf16.gmra.mxu1 %vm977_vm0, %v7069_v31  ;;  %v7829_v31 = vpop.permute.xlu1 %1099 }
 0x1f0   : > { %1221 = vmatprep.mubr.bf16.mxu1 %v11189_v50  ;;  %11203 = vst [vmem:[#allocation49_spill] sm:$0xff] %v7829_v31 }
 0x1f7   : > { %6862 = vmatmul.mubr.msk.bf16.gmra.mxu1 %vm977_vm0, %v7070_v33 }
 0x1f8   : > { %1529 = vmatprep.mubr.bf16.mxu1 %v11189_v50 }
 0x29f   : > { %v1193_v13 = vpop.f32.mrf.mxu1 }
 0x2a1   : > { %v1195_v38 = vpop.f32.mrf.mxu1 }
 0x2a3   : > { %v1197_v39 = vpop.f32.mrf.mxu1 }
 0x2a5   : > { %v1199_v36 = vpop.f32.mrf.mxu1 }
 0x2a7   : > { %v1203_v5 = vpop.f32.mrf.mxu1 }
 0x2a9   : > { %v1205_v8 = vpop.f32.mrf.mxu1 }
 0x2ab   : > { %v1207_v45 = vpop.f32.mrf.mxu1 }
 0x2ad   : > { %v1209_v4 = vpop.f32.mrf.mxu1 }
 0x2af   : > { %v1213_v14 = vpop.f32.mrf.mxu1 }
 0x2b1   : > { %v1215_v26 = vpop.f32.mrf.mxu1 }
 0x2b2   : > { %v1216_v58 = vadd.f32 %v1215_v26, %v7819_v22  ;;  %v7835_v26 = vpop.permute.xlu0 %1094 }
 0x2b3   : > { %v1217_v53 = vpop.f32.mrf.mxu1  ;;  %11204 = vst [vmem:[#allocation50_spill] sm:$0xff] %v7835_v26 }
 0x2b4   : > { %v1218_v33 = vadd.f32 %v1217_v53, %v7817_v9  ;;  %v1200_v53 = vadd.f32 %v1199_v36, %v7835_v26 }
 0x2b5   : > { %v1219_v19 = vpop.f32.mrf.mxu1 }
 0x2b6   : > { %v1220_v17 = vadd.f32 %v1219_v19, %v7817_v9  ;;  %v1210_v19 = vadd.f32 %v1209_v4, %v7824_v15 }
 0x2b7   : > { %v1223_v35 = vpop.f32.mrf.mxu1 }
 0x2b8   : > { %v1224_v11 = vadd.f32 %v1223_v35, %v7815_v44  ;;  %v1243_v27 = vmax.f32 %v1220_v17, 0.0  ;;  %v1206_v35 = vadd.f32 %v1205_v8, %v7829_v31  ;;  %v7839_v17 = vpop.permute.xlu1 %1089 }
 0x2b9   : > { %v1225_v60 = vpop.f32.mrf.mxu1  ;;  %11205 = vst [vmem:[#allocation51_spill] sm:$0xff] %v7839_v17  ;;  %v1196_v8 = vadd.f32 %v1195_v38, %v7839_v17  ;;  %v1194_v36 = vadd.f32 %v1193_v13, %v7839_v17  ;;  %v7072_v13 = vld [vmem:[%s10681_s7 + $0x8] sm:$0xff]  }
 0x2ba   : > { %v1226_v29 = vadd.f32 %v1225_v60, %v7815_v44  ;;  %v1244_v46 = vmax.f32 %v1224_v11, 0.0  ;;  %v1241_v44 = vmax.f32 %v1216_v58, 0.0  ;;  %v1198_v11 = vadd.f32 %v1197_v39, %v7835_v26  ;;  %v7071_v39 = vld [vmem:[%s10681_s7] sm:$0xff]  }
 0x2bb   : > { %v1227_v30 = vpop.f32.mrf.mxu1 }
 0x2bc   : > { %v1228_v2 = vadd.f32 %v1227_v30, %v7813_v43  ;;  %v1245_v60 = vmax.f32 %v1226_v29, 0.0  ;;  %v1214_v30 = vadd.f32 %v1213_v14, %v7819_v22  ;;  %v1253_v4 = vpack.c.bf16 %v1243_v27, %v1241_v44 }
 0x2bd   : > { %v1229_v20 = vpop.f32.mrf.mxu1  ;;  %v1204_v14 = vadd.f32 %v1203_v5, %v7829_v31  ;;  %v1233_v27 = vmax.f32 %v1196_v8, 0.0  ;;  %v1234_v44 = vmax.f32 %v1198_v11, 0.0 }
 0x2be   : > { %v1230_v54 = vadd.f32 %v1229_v20, %v7813_v43  ;;  %v1246_v41 = vmax.f32 %v1228_v2, 0.0  ;;  %v1208_v20 = vadd.f32 %v1207_v45, %v7824_v15  ;;  %v1242_v43 = vmax.f32 %v1218_v33, 0.0  ;;  %v7074_v33 = vld [vmem:[%s10681_s7 + $0x18] sm:$0xff]  }
 0x2bf   : > { %v1239_v2 = vmax.f32 %v1210_v19, 0.0  ;;  %v1240_v29 = vmax.f32 %v1214_v30, 0.0 }
 0x2c0   : > { %v1247_v18 = vmax.f32 %v1230_v54, 0.0  ;;  %v1254_v24 = vpack.c.bf16 %v1246_v41, %v1244_v46  ;;  %v1238_v45 = vmax.f32 %v1208_v20, 0.0  ;;  %v1235_v46 = vmax.f32 %v1200_v53, 0.0 }
 0x2c1   : > { %v1252_v58 = vpack.c.bf16 %v1242_v43, %v1240_v29  ;;  %v7073_v43 = vld [vmem:[%s10681_s7 + $0x10] sm:$0xff]   ;;  %v7865_v29 = vpop.permute.xlu0 %1293 }
 0x2c2   : > { %v1255_v37 = vpack.c.bf16 %v1247_v18, %v1245_v60  ;;  %v1237_v18 = vmax.f32 %v1206_v35, 0.0  ;;  %v1249_v54 = vpack.c.bf16 %v1235_v46, %v1233_v27  ;;  %11206 = vst [vmem:[#allocation52_spill] sm:$0xff] %v7865_v29 }
 0x2c4   : > { %1336 = vmatprep.subr.bf16.mxu0 %v1255_v37  ;;  %v1251_v41 = vpack.c.bf16 %v1239_v2, %v1237_v18  ;;  %v1236_v37 = vmax.f32 %v1204_v14, 0.0  ;;  %v7867_v18 = vpop.permute.xlu1 %1288 }
 0x2c5   : > { %1337 = vmatpush1.bf16.msra.mxu0 %v1254_v24  ;;  %v1232_v24 = vmax.f32 %v1194_v36, 0.0  ;;  %11207 = vst [vmem:[#allocation53_spill] sm:$0xff] %v7867_v18 }
 0x2c6   : > { %1338 = vmatprep.subr.bf16.mxu0 %v1253_v4  ;;  %v1250_v5 = vpack.c.bf16 %v1238_v45, %v1236_v37 }
 0x2c7   : > { %v1248_v38 = vpack.c.bf16 %v1234_v44, %v1232_v24 }
 0x2c9   : > { %1339 = vmatpush1.bf16.msra.mxu0 %v1252_v58  ;;  %v7869_v58 = vpop.permute.xlu0 %1283 }
 0x2ca   : > { %1340 = vmatprep.subr.bf16.mxu0 %v1251_v41  ;;  %11208 = vst [vmem:[#allocation54_spill] sm:$0xff] %v7869_v58  ;;  %v7871_v41 = vpop.permute.xlu1 %1278 }
 0x2cb   : > { %11209 = vst [vmem:[#allocation55_spill] sm:$0xff] %v7871_v41 }
 0x2cd   : > { %1341 = vmatpush1.bf16.msra.mxu0 %v1250_v5 }
 0x2ce   : > { %1342 = vmatprep.subr.bf16.mxu0 %v1249_v54  ;;  %v7876_v54 = vpop.permute.xlu0 %1273 }
 0x2cf   : > { %11210 = vst [vmem:[#allocation56_spill] sm:$0xff] %v7876_v54 }
 0x2d1   : > { %1343 = vmatpush1.bf16.msra.mxu0 %v1248_v38 }
 0x2d4   : > { %6867 = vmatmul.mubr.msk.bf16.vlgmr.msra.gmra.mxu0 %vm977_vm0, %v7071_v39 }
 0x2d5   : > { %1370 = vmatprep.mubr.bf16.mxu0 %v11189_v50 }
 0x2dc   : > { %6868 = vmatmul.mubr.msk.bf16.gmra.mxu0 %vm977_vm0, %v7072_v13 }
 0x2dd   : > { %1380 = vmatprep.mubr.bf16.mxu0 %v11189_v50 }
 0x2e4   : > { %6869 = vmatmul.mubr.msk.bf16.gmra.mxu0 %vm977_vm0, %v7073_v43  ;;  %v7881_v43 = vpop.permute.xlu1 %1268 }
 0x2e5   : > { %1390 = vmatprep.mubr.bf16.mxu0 %v11189_v50  ;;  %11211 = vst [vmem:[#allocation57_spill] sm:$0xff] %v7881_v43 }
 0x2ec   : > { %6870 = vmatmul.mubr.msk.bf16.gmra.mxu0 %vm977_vm0, %v7074_v33 }
 0x2ed   : > { %1698 = vmatprep.mubr.bf16.mxu0 %v11189_v50 }
 0x394   : > { %v1362_v19 = vpop.f32.mrf.mxu0 }
 0x396   : > { %v1364_v60 = vpop.f32.mrf.mxu0 }
 0x398   : > { %v1366_v30 = vpop.f32.mrf.mxu0 }
 0x39a   : > { %v1368_v35 = vpop.f32.mrf.mxu0 }
 0x39c   : > { %v1372_v20 = vpop.f32.mrf.mxu0 }
 0x39e   : > { %v1374_v53 = vpop.f32.mrf.mxu0 }
 0x3a0   : > { %v1376_v2 = vpop.f32.mrf.mxu0 }
 0x3a2   : > { %v1378_v4 = vpop.f32.mrf.mxu0 }
 0x3a4   : > { %v1382_v14 = vpop.f32.mrf.mxu0 }
 0x3a6   : > { %v1384_v8 = vpop.f32.mrf.mxu0 }
 0x3a7   : > { %v1385_v39 = vadd.f32 %v1384_v8, %v7871_v41  ;;  %v7887_v8 = vpop.permute.xlu0 %1263 }
 0x3a8   : > { %v1386_v11 = vpop.f32.mrf.mxu0  ;;  %11212 = vst [vmem:[#allocation58_spill] sm:$0xff] %v7887_v8 }
 0x3a9   : > { %v1387_v33 = vadd.f32 %v1386_v11, %v7869_v58  ;;  %v1369_v11 = vadd.f32 %v1368_v35, %v7887_v8 }
 0x3aa   : > { %v1388_v45 = vpop.f32.mrf.mxu0 }
 0x3ab   : > { %v1389_v27 = vadd.f32 %v1388_v45, %v7869_v58  ;;  %v1379_v45 = vadd.f32 %v1378_v4, %v7876_v54 }
 0x3ac   : > { %v1392_v46 = vpop.f32.mrf.mxu0 }
 0x3ad   : > { %v1393_v24 = vadd.f32 %v1392_v46, %v7867_v18  ;;  %v1412_v26 = vmax.f32 %v1389_v27, 0.0  ;;  %v1375_v46 = vadd.f32 %v1374_v53, %v7881_v43  ;;  %v7891_v27 = vpop.permute.xlu1 %1258 }
 0x3ae   : > { %v1394_v36 = vpop.f32.mrf.mxu0  ;;  %11213 = vst [vmem:[#allocation59_spill] sm:$0xff] %v7891_v27  ;;  %v1365_v53 = vadd.f32 %v1364_v60, %v7891_v27  ;;  %v1363_v35 = vadd.f32 %v1362_v19, %v7891_v27  ;;  %v7076_v19 = vld [vmem:[%s10683_s9 + $0x8] sm:$0xff]  }
 0x3af   : > { %v1395_v44 = vadd.f32 %v1394_v36, %v7867_v18  ;;  %v1413_v15 = vmax.f32 %v1393_v24, 0.0  ;;  %v1410_v18 = vmax.f32 %v1385_v39, 0.0  ;;  %v1367_v24 = vadd.f32 %v1366_v30, %v7887_v8  ;;  %v7075_v30 = vld [vmem:[%s10683_s9] sm:$0xff]  }
 0x3b0   : > { %v1396_v37 = vpop.f32.mrf.mxu0 }
 0x3b1   : > { %v1397_v5 = vadd.f32 %v1396_v37, %v7865_v29  ;;  %v1414_v36 = vmax.f32 %v1395_v44, 0.0  ;;  %v1383_v37 = vadd.f32 %v1382_v14, %v7871_v41  ;;  %v1422_v4 = vpack.c.bf16 %v1412_v26, %v1410_v18 }
 0x3b2   : > { %v1398_v38 = vpop.f32.mrf.mxu0  ;;  %v1373_v14 = vadd.f32 %v1372_v20, %v7881_v43  ;;  %v1402_v26 = vmax.f32 %v1365_v53, 0.0  ;;  %v1403_v18 = vmax.f32 %v1367_v24, 0.0 }
 0x3b3   : > { %v1399_v13 = vadd.f32 %v1398_v38, %v7865_v29  ;;  %v1415_v17 = vmax.f32 %v1397_v5, 0.0  ;;  %v1377_v38 = vadd.f32 %v1376_v2, %v7876_v54  ;;  %v1411_v29 = vmax.f32 %v1387_v33, 0.0  ;;  %v7078_v33 = vld [vmem:[%s10683_s9 + $0x18] sm:$0xff]  }
 0x3b4   : > { %v1408_v5 = vmax.f32 %v1379_v45, 0.0  ;;  %v1409_v44 = vmax.f32 %v1383_v37, 0.0 }
 0x3b5   : > { %v1416_v31 = vmax.f32 %v1399_v13, 0.0  ;;  %v1423_v9 = vpack.c.bf16 %v1415_v17, %v1413_v15  ;;  %v1407_v2 = vmax.f32 %v1377_v38, 0.0  ;;  %v1404_v15 = vmax.f32 %v1369_v11, 0.0 }
 0x3b6   : > { %v1421_v39 = vpack.c.bf16 %v1411_v29, %v1409_v44  ;;  %v7077_v29 = vld [vmem:[%s10683_s9 + $0x10] sm:$0xff]   ;;  %v7917_v44 = vpop.permute.xlu0 %1462 }
 0x3b7   : > { %v1424_v22 = vpack.c.bf16 %v1416_v31, %v1414_v36  ;;  %v1406_v31 = vmax.f32 %v1375_v46, 0.0  ;;  %v1418_v13 = vpack.c.bf16 %v1404_v15, %v1402_v26  ;;  %11214 = vst [vmem:[#allocation60_spill] sm:$0xff] %v7917_v44 }
 0x3b9   : > { %1505 = vmatprep.subr.bf16.mxu1 %v1424_v22  ;;  %v1420_v17 = vpack.c.bf16 %v1408_v5, %v1406_v31  ;;  %v1405_v22 = vmax.f32 %v1373_v14, 0.0  ;;  %v7919_v31 = vpop.permute.xlu1 %1457 }
 0x3ba   : > { %1506 = vmatpush1.bf16.msra.mxu1 %v1423_v9  ;;  %v1401_v9 = vmax.f32 %v1363_v35, 0.0  ;;  %11215 = vst [vmem:[#allocation61_spill] sm:$0xff] %v7919_v31 }
 0x3bb   : > { %1507 = vmatprep.subr.bf16.mxu1 %v1422_v4  ;;  %v1419_v20 = vpack.c.bf16 %v1407_v2, %v1405_v22 }
 0x3bc   : > { %v1417_v60 = vpack.c.bf16 %v1403_v18, %v1401_v9 }
 0x3be   : > { %1508 = vmatpush1.bf16.msra.mxu1 %v1421_v39  ;;  %v7921_v39 = vpop.permute.xlu0 %1452 }
 0x3bf   : > { %1509 = vmatprep.subr.bf16.mxu1 %v1420_v17  ;;  %11216 = vst [vmem:[#allocation62_spill] sm:$0xff] %v7921_v39  ;;  %v7923_v17 = vpop.permute.xlu1 %1447 }
 0x3c0   : > { %11217 = vst [vmem:[#allocation63_spill] sm:$0xff] %v7923_v17 }
 0x3c2   : > { %1510 = vmatpush1.bf16.msra.mxu1 %v1419_v20 }
 0x3c3   : > { %1511 = vmatprep.subr.bf16.mxu1 %v1418_v13  ;;  %v7928_v13 = vpop.permute.xlu0 %1442 }
 0x3c4   : > { %11218 = vst [vmem:[#allocation64_spill] sm:$0xff] %v7928_v13 }
 0x3c6   : > { %1512 = vmatpush1.bf16.msra.mxu1 %v1417_v60 }
 0x3c9   : > { %6875 = vmatmul.mubr.msk.bf16.vlgmr.msra.gmra.mxu1 %vm977_vm0, %v7075_v30 }
 0x3ca   : > { %1539 = vmatprep.mubr.bf16.mxu1 %v11189_v50 }
 0x3d1   : > { %6876 = vmatmul.mubr.msk.bf16.gmra.mxu1 %vm977_vm0, %v7076_v19 }
 0x3d2   : > { %1549 = vmatprep.mubr.bf16.mxu1 %v11189_v50 }
 0x3d9   : > { %6877 = vmatmul.mubr.msk.bf16.gmra.mxu1 %vm977_vm0, %v7077_v29  ;;  %v7933_v29 = vpop.permute.xlu1 %1437 }
 0x3da   : > { %1559 = vmatprep.mubr.bf16.mxu1 %v11189_v50  ;;  %11219 = vst [vmem:[#allocation65_spill] sm:$0xff] %v7933_v29 }
 0x3e1   : > { %6878 = vmatmul.mubr.msk.bf16.gmra.mxu1 %vm977_vm0, %v7078_v33 }
 0x3e2   : > { %1803 = vmatprep.mubr.bf16.mxu1 %v11189_v50 }
 0x489   : > { %v1531_v45 = vpop.f32.mrf.mxu1 }
 0x48b   : > { %v1533_v36 = vpop.f32.mrf.mxu1 }
 0x48d   : > { %v1535_v37 = vpop.f32.mrf.mxu1 }
 0x48f   : > { %v1537_v46 = vpop.f32.mrf.mxu1 }
 0x491   : > { %v1541_v38 = vpop.f32.mrf.mxu1 }
 0x493   : > { %v1543_v11 = vpop.f32.mrf.mxu1 }
 0x495   : > { %v1545_v5 = vpop.f32.mrf.mxu1 }
 0x497   : > { %v1547_v4 = vpop.f32.mrf.mxu1 }
 0x499   : > { %v1551_v14 = vpop.f32.mrf.mxu1 }
 0x49b   : > { %v1553_v53 = vpop.f32.mrf.mxu1 }
 0x49c   : > { %v1554_v30 = vadd.f32 %v1553_v53, %v7923_v17  ;;  %v7939_v53 = vpop.permute.xlu0 %1432 }
 0x49d   : > { %v1555_v24 = vpop.f32.mrf.mxu1  ;;  %11220 = vst [vmem:[#allocation66_spill] sm:$0xff] %v7939_v53 }
 0x49e   : > { %v1556_v33 = vadd.f32 %v1555_v24, %v7921_v39  ;;  %v1538_v24 = vadd.f32 %v1537_v46, %v7939_v53 }
 0x49f   : > { %v1557_v2 = vpop.f32.mrf.mxu1 }
 0x4a0   : > { %v1558_v26 = vadd.f32 %v1557_v2, %v7921_v39  ;;  %v1548_v2 = vadd.f32 %v1547_v4, %v7928_v13 }
 0x4a1   : > { %v1561_v15 = vpop.f32.mrf.mxu1 }
 0x4a2   : > { %v1562_v9 = vadd.f32 %v1561_v15, %v7919_v31  ;;  %v1581_v8 = vmax.f32 %v1558_v26, 0.0  ;;  %v1544_v15 = vadd.f32 %v1543_v11, %v7933_v29  ;;  %v7943_v26 = vpop.permute.xlu1 %1427 }
 0x4a3   : > { %v1563_v35 = vpop.f32.mrf.mxu1  ;;  %11221 = vst [vmem:[#allocation67_spill] sm:$0xff] %v7943_v26  ;;  %v1534_v11 = vadd.f32 %v1533_v36, %v7943_v26  ;;  %v1532_v46 = vadd.f32 %v1531_v45, %v7943_v26  ;;  %v7080_v45 = vld [vmem:[%s10685_s11 + $0x8] sm:$0xff]  }
 0x4a4   : > { %v1564_v18 = vadd.f32 %v1563_v35, %v7919_v31  ;;  %v1582_v54 = vmax.f32 %v1562_v9, 0.0  ;;  %v1579_v31 = vmax.f32 %v1554_v30, 0.0  ;;  %v1536_v9 = vadd.f32 %v1535_v37, %v7939_v53  ;;  %v7079_v37 = vld [vmem:[%s10685_s11] sm:$0xff]  }
 0x4a5   : > { %v1565_v22 = vpop.f32.mrf.mxu1 }
 0x4a6   : > { %v1566_v20 = vadd.f32 %v1565_v22, %v7917_v44  ;;  %v1583_v35 = vmax.f32 %v1564_v18, 0.0  ;;  %v1552_v22 = vadd.f32 %v1551_v14, %v7923_v17  ;;  %v1591_v4 = vpack.c.bf16 %v1581_v8, %v1579_v31 }
 0x4a7   : > { %v1567_v60 = vpop.f32.mrf.mxu1  ;;  %v1542_v14 = vadd.f32 %v1541_v38, %v7933_v29  ;;  %v1571_v8 = vmax.f32 %v1534_v11, 0.0  ;;  %v1572_v31 = vmax.f32 %v1536_v9, 0.0 }
 0x4a8   : > { %v1568_v19 = vadd.f32 %v1567_v60, %v7917_v44  ;;  %v1584_v27 = vmax.f32 %v1566_v20, 0.0  ;;  %v1546_v60 = vadd.f32 %v1545_v5, %v7928_v13  ;;  %v1580_v44 = vmax.f32 %v1556_v33, 0.0  ;;  %v7082_v33 = vld [vmem:[%s10685_s11 + $0x18] sm:$0xff]  }
 0x4a9   : > { %v1577_v20 = vmax.f32 %v1548_v2, 0.0  ;;  %v1578_v18 = vmax.f32 %v1552_v22, 0.0 }
 0x4aa   : > { %v1585_v43 = vmax.f32 %v1568_v19, 0.0  ;;  %v1592_v58 = vpack.c.bf16 %v1584_v27, %v1582_v54  ;;  %v1576_v5 = vmax.f32 %v1546_v60, 0.0  ;;  %v1573_v54 = vmax.f32 %v1538_v24, 0.0  ;;  %v1819_v60 = vld [vmem:[%s7511_s28 + $0x8] sm:$0x77] }
 0x4ab   : > { %v1590_v30 = vpack.c.bf16 %v1580_v44, %v1578_v18  ;;  %v7081_v44 = vld [vmem:[%s10685_s11 + $0x10] sm:$0xff]   ;;  %v1858_v18 = vrot.slane %v1819_v60, %v7524_v0  ;;  %v1912_v9 = vrot.slane %v1819_v60, %v7536_v7 }
 0x4ac   : > { %v1593_v41 = vpack.c.bf16 %v1585_v43, %v1583_v35  ;;  %v1575_v43 = vmax.f32 %v1544_v15, 0.0  ;;  %v1587_v19 = vpack.c.bf16 %v1573_v54, %v1571_v8 }
 0x4ae   : > { %1674 = vmatprep.subr.bf16.mxu0 %v1593_v41  ;;  %v1589_v27 = vpack.c.bf16 %v1577_v20, %v1575_v43  ;;  %v1574_v41 = vmax.f32 %v1542_v14, 0.0  ;;  %v1862_v14 = vrot.slane %v1819_v60, %v7526_v1  ;;  %v1824_v43 = vrot.slane %v1819_v60, %v7520_v62 }
 0x4af   : > { %1675 = vmatpush1.bf16.msra.mxu0 %v1592_v58  ;;  %v1570_v58 = vmax.f32 %v1532_v46, 0.0  ;;  %v1908_v46 = vrot.slane %v1819_v60, %v7534_v6 }
 0x4b0   : > { %1676 = vmatprep.subr.bf16.mxu0 %v1591_v4  ;;  %v1588_v38 = vpack.c.bf16 %v1576_v5, %v1574_v41  ;;  %v1828_v4 = vrot.slane %v1819_v60, %v7522_v63  ;;  %v7995_v54 = vrot.slane %v1862_v14, %v7524_v0 }
 0x4b1   : > { %v1586_v36 = vpack.c.bf16 %v1572_v31, %v1570_v58  ;;  %v8013_v58 = vpop.permute.xlu0 %1631 }
 0x4b2   : > { %11222 = vst [vmem:[#allocation68_spill] sm:$0xff] %v8013_v58  ;;  %v1882_v14 = vmul.f32 %v7995_v54, %v7542_v12 }
 0x4b3   : > { %1677 = vmatpush1.bf16.msra.mxu0 %v1590_v30  ;;  %v7992_v30 = vrot.slane %v1828_v4, %v7520_v62  ;;  %v8026_v4 = vrot.slane %v1908_v46, %v7534_v6 }
 0x4b4   : > { %1678 = vmatprep.subr.bf16.mxu0 %v1589_v27  ;;  %v7998_v27 = vrot.slane %v1858_v18, %v7524_v0  ;;  %v8030_v18 = vpop.permute.xlu1 %1626 }
 0x4b5   : > { %v1852_v8 = vmul.f32 %v7992_v30, %v7549_v16  ;;  %v1854_v31 = vmul.f32 %v7992_v30, %v7572_v25  ;;  %11223 = vst [vmem:[#allocation69_spill] sm:$0xff] %v8030_v18  ;;  %v1848_v46 = vmul.f32 %v7992_v30, %v7518_v61  ;;  %v8054_v1 = vpop.permute.xlu0 %1621 }
 0x4b6   : > { %v1885_v60 = vmul.f32 %v7998_v27, %v7479_v47  ;;  %v1881_v0 = vmul.f32 %v7998_v27, %v7542_v12 }
 0x4b7   : > { %1679 = vmatpush1.bf16.msra.mxu0 %v1588_v38  ;;  %v8008_v38 = vrot.slane %v1824_v43, %v7520_v62 }
 0x4b8   : > { %1680 = vmatprep.subr.bf16.mxu0 %v1587_v19  ;;  %v8011_v19 = vrot.slane %v1912_v9, %v7534_v6  ;;  %v8070_v53 = vpop.permute.xlu1 %1616 }
 0x4b9   : > { %11224 = vst [vmem:[#allocation70_spill] sm:$0xff] %v8070_v53 }
 0x4ba   : > { %v1938_v62 = vmul.f32 %v8011_v19, %v7500_v56  ;;  %v1932_v12 = vmul.f32 %v8011_v19, %v7491_v52 }
 0x4bb   : > { %1681 = vmatpush1.bf16.msra.mxu0 %v1586_v36 }
 0x4be   : > { %6883 = vmatmul.mubr.msk.bf16.vlgmr.msra.gmra.mxu0 %vm977_vm0, %v7079_v37  ;;  %v1886_v37 = vmul.f32 %v7995_v54, %v7479_v47  ;;  %v1935_v47 = vmul.f32 %v8026_v4, %v7481_v48 }
 0x4bf   : > { %1708 = vmatprep.mubr.bf16.mxu0 %v11189_v50 }
 0x4c0   : > { %v1902_v9 = vadd.f32 %v1886_v37, %v1852_v8  ;;  %v1887_v8 = vmul.f32 %v7998_v27, %v7489_v51  ;;  %v1847_v37 = vmul.f32 %v8008_v38, %v7518_v61  ;;  %v8068_v61 = vmul.f32 %v8026_v4, %v7498_v55 }
 0x4c6   : > { %6884 = vmatmul.mubr.msk.bf16.gmra.mxu0 %vm977_vm0, %v7080_v45  ;;  %v1888_v45 = vmul.f32 %v7995_v54, %v7489_v51 }
 0x4c7   : > { %1718 = vmatprep.mubr.bf16.mxu0 %v11189_v50 }
 0x4c8   : > { %v1904_v7 = vadd.f32 %v1888_v45, %v1854_v31  ;;  %v1898_v45 = vadd.f32 %v1882_v14, %v1848_v46  ;;  %v1937_v14 = vmul.f32 %v8026_v4, %v7500_v56  ;;  %v8060_v46 = vmul.f32 %v7995_v54, %v7513_v59 }
 0x4ca   : > { %v1954_v51 = vadd.f32 %v1938_v62, %v1904_v7 }
 0x4cc   : > { %v1970_v7 = vadd.f32 %v1954_v51, %v7612_v57  ;;  %v1883_v51 = vmul.f32 %v7998_v27, %v7563_v21 }
 0x4ce   : > { %6885 = vmatmul.mubr.msk.bf16.gmra.mxu0 %vm977_vm0, %v7081_v44  ;;  %v1851_v44 = vmul.f32 %v8008_v38, %v7549_v16  ;;  %v1853_v16 = vmul.f32 %v8008_v38, %v7572_v25  ;;  %v8052_v25 = vmul.f32 %v8011_v19, %v7498_v55 }
 0x4cf   : > { %1728 = vmatprep.mubr.bf16.mxu0 %v11189_v50 }
 0x4d0   : > { %v1901_v31 = vadd.f32 %v1885_v60, %v1851_v44  ;;  %v1903_v44 = vadd.f32 %v1887_v8, %v1853_v16  ;;  %v1897_v60 = vadd.f32 %v1881_v0, %v1847_v37  ;;  %v1884_v8 = vmul.f32 %v7995_v54, %v7563_v21 }
 0x4d1   : > { %v8082_v37 = vadd.f32 %v1932_v12, %v1898_v45  ;;  %v1934_v45 = vmul.f32 %v8011_v19, %v7592_v34 }
 0x4d2   : > { %v1951_v16 = vadd.f32 %v1935_v47, %v1901_v31  ;;  %v1953_v55 = vadd.f32 %v1937_v14, %v1903_v44 }
 0x4d4   : > { %v1967_v47 = vadd.f32 %v1951_v16, %v7607_v49  ;;  %v1969_v21 = vadd.f32 %v1953_v55, %v7612_v57 }
 0x4d6   : > { %6886 = vmatmul.mubr.msk.bf16.gmra.mxu0 %vm977_vm0, %v7082_v33  ;;  %v1936_v33 = vmul.f32 %v8011_v19, %v7481_v48  ;;  %v1931_v48 = vmul.f32 %v8026_v4, %v7491_v52  ;;  %v8064_v52 = vmul.f32 %v7998_v27, %v7513_v59  ;;  %v8086_v59 = vmul.f32 %v7998_v27, %v7529_v3 }
 0x4d7   : > { %2124 = vmatprep.mubr.bf16.mxu0 %v11189_v50  ;;  %v1983_v39 = vmax.f32 %v1967_v47, 0.0 }
 0x4d8   : > { %v1952_v26 = vadd.f32 %v1936_v33, %v1902_v9  ;;  %v8076_v33 = vmul.f32 %v7995_v54, %v7529_v3  ;;  %v1850_v9 = vmul.f32 %v7992_v30, %v7601_v42  ;;  %v8091_v31 = vadd.f32 %v1931_v48, %v1897_v60  ;;  %v8098_v3 = vpop.permute.xlu0 %1611 }
 0x4da   : > { %v1968_v0 = vadd.f32 %v1952_v26, %v7607_v49  ;;  %v1986_v49 = vmax.f32 %v1970_v7, 0.0  ;;  %v1900_v60 = vadd.f32 %v1884_v8, %v1850_v9 }
 0x4dc   : > { %v1984_v16 = vmax.f32 %v1968_v0, 0.0 }
 0x57e   : > { %v7969_v2 = vpop.f32.mrf.mxu0 }
 0x580   : > { %v7971_v35 = vpop.f32.mrf.mxu0 }
 0x582   : > { %v7973_v22 = vpop.f32.mrf.mxu0 }
 0x584   : > { %v7975_v15 = vpop.f32.mrf.mxu0 }
 0x586   : > { %v7978_v24 = vpop.f32.mrf.mxu0 }
 0x588   : > { %v7980_v20 = vpop.f32.mrf.mxu0 }
 0x58a   : > { %v7985_v11 = vpop.f32.mrf.mxu0 }
 0x58c   : > { %v7989_v5 = vpop.f32.mrf.mxu0 }
 0x58d   : > { %v1717_v55 = vadd.f32 %v7989_v5, %v8098_v3 }
 0x58e   : > { %v8001_v41 = vpop.f32.mrf.mxu0 }
 0x58f   : > { %v1721_v9 = vadd.f32 %v8001_v41, %v8070_v53 }
 0x590   : > { %v1722_v36 = vpop.f32.mrf.mxu0 }
 0x591   : > { %v1723_v48 = vadd.f32 %v1722_v36, %v8070_v53 }
 0x592   : > { %v1724_v43 = vpop.f32.mrf.mxu0 }
 0x593   : > { %v1725_v13 = vadd.f32 %v1724_v43, %v8054_v1  ;;  %v1748_v47 = vmax.f32 %v1723_v48, 0.0  ;;  %v1843_v48 = vmul.f32 %v8008_v38, %v7618_v10 }
 0x594   : > { %v1726_v6 = vpop.f32.mrf.mxu0 }
 0x595   : > { %v1727_v56 = vadd.f32 %v1726_v6, %v8054_v1 }
 0x596   : > { %v1730_v63 = vpop.f32.mrf.mxu0 }
 0x597   : > { %v1731_v44 = vadd.f32 %v1730_v63, %v8030_v18  ;;  %v1849_v63 = vmul.f32 %v8008_v38, %v7601_v42  ;;  %v1750_v0 = vmax.f32 %v1727_v56, 0.0  ;;  %v1715_v56 = vadd.f32 %v7985_v11, %v8098_v3 }
 0x598   : > { %v1732_v62 = vpop.f32.mrf.mxu0 }
 0x599   : > { %v1733_v29 = vadd.f32 %v1732_v62, %v8030_v18  ;;  %v1933_v62 = vmul.f32 %v8026_v4, %v7592_v34  ;;  %v1751_v8 = vmax.f32 %v1731_v44, 0.0  ;;  %v1985_v34 = vmax.f32 %v1969_v21, 0.0  ;;  %v8119_v18 = vpop.permute.xlu0 %1601 }
 0x59a   : > { %v1734_v26 = vpop.f32.mrf.mxu0  ;;  %v1707_v41 = vadd.f32 %v7975_v15, %v8119_v18  ;;  %v1760_v21 = vpack.c.bf16 %v1750_v0, %v1748_v47 }
 0x59b   : > { %v1735_v12 = vadd.f32 %v1734_v26, %v8013_v58  ;;  %v8106_v26 = vpop.permute.xlu1 %1606  ;;  %v1752_v36 = vmax.f32 %v1733_v29, 0.0  ;;  %v1749_v29 = vmax.f32 %v1725_v13, 0.0  ;;  %v1879_v13 = vmul.f32 %v7998_v27, %v7631_v28 }
 0x59c   : > { %v1736_v14 = vpop.f32.mrf.mxu0  ;;  %v1713_v43 = vadd.f32 %v7980_v20, %v8106_v26  ;;  %v1844_v20 = vmul.f32 %v7992_v30, %v7618_v10  ;;  %v1742_v0 = vmax.f32 %v1707_v41, 0.0 }
 0x59d   : > { %v1737_v6 = vadd.f32 %v1736_v14, %v8013_v58  ;;  %v1753_v17 = vmax.f32 %v1735_v12, 0.0  ;;  %v8115_v14 = vpack.c.bf16 %v1986_v49, %v1984_v16  ;;  %v1950_v58 = vadd.f32 %v1934_v45, %v1900_v60 }
 0x59e   : > { %v1746_v49 = vmax.f32 %v1717_v55, 0.0  ;;  %v1711_v45 = vadd.f32 %v7978_v24, %v8106_v26  ;;  %v1747_v16 = vmax.f32 %v1721_v9, 0.0  ;;  %v1744_v11 = vmax.f32 %v1713_v43, 0.0 }
 0x59f   : > { %v1754_v7 = vmax.f32 %v1737_v6, 0.0  ;;  %v1761_v5 = vpack.c.bf16 %v1753_v17, %v1751_v8  ;;  %v1899_v6 = vadd.f32 %v1883_v51, %v1849_v63  ;;  %v8127_v44 = vpop.permute.xlu1 %1596  ;;  %v1880_v17 = vmul.f32 %v7995_v54, %v7631_v28 }
 0x5a0   : > { %v1703_v15 = vadd.f32 %v7971_v35, %v8127_v44  ;;  %v1846_v51 = vmul.f32 %v7992_v30, %v7623_v23  ;;  %v1705_v24 = vadd.f32 %v7973_v22, %v8119_v18  ;;  %v1745_v60 = vmax.f32 %v1715_v56, 0.0 }
 0x5a1   : > { %v1762_v12 = vpack.c.bf16 %v1754_v7, %v1752_v36  ;;  %v1759_v63 = vpack.c.bf16 %v1749_v29, %v1747_v16  ;;  %v1845_v55 = vmul.f32 %v8008_v38, %v7623_v23  ;;  %v1758_v36 = vpack.c.bf16 %v1746_v49, %v1744_v11  ;;  %v11226_v49 = vld [vmem:[#allocation27_spill] sm:$0xff]  ;;  %v11229_v11 = vld [vmem:[#allocation30_spill] sm:$0xff] }
 0x5a2   : > { %v1993_v7 = vpack.c.bf16 %v1985_v34, %v1983_v39  ;;  %v1949_v35 = vadd.f32 %v1933_v62, %v1899_v6  ;;  %v1701_v9 = vadd.f32 %v7969_v2, %v8127_v44  ;;  %v1743_v8 = vmax.f32 %v1711_v45, 0.0  ;;  %v11225_v62 = vld [vmem:[#allocation26_spill] sm:$0xff] }
 0x5a3   : > { %1779 = vmatprep.subr.bf16.mxu1 %v1762_v12  ;;  %v1896_v43 = vadd.f32 %v1880_v17, %v1846_v51  ;;  %v1895_v47 = vadd.f32 %v1879_v13, %v1845_v55  ;;  %v1740_v12 = vmax.f32 %v1703_v15, 0.0  ;;  %v1894_v22 = vadd.f32 %v8060_v46, %v1844_v20  ;;  %v11227_v46 = vld [vmem:[#allocation28_spill] sm:$0xff]  ;;  %v11228_v13 = vld [vmem:[#allocation25_spill] sm:$0xff]  ;;  %v11230_v51 = vld [vmem:[#allocation31_spill] sm:$0xff] }
 0x5a4   : > { %1780 = vmatpush1.bf16.msra.mxu1 %v1761_v5  ;;  %v1928_v56 = vmul.f32 %v8011_v19, %v7637_v32  ;;  %v1893_v29 = vadd.f32 %v8064_v52, %v1843_v48  ;;  %v1741_v5 = vmax.f32 %v1705_v24, 0.0  ;;  %v1757_v41 = vpack.c.bf16 %v1745_v60, %v1743_v8  ;;  %v11232_v8 = vld [vmem:[#allocation32_spill] sm:$0xff] }
 0x5a5   : > { %1781 = vmatprep.subr.bf16.mxu1 %v1760_v21  ;;  %v1840_v34 = vmul.f32 %v7992_v30, %v7679_v40  ;;  %v1839_v39 = vmul.f32 %v8008_v38, %v7679_v40  ;;  %v1756_v2 = vpack.c.bf16 %v1742_v0, %v1740_v12  ;;  %v1966_v6 = vadd.f32 %v1950_v58, %v11225_v62 }
 0x5a6   : > { %v1842_v21 = vmul.f32 %v7992_v30, %v11226_v49  ;;  %v1874_v20 = vmul.f32 %v7995_v54, %v11227_v46  ;;  %v1739_v45 = vmax.f32 %v1701_v9, 0.0  ;;  %v1946_v52 = vadd.f32 %v8052_v25, %v1896_v43 }
 0x5a7   : > { %v1927_v16 = vmul.f32 %v8026_v4, %v7637_v32  ;;  %v1945_v17 = vadd.f32 %v8068_v61, %v1895_v47  ;;  %v1964_v15 = vadd.f32 %v8082_v37, %v11228_v13  ;;  %v1944_v58 = vadd.f32 %v1928_v56, %v1894_v22 }
 0x5a8   : > { %1782 = vmatpush1.bf16.msra.mxu1 %v1759_v63  ;;  %v1924_v30 = vmul.f32 %v8011_v19, %v11229_v11  ;;  %v1926_v54 = vmul.f32 %v8011_v19, %v11230_v51  ;;  %v1755_v48 = vpack.c.bf16 %v1741_v5, %v1739_v45  ;;  %v1965_v24 = vadd.f32 %v1949_v35, %v11225_v62  ;;  %v11231_v63 = vld [vmem:[#allocation33_spill] sm:$0xff]  ;;  %v595_v19 = vld [vmem:[%s10687_s13] sm:$0x3] }
 0x5a9   : > { %1783 = vmatprep.subr.bf16.mxu1 %v1758_v36  ;;  %v1841_v25 = vmul.f32 %v8008_v38, %v11226_v49  ;;  %v1873_v61 = vmul.f32 %v7998_v27, %v11227_v46  ;;  %v1982_v60 = vmax.f32 %v1966_v6, 0.0  ;;  %v1962_v55 = vadd.f32 %v1946_v52, %v11231_v63 }
 0x5aa   : > { %v1890_v37 = vadd.f32 %v1874_v20, %v1840_v34  ;;  %v1892_v0 = vadd.f32 %v8076_v33, %v1842_v21  ;;  %v1963_v36 = vadd.f32 %v8091_v31, %v11228_v13  ;;  %v1943_v35 = vadd.f32 %v1927_v16, %v1893_v29  ;;  %v11234_v20 = vld [vmem:[#allocation34_spill] sm:$0xff] }
 0x5ab   : > { %v1923_v38 = vmul.f32 %v8026_v4, %v11229_v11  ;;  %v1925_v27 = vmul.f32 %v8026_v4, %v11230_v51  ;;  %v1980_v9 = vmax.f32 %v1964_v15, 0.0  ;;  %v1960_v33 = vadd.f32 %v1944_v58, %v11232_v8 }
 0x5ac   : > { %1784 = vmatpush1.bf16.msra.mxu1 %v1757_v41  ;;  %v1940_v43 = vadd.f32 %v1924_v30, %v1890_v37  ;;  %v1942_v47 = vadd.f32 %v1926_v54, %v1892_v0  ;;  %v1981_v12 = vmax.f32 %v1965_v24, 0.0  ;;  %v1961_v22 = vadd.f32 %v1945_v17, %v11231_v63  ;;  %v11233_v41 = vld [vmem:[#allocation35_spill] sm:$0xff]  ;;  %v7086_v37 = vld [vmem:[%s10677_s3 + $0x18] sm:$0xff]   ;;  %v8217_v0 = vpop.permute.xlu1 %1765  ;;  %v11290_v63 = vld [vmem:[#allocation14_spill] sm:$0xff] }
 0x5ad   : > { %1785 = vmatprep.subr.bf16.mxu1 %v1756_v2  ;;  %v1889_v56 = vadd.f32 %v1873_v61, %v1839_v39  ;;  %v1891_v31 = vadd.f32 %v8086_v59, %v1841_v25  ;;  %v1992_v29 = vpack.c.bf16 %v1982_v60, %v1980_v9  ;;  %v1978_v5 = vmax.f32 %v1962_v55, 0.0  ;;  %v7083_v61 = vld [vmem:[%s10677_s3] sm:$0xff]   ;;  %v7084_v60 = vld [vmem:[%s10677_s3 + $0x8] sm:$0xff]   ;;  %v7085_v55 = vld [vmem:[%s10677_s3 + $0x10] sm:$0xff]   ;;  %11235 = vst [vmem:[#allocation26_spill] sm:$0xff] %v8217_v0 }
 0x5ae   : > { %v1956_v34 = vadd.f32 %v1940_v43, %v11233_v41  ;;  %v1979_v4 = vmax.f32 %v1963_v36, 0.0  ;;  %v1976_v21 = vmax.f32 %v1960_v33, 0.0  ;;  %v1958_v39 = vadd.f32 %v1942_v47, %v11234_v20 }
 0x5af   : > { %v1939_v2 = vadd.f32 %v1923_v38, %v1889_v56  ;;  %v1941_v6 = vadd.f32 %v1925_v27, %v1891_v31  ;;  %v1977_v59 = vmax.f32 %v1961_v22, 0.0 }
 0x5b0   : > { %1786 = vmatpush1.bf16.msra.mxu1 %v1755_v48  ;;  %v1991_v45 = vpack.c.bf16 %v1981_v12, %v1979_v4  ;;  %v1990_v16 = vpack.c.bf16 %v1978_v5, %v1976_v21  ;;  %v1972_v17 = vmax.f32 %v1956_v34, 0.0  ;;  %v1974_v58 = vmax.f32 %v1958_v39, 0.0 }
 0x5b1   : > { %2003 = vmatprep.subr.bf16.mxu1 %v8115_v14  ;;  %v1959_v14 = vadd.f32 %v1943_v35, %v11232_v8  ;;  %v1955_v52 = vadd.f32 %v1939_v2, %v11233_v41 }
 0x5b2   : > { %v1988_v48 = vpack.c.bf16 %v1974_v58, %v1972_v17  ;;  %v11237_v17 = vld [vmem:[#allocation37_spill] sm:$0xff] }
 0x5b3   : > { %6887 = vmatmul.mubr.msk.bf16.vlgmr.msra.gmra.mxu1 %vm977_vm0, %v595_v19  ;;  %v1975_v15 = vmax.f32 %v1959_v14, 0.0  ;;  %v1971_v54 = vmax.f32 %v1955_v52, 0.0  ;;  %v11236_v52 = vld [vmem:[#allocation38_spill] sm:$0xff] }
 0x5b4   : > { %2004 = vmatpush1.bf16.msra.mxu1 %v1993_v7  ;;  %2027 = vmatprep.mubr.bf16.mxu1 %v11189_v50  ;;  %v1957_v7 = vadd.f32 %v1941_v6, %v11234_v20 }
 0x5b5   : > { %2005 = vmatprep.subr.bf16.mxu1 %v1992_v29  ;;  %v1989_v30 = vpack.c.bf16 %v1977_v59, %v1975_v15 }
 0x5b6   : > { %v1973_v24 = vmax.f32 %v1957_v7, 0.0  ;;  %v11238_v7 = vld [vmem:[#allocation36_spill] sm:$0xff] }
 0x5b8   : > { %2006 = vmatpush1.bf16.msra.mxu1 %v1991_v45  ;;  %v1987_v25 = vpack.c.bf16 %v1973_v24, %v1971_v54 }
 0x5b9   : > { %2007 = vmatprep.subr.bf16.mxu1 %v1990_v16 }
 0x5bc   : > { %2008 = vmatpush1.bf16.msra.mxu1 %v1989_v30 }
 0x5bd   : > { %2009 = vmatprep.subr.bf16.mxu1 %v1988_v48  ;;  %v11239_v48 = vld [vmem:[#allocation39_spill] sm:$0xff] }
 0x5c0   : > { %2010 = vmatpush1.bf16.msra.mxu1 %v1987_v25 }
 0x5c3   : > { %6888 = vmatmul.mubr.msk.bf16.vlgmr.msra.gmra.mxu1 %vm977_vm0, %v7083_v61 }
 0x5c4   : > { %2037 = vmatprep.mubr.bf16.mxu1 %v11189_v50 }
 0x5cb   : > { %6889 = vmatmul.mubr.msk.bf16.gmra.mxu1 %vm977_vm0, %v7084_v60 }
 0x5cc   : > { %2047 = vmatprep.mubr.bf16.mxu1 %v11189_v50 }
 0x5d3   : > { %6890 = vmatmul.mubr.msk.bf16.gmra.mxu1 %vm977_vm0, %v7085_v55  ;;  %v11240_v55 = vld [vmem:[#allocation40_spill] sm:$0xff] }
 0x5d4   : > { %2057 = vmatprep.mubr.bf16.mxu1 %v11189_v50 }
 0x5db   : > { %6891 = vmatmul.mubr.msk.bf16.gmra.mxu1 %vm977_vm0, %v7086_v37 }
 0x5dc   : > { %2221 = vmatprep.mubr.bf16.mxu1 %v11189_v50 }
 0x673   : > { %v1805_v19 = vpop.f32.mrf.mxu1 }
 0x674   : > { %v1806_v36 = vadd.f32 %v1805_v19, %v8217_v0 }
 0x675   : > { %v1807_v35 = vpop.f32.mrf.mxu1 }
 0x676   : > { %v1808_v38 = vadd.f32 %v1807_v35, %v8217_v0  ;;  %v1812_v9 = vmax.f32 %v1806_v36, 0.0  ;;  %v11285_v0 = vld [vmem:[#allocation6_spill] sm:$0xff] }
 0x677   : > { %v1809_v27 = vpop.f32.mrf.mxu1 }
 0x678   : > { %v1813_v33 = vmax.f32 %v1808_v38, 0.0 }
 0x679   : > { %v1810_v43 = vpop.f32.mrf.mxu1 }
 0x67a   : > { %v1816_v47 = vcombine.low %v1812_v9, %v1813_v33  ;;  %v11241_v9 = vld [vmem:[#allocation41_spill] sm:$0xff] }
 0x67c   : > { %1818 = vst [vmem:[%s8226_s21] sm:$0xff] %v1816_v47 }
 0x683   : > { %v2029_v12 = vpop.f32.mrf.mxu1 }
 0x685   : > { %v2031_v22 = vpop.f32.mrf.mxu1 }
 0x687   : > { %v2033_v56 = vpop.f32.mrf.mxu1 }
 0x689   : > { %v2035_v31 = vpop.f32.mrf.mxu1 }
 0x68b   : > { %v2039_v29 = vpop.f32.mrf.mxu1 }
 0x68d   : > { %v2041_v5 = vpop.f32.mrf.mxu1 }
 0x68e   : > { %v2042_v33 = vadd.f32 %v2041_v5, %v11241_v9 }
 0x68f   : > { %v2043_v34 = vpop.f32.mrf.mxu1 }
 0x691   : > { %v2045_v4 = vpop.f32.mrf.mxu1 }
 0x692   : > { %v2046_v37 = vadd.f32 %v2045_v4, %v11240_v55  ;;  %v2040_v4 = vadd.f32 %v2039_v29, %v11241_v9  ;;  %v11249_v9 = vld [vmem:[#allocation49_spill] sm:$0xff] }
 0x693   : > { %v2049_v14 = vpop.f32.mrf.mxu1 }
 0x694   : > { %v2050_v38 = vadd.f32 %v2049_v14, %v11239_v48 }
 0x695   : > { %v2051_v2 = vpop.f32.mrf.mxu1 }
 0x696   : > { %v2052_v24 = vadd.f32 %v2051_v2, %v11239_v48 }
 0x697   : > { %v2053_v6 = vpop.f32.mrf.mxu1 }
 0x698   : > { %v2054_v61 = vadd.f32 %v2053_v6, %v11236_v52  ;;  %v2077_v43 = vmax.f32 %v2052_v24, 0.0  ;;  %v2075_v6 = vmax.f32 %v2046_v37, 0.0 }
 0x699   : > { %v2055_v21 = vpop.f32.mrf.mxu1 }
 0x69a   : > { %v2056_v16 = vadd.f32 %v2055_v21, %v11236_v52  ;;  %v2044_v21 = vadd.f32 %v2043_v34, %v11240_v55  ;;  %v2078_v2 = vmax.f32 %v2054_v61, 0.0 }
 0x69b   : > { %v2059_v39 = vpop.f32.mrf.mxu1 }
 0x69c   : > { %v2060_v30 = vadd.f32 %v2059_v39, %v11237_v17  ;;  %v2079_v19 = vmax.f32 %v2056_v16, 0.0  ;;  %v2076_v16 = vmax.f32 %v2050_v38, 0.0  ;;  %v7090_v38 = vld [vmem:[%s10679_s5 + $0x18] sm:$0xff]  }
 0x69d   : > { %v2061_v45 = vpop.f32.mrf.mxu1 }
 0x69e   : > { %v2062_v15 = vadd.f32 %v2061_v45, %v11237_v17  ;;  %v2080_v27 = vmax.f32 %v2060_v30, 0.0  ;;  %v11242_v45 = vld [vmem:[#allocation42_spill] sm:$0xff]  ;;  %v2073_v30 = vmax.f32 %v2042_v33, 0.0  ;;  %v2088_v24 = vpack.c.bf16 %v2078_v2, %v2076_v16 }
 0x69f   : > { %v2063_v59 = vpop.f32.mrf.mxu1  ;;  %v2034_v5 = vadd.f32 %v2033_v56, %v11242_v45  ;;  %v7087_v56 = vld [vmem:[%s10679_s5] sm:$0xff]  }
 0x6a0   : > { %v2064_v58 = vadd.f32 %v2063_v59, %v11238_v7  ;;  %v2081_v36 = vmax.f32 %v2062_v15, 0.0  ;;  %v2036_v59 = vadd.f32 %v2035_v31, %v11242_v45  ;;  %v11243_v15 = vld [vmem:[#allocation43_spill] sm:$0xff]  ;;  %v2072_v31 = vmax.f32 %v2040_v4, 0.0 }
 0x6a1   : > { %v2065_v54 = vpop.f32.mrf.mxu1  ;;  %v2032_v14 = vadd.f32 %v2031_v22, %v11243_v15  ;;  %v2030_v61 = vadd.f32 %v2029_v12, %v11243_v15  ;;  %v2070_v37 = vmax.f32 %v2034_v5, 0.0  ;;  %v7088_v12 = vld [vmem:[%s10679_s5 + $0x8] sm:$0xff]  }
 0x6a2   : > { %v2066_v25 = vadd.f32 %v2065_v54, %v11238_v7  ;;  %v2082_v60 = vmax.f32 %v2064_v58, 0.0  ;;  %v2089_v58 = vpack.c.bf16 %v2079_v19, %v2077_v43  ;;  %v2074_v54 = vmax.f32 %v2044_v21, 0.0 }
 0x6a3   : > { %v2071_v34 = vmax.f32 %v2036_v59, 0.0 }
 0x6a4   : > { %v2083_v35 = vmax.f32 %v2066_v25, 0.0  ;;  %v2090_v39 = vpack.c.bf16 %v2082_v60, %v2080_v27  ;;  %v2087_v25 = vpack.c.bf16 %v2075_v6, %v2073_v30  ;;  %v2069_v60 = vmax.f32 %v2032_v14, 0.0 }
 0x6a5   : > { %v2086_v29 = vpack.c.bf16 %v2074_v54, %v2072_v31  ;;  %v11244_v54 = vld [vmem:[#allocation46_spill] sm:$0xff] }
 0x6a6   : > { %v2091_v47 = vpack.c.bf16 %v2083_v35, %v2081_v36  ;;  %v2085_v19 = vpack.c.bf16 %v2071_v34, %v2069_v60  ;;  %v2068_v36 = vmax.f32 %v2030_v61, 0.0  ;;  %v7089_v35 = vld [vmem:[%s10679_s5 + $0x10] sm:$0xff]   ;;  %v11245_v34 = vld [vmem:[#allocation45_spill] sm:$0xff] }
 0x6a7   : > { %v11246_v61 = vld [vmem:[#allocation44_spill] sm:$0xff] }
 0x6a8   : > { %2100 = vmatprep.subr.bf16.mxu0 %v2091_v47  ;;  %v2084_v22 = vpack.c.bf16 %v2070_v37, %v2068_v36 }
 0x6a9   : > { %2101 = vmatpush1.bf16.msra.mxu0 %v2090_v39 }
 0x6aa   : > { %2102 = vmatprep.subr.bf16.mxu0 %v2089_v58 }
 0x6ad   : > { %2103 = vmatpush1.bf16.msra.mxu0 %v2088_v24 }
 0x6ae   : > { %2104 = vmatprep.subr.bf16.mxu0 %v2087_v25 }
 0x6b1   : > { %2105 = vmatpush1.bf16.msra.mxu0 %v2086_v29  ;;  %v11247_v29 = vld [vmem:[#allocation47_spill] sm:$0xff] }
 0x6b2   : > { %2106 = vmatprep.subr.bf16.mxu0 %v2085_v19 }
 0x6b5   : > { %2107 = vmatpush1.bf16.msra.mxu0 %v2084_v22 }
 0x6b8   : > { %6892 = vmatmul.mubr.msk.bf16.vlgmr.msra.gmra.mxu0 %vm977_vm0, %v7087_v56 }
 0x6b9   : > { %2134 = vmatprep.mubr.bf16.mxu0 %v11189_v50 }
 0x6c0   : > { %6893 = vmatmul.mubr.msk.bf16.gmra.mxu0 %vm977_vm0, %v7088_v12  ;;  %v11248_v12 = vld [vmem:[#allocation48_spill] sm:$0xff] }
 0x6c1   : > { %2144 = vmatprep.mubr.bf16.mxu0 %v11189_v50 }
 0x6c8   : > { %6894 = vmatmul.mubr.msk.bf16.gmra.mxu0 %vm977_vm0, %v7089_v35 }
 0x6c9   : > { %2154 = vmatprep.mubr.bf16.mxu0 %v11189_v50 }
 0x6d0   : > { %6895 = vmatmul.mubr.msk.bf16.gmra.mxu0 %vm977_vm0, %v7090_v38 }
 0x6d1   : > { %2318 = vmatprep.mubr.bf16.mxu0 %v11189_v50 }
 0x778   : > { %v2126_v27 = vpop.f32.mrf.mxu0 }
 0x77a   : > { %v2128_v33 = vpop.f32.mrf.mxu0 }
 0x77c   : > { %v2130_v43 = vpop.f32.mrf.mxu0 }
 0x77e   : > { %v2132_v47 = vpop.f32.mrf.mxu0 }
 0x780   : > { %v2136_v21 = vpop.f32.mrf.mxu0 }
 0x782   : > { %v2138_v2 = vpop.f32.mrf.mxu0 }
 0x784   : > { %v2140_v39 = vpop.f32.mrf.mxu0 }
 0x786   : > { %v2142_v59 = vpop.f32.mrf.mxu0 }
 0x787   : > { %v2143_v35 = vadd.f32 %v2142_v59, %v11248_v12  ;;  %v2137_v59 = vadd.f32 %v2136_v21, %v11249_v9 }
 0x788   : > { %v2146_v6 = vpop.f32.mrf.mxu0 }
 0x78a   : > { %v2148_v58 = vpop.f32.mrf.mxu0 }
 0x78b   : > { %v2149_v19 = vadd.f32 %v2148_v58, %v11247_v29 }
 0x78c   : > { %v2150_v4 = vpop.f32.mrf.mxu0 }
 0x78d   : > { %v2151_v22 = vadd.f32 %v2150_v4, %v11244_v54  ;;  %v2174_v55 = vmax.f32 %v2149_v19, 0.0  ;;  %v2172_v4 = vmax.f32 %v2143_v35, 0.0 }
 0x78e   : > { %v2152_v16 = vpop.f32.mrf.mxu0 }
 0x78f   : > { %v2153_v24 = vadd.f32 %v2152_v16, %v11244_v54  ;;  %v2147_v16 = vadd.f32 %v2146_v6, %v11247_v29  ;;  %v2175_v58 = vmax.f32 %v2151_v22, 0.0 }
 0x790   : > { %v2156_v14 = vpop.f32.mrf.mxu0 }
 0x791   : > { %v2157_v60 = vadd.f32 %v2156_v14, %v11245_v34  ;;  %v2176_v38 = vmax.f32 %v2153_v24, 0.0  ;;  %v2173_v24 = vmax.f32 %v2147_v16, 0.0 }
 0x792   : > { %v2158_v30 = vpop.f32.mrf.mxu0 }
 0x793   : > { %v2159_v25 = vadd.f32 %v2158_v30, %v11245_v34  ;;  %v2177_v30 = vmax.f32 %v2157_v60, 0.0  ;;  %v2141_v34 = vadd.f32 %v2140_v39, %v11248_v12  ;;  %v11257_v12 = vld [vmem:[#allocation57_spill] sm:$0xff] }
 0x794   : > { %v2160_v5 = vpop.f32.mrf.mxu0 }
 0x795   : > { %v2161_v31 = vadd.f32 %v2160_v5, %v11246_v61  ;;  %v2178_v15 = vmax.f32 %v2159_v25, 0.0  ;;  %v2139_v5 = vadd.f32 %v2138_v2, %v11249_v9  ;;  %v11251_v25 = vld [vmem:[#allocation51_spill] sm:$0xff] }
 0x796   : > { %v2162_v37 = vpop.f32.mrf.mxu0  ;;  %v2129_v6 = vadd.f32 %v2128_v33, %v11251_v25 }
 0x797   : > { %v2163_v36 = vadd.f32 %v2162_v37, %v11246_v61  ;;  %v2179_v56 = vmax.f32 %v2161_v31, 0.0  ;;  %v11250_v37 = vld [vmem:[#allocation50_spill] sm:$0xff]  ;;  %v2186_v31 = vpack.c.bf16 %v2176_v38, %v2174_v55  ;;  %v2170_v60 = vmax.f32 %v2139_v5, 0.0 }
 0x798   : > { %v2133_v61 = vadd.f32 %v2132_v47, %v11250_v37  ;;  %v2131_v2 = vadd.f32 %v2130_v43, %v11250_v37  ;;  %v2169_v47 = vmax.f32 %v2137_v59, 0.0  ;;  %v2166_v22 = vmax.f32 %v2129_v6, 0.0  ;;  %v7091_v43 = vld [vmem:[%s10681_s7] sm:$0xff]  }
 0x799   : > { %v2180_v45 = vmax.f32 %v2163_v36, 0.0  ;;  %v2187_v48 = vpack.c.bf16 %v2179_v56, %v2177_v30  ;;  %v2184_v19 = vpack.c.bf16 %v2172_v4, %v2170_v60  ;;  %v2127_v36 = vadd.f32 %v2126_v27, %v11251_v25  ;;  %v7092_v27 = vld [vmem:[%s10681_s7 + $0x8] sm:$0xff]  }
 0x79a   : > { %v2168_v39 = vmax.f32 %v2133_v61, 0.0  ;;  %v2167_v55 = vmax.f32 %v2131_v2, 0.0  ;;  %v7094_v61 = vld [vmem:[%s10681_s7 + $0x18] sm:$0xff]  }
 0x79b   : > { %v2188_v14 = vpack.c.bf16 %v2180_v45, %v2178_v15  ;;  %v2171_v45 = vmax.f32 %v2141_v34, 0.0  ;;  %v2185_v15 = vpack.c.bf16 %v2175_v58, %v2173_v24  ;;  %v7093_v34 = vld [vmem:[%s10681_s7 + $0x10] sm:$0xff]  }
 0x79c   : > { %v2182_v56 = vpack.c.bf16 %v2168_v39, %v2166_v22 }
 0x79d   : > { %2197 = vmatprep.subr.bf16.mxu1 %v2188_v14  ;;  %v2183_v21 = vpack.c.bf16 %v2171_v45, %v2169_v47  ;;  %v11254_v47 = vld [vmem:[#allocation52_spill] sm:$0xff] }
 0x79e   : > { %2198 = vmatpush1.bf16.msra.mxu1 %v2187_v48  ;;  %v2165_v48 = vmax.f32 %v2127_v36, 0.0 }
 0x79f   : > { %2199 = vmatprep.subr.bf16.mxu1 %v2186_v31 }
 0x7a0   : > { %v2181_v33 = vpack.c.bf16 %v2167_v55, %v2165_v48 }
 0x7a2   : > { %2200 = vmatpush1.bf16.msra.mxu1 %v2185_v15  ;;  %v11252_v15 = vld [vmem:[#allocation54_spill] sm:$0xff] }
 0x7a3   : > { %2201 = vmatprep.subr.bf16.mxu1 %v2184_v19  ;;  %v11253_v19 = vld [vmem:[#allocation53_spill] sm:$0xff] }
 0x7a6   : > { %2202 = vmatpush1.bf16.msra.mxu1 %v2183_v21 }
 0x7a7   : > { %2203 = vmatprep.subr.bf16.mxu1 %v2182_v56  ;;  %v11255_v56 = vld [vmem:[#allocation55_spill] sm:$0xff] }
 0x7aa   : > { %2204 = vmatpush1.bf16.msra.mxu1 %v2181_v33 }
 0x7ad   : > { %6896 = vmatmul.mubr.msk.bf16.vlgmr.msra.gmra.mxu1 %vm977_vm0, %v7091_v43 }
 0x7ae   : > { %2231 = vmatprep.mubr.bf16.mxu1 %v11189_v50 }
 0x7b5   : > { %6897 = vmatmul.mubr.msk.bf16.gmra.mxu1 %vm977_vm0, %v7092_v27 }
 0x7b6   : > { %2241 = vmatprep.mubr.bf16.mxu1 %v11189_v50 }
 0x7bd   : > { %6898 = vmatmul.mubr.msk.bf16.gmra.mxu1 %vm977_vm0, %v7093_v34  ;;  %v11256_v34 = vld [vmem:[#allocation56_spill] sm:$0xff] }
 0x7be   : > { %2251 = vmatprep.mubr.bf16.mxu1 %v11189_v50 }
 0x7c5   : > { %6899 = vmatmul.mubr.msk.bf16.gmra.mxu1 %vm977_vm0, %v7094_v61 }
 0x7c6   : > { %2415 = vmatprep.mubr.bf16.mxu1 %v11189_v50 }
 0x86d   : > { %v2223_v35 = vpop.f32.mrf.mxu1 }
 0x86f   : > { %v2225_v38 = vpop.f32.mrf.mxu1 }
 0x871   : > { %v2227_v16 = vpop.f32.mrf.mxu1 }
 0x873   : > { %v2229_v30 = vpop.f32.mrf.mxu1 }
 0x875   : > { %v2233_v5 = vpop.f32.mrf.mxu1 }
 0x877   : > { %v2235_v14 = vpop.f32.mrf.mxu1 }
 0x879   : > { %v2237_v58 = vpop.f32.mrf.mxu1 }
 0x87b   : > { %v2239_v4 = vpop.f32.mrf.mxu1 }
 0x87c   : > { %v2240_v61 = vadd.f32 %v2239_v4, %v11256_v34  ;;  %v2234_v4 = vadd.f32 %v2233_v5, %v11257_v12 }
 0x87d   : > { %v2243_v31 = vpop.f32.mrf.mxu1 }
 0x87f   : > { %v2245_v59 = vpop.f32.mrf.mxu1 }
 0x880   : > { %v2246_v48 = vadd.f32 %v2245_v59, %v11255_v56 }
 0x881   : > { %v2247_v24 = vpop.f32.mrf.mxu1 }
 0x882   : > { %v2248_v43 = vadd.f32 %v2247_v24, %v11252_v15  ;;  %v2271_v29 = vmax.f32 %v2246_v48, 0.0  ;;  %v2269_v24 = vmax.f32 %v2240_v61, 0.0 }
 0x883   : > { %v2249_v6 = vpop.f32.mrf.mxu1 }
 0x884   : > { %v2250_v39 = vadd.f32 %v2249_v6, %v11252_v15  ;;  %v2244_v6 = vadd.f32 %v2243_v31, %v11255_v56  ;;  %v2272_v59 = vmax.f32 %v2248_v43, 0.0 }
 0x885   : > { %v2253_v60 = vpop.f32.mrf.mxu1 }
 0x886   : > { %v2254_v55 = vadd.f32 %v2253_v60, %v11253_v19  ;;  %v2273_v25 = vmax.f32 %v2250_v39, 0.0  ;;  %v2270_v39 = vmax.f32 %v2244_v6, 0.0 }
 0x887   : > { %v2255_v2 = vpop.f32.mrf.mxu1 }
 0x888   : > { %v2256_v36 = vadd.f32 %v2255_v2, %v11253_v19  ;;  %v2274_v2 = vmax.f32 %v2254_v55, 0.0  ;;  %v2238_v19 = vadd.f32 %v2237_v58, %v11256_v34  ;;  %v11265_v34 = vld [vmem:[#allocation65_spill] sm:$0xff] }
 0x889   : > { %v2257_v45 = vpop.f32.mrf.mxu1 }
 0x88a   : > { %v2258_v22 = vadd.f32 %v2257_v45, %v11254_v47  ;;  %v2275_v37 = vmax.f32 %v2256_v36, 0.0  ;;  %v2236_v45 = vadd.f32 %v2235_v14, %v11257_v12  ;;  %v11259_v36 = vld [vmem:[#allocation59_spill] sm:$0xff] }
 0x88b   : > { %v2259_v21 = vpop.f32.mrf.mxu1  ;;  %v2226_v31 = vadd.f32 %v2225_v38, %v11259_v36 }
 0x88c   : > { %v2260_v33 = vadd.f32 %v2259_v21, %v11254_v47  ;;  %v2276_v27 = vmax.f32 %v2258_v22, 0.0  ;;  %v11258_v21 = vld [vmem:[#allocation58_spill] sm:$0xff]  ;;  %v2283_v22 = vpack.c.bf16 %v2273_v25, %v2271_v29  ;;  %v2267_v55 = vmax.f32 %v2236_v45, 0.0 }
 0x88d   : > { %v2230_v47 = vadd.f32 %v2229_v30, %v11258_v21  ;;  %v2228_v14 = vadd.f32 %v2227_v16, %v11258_v21  ;;  %v2266_v30 = vmax.f32 %v2234_v4, 0.0  ;;  %v2263_v43 = vmax.f32 %v2226_v31, 0.0  ;;  %v7095_v16 = vld [vmem:[%s10683_s9] sm:$0xff]  }
 0x88e   : > { %v2277_v9 = vmax.f32 %v2260_v33, 0.0  ;;  %v2284_v54 = vpack.c.bf16 %v2276_v27, %v2274_v2  ;;  %v2281_v48 = vpack.c.bf16 %v2269_v24, %v2267_v55  ;;  %v2224_v33 = vadd.f32 %v2223_v35, %v11259_v36  ;;  %v7096_v35 = vld [vmem:[%s10683_s9 + $0x8] sm:$0xff]  }
 0x88f   : > { %v2265_v58 = vmax.f32 %v2230_v47, 0.0  ;;  %v2264_v29 = vmax.f32 %v2228_v14, 0.0  ;;  %v7098_v47 = vld [vmem:[%s10683_s9 + $0x18] sm:$0xff]  }
 0x890   : > { %v2285_v60 = vpack.c.bf16 %v2277_v9, %v2275_v37  ;;  %v2268_v9 = vmax.f32 %v2238_v19, 0.0  ;;  %v2282_v37 = vpack.c.bf16 %v2272_v59, %v2270_v39  ;;  %v7097_v19 = vld [vmem:[%s10683_s9 + $0x10] sm:$0xff]  }
 0x891   : > { %v2279_v5 = vpack.c.bf16 %v2265_v58, %v2263_v43 }
 0x892   : > { %2294 = vmatprep.subr.bf16.mxu0 %v2285_v60  ;;  %v2280_v25 = vpack.c.bf16 %v2268_v9, %v2266_v30  ;;  %v11262_v30 = vld [vmem:[#allocation60_spill] sm:$0xff] }
 0x893   : > { %2295 = vmatpush1.bf16.msra.mxu0 %v2284_v54  ;;  %v2262_v54 = vmax.f32 %v2224_v33, 0.0 }
 0x894   : > { %2296 = vmatprep.subr.bf16.mxu0 %v2283_v22 }
 0x895   : > { %v2278_v38 = vpack.c.bf16 %v2264_v29, %v2262_v54 }
 0x897   : > { %2297 = vmatpush1.bf16.msra.mxu0 %v2282_v37  ;;  %v11260_v37 = vld [vmem:[#allocation62_spill] sm:$0xff] }
 0x898   : > { %2298 = vmatprep.subr.bf16.mxu0 %v2281_v48  ;;  %v11261_v48 = vld [vmem:[#allocation61_spill] sm:$0xff] }
 0x89b   : > { %2299 = vmatpush1.bf16.msra.mxu0 %v2280_v25 }
 0x89c   : > { %2300 = vmatprep.subr.bf16.mxu0 %v2279_v5  ;;  %v11263_v5 = vld [vmem:[#allocation63_spill] sm:$0xff] }
 0x89f   : > { %2301 = vmatpush1.bf16.msra.mxu0 %v2278_v38 }
 0x8a2   : > { %6900 = vmatmul.mubr.msk.bf16.vlgmr.msra.gmra.mxu0 %vm977_vm0, %v7095_v16 }
 0x8a3   : > { %2328 = vmatprep.mubr.bf16.mxu0 %v11189_v50 }
 0x8aa   : > { %6901 = vmatmul.mubr.msk.bf16.gmra.mxu0 %vm977_vm0, %v7096_v35 }
 0x8ab   : > { %2338 = vmatprep.mubr.bf16.mxu0 %v11189_v50 }
 0x8b2   : > { %6902 = vmatmul.mubr.msk.bf16.gmra.mxu0 %vm977_vm0, %v7097_v19  ;;  %v11264_v19 = vld [vmem:[#allocation64_spill] sm:$0xff] }
 0x8b3   : > { %2348 = vmatprep.mubr.bf16.mxu0 %v11189_v50 }
 0x8ba   : > { %6903 = vmatmul.mubr.msk.bf16.gmra.mxu0 %vm977_vm0, %v7098_v47 }
 0x8bb   : > { %2512 = vmatprep.mubr.bf16.mxu0 %v11189_v50 }
 0x962   : > { %v2320_v27 = vpop.f32.mrf.mxu0 }
 0x964   : > { %v2322_v61 = vpop.f32.mrf.mxu0 }
 0x966   : > { %v2324_v6 = vpop.f32.mrf.mxu0 }
 0x968   : > { %v2326_v2 = vpop.f32.mrf.mxu0 }
 0x96a   : > { %v2330_v45 = vpop.f32.mrf.mxu0 }
 0x96c   : > { %v2332_v60 = vpop.f32.mrf.mxu0 }
 0x96e   : > { %v2334_v59 = vpop.f32.mrf.mxu0 }
 0x970   : > { %v2336_v24 = vpop.f32.mrf.mxu0 }
 0x971   : > { %v2337_v47 = vadd.f32 %v2336_v24, %v11264_v19  ;;  %v2331_v24 = vadd.f32 %v2330_v45, %v11265_v34 }
 0x972   : > { %v2340_v22 = vpop.f32.mrf.mxu0 }
 0x974   : > { %v2342_v4 = vpop.f32.mrf.mxu0 }
 0x975   : > { %v2343_v54 = vadd.f32 %v2342_v4, %v11263_v5 }
 0x976   : > { %v2344_v39 = vpop.f32.mrf.mxu0 }
 0x977   : > { %v2345_v16 = vadd.f32 %v2344_v39, %v11260_v37  ;;  %v2368_v56 = vmax.f32 %v2343_v54, 0.0  ;;  %v2366_v39 = vmax.f32 %v2337_v47, 0.0 }
 0x978   : > { %v2346_v31 = vpop.f32.mrf.mxu0 }
 0x979   : > { %v2347_v58 = vadd.f32 %v2346_v31, %v11260_v37  ;;  %v2341_v31 = vadd.f32 %v2340_v22, %v11263_v5  ;;  %v2369_v4 = vmax.f32 %v2345_v16, 0.0 }
 0x97a   : > { %v2350_v55 = vpop.f32.mrf.mxu0 }
 0x97b   : > { %v2351_v29 = vadd.f32 %v2350_v55, %v11261_v48  ;;  %v2370_v36 = vmax.f32 %v2347_v58, 0.0  ;;  %v2367_v58 = vmax.f32 %v2341_v31, 0.0  ;;  %v2528_v31 = vld [vmem:[%s7511_s28 + $0x10] sm:$0x77] }
 0x97c   : > { %v2352_v14 = vpop.f32.mrf.mxu0 }
 0x97d   : > { %v2353_v33 = vadd.f32 %v2352_v14, %v11261_v48  ;;  %v2371_v14 = vmax.f32 %v2351_v29, 0.0  ;;  %v2335_v48 = vadd.f32 %v2334_v59, %v11264_v19  ;;  %v11279_v19 = vld [vmem:[#allocation7_spill] sm:$0xff] }
 0x97e   : > { %v2354_v9 = vpop.f32.mrf.mxu0 }
 0x97f   : > { %v2355_v43 = vadd.f32 %v2354_v9, %v11262_v30  ;;  %v2372_v21 = vmax.f32 %v2353_v33, 0.0  ;;  %v2333_v9 = vadd.f32 %v2332_v60, %v11265_v34  ;;  %v11267_v33 = vld [vmem:[#allocation67_spill] sm:$0xff] }
 0x980   : > { %v2356_v25 = vpop.f32.mrf.mxu0  ;;  %v2323_v22 = vadd.f32 %v2322_v61, %v11267_v33 }
 0x981   : > { %v2357_v38 = vadd.f32 %v2356_v25, %v11262_v30  ;;  %v2373_v35 = vmax.f32 %v2355_v43, 0.0  ;;  %v11266_v25 = vld [vmem:[#allocation66_spill] sm:$0xff]  ;;  %v2380_v43 = vpack.c.bf16 %v2370_v36, %v2368_v56  ;;  %v2364_v29 = vmax.f32 %v2333_v9, 0.0 }
 0x982   : > { %v2327_v30 = vadd.f32 %v2326_v2, %v11266_v25  ;;  %v2325_v60 = vadd.f32 %v2324_v6, %v11266_v25  ;;  %v2363_v2 = vmax.f32 %v2331_v24, 0.0  ;;  %v2360_v16 = vmax.f32 %v2323_v22, 0.0  ;;  %v7099_v6 = vld [vmem:[%s10685_s11] sm:$0xff]  }
 0x983   : > { %v2374_v12 = vmax.f32 %v2357_v38, 0.0  ;;  %v2381_v15 = vpack.c.bf16 %v2373_v35, %v2371_v14  ;;  %v2378_v54 = vpack.c.bf16 %v2366_v39, %v2364_v29  ;;  %v2321_v38 = vadd.f32 %v2320_v27, %v11267_v33  ;;  %v7100_v27 = vld [vmem:[%s10685_s11 + $0x8] sm:$0xff]   ;;  %v11269_v39 = vld [vmem:[#allocation13_spill] sm:$0xff]  ;;  %v11271_v29 = vld [vmem:[#allocation12_spill] sm:$0xff] }
 0x984   : > { %v2362_v59 = vmax.f32 %v2327_v30, 0.0  ;;  %v2361_v56 = vmax.f32 %v2325_v60, 0.0  ;;  %v7102_v30 = vld [vmem:[%s10685_s11 + $0x18] sm:$0xff]   ;;  %v2567_v60 = vrot.slane %v2528_v31, %v11271_v29 }
 0x985   : > { %v2382_v55 = vpack.c.bf16 %v2374_v12, %v2372_v21  ;;  %v2365_v12 = vmax.f32 %v2335_v48, 0.0  ;;  %v2379_v21 = vpack.c.bf16 %v2369_v4, %v2367_v58  ;;  %v7101_v48 = vld [vmem:[%s10685_s11 + $0x10] sm:$0xff]   ;;  %v11270_v58 = vld [vmem:[#allocation10_spill] sm:$0xff] }
 0x986   : > { %v2376_v45 = vpack.c.bf16 %v2362_v59, %v2360_v16  ;;  %v2533_v22 = vrot.slane %v2528_v31, %v11270_v58 }
 0x987   : > { %2391 = vmatprep.subr.bf16.mxu1 %v2382_v55  ;;  %v2377_v36 = vpack.c.bf16 %v2365_v12, %v2363_v2  ;;  %v11268_v55 = vld [vmem:[#allocation11_spill] sm:$0xff]  ;;  %v11272_v12 = vld [vmem:[#allocation16_spill] sm:$0xff] }
 0x988   : > { %2392 = vmatpush1.bf16.msra.mxu1 %v2381_v15  ;;  %v2359_v15 = vmax.f32 %v2321_v38, 0.0  ;;  %v2537_v4 = vrot.slane %v2528_v31, %v11268_v55  ;;  %v11273_v2 = vld [vmem:[#allocation15_spill] sm:$0xff] }
 0x989   : > { %2393 = vmatprep.subr.bf16.mxu1 %v2380_v43  ;;  %v2571_v43 = vrot.slane %v2528_v31, %v11269_v39  ;;  %v2617_v16 = vrot.slane %v2528_v31, %v11273_v2 }
 0x98a   : > { %v2375_v61 = vpack.c.bf16 %v2361_v56, %v2359_v15  ;;  %v11275_v15 = vld [vmem:[#allocation20_spill] sm:$0xff] }
 0x98b   : > { %v8395_v38 = vrot.slane %v2571_v43, %v11271_v29  ;;  %v11277_v43 = vld [vmem:[#allocation4_spill] sm:$0xff] }
 0x98c   : > { %2394 = vmatpush1.bf16.msra.mxu1 %v2379_v21  ;;  %v2621_v21 = vrot.slane %v2528_v31, %v11272_v12  ;;  %v11276_v31 = vld [vmem:[#allocation2_spill] sm:$0xff] }
 0x98d   : > { %2395 = vmatprep.subr.bf16.mxu1 %v2378_v54  ;;  %v8392_v54 = vrot.slane %v2537_v4, %v11270_v58  ;;  %v2595_v4 = vmul.f32 %v8395_v38, %v11276_v31  ;;  %v2597_v12 = vmul.f32 %v8395_v38, %v11277_v43 }
 0x990   : > { %2396 = vmatpush1.bf16.msra.mxu1 %v2377_v36  ;;  %v11274_v36 = vld [vmem:[#allocation18_spill] sm:$0xff] }
 0x991   : > { %2397 = vmatprep.subr.bf16.mxu1 %v2376_v45  ;;  %v2561_v45 = vmul.f32 %v8392_v54, %v11274_v36 }
 0x993   : > { %v2611_v55 = vadd.f32 %v2595_v4, %v2561_v45 }
 0x994   : > { %2398 = vmatpush1.bf16.msra.mxu1 %v2375_v61  ;;  %v2563_v61 = vmul.f32 %v8392_v54, %v11275_v15 }
 0x996   : > { %v2613_v33 = vadd.f32 %v2597_v12, %v2563_v61  ;;  %v11280_v61 = vld [vmem:[#allocation23_spill] sm:$0xff] }
 0x997   : > { %6904 = vmatmul.mubr.msk.bf16.vlgmr.msra.gmra.mxu1 %vm977_vm0, %v7099_v6  ;;  %v8405_v6 = vrot.slane %v2533_v22, %v11270_v58  ;;  %v11278_v58 = vld [vmem:[#allocation3_spill] sm:$0xff] }
 0x998   : > { %2425 = vmatprep.mubr.bf16.mxu1 %v11189_v50 }
 0x999   : > { %v2560_v39 = vmul.f32 %v8405_v6, %v11274_v36  ;;  %v2562_v22 = vmul.f32 %v8405_v6, %v11275_v15 }
 0x99f   : > { %6905 = vmatmul.mubr.msk.bf16.gmra.mxu1 %vm977_vm0, %v7100_v27  ;;  %v8408_v27 = vrot.slane %v2567_v60, %v11271_v29 }
 0x9a0   : > { %2435 = vmatprep.mubr.bf16.mxu1 %v11189_v50 }
 0x9a1   : > { %v2594_v25 = vmul.f32 %v8408_v27, %v11276_v31  ;;  %v2596_v34 = vmul.f32 %v8408_v27, %v11277_v43 }
 0x9a3   : > { %v2610_v5 = vadd.f32 %v2594_v25, %v2560_v39  ;;  %v2612_v37 = vadd.f32 %v2596_v34, %v2562_v22  ;;  %v2559_v25 = vmul.f32 %v8392_v54, %v7601_v42  ;;  %v11281_v34 = vld [vmem:[#allocation17_spill] sm:$0xff] }
 0x9a4   : > { %v2591_v39 = vmul.f32 %v8395_v38, %v11281_v34 }
 0x9a7   : > { %6906 = vmatmul.mubr.msk.bf16.gmra.mxu1 %vm977_vm0, %v7101_v48  ;;  %v8411_v48 = vrot.slane %v2621_v21, %v11273_v2  ;;  %v8426_v21 = vrot.slane %v2617_v16, %v11273_v2 }
 0x9a8   : > { %2445 = vmatprep.mubr.bf16.mxu1 %v11189_v50 }
 0x9a9   : > { %v2645_v60 = vmul.f32 %v8411_v48, %v11278_v58  ;;  %v2647_v15 = vmul.f32 %v8411_v48, %v11279_v19  ;;  %v2644_v16 = vmul.f32 %v8426_v21, %v11278_v58  ;;  %v2646_v12 = vmul.f32 %v8426_v21, %v11279_v19  ;;  %v11283_v19 = vld [vmem:[#allocation19_spill] sm:$0xff] }
 0x9ab   : > { %v2661_v7 = vadd.f32 %v2645_v60, %v2611_v55  ;;  %v2663_v17 = vadd.f32 %v2647_v15, %v2613_v33  ;;  %v2660_v31 = vadd.f32 %v2644_v16, %v2610_v5  ;;  %v2662_v52 = vadd.f32 %v2646_v12, %v2612_v37  ;;  %v11282_v15 = vld [vmem:[#allocation9_spill] sm:$0xff] }
 0x9ac   : > { %v2557_v60 = vmul.f32 %v8392_v54, %v11282_v15  ;;  %v2556_v20 = vmul.f32 %v8405_v6, %v11282_v15 }
 0x9ad   : > { %v2677_v4 = vadd.f32 %v2661_v7, %v11280_v61  ;;  %v2679_v43 = vadd.f32 %v2663_v17, %v7612_v57  ;;  %v2676_v55 = vadd.f32 %v2660_v31, %v11280_v61  ;;  %v2678_v33 = vadd.f32 %v2662_v52, %v7612_v57  ;;  %v11284_v17 = vld [vmem:[#allocation5_spill] sm:$0xff] }
 0x9ae   : > { %v2593_v7 = vmul.f32 %v8395_v38, %v11283_v19  ;;  %v2641_v37 = vmul.f32 %v8411_v48, %v11284_v17  ;;  %v8456_v5 = vmul.f32 %v8426_v21, %v11284_v17  ;;  %v8460_v31 = vmul.f32 %v8411_v48, %v11285_v0 }
 0x9af   : > { %6907 = vmatmul.mubr.msk.bf16.gmra.mxu1 %vm977_vm0, %v7102_v30  ;;  %v2693_v12 = vmax.f32 %v2677_v4, 0.0  ;;  %v2695_v58 = vmax.f32 %v2679_v43, 0.0  ;;  %v8464_v52 = vmul.f32 %v8426_v21, %v11285_v0  ;;  %v2607_v57 = vadd.f32 %v2591_v39, %v2557_v60  ;;  %v11292_v39 = vld [vmem:[#allocation69_spill] sm:$0xff] }
 0x9b0   : > { %2833 = vmatprep.mubr.bf16.mxu1 %v11189_v50  ;;  %11286 = vst [vmem:[#allocation25_spill] sm:$0xff] %v8460_v31  ;;  %v2609_v61 = vadd.f32 %v2593_v7, %v2559_v25  ;;  %v11288_v50 = vld [vmem:[#allocation8_spill] sm:$0xff]  ;;  %v2692_v4 = vmax.f32 %v2676_v55, 0.0  ;;  %v2694_v43 = vmax.f32 %v2678_v33, 0.0  ;;  %v8478_v0 = vmul.f32 %v8395_v38, %v11290_v63 }
 0x9b1   : > { %11287 = vst [vmem:[#allocation71_spill] sm:$0xff] %v8464_v52  ;;  %v8470_v17 = vmul.f32 %v8395_v38, %v11288_v50  ;;  %v8474_v8 = vmul.f32 %v8408_v27, %v11288_v50  ;;  %v11293_v7 = vld [vmem:[#allocation68_spill] sm:$0xff]  ;;  %v11294_v52 = vld [vmem:[#allocation21_spill] sm:$0xff]  ;;  %v8486_v11 = vpack.c.bf16 %v2695_v58, %v2693_v12  ;;  %v2590_v50 = vmul.f32 %v8408_v27, %v11281_v34 }
 0x9b2   : > { %11291 = vst [vmem:[#allocation73_spill] sm:$0xff] %v8478_v0  ;;  %v2643_v51 = vmul.f32 %v8411_v48, %v11294_v52  ;;  %v8492_v0 = vmul.f32 %v8408_v27, %v11290_v63  ;;  %v2558_v58 = vmul.f32 %v8405_v6, %v7601_v42 }
 0x9b3   : > { %11289 = vst [vmem:[#allocation72_spill] sm:$0xff] %v8474_v8 }
 0x9b4   : > { %v2659_v40 = vadd.f32 %v2643_v51, %v2609_v61 }
 0x9b6   : > { %v8509_v51 = vadd.f32 %v2659_v40, %v11225_v62 }
 0xa57   : > { %v8373_v35 = vpop.f32.mrf.mxu1 }
 0xa59   : > { %v8375_v47 = vpop.f32.mrf.mxu1 }
 0xa5b   : > { %v8378_v14 = vpop.f32.mrf.mxu1 }
 0xa5d   : > { %v8380_v9 = vpop.f32.mrf.mxu1 }
 0xa5f   : > { %v8384_v24 = vpop.f32.mrf.mxu1 }
 0xa61   : > { %v8389_v59 = vpop.f32.mrf.mxu1 }
 0xa63   : > { %v8398_v56 = vpop.f32.mrf.mxu1 }
 0xa65   : > { %v8413_v30 = vpop.f32.mrf.mxu1 }
 0xa66   : > { %v2434_v12 = vadd.f32 %v8413_v30, %v8098_v3  ;;  %v2592_v30 = vmul.f32 %v8408_v27, %v11283_v19 }
 0xa67   : > { %v8428_v29 = vpop.f32.mrf.mxu1 }
 0xa69   : > { %v2439_v36 = vpop.f32.mrf.mxu1 }
 0xa6b   : > { %v2441_v2 = vpop.f32.mrf.mxu1 }
 0xa6c   : > { %v2442_v8 = vadd.f32 %v2441_v2, %v8054_v1  ;;  %v2430_v2 = vadd.f32 %v8389_v59, %v8106_v26  ;;  %v2428_v59 = vadd.f32 %v8384_v24, %v8106_v26  ;;  %v2422_v24 = vadd.f32 %v8378_v14, %v8119_v18 }
 0xa6d   : > { %v2443_v45 = vpop.f32.mrf.mxu1  ;;  %v2588_v14 = vmul.f32 %v8408_v27, %v7631_v28 }
 0xa6e   : > { %v2444_v25 = vadd.f32 %v2443_v45, %v8054_v1  ;;  %v2440_v45 = vadd.f32 %v2439_v36, %v8070_v53  ;;  %v2438_v36 = vadd.f32 %v8428_v29, %v8070_v53 }
 0xa6f   : > { %v2447_v22 = vpop.f32.mrf.mxu1 }
 0xa70   : > { %v2448_v55 = vadd.f32 %v2447_v22, %v11292_v39  ;;  %v8497_v22 = vpack.c.bf16 %v2694_v43, %v2692_v4  ;;  %v2465_v61 = vmax.f32 %v2440_v45, 0.0  ;;  %v2466_v4 = vmax.f32 %v2442_v8, 0.0 }
 0xa71   : > { %v2449_v16 = vpop.f32.mrf.mxu1  ;;  %v2606_v43 = vadd.f32 %v2590_v50, %v2556_v20  ;;  %v2420_v50 = vadd.f32 %v8375_v47, %v8127_v44  ;;  %v2461_v8 = vmax.f32 %v2430_v2, 0.0  ;;  %v2642_v20 = vmul.f32 %v8426_v21, %v11294_v52 }
 0xa72   : > { %v2450_v60 = vadd.f32 %v2449_v16, %v11292_v39  ;;  %v2467_v39 = vmax.f32 %v2444_v25, 0.0  ;;  %v2424_v25 = vadd.f32 %v8380_v9, %v8119_v18  ;;  %v2553_v9 = vmul.f32 %v8392_v54, %v7618_v10 }
 0xa73   : > { %v2451_v41 = vpop.f32.mrf.mxu1  ;;  %v2555_v45 = vmul.f32 %v8392_v54, %v7623_v23  ;;  %v2656_v47 = vadd.f32 %v8456_v5, %v2606_v43  ;;  %v2457_v2 = vmax.f32 %v2420_v50, 0.0  ;;  %v2552_v5 = vmul.f32 %v8405_v6, %v7618_v10 }
 0xa74   : > { %v2452_v15 = vadd.f32 %v2451_v41, %v11293_v7  ;;  %v2657_v41 = vadd.f32 %v2641_v37, %v2607_v57  ;;  %v2469_v63 = vmax.f32 %v2450_v60, 0.0  ;;  %v2432_v37 = vadd.f32 %v8398_v56, %v8098_v3 }
 0xa75   : > { %v2453_v33 = vpop.f32.mrf.mxu1  ;;  %v2463_v60 = vmax.f32 %v2434_v12, 0.0  ;;  %v2477_v40 = vpack.c.bf16 %v2467_v39, %v2465_v61  ;;  %v2589_v56 = vmul.f32 %v8395_v38, %v7631_v28  ;;  %v2418_v12 = vadd.f32 %v8373_v35, %v8127_v44 }
 0xa76   : > { %v2454_v16 = vadd.f32 %v2453_v33, %v11293_v7  ;;  %v2470_v31 = vmax.f32 %v2452_v15, 0.0  ;;  %v2468_v33 = vmax.f32 %v2448_v55, 0.0  ;;  %v8506_v57 = vadd.f32 %v2657_v41, %v11228_v13 }
 0xa77   : > { %v2608_v55 = vadd.f32 %v2592_v30, %v2558_v58  ;;  %v2475_v41 = vpack.c.bf16 %v2463_v60, %v2461_v8  ;;  %v2637_v58 = vmul.f32 %v8411_v48, %v7637_v32  ;;  %v2458_v30 = vmax.f32 %v2422_v24, 0.0  ;;  %v11297_v8 = vld [vmem:[#allocation29_spill] sm:$0xff] }
 0xa78   : > { %v2471_v34 = vmax.f32 %v2454_v16, 0.0  ;;  %v2478_v29 = vpack.c.bf16 %v2470_v31, %v2468_v33  ;;  %v2462_v31 = vmax.f32 %v2432_v37, 0.0  ;;  %v2459_v16 = vmax.f32 %v2424_v25, 0.0 }
 0xa79   : > { %v2605_v33 = vadd.f32 %v2589_v56, %v2555_v45  ;;  %v2658_v61 = vadd.f32 %v2642_v20, %v2608_v55  ;;  %v2554_v35 = vmul.f32 %v8405_v6, %v7623_v23  ;;  %v2636_v43 = vmul.f32 %v8426_v21, %v7637_v32 }
 0xa7a   : > { %v2479_v15 = vpack.c.bf16 %v2471_v34, %v2469_v63  ;;  %v2464_v63 = vmax.f32 %v2438_v36, 0.0  ;;  %v2691_v34 = vmax.f32 %v8509_v51, 0.0  ;;  %v2460_v36 = vmax.f32 %v2428_v59, 0.0  ;;  %v11295_v59 = vld [vmem:[#allocation25_spill] sm:$0xff] }
 0xa7b   : > { %v2551_v25 = vmul.f32 %v8392_v54, %v11226_v49  ;;  %v2583_v60 = vmul.f32 %v8395_v38, %v11227_v46  ;;  %v2604_v56 = vadd.f32 %v2588_v14, %v2554_v35  ;;  %v2549_v20 = vmul.f32 %v8392_v54, %v11297_v8  ;;  %v11301_v54 = vld [vmem:[#allocation73_spill] sm:$0xff]  ;;  %v11302_v14 = vld [vmem:[#allocation71_spill] sm:$0xff] }
 0xa7c   : > { %2488 = vmatprep.subr.bf16.mxu0 %v2479_v15  ;;  %v2476_v39 = vpack.c.bf16 %v2466_v4, %v2464_v63  ;;  %v2672_v15 = vadd.f32 %v2656_v47, %v11228_v13  ;;  %v2474_v37 = vpack.c.bf16 %v2462_v31, %v2460_v36  ;;  %v2603_v4 = vadd.f32 %v8470_v17, %v2553_v9  ;;  %v11296_v17 = vld [vmem:[#allocation72_spill] sm:$0xff]  ;;  %v11298_v9 = vld [vmem:[#allocation30_spill] sm:$0xff]  ;;  %v11299_v31 = vld [vmem:[#allocation31_spill] sm:$0xff] }
 0xa7d   : > { %2489 = vmatpush1.bf16.msra.mxu0 %v2478_v29  ;;  %v2473_v29 = vpack.c.bf16 %v2459_v16, %v2457_v2  ;;  %v2655_v63 = vadd.f32 %v11295_v59, %v2605_v33  ;;  %v2602_v50 = vadd.f32 %v11296_v17, %v2552_v5  ;;  %v2633_v24 = vmul.f32 %v8411_v48, %v11298_v9  ;;  %v11300_v47 = vld [vmem:[#allocation33_spill] sm:$0xff] }
 0xa7e   : > { %2490 = vmatprep.subr.bf16.mxu0 %v2477_v40  ;;  %v2456_v40 = vmax.f32 %v2418_v12, 0.0  ;;  %v2653_v55 = vadd.f32 %v2637_v58, %v2603_v4  ;;  %v2674_v38 = vadd.f32 %v2658_v61, %v11225_v62  ;;  %v2550_v16 = vmul.f32 %v8405_v6, %v11226_v49 }
 0xa7f   : > { %v2671_v58 = vadd.f32 %v2655_v63, %v11300_v47  ;;  %v2652_v12 = vadd.f32 %v2636_v43, %v2602_v50  ;;  %v2599_v36 = vadd.f32 %v2583_v60, %v2549_v20  ;;  %v2601_v33 = vadd.f32 %v11301_v54, %v2551_v25  ;;  %v7103_v60 = vld [vmem:[%s10687_s13] sm:$0x3] }
 0xa80   : > { %v2472_v45 = vpack.c.bf16 %v2458_v30, %v2456_v40  ;;  %v2654_v2 = vadd.f32 %v11302_v14, %v2604_v56  ;;  %v2632_v61 = vmul.f32 %v8426_v21, %v11298_v9  ;;  %v2634_v5 = vmul.f32 %v8426_v21, %v11299_v31  ;;  %v11303_v30 = vld [vmem:[#allocation32_spill] sm:$0xff]  ;;  %v11306_v50 = vld [vmem:[#allocation34_spill] sm:$0xff] }
 0xa81   : > { %2491 = vmatpush1.bf16.msra.mxu0 %v2476_v39  ;;  %v2635_v39 = vmul.f32 %v8411_v48, %v11299_v31  ;;  %v2548_v48 = vmul.f32 %v8405_v6, %v11297_v8  ;;  %v2649_v4 = vadd.f32 %v2633_v24, %v2599_v36  ;;  %v2600_v6 = vadd.f32 %v8492_v0, %v2550_v16  ;;  %v7104_v54 = vld [vmem:[%s10677_s3] sm:$0xff]   ;;  %v7106_v14 = vld [vmem:[%s10677_s3 + $0x10] sm:$0xff]  }
 0xa82   : > { %2492 = vmatprep.subr.bf16.mxu0 %v2475_v41  ;;  %v2582_v41 = vmul.f32 %v8408_v27, %v11227_v46  ;;  %v2689_v27 = vmax.f32 %v8506_v57, 0.0  ;;  %v2670_v43 = vadd.f32 %v2654_v2, %v11300_v47  ;;  %v2687_v21 = vmax.f32 %v2671_v58, 0.0  ;;  %v11304_v57 = vld [vmem:[#allocation35_spill] sm:$0xff]  ;;  %v7107_v2 = vld [vmem:[%s10677_s3 + $0x18] sm:$0xff]  }
 0xa83   : > { %v2651_v35 = vadd.f32 %v2635_v39, %v2601_v33  ;;  %v2665_v40 = vadd.f32 %v2649_v4, %v11304_v57  ;;  %v2668_v59 = vadd.f32 %v2652_v12, %v11303_v30  ;;  %v2650_v56 = vadd.f32 %v2634_v5, %v2600_v6  ;;  %v7105_v33 = vld [vmem:[%s10677_s3 + $0x8] sm:$0xff]  }
 0xa84   : > { %v2598_v25 = vadd.f32 %v2582_v41, %v2548_v48  ;;  %v11305_v0 = vmov 0   ;;  %v2686_v39 = vmax.f32 %v2670_v43, 0.0 }
 0xa85   : > { %2493 = vmatpush1.bf16.msra.mxu0 %v2474_v37  ;;  %v2669_v37 = vadd.f32 %v2653_v55, %v11303_v30  ;;  %v2688_v55 = vmax.f32 %v2672_v15, 0.0  ;;  %v2667_v20 = vadd.f32 %v2651_v35, %v11306_v50 }
 0xa86   : > { %2494 = vmatprep.subr.bf16.mxu0 %v2473_v29  ;;  %v2690_v29 = vmax.f32 %v2674_v38, 0.0  ;;  %v2648_v63 = vadd.f32 %v2632_v61, %v2598_v25  ;;  %v2684_v38 = vmax.f32 %v2668_v59, 0.0  ;;  %v11307_v61 = vld [vmem:[#allocation26_spill] sm:$0xff] }
 0xa87   : > { %v2685_v17 = vmax.f32 %v2669_v37, 0.0  ;;  %v2683_v15 = vmax.f32 %v2667_v20, 0.0 }
 0xa88   : > { %v2700_v24 = vpack.c.bf16 %v2690_v29, %v2688_v55  ;;  %v2664_v51 = vadd.f32 %v2648_v63, %v11304_v57  ;;  %v2698_v16 = vpack.c.bf16 %v2686_v39, %v2684_v38  ;;  %v11355_v57 = vld [vmem:[#allocation6_spill] sm:$0xff] }
 0xa89   : > { %2495 = vmatpush1.bf16.msra.mxu0 %v2472_v45  ;;  %v2681_v45 = vmax.f32 %v2665_v40, 0.0 }
 0xa8a   : > { %2712 = vmatprep.subr.bf16.mxu0 %v8486_v11  ;;  %v2701_v11 = vpack.c.bf16 %v2691_v34, %v2689_v27  ;;  %v2699_v34 = vpack.c.bf16 %v2687_v21, %v2685_v17  ;;  %v2680_v41 = vmax.f32 %v2664_v51, 0.0 }
 0xa8b   : > { %v2697_v58 = vpack.c.bf16 %v2683_v15, %v2681_v45  ;;  %v11308_v45 = vld [vmem:[#allocation38_spill] sm:$0xff] }
 0xa8c   : > { %6908 = vmatmul.mubr.msk.bf16.vlgmr.msra.gmra.mxu0 %vm977_vm0, %v7103_v60 }
 0xa8d   : > { %2713 = vmatpush1.bf16.msra.mxu0 %v8497_v22  ;;  %2736 = vmatprep.mubr.bf16.mxu0 %v11305_v0  ;;  %v2666_v22 = vadd.f32 %v2650_v56, %v11306_v50  ;;  %v11353_v50 = vld [vmem:[#allocation9_spill] sm:$0xff] }
 0xa8e   : > { %2714 = vmatprep.subr.bf16.mxu0 %v2701_v11 }
 0xa8f   : > { %v2682_v12 = vmax.f32 %v2666_v22, 0.0  ;;  %v11309_v22 = vld [vmem:[#allocation37_spill] sm:$0xff] }
 0xa91   : > { %2715 = vmatpush1.bf16.msra.mxu0 %v2700_v24  ;;  %v2696_v36 = vpack.c.bf16 %v2682_v12, %v2680_v41 }
 0xa92   : > { %2716 = vmatprep.subr.bf16.mxu0 %v2699_v34 }
 0xa95   : > { %2717 = vmatpush1.bf16.msra.mxu0 %v2698_v16  ;;  %v11310_v16 = vld [vmem:[#allocation36_spill] sm:$0xff] }
 0xa96   : > { %2718 = vmatprep.subr.bf16.mxu0 %v2697_v58 }
 0xa99   : > { %2719 = vmatpush1.bf16.msra.mxu0 %v2696_v36  ;;  %v11311_v36 = vld [vmem:[#allocation39_spill] sm:$0xff] }
 0xa9c   : > { %6909 = vmatmul.mubr.msk.bf16.vlgmr.msra.gmra.mxu0 %vm977_vm0, %v7104_v54 }
 0xa9d   : > { %2746 = vmatprep.mubr.bf16.mxu0 %v11305_v0 }
 0xaa4   : > { %6910 = vmatmul.mubr.msk.bf16.gmra.mxu0 %vm977_vm0, %v7105_v33 }
 0xaa5   : > { %2756 = vmatprep.mubr.bf16.mxu0 %v11305_v0 }
 0xaac   : > { %6911 = vmatmul.mubr.msk.bf16.gmra.mxu0 %vm977_vm0, %v7106_v14 }
 0xaad   : > { %2766 = vmatprep.mubr.bf16.mxu0 %v11305_v0 }
 0xab4   : > { %6912 = vmatmul.mubr.msk.bf16.gmra.mxu0 %vm977_vm0, %v7107_v2 }
 0xab5   : > { %2930 = vmatprep.mubr.bf16.mxu0 %v11305_v0 }
 0xb4c   : > { %v2514_v48 = vpop.f32.mrf.mxu0 }
 0xb4d   : > { %v2515_v5 = vadd.f32 %v2514_v48, %v11307_v61  ;;  %v11312_v48 = vld [vmem:[#allocation40_spill] sm:$0xff] }
 0xb4e   : > { %v2516_v27 = vpop.f32.mrf.mxu0 }
 0xb4f   : > { %v2517_v37 = vadd.f32 %v2516_v27, %v11307_v61  ;;  %v2521_v35 = vmax.f32 %v2515_v5, 0.0 }
 0xb50   : > { %v2518_v4 = vpop.f32.mrf.mxu0 }
 0xb51   : > { %v2522_v29 = vmax.f32 %v2517_v37, 0.0 }
 0xb52   : > { %v2519_v43 = vpop.f32.mrf.mxu0 }
 0xb53   : > { %v2525_v25 = vcombine.low %v2521_v35, %v2522_v29  ;;  %v11313_v43 = vld [vmem:[#allocation41_spill] sm:$0xff] }
 0xb55   : > { %2527 = vst [vmem:[%s8226_s21 + $0x8] sm:$0xff] %v2525_v25 }
 0xb5c   : > { %v2738_v6 = vpop.f32.mrf.mxu0 }
 0xb5e   : > { %v2740_v60 = vpop.f32.mrf.mxu0 }
 0xb60   : > { %v2742_v11 = vpop.f32.mrf.mxu0 }
 0xb62   : > { %v2744_v21 = vpop.f32.mrf.mxu0 }
 0xb64   : > { %v2748_v40 = vpop.f32.mrf.mxu0 }
 0xb66   : > { %v2750_v55 = vpop.f32.mrf.mxu0 }
 0xb67   : > { %v2751_v25 = vadd.f32 %v2750_v55, %v11313_v43 }
 0xb68   : > { %v2752_v59 = vpop.f32.mrf.mxu0 }
 0xb6a   : > { %v2754_v63 = vpop.f32.mrf.mxu0 }
 0xb6b   : > { %v2755_v5 = vadd.f32 %v2754_v63, %v11312_v48  ;;  %v2749_v63 = vadd.f32 %v2748_v40, %v11313_v43 }
 0xb6c   : > { %v2758_v56 = vpop.f32.mrf.mxu0 }
 0xb6d   : > { %v2759_v35 = vadd.f32 %v2758_v56, %v11311_v36 }
 0xb6e   : > { %v2760_v17 = vpop.f32.mrf.mxu0 }
 0xb6f   : > { %v2761_v54 = vadd.f32 %v2760_v17, %v11311_v36 }
 0xb70   : > { %v2762_v20 = vpop.f32.mrf.mxu0 }
 0xb71   : > { %v2763_v14 = vadd.f32 %v2762_v20, %v11308_v45  ;;  %v2784_v20 = vmax.f32 %v2755_v5, 0.0 }
 0xb72   : > { %v2764_v24 = vpop.f32.mrf.mxu0 }
 0xb73   : > { %v2765_v38 = vadd.f32 %v2764_v24, %v11308_v45  ;;  %v2786_v24 = vmax.f32 %v2761_v54, 0.0  ;;  %v2787_v17 = vmax.f32 %v2763_v14, 0.0 }
 0xb74   : > { %v2768_v39 = vpop.f32.mrf.mxu0 }
 0xb75   : > { %v2769_v58 = vadd.f32 %v2768_v39, %v11309_v22  ;;  %v2788_v27 = vmax.f32 %v2765_v38, 0.0  ;;  %v2785_v38 = vmax.f32 %v2759_v35, 0.0  ;;  %v7111_v35 = vld [vmem:[%s10679_s5 + $0x18] sm:$0xff]  }
 0xb76   : > { %v2770_v51 = vpop.f32.mrf.mxu0 }
 0xb77   : > { %v2771_v15 = vadd.f32 %v2770_v51, %v11309_v22  ;;  %v2789_v29 = vmax.f32 %v2769_v58, 0.0  ;;  %v2753_v51 = vadd.f32 %v2752_v59, %v11312_v48  ;;  %v2782_v58 = vmax.f32 %v2751_v25, 0.0  ;;  %v11321_v48 = vld [vmem:[#allocation49_spill] sm:$0xff] }
 0xb78   : > { %v2772_v34 = vpop.f32.mrf.mxu0 }
 0xb79   : > { %v2773_v41 = vadd.f32 %v2772_v34, %v11310_v16  ;;  %v2790_v37 = vmax.f32 %v2771_v15, 0.0  ;;  %v11315_v15 = vld [vmem:[#allocation43_spill] sm:$0xff]  ;;  %v2783_v54 = vmax.f32 %v2753_v51, 0.0  ;;  %v2796_v14 = vpack.c.bf16 %v2784_v20, %v2782_v58 }
 0xb7a   : > { %v2774_v12 = vpop.f32.mrf.mxu0  ;;  %v2741_v56 = vadd.f32 %v2740_v60, %v11315_v15 }
 0xb7b   : > { %v2775_v33 = vadd.f32 %v2774_v12, %v11310_v16  ;;  %v2791_v2 = vmax.f32 %v2773_v41, 0.0  ;;  %v11314_v12 = vld [vmem:[#allocation42_spill] sm:$0xff]  ;;  %v2798_v41 = vpack.c.bf16 %v2788_v27, %v2786_v24 }
 0xb7c   : > { %v2745_v16 = vadd.f32 %v2744_v21, %v11314_v12  ;;  %v2743_v55 = vadd.f32 %v2742_v11, %v11314_v12  ;;  %v2781_v21 = vmax.f32 %v2749_v63, 0.0  ;;  %v2778_v5 = vmax.f32 %v2741_v56, 0.0  ;;  %v7108_v11 = vld [vmem:[%s10679_s5] sm:$0xff]  }
 0xb7d   : > { %v2792_v4 = vmax.f32 %v2775_v33, 0.0  ;;  %v2799_v34 = vpack.c.bf16 %v2791_v2, %v2789_v29  ;;  %v2797_v33 = vpack.c.bf16 %v2787_v17, %v2785_v38  ;;  %v2739_v2 = vadd.f32 %v2738_v6, %v11315_v15  ;;  %v7109_v6 = vld [vmem:[%s10679_s5 + $0x8] sm:$0xff]  }
 0xb7e   : > { %v2780_v59 = vmax.f32 %v2745_v16, 0.0  ;;  %v2779_v27 = vmax.f32 %v2743_v55, 0.0  ;;  %v2795_v40 = vpack.c.bf16 %v2783_v54, %v2781_v21  ;;  %v7110_v16 = vld [vmem:[%s10679_s5 + $0x10] sm:$0xff]  }
 0xb7f   : > { %v2800_v39 = vpack.c.bf16 %v2792_v4, %v2790_v37  ;;  %v2777_v4 = vmax.f32 %v2739_v2, 0.0  ;;  %v11318_v21 = vld [vmem:[#allocation44_spill] sm:$0xff] }
 0xb80   : > { %v2794_v37 = vpack.c.bf16 %v2780_v59, %v2778_v5 }
 0xb81   : > { %2809 = vmatprep.subr.bf16.mxu1 %v2800_v39  ;;  %v2793_v60 = vpack.c.bf16 %v2779_v27, %v2777_v4 }
 0xb82   : > { %2810 = vmatpush1.bf16.msra.mxu1 %v2799_v34 }
 0xb83   : > { %2811 = vmatprep.subr.bf16.mxu1 %v2798_v41 }
 0xb86   : > { %2812 = vmatpush1.bf16.msra.mxu1 %v2797_v33  ;;  %v11316_v33 = vld [vmem:[#allocation46_spill] sm:$0xff] }
 0xb87   : > { %2813 = vmatprep.subr.bf16.mxu1 %v2796_v14  ;;  %v11317_v14 = vld [vmem:[#allocation45_spill] sm:$0xff] }
 0xb8a   : > { %2814 = vmatpush1.bf16.msra.mxu1 %v2795_v40 }
 0xb8b   : > { %2815 = vmatprep.subr.bf16.mxu1 %v2794_v37  ;;  %v11319_v37 = vld [vmem:[#allocation47_spill] sm:$0xff] }
 0xb8e   : > { %2816 = vmatpush1.bf16.msra.mxu1 %v2793_v60 }
 0xb91   : > { %6913 = vmatmul.mubr.msk.bf16.vlgmr.msra.gmra.mxu1 %vm977_vm0, %v7108_v11 }
 0xb92   : > { %2843 = vmatprep.mubr.bf16.mxu1 %v11305_v0 }
 0xb99   : > { %6914 = vmatmul.mubr.msk.bf16.gmra.mxu1 %vm977_vm0, %v7109_v6 }
 0xb9a   : > { %2853 = vmatprep.mubr.bf16.mxu1 %v11305_v0 }
 0xba1   : > { %6915 = vmatmul.mubr.msk.bf16.gmra.mxu1 %vm977_vm0, %v7110_v16  ;;  %v11320_v16 = vld [vmem:[#allocation48_spill] sm:$0xff] }
 0xba2   : > { %2863 = vmatprep.mubr.bf16.mxu1 %v11305_v0 }
 0xba9   : > { %6916 = vmatmul.mubr.msk.bf16.gmra.mxu1 %vm977_vm0, %v7111_v35 }
 0xbaa   : > { %3027 = vmatprep.mubr.bf16.mxu1 %v11305_v0 }
 0xc51   : > { %v2835_v29 = vpop.f32.mrf.mxu1 }
 0xc53   : > { %v2837_v25 = vpop.f32.mrf.mxu1 }
 0xc55   : > { %v2839_v24 = vpop.f32.mrf.mxu1 }
 0xc57   : > { %v2841_v39 = vpop.f32.mrf.mxu1 }
 0xc59   : > { %v2845_v51 = vpop.f32.mrf.mxu1 }
 0xc5b   : > { %v2847_v17 = vpop.f32.mrf.mxu1 }
 0xc5d   : > { %v2849_v34 = vpop.f32.mrf.mxu1 }
 0xc5f   : > { %v2851_v20 = vpop.f32.mrf.mxu1 }
 0xc60   : > { %v2852_v35 = vadd.f32 %v2851_v20, %v11320_v16  ;;  %v2846_v20 = vadd.f32 %v2845_v51, %v11321_v48 }
 0xc61   : > { %v2855_v41 = vpop.f32.mrf.mxu1 }
 0xc63   : > { %v2857_v63 = vpop.f32.mrf.mxu1 }
 0xc64   : > { %v2858_v4 = vadd.f32 %v2857_v63, %v11319_v37 }
 0xc65   : > { %v2859_v38 = vpop.f32.mrf.mxu1 }
 0xc66   : > { %v2860_v11 = vadd.f32 %v2859_v38, %v11316_v33  ;;  %v2883_v36 = vmax.f32 %v2858_v4, 0.0  ;;  %v2881_v38 = vmax.f32 %v2852_v35, 0.0 }
 0xc67   : > { %v2861_v56 = vpop.f32.mrf.mxu1 }
 0xc68   : > { %v2862_v59 = vadd.f32 %v2861_v56, %v11316_v33  ;;  %v2856_v56 = vadd.f32 %v2855_v41, %v11319_v37  ;;  %v2884_v63 = vmax.f32 %v2860_v11, 0.0 }
 0xc69   : > { %v2865_v58 = vpop.f32.mrf.mxu1 }
 0xc6a   : > { %v2866_v27 = vadd.f32 %v2865_v58, %v11317_v14  ;;  %v2885_v15 = vmax.f32 %v2862_v59, 0.0  ;;  %v2882_v59 = vmax.f32 %v2856_v56, 0.0 }
 0xc6b   : > { %v2867_v55 = vpop.f32.mrf.mxu1 }
 0xc6c   : > { %v2868_v2 = vadd.f32 %v2867_v55, %v11317_v14  ;;  %v2886_v55 = vmax.f32 %v2866_v27, 0.0  ;;  %v2850_v14 = vadd.f32 %v2849_v34, %v11320_v16  ;;  %v11329_v16 = vld [vmem:[#allocation57_spill] sm:$0xff] }
 0xc6d   : > { %v2869_v54 = vpop.f32.mrf.mxu1 }
 0xc6e   : > { %v2870_v5 = vadd.f32 %v2869_v54, %v11318_v21  ;;  %v2887_v12 = vmax.f32 %v2868_v2, 0.0  ;;  %v2848_v54 = vadd.f32 %v2847_v17, %v11321_v48  ;;  %v11323_v2 = vld [vmem:[#allocation51_spill] sm:$0xff] }
 0xc6f   : > { %v2871_v40 = vpop.f32.mrf.mxu1  ;;  %v2838_v41 = vadd.f32 %v2837_v25, %v11323_v2 }
 0xc70   : > { %v2872_v60 = vadd.f32 %v2871_v40, %v11318_v21  ;;  %v2888_v6 = vmax.f32 %v2870_v5, 0.0  ;;  %v11322_v40 = vld [vmem:[#allocation50_spill] sm:$0xff]  ;;  %v2895_v5 = vpack.c.bf16 %v2885_v15, %v2883_v36  ;;  %v2879_v27 = vmax.f32 %v2848_v54, 0.0 }
 0xc71   : > { %v2842_v21 = vadd.f32 %v2841_v39, %v11322_v40  ;;  %v2840_v17 = vadd.f32 %v2839_v24, %v11322_v40  ;;  %v2878_v39 = vmax.f32 %v2846_v20, 0.0  ;;  %v2875_v11 = vmax.f32 %v2838_v41, 0.0  ;;  %v7112_v24 = vld [vmem:[%s10681_s7] sm:$0xff]  }
 0xc72   : > { %v2889_v43 = vmax.f32 %v2872_v60, 0.0  ;;  %v2896_v22 = vpack.c.bf16 %v2888_v6, %v2886_v55  ;;  %v2893_v4 = vpack.c.bf16 %v2881_v38, %v2879_v27  ;;  %v2836_v60 = vadd.f32 %v2835_v29, %v11323_v2  ;;  %v7113_v29 = vld [vmem:[%s10681_s7 + $0x8] sm:$0xff]  }
 0xc73   : > { %v2877_v34 = vmax.f32 %v2842_v21, 0.0  ;;  %v2876_v36 = vmax.f32 %v2840_v17, 0.0  ;;  %v7115_v21 = vld [vmem:[%s10681_s7 + $0x18] sm:$0xff]  }
 0xc74   : > { %v2897_v58 = vpack.c.bf16 %v2889_v43, %v2887_v12  ;;  %v2880_v43 = vmax.f32 %v2850_v14, 0.0  ;;  %v2894_v12 = vpack.c.bf16 %v2884_v63, %v2882_v59  ;;  %v7114_v14 = vld [vmem:[%s10681_s7 + $0x10] sm:$0xff]  }
 0xc75   : > { %v2891_v51 = vpack.c.bf16 %v2877_v34, %v2875_v11 }
 0xc76   : > { %2906 = vmatprep.subr.bf16.mxu0 %v2897_v58  ;;  %v2892_v15 = vpack.c.bf16 %v2880_v43, %v2878_v39  ;;  %v11326_v39 = vld [vmem:[#allocation52_spill] sm:$0xff] }
 0xc77   : > { %2907 = vmatpush1.bf16.msra.mxu0 %v2896_v22  ;;  %v2874_v22 = vmax.f32 %v2836_v60, 0.0 }
 0xc78   : > { %2908 = vmatprep.subr.bf16.mxu0 %v2895_v5 }
 0xc79   : > { %v2890_v25 = vpack.c.bf16 %v2876_v36, %v2874_v22 }
 0xc7b   : > { %2909 = vmatpush1.bf16.msra.mxu0 %v2894_v12  ;;  %v11324_v12 = vld [vmem:[#allocation54_spill] sm:$0xff] }
 0xc7c   : > { %2910 = vmatprep.subr.bf16.mxu0 %v2893_v4  ;;  %v11325_v4 = vld [vmem:[#allocation53_spill] sm:$0xff] }
 0xc7f   : > { %2911 = vmatpush1.bf16.msra.mxu0 %v2892_v15 }
 0xc80   : > { %2912 = vmatprep.subr.bf16.mxu0 %v2891_v51  ;;  %v11327_v51 = vld [vmem:[#allocation55_spill] sm:$0xff] }
 0xc83   : > { %2913 = vmatpush1.bf16.msra.mxu0 %v2890_v25 }
 0xc86   : > { %6917 = vmatmul.mubr.msk.bf16.vlgmr.msra.gmra.mxu0 %vm977_vm0, %v7112_v24 }
 0xc87   : > { %2940 = vmatprep.mubr.bf16.mxu0 %v11305_v0 }
 0xc8e   : > { %6918 = vmatmul.mubr.msk.bf16.gmra.mxu0 %vm977_vm0, %v7113_v29 }
 0xc8f   : > { %2950 = vmatprep.mubr.bf16.mxu0 %v11305_v0 }
 0xc96   : > { %6919 = vmatmul.mubr.msk.bf16.gmra.mxu0 %vm977_vm0, %v7114_v14  ;;  %v11328_v14 = vld [vmem:[#allocation56_spill] sm:$0xff] }
 0xc97   : > { %2960 = vmatprep.mubr.bf16.mxu0 %v11305_v0 }
 0xc9e   : > { %6920 = vmatmul.mubr.msk.bf16.gmra.mxu0 %vm977_vm0, %v7115_v21 }
 0xc9f   : > { %3124 = vmatprep.mubr.bf16.mxu0 %v11305_v0 }
 0xd46   : > { %v2932_v6 = vpop.f32.mrf.mxu0 }
 0xd48   : > { %v2934_v35 = vpop.f32.mrf.mxu0 }
 0xd4a   : > { %v2936_v56 = vpop.f32.mrf.mxu0 }
 0xd4c   : > { %v2938_v55 = vpop.f32.mrf.mxu0 }
 0xd4e   : > { %v2942_v54 = vpop.f32.mrf.mxu0 }
 0xd50   : > { %v2944_v58 = vpop.f32.mrf.mxu0 }
 0xd52   : > { %v2946_v63 = vpop.f32.mrf.mxu0 }
 0xd54   : > { %v2948_v38 = vpop.f32.mrf.mxu0 }
 0xd55   : > { %v2949_v21 = vadd.f32 %v2948_v38, %v11328_v14  ;;  %v2943_v38 = vadd.f32 %v2942_v54, %v11329_v16 }
 0xd56   : > { %v2952_v5 = vpop.f32.mrf.mxu0 }
 0xd58   : > { %v2954_v20 = vpop.f32.mrf.mxu0 }
 0xd59   : > { %v2955_v22 = vadd.f32 %v2954_v20, %v11327_v51 }
 0xd5a   : > { %v2956_v59 = vpop.f32.mrf.mxu0 }
 0xd5b   : > { %v2957_v24 = vadd.f32 %v2956_v59, %v11324_v12  ;;  %v2980_v37 = vmax.f32 %v2955_v22, 0.0  ;;  %v2978_v59 = vmax.f32 %v2949_v21, 0.0 }
 0xd5c   : > { %v2958_v41 = vpop.f32.mrf.mxu0 }
 0xd5d   : > { %v2959_v34 = vadd.f32 %v2958_v41, %v11324_v12  ;;  %v2953_v41 = vadd.f32 %v2952_v5, %v11327_v51  ;;  %v2981_v20 = vmax.f32 %v2957_v24, 0.0 }
 0xd5e   : > { %v2962_v27 = vpop.f32.mrf.mxu0 }
 0xd5f   : > { %v2963_v36 = vadd.f32 %v2962_v27, %v11325_v4  ;;  %v2982_v2 = vmax.f32 %v2959_v34, 0.0  ;;  %v2979_v34 = vmax.f32 %v2953_v41, 0.0 }
 0xd60   : > { %v2964_v17 = vpop.f32.mrf.mxu0 }
 0xd61   : > { %v2965_v60 = vadd.f32 %v2964_v17, %v11325_v4  ;;  %v2983_v17 = vmax.f32 %v2963_v36, 0.0  ;;  %v2947_v4 = vadd.f32 %v2946_v63, %v11328_v14  ;;  %v11337_v14 = vld [vmem:[#allocation65_spill] sm:$0xff] }
 0xd62   : > { %v2966_v43 = vpop.f32.mrf.mxu0 }
 0xd63   : > { %v2967_v11 = vadd.f32 %v2966_v43, %v11326_v39  ;;  %v2984_v40 = vmax.f32 %v2965_v60, 0.0  ;;  %v2945_v43 = vadd.f32 %v2944_v58, %v11329_v16  ;;  %v11331_v60 = vld [vmem:[#allocation59_spill] sm:$0xff] }
 0xd64   : > { %v2968_v15 = vpop.f32.mrf.mxu0  ;;  %v2935_v5 = vadd.f32 %v2934_v35, %v11331_v60 }
 0xd65   : > { %v2969_v25 = vadd.f32 %v2968_v15, %v11326_v39  ;;  %v2985_v29 = vmax.f32 %v2967_v11, 0.0  ;;  %v11330_v15 = vld [vmem:[#allocation58_spill] sm:$0xff]  ;;  %v2992_v11 = vpack.c.bf16 %v2982_v2, %v2980_v37  ;;  %v2976_v36 = vmax.f32 %v2945_v43, 0.0 }
 0xd66   : > { %v2939_v39 = vadd.f32 %v2938_v55, %v11330_v15  ;;  %v2937_v58 = vadd.f32 %v2936_v56, %v11330_v15  ;;  %v2975_v55 = vmax.f32 %v2943_v38, 0.0  ;;  %v2972_v24 = vmax.f32 %v2935_v5, 0.0  ;;  %v7116_v56 = vld [vmem:[%s10683_s9] sm:$0xff]  }
 0xd67   : > { %v2986_v48 = vmax.f32 %v2969_v25, 0.0  ;;  %v2993_v33 = vpack.c.bf16 %v2985_v29, %v2983_v17  ;;  %v2990_v22 = vpack.c.bf16 %v2978_v59, %v2976_v36  ;;  %v2933_v25 = vadd.f32 %v2932_v6, %v11331_v60  ;;  %v7117_v6 = vld [vmem:[%s10683_s9 + $0x8] sm:$0xff]  }
 0xd68   : > { %v2974_v63 = vmax.f32 %v2939_v39, 0.0  ;;  %v2973_v37 = vmax.f32 %v2937_v58, 0.0  ;;  %v7119_v39 = vld [vmem:[%s10683_s9 + $0x18] sm:$0xff]  }
 0xd69   : > { %v2994_v27 = vpack.c.bf16 %v2986_v48, %v2984_v40  ;;  %v2977_v48 = vmax.f32 %v2947_v4, 0.0  ;;  %v2991_v40 = vpack.c.bf16 %v2981_v20, %v2979_v34  ;;  %v7118_v4 = vld [vmem:[%s10683_s9 + $0x10] sm:$0xff]  }
 0xd6a   : > { %v2988_v54 = vpack.c.bf16 %v2974_v63, %v2972_v24 }
 0xd6b   : > { %3003 = vmatprep.subr.bf16.mxu1 %v2994_v27  ;;  %v2989_v2 = vpack.c.bf16 %v2977_v48, %v2975_v55  ;;  %v11334_v55 = vld [vmem:[#allocation60_spill] sm:$0xff] }
 0xd6c   : > { %3004 = vmatpush1.bf16.msra.mxu1 %v2993_v33  ;;  %v2971_v33 = vmax.f32 %v2933_v25, 0.0 }
 0xd6d   : > { %3005 = vmatprep.subr.bf16.mxu1 %v2992_v11 }
 0xd6e   : > { %v2987_v35 = vpack.c.bf16 %v2973_v37, %v2971_v33 }
 0xd70   : > { %3006 = vmatpush1.bf16.msra.mxu1 %v2991_v40  ;;  %v11332_v40 = vld [vmem:[#allocation62_spill] sm:$0xff] }
 0xd71   : > { %3007 = vmatprep.subr.bf16.mxu1 %v2990_v22  ;;  %v11333_v22 = vld [vmem:[#allocation61_spill] sm:$0xff] }
 0xd74   : > { %3008 = vmatpush1.bf16.msra.mxu1 %v2989_v2 }
 0xd75   : > { %3009 = vmatprep.subr.bf16.mxu1 %v2988_v54  ;;  %v11335_v54 = vld [vmem:[#allocation63_spill] sm:$0xff] }
 0xd78   : > { %3010 = vmatpush1.bf16.msra.mxu1 %v2987_v35 }
 0xd7b   : > { %6921 = vmatmul.mubr.msk.bf16.vlgmr.msra.gmra.mxu1 %vm977_vm0, %v7116_v56 }
 0xd7c   : > { %3037 = vmatprep.mubr.bf16.mxu1 %v11305_v0 }
 0xd83   : > { %6922 = vmatmul.mubr.msk.bf16.gmra.mxu1 %vm977_vm0, %v7117_v6 }
 0xd84   : > { %3047 = vmatprep.mubr.bf16.mxu1 %v11305_v0 }
 0xd8b   : > { %6923 = vmatmul.mubr.msk.bf16.gmra.mxu1 %vm977_vm0, %v7118_v4  ;;  %v11336_v4 = vld [vmem:[#allocation64_spill] sm:$0xff] }
 0xd8c   : > { %3057 = vmatprep.mubr.bf16.mxu1 %v11305_v0 }
 0xd93   : > { %6924 = vmatmul.mubr.msk.bf16.gmra.mxu1 %vm977_vm0, %v7119_v39 }
 0xd94   : > { %3221 = vmatprep.mubr.bf16.mxu1 %v11305_v0 }
 0xe3b   : > { %v3029_v29 = vpop.f32.mrf.mxu1 }
 0xe3d   : > { %v3031_v21 = vpop.f32.mrf.mxu1 }
 0xe3f   : > { %v3033_v41 = vpop.f32.mrf.mxu1 }
 0xe41   : > { %v3035_v17 = vpop.f32.mrf.mxu1 }
 0xe43   : > { %v3039_v43 = vpop.f32.mrf.mxu1 }
 0xe45   : > { %v3041_v27 = vpop.f32.mrf.mxu1 }
 0xe47   : > { %v3043_v20 = vpop.f32.mrf.mxu1 }
 0xe49   : > { %v3045_v59 = vpop.f32.mrf.mxu1 }
 0xe4a   : > { %v3046_v39 = vadd.f32 %v3045_v59, %v11336_v4  ;;  %v3040_v59 = vadd.f32 %v3039_v43, %v11337_v14 }
 0xe4b   : > { %v3049_v11 = vpop.f32.mrf.mxu1 }
 0xe4d   : > { %v3051_v38 = vpop.f32.mrf.mxu1 }
 0xe4e   : > { %v3052_v33 = vadd.f32 %v3051_v38, %v11335_v54 }
 0xe4f   : > { %v3053_v34 = vpop.f32.mrf.mxu1 }
 0xe50   : > { %v3054_v56 = vadd.f32 %v3053_v34, %v11332_v40  ;;  %v3077_v51 = vmax.f32 %v3052_v33, 0.0  ;;  %v3075_v34 = vmax.f32 %v3046_v39, 0.0 }
 0xe51   : > { %v3055_v5 = vpop.f32.mrf.mxu1 }
 0xe52   : > { %v3056_v63 = vadd.f32 %v3055_v5, %v11332_v40  ;;  %v3050_v5 = vadd.f32 %v3049_v11, %v11335_v54  ;;  %v3078_v38 = vmax.f32 %v3054_v56, 0.0  ;;  %v11351_v54 = vld [vmem:[#allocation17_spill] sm:$0xff] }
 0xe53   : > { %v3059_v36 = vpop.f32.mrf.mxu1 }
 0xe54   : > { %v3060_v37 = vadd.f32 %v3059_v36, %v11333_v22  ;;  %v3079_v60 = vmax.f32 %v3056_v63, 0.0  ;;  %v3076_v63 = vmax.f32 %v3050_v5, 0.0 }
 0xe55   : > { %v3061_v58 = vpop.f32.mrf.mxu1 }
 0xe56   : > { %v3062_v25 = vadd.f32 %v3061_v58, %v11333_v22  ;;  %v3080_v58 = vmax.f32 %v3060_v37, 0.0  ;;  %v3044_v22 = vadd.f32 %v3043_v20, %v11336_v4 }
 0xe57   : > { %v3063_v48 = vpop.f32.mrf.mxu1 }
 0xe58   : > { %v3064_v24 = vadd.f32 %v3063_v48, %v11334_v55  ;;  %v3081_v15 = vmax.f32 %v3062_v25, 0.0  ;;  %v3042_v48 = vadd.f32 %v3041_v27, %v11337_v14  ;;  %v11339_v25 = vld [vmem:[#allocation67_spill] sm:$0xff] }
 0xe59   : > { %v3065_v2 = vpop.f32.mrf.mxu1  ;;  %v3032_v11 = vadd.f32 %v3031_v21, %v11339_v25 }
 0xe5a   : > { %v3066_v35 = vadd.f32 %v3065_v2, %v11334_v55  ;;  %v3082_v6 = vmax.f32 %v3064_v24, 0.0  ;;  %v11338_v2 = vld [vmem:[#allocation66_spill] sm:$0xff]  ;;  %v3089_v24 = vpack.c.bf16 %v3079_v60, %v3077_v51  ;;  %v3073_v37 = vmax.f32 %v3042_v48, 0.0  ;;  %v3237_v48 = vld [vmem:[%s7511_s28 + $0x18] sm:$0x77] }
 0xe5b   : > { %v3036_v55 = vadd.f32 %v3035_v17, %v11338_v2  ;;  %v3034_v27 = vadd.f32 %v3033_v41, %v11338_v2  ;;  %v3072_v17 = vmax.f32 %v3040_v59, 0.0  ;;  %v3069_v56 = vmax.f32 %v3032_v11, 0.0  ;;  %v7120_v41 = vld [vmem:[%s10685_s11] sm:$0xff]  }
 0xe5c   : > { %v3083_v16 = vmax.f32 %v3066_v35, 0.0  ;;  %v3090_v12 = vpack.c.bf16 %v3082_v6, %v3080_v58  ;;  %v3087_v33 = vpack.c.bf16 %v3075_v34, %v3073_v37  ;;  %v3030_v35 = vadd.f32 %v3029_v29, %v11339_v25  ;;  %v7121_v29 = vld [vmem:[%s10685_s11 + $0x8] sm:$0xff]   ;;  %v11342_v11 = vld [vmem:[#allocation10_spill] sm:$0xff] }
 0xe5d   : > { %v3071_v20 = vmax.f32 %v3036_v55, 0.0  ;;  %v3070_v51 = vmax.f32 %v3034_v27, 0.0  ;;  %v7123_v55 = vld [vmem:[%s10685_s11 + $0x18] sm:$0xff]   ;;  %v3242_v37 = vrot.slane %v3237_v48, %v11342_v11  ;;  %v11343_v27 = vld [vmem:[#allocation12_spill] sm:$0xff] }
 0xe5e   : > { %v3091_v36 = vpack.c.bf16 %v3083_v16, %v3081_v15  ;;  %v3074_v16 = vmax.f32 %v3044_v22, 0.0  ;;  %v3088_v15 = vpack.c.bf16 %v3078_v38, %v3076_v63  ;;  %v7122_v22 = vld [vmem:[%s10685_s11 + $0x10] sm:$0xff]   ;;  %v11340_v38 = vld [vmem:[#allocation11_spill] sm:$0xff] }
 0xe5f   : > { %v3085_v43 = vpack.c.bf16 %v3071_v20, %v3069_v56  ;;  %v3246_v34 = vrot.slane %v3237_v48, %v11340_v38  ;;  %v11350_v38 = vld [vmem:[#allocation3_spill] sm:$0xff] }
 0xe60   : > { %3100 = vmatprep.subr.bf16.mxu0 %v3091_v36  ;;  %v3086_v60 = vpack.c.bf16 %v3074_v16, %v3072_v17  ;;  %v3276_v16 = vrot.slane %v3237_v48, %v11343_v27 }
 0xe61   : > { %3101 = vmatpush1.bf16.msra.mxu0 %v3090_v12  ;;  %v3068_v12 = vmax.f32 %v3030_v35, 0.0  ;;  %v8780_v20 = vrot.slane %v3246_v34, %v11342_v11  ;;  %v11344_v35 = vld [vmem:[#allocation16_spill] sm:$0xff]  ;;  %v11348_v34 = vld [vmem:[#allocation2_spill] sm:$0xff] }
 0xe62   : > { %3102 = vmatprep.subr.bf16.mxu0 %v3089_v24  ;;  %v11341_v24 = vld [vmem:[#allocation13_spill] sm:$0xff]  ;;  %v3330_v17 = vrot.slane %v3237_v48, %v11344_v35 }
 0xe63   : > { %v3084_v21 = vpack.c.bf16 %v3070_v51, %v3068_v12  ;;  %v3280_v59 = vrot.slane %v3237_v48, %v11341_v24  ;;  %v11345_v51 = vld [vmem:[#allocation18_spill] sm:$0xff]  ;;  %v8794_v12 = vrot.slane %v3276_v16, %v11343_v27  ;;  %v11349_v24 = vld [vmem:[#allocation4_spill] sm:$0xff] }
 0xe65   : > { %3103 = vmatpush1.bf16.msra.mxu0 %v3088_v15  ;;  %v3303_v2 = vmul.f32 %v8794_v12, %v11348_v34 }
 0xe66   : > { %3104 = vmatprep.subr.bf16.mxu0 %v3087_v33  ;;  %v8783_v33 = vrot.slane %v3280_v59, %v11343_v27 }
 0xe68   : > { %v3304_v59 = vmul.f32 %v8783_v33, %v11348_v34  ;;  %v3306_v16 = vmul.f32 %v8783_v33, %v11349_v24  ;;  %v3300_v40 = vmul.f32 %v8783_v33, %v11351_v54 }
 0xe69   : > { %3105 = vmatpush1.bf16.msra.mxu0 %v3086_v60  ;;  %v3270_v60 = vmul.f32 %v8780_v20, %v11345_v51 }
 0xe6a   : > { %3106 = vmatprep.subr.bf16.mxu0 %v3085_v43  ;;  %v8791_v43 = vrot.slane %v3242_v37, %v11342_v11 }
 0xe6b   : > { %v3320_v27 = vadd.f32 %v3304_v59, %v3270_v60 }
 0xe6c   : > { %v3269_v37 = vmul.f32 %v8791_v43, %v11345_v51  ;;  %v3305_v51 = vmul.f32 %v8794_v12, %v11349_v24  ;;  %v3265_v47 = vmul.f32 %v8791_v43, %v11353_v50 }
 0xe6d   : > { %3107 = vmatpush1.bf16.msra.mxu0 %v3084_v21  ;;  %v11346_v21 = vld [vmem:[#allocation15_spill] sm:$0xff] }
 0xe6e   : > { %v8804_v35 = vrot.slane %v3330_v17, %v11346_v21  ;;  %v3319_v45 = vadd.f32 %v3303_v2, %v3269_v37 }
 0xe70   : > { %6925 = vmatmul.mubr.msk.bf16.vlgmr.msra.gmra.mxu0 %vm977_vm0, %v7120_v41  ;;  %v3326_v41 = vrot.slane %v3237_v48, %v11346_v21  ;;  %v3354_v25 = vmul.f32 %v8804_v35, %v11350_v38  ;;  %v8843_v30 = vmul.f32 %v8804_v35, %v11355_v57 }
 0xe71   : > { %3134 = vmatprep.mubr.bf16.mxu0 %v11305_v0 }
 0xe72   : > { %v8817_v17 = vrot.slane %v3326_v41, %v11346_v21  ;;  %v3266_v41 = vmul.f32 %v8780_v20, %v11353_v50  ;;  %v11354_v21 = vld [vmem:[#allocation5_spill] sm:$0xff]  ;;  %11356 = vst [vmem:[#allocation21_spill] sm:$0xff] %v8843_v30 }
 0xe73   : > { %v3350_v2 = vmul.f32 %v8804_v35, %v11354_v21 }
 0xe74   : > { %v3353_v60 = vmul.f32 %v8817_v17, %v11350_v38  ;;  %v8837_v37 = vmul.f32 %v8817_v17, %v11354_v21  ;;  %v8850_v21 = vmul.f32 %v8817_v17, %v11355_v57 }
 0xe76   : > { %11358 = vst [vmem:[#allocation25_spill] sm:$0xff] %v8850_v21 }
 0xe78   : > { %6926 = vmatmul.mubr.msk.bf16.gmra.mxu0 %vm977_vm0, %v7121_v29 }
 0xe79   : > { %3144 = vmatprep.mubr.bf16.mxu0 %v11305_v0 }
 0xe80   : > { %6927 = vmatmul.mubr.msk.bf16.gmra.mxu0 %vm977_vm0, %v7122_v22  ;;  %v11347_v22 = vld [vmem:[#allocation20_spill] sm:$0xff] }
 0xe81   : > { %3154 = vmatprep.mubr.bf16.mxu0 %v11305_v0  ;;  %v3271_v48 = vmul.f32 %v8791_v43, %v11347_v22 }
 0xe83   : > { %v3321_v34 = vadd.f32 %v3305_v51, %v3271_v48  ;;  %v3302_v51 = vmul.f32 %v8783_v33, %v11283_v19  ;;  %v3316_v48 = vadd.f32 %v3300_v40, %v3266_v41  ;;  %v11360_v40 = vld [vmem:[#allocation8_spill] sm:$0xff] }
 0xe84   : > { %v8855_v41 = vmul.f32 %v8783_v33, %v11360_v40 }
 0xe88   : > { %6928 = vmatmul.mubr.msk.bf16.gmra.mxu0 %vm977_vm0, %v7123_v55  ;;  %v3272_v55 = vmul.f32 %v8780_v20, %v11347_v22  ;;  %v11352_v22 = vld [vmem:[#allocation7_spill] sm:$0xff] }
 0xe89   : > { %3542 = vmatprep.mubr.bf16.mxu0 %v11305_v0  ;;  %v3356_v61 = vmul.f32 %v8804_v35, %v11352_v22  ;;  %v3355_v24 = vmul.f32 %v8817_v17, %v11352_v22  ;;  %v3369_v22 = vadd.f32 %v3353_v60, %v3319_v45  ;;  %v8862_v45 = vmul.f32 %v8794_v12, %v11360_v40  ;;  %v11361_v60 = vld [vmem:[#allocation14_spill] sm:$0xff]  ;;  %v11364_v40 = vld [vmem:[#allocation69_spill] sm:$0xff] }
 0xe8a   : > { %v3322_v4 = vadd.f32 %v3306_v16, %v3272_v55  ;;  %v3268_v55 = vmul.f32 %v8780_v20, %v7601_v42  ;;  %v3370_v16 = vadd.f32 %v3354_v25, %v3320_v27  ;;  %v11357_v25 = vld [vmem:[#allocation23_spill] sm:$0xff] }
 0xe8b   : > { %v3371_v9 = vadd.f32 %v3355_v24, %v3321_v34  ;;  %v8858_v30 = vadd.f32 %v3369_v22, %v11357_v25  ;;  %v3352_v22 = vmul.f32 %v8804_v35, %v11294_v52 }
 0xe8c   : > { %v3372_v0 = vadd.f32 %v3356_v61, %v3322_v4  ;;  %v3386_v27 = vadd.f32 %v3370_v16, %v11357_v25  ;;  %v11359_v61 = vld [vmem:[#allocation24_spill] sm:$0xff]  ;;  %v3318_v8 = vadd.f32 %v3302_v51, %v3268_v55  ;;  %v8866_v16 = vmul.f32 %v8783_v33, %v11361_v60 }
 0xe8d   : > { %v8873_v34 = vadd.f32 %v3371_v9, %v11359_v61  ;;  %v3366_v55 = vadd.f32 %v3350_v2, %v3316_v48  ;;  %v3299_v51 = vmul.f32 %v8794_v12, %v11351_v54 }
 0xe8e   : > { %v3388_v4 = vadd.f32 %v3372_v0, %v11359_v61  ;;  %11362 = vst [vmem:[#allocation72_spill] sm:$0xff] %v8866_v16  ;;  %v8870_v0 = vmul.f32 %v8794_v12, %v11361_v60  ;;  %v3402_v21 = vmax.f32 %v3386_v27, 0.0  ;;  %v3368_v9 = vadd.f32 %v3352_v22, %v3318_v8 }
 0xe8f   : > { %v3267_v61 = vmul.f32 %v8791_v43, %v7601_v42 }
 0xe90   : > { %11363 = vst [vmem:[#allocation73_spill] sm:$0xff] %v8870_v0  ;;  %v3404_v16 = vmax.f32 %v3388_v4, 0.0  ;;  %v8894_v4 = vadd.f32 %v3368_v9, %v11225_v62 }
 0xf30   : > { %v8760_v6 = vpop.f32.mrf.mxu0 }
 0xf32   : > { %v8762_v39 = vpop.f32.mrf.mxu0 }
 0xf34   : > { %v8764_v5 = vpop.f32.mrf.mxu0 }
 0xf36   : > { %v8766_v58 = vpop.f32.mrf.mxu0 }
 0xf38   : > { %v8769_v36 = vpop.f32.mrf.mxu0 }
 0xf3a   : > { %v8773_v63 = vpop.f32.mrf.mxu0 }
 0xf3c   : > { %v8777_v15 = vpop.f32.mrf.mxu0 }
 0xf3e   : > { %v8786_v56 = vpop.f32.mrf.mxu0 }
 0xf3f   : > { %v3143_v8 = vadd.f32 %v8786_v56, %v8098_v3 }
 0xf40   : > { %v8797_v29 = vpop.f32.mrf.mxu0 }
 0xf42   : > { %v3148_v11 = vpop.f32.mrf.mxu0 }
 0xf43   : > { %v3149_v2 = vadd.f32 %v3148_v11, %v8070_v53 }
 0xf44   : > { %v3150_v14 = vpop.f32.mrf.mxu0 }
 0xf46   : > { %v3152_v59 = vpop.f32.mrf.mxu0 }
 0xf47   : > { %v3153_v57 = vadd.f32 %v3152_v59, %v8054_v1  ;;  %v8889_v59 = vadd.f32 %v3366_v55, %v11228_v13  ;;  %v3301_v55 = vmul.f32 %v8794_v12, %v11283_v19 }
 0xf48   : > { %v3156_v38 = vpop.f32.mrf.mxu0 }
 0xf49   : > { %v3157_v60 = vadd.f32 %v3156_v38, %v11364_v40  ;;  %v3174_v38 = vmax.f32 %v3149_v2, 0.0  ;;  %v3317_v2 = vadd.f32 %v3301_v55, %v3267_v61  ;;  %v3127_v61 = vadd.f32 %v8760_v6, %v8127_v44 }
 0xf4a   : > { %v3158_v31 = vpop.f32.mrf.mxu0  ;;  %v3297_v55 = vmul.f32 %v8794_v12, %v7631_v28  ;;  %v3263_v6 = vmul.f32 %v8791_v43, %v7623_v23 }
 0xf4b   : > { %v3159_v50 = vadd.f32 %v3158_v31, %v11364_v40  ;;  %v3151_v31 = vadd.f32 %v3150_v14, %v8054_v1  ;;  %v3177_v54 = vmax.f32 %v3157_v60, 0.0  ;;  %v3315_v14 = vadd.f32 %v3299_v51, %v3265_v47 }
 0xf4c   : > { %v3160_v24 = vpop.f32.mrf.mxu0  ;;  %v3172_v60 = vmax.f32 %v3143_v8, 0.0  ;;  %v3129_v51 = vadd.f32 %v8762_v39, %v8127_v44  ;;  %v3346_v39 = vmul.f32 %v8804_v35, %v7637_v32 }
 0xf4d   : > { %v3161_v25 = vadd.f32 %v3160_v24, %v11293_v7  ;;  %v3176_v24 = vmax.f32 %v3153_v57, 0.0  ;;  %v3178_v11 = vmax.f32 %v3159_v50, 0.0  ;;  %v3141_v57 = vadd.f32 %v8777_v15, %v8098_v3 }
 0xf4e   : > { %v3162_v0 = vpop.f32.mrf.mxu0  ;;  %v3175_v50 = vmax.f32 %v3151_v31, 0.0  ;;  %v3400_v15 = vmax.f32 %v8894_v4, 0.0  ;;  %v3298_v31 = vmul.f32 %v8783_v33, %v7631_v28  ;;  %v3365_v8 = vadd.f32 %v8837_v37, %v3315_v14 }
 0xf4f   : > { %v3163_v48 = vadd.f32 %v3162_v0, %v11293_v7  ;;  %v3179_v27 = vmax.f32 %v3161_v25, 0.0  ;;  %v3147_v0 = vadd.f32 %v8797_v29, %v8070_v53  ;;  %v3139_v25 = vadd.f32 %v8773_v63, %v8106_v26 }
 0xf50   : > { %v8904_v7 = vpack.c.bf16 %v3404_v16, %v3402_v21  ;;  %v3133_v29 = vadd.f32 %v8766_v58, %v8119_v18  ;;  %v3186_v47 = vpack.c.bf16 %v3176_v24, %v3174_v38  ;;  %v3351_v63 = vmul.f32 %v8817_v17, %v11294_v52 }
 0xf51   : > { %v3180_v22 = vmax.f32 %v3163_v48, 0.0  ;;  %v3187_v56 = vpack.c.bf16 %v3179_v27, %v3177_v54  ;;  %v3398_v48 = vmax.f32 %v8889_v59, 0.0  ;;  %v3137_v21 = vadd.f32 %v8769_v36, %v8106_v26 }
 0xf52   : > { %v3173_v16 = vmax.f32 %v3147_v0, 0.0  ;;  %v3262_v54 = vmul.f32 %v8780_v20, %v7618_v10  ;;  %v3170_v58 = vmax.f32 %v3139_v25, 0.0  ;;  %v3131_v27 = vadd.f32 %v8764_v5, %v8119_v18 }
 0xf53   : > { %v3188_v9 = vpack.c.bf16 %v3180_v22, %v3178_v11  ;;  %v3171_v36 = vmax.f32 %v3141_v57, 0.0  ;;  %v3168_v24 = vmax.f32 %v3133_v29, 0.0  ;;  %v3264_v22 = vmul.f32 %v8780_v20, %v7623_v23 }
 0xf54   : > { %v3185_v38 = vpack.c.bf16 %v3175_v50, %v3173_v16  ;;  %v3184_v11 = vpack.c.bf16 %v3172_v60, %v3170_v58  ;;  %v3169_v0 = vmax.f32 %v3137_v21, 0.0  ;;  %v3261_v5 = vmul.f32 %v8791_v43, %v7618_v10 }
 0xf55   : > { %3197 = vmatprep.subr.bf16.mxu1 %v3188_v9  ;;  %v3166_v37 = vmax.f32 %v3129_v51, 0.0  ;;  %v3367_v14 = vadd.f32 %v3351_v63, %v3317_v2  ;;  %v3312_v25 = vadd.f32 %v8855_v41, %v3262_v54  ;;  %v3314_v9 = vadd.f32 %v3298_v31, %v3264_v22  ;;  %v11365_v51 = vld [vmem:[#allocation21_spill] sm:$0xff] }
 0xf56   : > { %3198 = vmatpush1.bf16.msra.mxu1 %v3187_v56  ;;  %v3167_v57 = vmax.f32 %v3131_v27, 0.0  ;;  %v3183_v50 = vpack.c.bf16 %v3171_v36, %v3169_v0  ;;  %v3381_v56 = vadd.f32 %v3365_v8, %v11228_v13  ;;  %v3345_v60 = vmul.f32 %v8817_v17, %v7637_v32  ;;  %v11366_v2 = vld [vmem:[#allocation29_spill] sm:$0xff]  ;;  %v11367_v27 = vld [vmem:[#allocation30_spill] sm:$0xff] }
 0xf57   : > { %3199 = vmatprep.subr.bf16.mxu1 %v3186_v47  ;;  %v3182_v29 = vpack.c.bf16 %v3168_v24, %v3166_v37  ;;  %v3260_v47 = vmul.f32 %v8780_v20, %v11226_v49  ;;  %v3292_v63 = vmul.f32 %v8783_v33, %v11227_v46  ;;  %v3165_v21 = vmax.f32 %v3127_v61, 0.0  ;;  %v11369_v22 = vld [vmem:[#allocation33_spill] sm:$0xff] }
 0xf58   : > { %v3362_v41 = vadd.f32 %v3346_v39, %v3312_v25  ;;  %v3311_v16 = vadd.f32 %v8862_v45, %v3261_v5  ;;  %v3313_v54 = vadd.f32 %v3297_v55, %v3263_v6  ;;  %v3364_v58 = vadd.f32 %v11365_v51, %v3314_v9  ;;  %v11371_v55 = vld [vmem:[#allocation25_spill] sm:$0xff] }
 0xf59   : > { %v3258_v31 = vmul.f32 %v8780_v20, %v11366_v2  ;;  %v3342_v36 = vmul.f32 %v8804_v35, %v11367_v27  ;;  %v3181_v24 = vpack.c.bf16 %v3167_v57, %v3165_v21  ;;  %v3383_v33 = vadd.f32 %v3367_v14, %v11225_v62  ;;  %v11370_v20 = vld [vmem:[#allocation72_spill] sm:$0xff]  ;;  %v11375_v21 = vld [vmem:[#allocation73_spill] sm:$0xff] }
 0xf5a   : > { %3200 = vmatpush1.bf16.msra.mxu1 %v3185_v38  ;;  %v11368_v38 = vld [vmem:[#allocation31_spill] sm:$0xff]  ;;  %v3291_v45 = vmul.f32 %v8794_v12, %v11227_v46  ;;  %v3380_v39 = vadd.f32 %v3364_v58, %v11369_v22  ;;  %v3361_v61 = vadd.f32 %v3345_v60, %v3311_v16  ;;  %v3310_v5 = vadd.f32 %v11370_v20, %v3260_v47 }
 0xf5b   : > { %3201 = vmatprep.subr.bf16.mxu1 %v3184_v11  ;;  %v3344_v8 = vmul.f32 %v8804_v35, %v11368_v38  ;;  %v3259_v11 = vmul.f32 %v8791_v43, %v11226_v49  ;;  %v3308_v0 = vadd.f32 %v3292_v63, %v3258_v31  ;;  %v3363_v37 = vadd.f32 %v11371_v55, %v3313_v54 }
 0xf5c   : > { %v3257_v35 = vmul.f32 %v8791_v43, %v11366_v2  ;;  %v3341_v14 = vmul.f32 %v8817_v17, %v11367_v27  ;;  %v3343_v25 = vmul.f32 %v8817_v17, %v11368_v38  ;;  %v11372_v12 = vmax.f32 %v8858_v30, 0.0  ;;  %v7124_v17 = vld [vmem:[%s10687_s13] sm:$0x3] }
 0xf5d   : > { %v11373_v9 = vmax.f32 %v8873_v34, 0.0  ;;  %v3360_v60 = vadd.f32 %v3344_v8, %v3310_v5  ;;  %v3399_v47 = vmax.f32 %v3383_v33, 0.0  ;;  %v3379_v43 = vadd.f32 %v3363_v37, %v11369_v22  ;;  %v11376_v34 = vld [vmem:[#allocation35_spill] sm:$0xff]  ;;  %v7125_v37 = vld [vmem:[%s10677_s3] sm:$0xff]  }
 0xf5e   : > { %3202 = vmatpush1.bf16.msra.mxu1 %v3183_v50  ;;  %v11374_v50 = vld [vmem:[#allocation32_spill] sm:$0xff]  ;;  %v3307_v63 = vadd.f32 %v3291_v45, %v3257_v35  ;;  %v3309_v16 = vadd.f32 %v11375_v21, %v3259_v11  ;;  %v3396_v30 = vmax.f32 %v3380_v39, 0.0  ;;  %v3397_v54 = vmax.f32 %v3381_v56, 0.0  ;;  %v7126_v35 = vld [vmem:[%s10677_s3 + $0x8] sm:$0xff]  }
 0xf5f   : > { %3203 = vmatprep.subr.bf16.mxu1 %v3182_v29  ;;  %v3411_v57 = vpack.c.bf16 %v11373_v9, %v11372_v12  ;;  %v3378_v6 = vadd.f32 %v3362_v41, %v11374_v50  ;;  %v3358_v29 = vadd.f32 %v3342_v36, %v3308_v0  ;;  %v3377_v51 = vadd.f32 %v3361_v61, %v11374_v50  ;;  %v11379_v9 = vld [vmem:[#allocation26_spill] sm:$0xff] }
 0xf60   : > { %v3357_v58 = vadd.f32 %v3341_v14, %v3307_v63  ;;  %v3359_v31 = vadd.f32 %v3343_v25, %v3309_v16  ;;  %v11377_v36 = vmov 0   ;;  %v3409_v11 = vpack.c.bf16 %v3399_v47, %v3397_v54  ;;  %v7127_v14 = vld [vmem:[%s10677_s3 + $0x10] sm:$0xff]   ;;  %v7128_v25 = vld [vmem:[%s10677_s3 + $0x18] sm:$0xff]  }
 0xf61   : > { %v3374_v41 = vadd.f32 %v3358_v29, %v11376_v34  ;;  %v3394_v8 = vmax.f32 %v3378_v6, 0.0  ;;  %v3395_v59 = vmax.f32 %v3379_v43, 0.0  ;;  %v3393_v45 = vmax.f32 %v3377_v51, 0.0 }
 0xf62   : > { %3204 = vmatpush1.bf16.msra.mxu1 %v3181_v24  ;;  %v11378_v24 = vld [vmem:[#allocation34_spill] sm:$0xff]  ;;  %v3373_v4 = vadd.f32 %v3357_v58, %v11376_v34 }
 0xf63   : > { %3421 = vmatprep.subr.bf16.mxu1 %v8904_v7  ;;  %v3410_v7 = vpack.c.bf16 %v3400_v15, %v3398_v48  ;;  %v3376_v33 = vadd.f32 %v3360_v60, %v11378_v24  ;;  %v3408_v48 = vpack.c.bf16 %v3396_v30, %v3394_v8  ;;  %v3390_v15 = vmax.f32 %v3374_v41, 0.0 }
 0xf64   : > { %v3375_v56 = vadd.f32 %v3359_v31, %v11378_v24  ;;  %v3407_v61 = vpack.c.bf16 %v3395_v59, %v3393_v45  ;;  %v3389_v0 = vmax.f32 %v3373_v4, 0.0 }
 0xf65   : > { %6929 = vmatmul.mubr.msk.bf16.vlgmr.msra.gmra.mxu1 %vm977_vm0, %v7124_v17  ;;  %v3392_v39 = vmax.f32 %v3376_v33, 0.0 }
 0xf66   : > { %3422 = vmatpush1.bf16.msra.mxu1 %v3411_v57  ;;  %3445 = vmatprep.mubr.bf16.mxu1 %v11377_v36  ;;  %v3391_v5 = vmax.f32 %v3375_v56, 0.0  ;;  %v11381_v56 = vld [vmem:[#allocation37_spill] sm:$0xff] }
 0xf67   : > { %3423 = vmatprep.subr.bf16.mxu1 %v3410_v7  ;;  %v3406_v20 = vpack.c.bf16 %v3392_v39, %v3390_v15  ;;  %v11380_v15 = vld [vmem:[#allocation38_spill] sm:$0xff] }
 0xf68   : > { %v3405_v55 = vpack.c.bf16 %v3391_v5, %v3389_v0 }
 0xf6a   : > { %3424 = vmatpush1.bf16.msra.mxu1 %v3409_v11 }
 0xf6b   : > { %3425 = vmatprep.subr.bf16.mxu1 %v3408_v48 }
 0xf6e   : > { %3426 = vmatpush1.bf16.msra.mxu1 %v3407_v61  ;;  %v11382_v61 = vld [vmem:[#allocation36_spill] sm:$0xff] }
 0xf6f   : > { %3427 = vmatprep.subr.bf16.mxu1 %v3406_v20 }
 0xf72   : > { %3428 = vmatpush1.bf16.msra.mxu1 %v3405_v55  ;;  %v11383_v55 = vld [vmem:[#allocation39_spill] sm:$0xff] }
 0xf75   : > { %6930 = vmatmul.mubr.msk.bf16.vlgmr.msra.gmra.mxu1 %vm977_vm0, %v7125_v37 }
 0xf76   : > { %3455 = vmatprep.mubr.bf16.mxu1 %v11377_v36 }
 0xf7d   : > { %6931 = vmatmul.mubr.msk.bf16.gmra.mxu1 %vm977_vm0, %v7126_v35 }
 0xf7e   : > { %3465 = vmatprep.mubr.bf16.mxu1 %v11377_v36 }
 0xf85   : > { %6932 = vmatmul.mubr.msk.bf16.gmra.mxu1 %vm977_vm0, %v7127_v14 }
 0xf86   : > { %3475 = vmatprep.mubr.bf16.mxu1 %v11377_v36 }
 0xf8d   : > { %6933 = vmatmul.mubr.msk.bf16.gmra.mxu1 %vm977_vm0, %v7128_v25 }
 0xf8e   : > { %3639 = vmatprep.mubr.bf16.mxu1 %v11377_v36 }
0x1025   : > { %v3223_v12 = vpop.f32.mrf.mxu1 }
0x1026   : > { %v3224_v57 = vadd.f32 %v3223_v12, %v11379_v9  ;;  %v11384_v12 = vld [vmem:[#allocation40_spill] sm:$0xff] }
0x1027   : > { %v3225_v6 = vpop.f32.mrf.mxu1 }
0x1028   : > { %v3226_v29 = vadd.f32 %v3225_v6, %v11379_v9  ;;  %v3230_v47 = vmax.f32 %v3224_v57, 0.0  ;;  %v11425_v9 = vld [vmem:[#allocation24_spill] sm:$0xff] }
0x1029   : > { %v3227_v60 = vpop.f32.mrf.mxu1 }
0x102a   : > { %v3231_v43 = vmax.f32 %v3226_v29, 0.0 }
0x102b   : > { %v3228_v63 = vpop.f32.mrf.mxu1 }
0x102c   : > { %v3234_v21 = vcombine.low %v3230_v47, %v3231_v43  ;;  %v11385_v63 = vld [vmem:[#allocation41_spill] sm:$0xff] }
0x102e   : > { %3236 = vst [vmem:[%s8226_s21 + $0x10] sm:$0xff] %v3234_v21 }
0x1035   : > { %v3447_v16 = vpop.f32.mrf.mxu1 }
0x1037   : > { %v3449_v17 = vpop.f32.mrf.mxu1 }
0x1039   : > { %v3451_v7 = vpop.f32.mrf.mxu1 }
0x103b   : > { %v3453_v30 = vpop.f32.mrf.mxu1 }
0x103d   : > { %v3457_v41 = vpop.f32.mrf.mxu1 }
0x103f   : > { %v3459_v54 = vpop.f32.mrf.mxu1 }
0x1040   : > { %v3460_v21 = vadd.f32 %v3459_v54, %v11385_v63 }
0x1041   : > { %v3461_v51 = vpop.f32.mrf.mxu1 }
0x1043   : > { %v3463_v58 = vpop.f32.mrf.mxu1 }
0x1044   : > { %v3464_v57 = vadd.f32 %v3463_v58, %v11384_v12  ;;  %v3458_v58 = vadd.f32 %v3457_v41, %v11385_v63 }
0x1045   : > { %v3467_v31 = vpop.f32.mrf.mxu1 }
0x1046   : > { %v3468_v47 = vadd.f32 %v3467_v31, %v11383_v55 }
0x1047   : > { %v3469_v8 = vpop.f32.mrf.mxu1 }
0x1048   : > { %v3470_v37 = vadd.f32 %v3469_v8, %v11383_v55 }
0x1049   : > { %v3471_v33 = vpop.f32.mrf.mxu1 }
0x104a   : > { %v3472_v14 = vadd.f32 %v3471_v33, %v11380_v15  ;;  %v3493_v33 = vmax.f32 %v3464_v57, 0.0 }
0x104b   : > { %v3473_v11 = vpop.f32.mrf.mxu1 }
0x104c   : > { %v3474_v45 = vadd.f32 %v3473_v11, %v11380_v15  ;;  %v3495_v11 = vmax.f32 %v3470_v37, 0.0  ;;  %v3496_v8 = vmax.f32 %v3472_v14, 0.0 }
0x104d   : > { %v3477_v59 = vpop.f32.mrf.mxu1 }
0x104e   : > { %v3478_v20 = vadd.f32 %v3477_v59, %v11381_v56  ;;  %v3497_v6 = vmax.f32 %v3474_v45, 0.0  ;;  %v3494_v45 = vmax.f32 %v3468_v47, 0.0  ;;  %v7132_v47 = vld [vmem:[%s10679_s5 + $0x18] sm:$0xff]  }
0x104f   : > { %v3479_v4 = vpop.f32.mrf.mxu1 }
0x1050   : > { %v3480_v39 = vadd.f32 %v3479_v4, %v11381_v56  ;;  %v3498_v43 = vmax.f32 %v3478_v20, 0.0  ;;  %v3462_v4 = vadd.f32 %v3461_v51, %v11384_v12  ;;  %v3491_v20 = vmax.f32 %v3460_v21, 0.0  ;;  %v11393_v12 = vld [vmem:[#allocation49_spill] sm:$0xff] }
0x1051   : > { %v3481_v48 = vpop.f32.mrf.mxu1 }
0x1052   : > { %v3482_v0 = vadd.f32 %v3481_v48, %v11382_v61  ;;  %v3499_v29 = vmax.f32 %v3480_v39, 0.0  ;;  %v11387_v39 = vld [vmem:[#allocation43_spill] sm:$0xff]  ;;  %v3492_v37 = vmax.f32 %v3462_v4, 0.0  ;;  %v3505_v14 = vpack.c.bf16 %v3493_v33, %v3491_v20 }
0x1053   : > { %v3483_v5 = vpop.f32.mrf.mxu1  ;;  %v3450_v31 = vadd.f32 %v3449_v17, %v11387_v39 }
0x1054   : > { %v3484_v35 = vadd.f32 %v3483_v5, %v11382_v61  ;;  %v3500_v25 = vmax.f32 %v3482_v0, 0.0  ;;  %v11386_v5 = vld [vmem:[#allocation42_spill] sm:$0xff]  ;;  %v3507_v0 = vpack.c.bf16 %v3497_v6, %v3495_v11 }
0x1055   : > { %v3454_v61 = vadd.f32 %v3453_v30, %v11386_v5  ;;  %v3452_v54 = vadd.f32 %v3451_v7, %v11386_v5  ;;  %v3490_v30 = vmax.f32 %v3458_v58, 0.0  ;;  %v3487_v57 = vmax.f32 %v3450_v31, 0.0  ;;  %v7129_v7 = vld [vmem:[%s10679_s5] sm:$0xff]  }
0x1056   : > { %v3501_v60 = vmax.f32 %v3484_v35, 0.0  ;;  %v3508_v48 = vpack.c.bf16 %v3500_v25, %v3498_v43  ;;  %v3506_v35 = vpack.c.bf16 %v3496_v8, %v3494_v45  ;;  %v3448_v25 = vadd.f32 %v3447_v16, %v11387_v39  ;;  %v7130_v16 = vld [vmem:[%s10679_s5 + $0x8] sm:$0xff]  }
0x1057   : > { %v3489_v51 = vmax.f32 %v3454_v61, 0.0  ;;  %v3488_v6 = vmax.f32 %v3452_v54, 0.0  ;;  %v3504_v41 = vpack.c.bf16 %v3492_v37, %v3490_v30  ;;  %v7131_v61 = vld [vmem:[%s10679_s5 + $0x10] sm:$0xff]  }
0x1058   : > { %v3509_v59 = vpack.c.bf16 %v3501_v60, %v3499_v29  ;;  %v3486_v60 = vmax.f32 %v3448_v25, 0.0  ;;  %v11390_v30 = vld [vmem:[#allocation44_spill] sm:$0xff] }
0x1059   : > { %v3503_v29 = vpack.c.bf16 %v3489_v51, %v3487_v57 }
0x105a   : > { %3518 = vmatprep.subr.bf16.mxu0 %v3509_v59  ;;  %v3502_v17 = vpack.c.bf16 %v3488_v6, %v3486_v60 }
0x105b   : > { %3519 = vmatpush1.bf16.msra.mxu0 %v3508_v48 }
0x105c   : > { %3520 = vmatprep.subr.bf16.mxu0 %v3507_v0 }
0x105f   : > { %3521 = vmatpush1.bf16.msra.mxu0 %v3506_v35  ;;  %v11388_v35 = vld [vmem:[#allocation46_spill] sm:$0xff] }
0x1060   : > { %3522 = vmatprep.subr.bf16.mxu0 %v3505_v14  ;;  %v11389_v14 = vld [vmem:[#allocation45_spill] sm:$0xff] }
0x1063   : > { %3523 = vmatpush1.bf16.msra.mxu0 %v3504_v41 }
0x1064   : > { %3524 = vmatprep.subr.bf16.mxu0 %v3503_v29  ;;  %v11391_v29 = vld [vmem:[#allocation47_spill] sm:$0xff] }
0x1067   : > { %3525 = vmatpush1.bf16.msra.mxu0 %v3502_v17 }
0x106a   : > { %6934 = vmatmul.mubr.msk.bf16.vlgmr.msra.gmra.mxu0 %vm977_vm0, %v7129_v7 }
0x106b   : > { %3552 = vmatprep.mubr.bf16.mxu0 %v11377_v36 }
0x1072   : > { %6935 = vmatmul.mubr.msk.bf16.gmra.mxu0 %vm977_vm0, %v7130_v16 }
0x1073   : > { %3562 = vmatprep.mubr.bf16.mxu0 %v11377_v36 }
0x107a   : > { %6936 = vmatmul.mubr.msk.bf16.gmra.mxu0 %vm977_vm0, %v7131_v61  ;;  %v11392_v61 = vld [vmem:[#allocation48_spill] sm:$0xff] }
0x107b   : > { %3572 = vmatprep.mubr.bf16.mxu0 %v11377_v36 }
0x1082   : > { %6937 = vmatmul.mubr.msk.bf16.gmra.mxu0 %vm977_vm0, %v7132_v47 }
0x1083   : > { %3736 = vmatprep.mubr.bf16.mxu0 %v11377_v36 }
0x112a   : > { %v3544_v43 = vpop.f32.mrf.mxu0 }
0x112c   : > { %v3546_v21 = vpop.f32.mrf.mxu0 }
0x112e   : > { %v3548_v11 = vpop.f32.mrf.mxu0 }
0x1130   : > { %v3550_v59 = vpop.f32.mrf.mxu0 }
0x1132   : > { %v3554_v4 = vpop.f32.mrf.mxu0 }
0x1134   : > { %v3556_v8 = vpop.f32.mrf.mxu0 }
0x1136   : > { %v3558_v48 = vpop.f32.mrf.mxu0 }
0x1138   : > { %v3560_v33 = vpop.f32.mrf.mxu0 }
0x1139   : > { %v3561_v47 = vadd.f32 %v3560_v33, %v11392_v61  ;;  %v3555_v33 = vadd.f32 %v3554_v4, %v11393_v12 }
0x113a   : > { %v3564_v0 = vpop.f32.mrf.mxu0 }
0x113c   : > { %v3566_v58 = vpop.f32.mrf.mxu0 }
0x113d   : > { %v3567_v60 = vadd.f32 %v3566_v58, %v11391_v29 }
0x113e   : > { %v3568_v45 = vpop.f32.mrf.mxu0 }
0x113f   : > { %v3569_v7 = vadd.f32 %v3568_v45, %v11388_v35  ;;  %v3592_v55 = vmax.f32 %v3567_v60, 0.0  ;;  %v3590_v45 = vmax.f32 %v3561_v47, 0.0 }
0x1140   : > { %v3570_v31 = vpop.f32.mrf.mxu0 }
0x1141   : > { %v3571_v51 = vadd.f32 %v3570_v31, %v11388_v35  ;;  %v3565_v31 = vadd.f32 %v3564_v0, %v11391_v29  ;;  %v3593_v58 = vmax.f32 %v3569_v7, 0.0 }
0x1142   : > { %v3574_v20 = vpop.f32.mrf.mxu0 }
0x1143   : > { %v3575_v6 = vadd.f32 %v3574_v20, %v11389_v14  ;;  %v3594_v39 = vmax.f32 %v3571_v51, 0.0  ;;  %v3591_v51 = vmax.f32 %v3565_v31, 0.0 }
0x1144   : > { %v3576_v54 = vpop.f32.mrf.mxu0 }
0x1145   : > { %v3577_v25 = vadd.f32 %v3576_v54, %v11389_v14  ;;  %v3595_v54 = vmax.f32 %v3575_v6, 0.0  ;;  %v3559_v14 = vadd.f32 %v3558_v48, %v11392_v61  ;;  %v11401_v61 = vld [vmem:[#allocation57_spill] sm:$0xff] }
0x1146   : > { %v3578_v37 = vpop.f32.mrf.mxu0 }
0x1147   : > { %v3579_v57 = vadd.f32 %v3578_v37, %v11390_v30  ;;  %v3596_v5 = vmax.f32 %v3577_v25, 0.0  ;;  %v3557_v37 = vadd.f32 %v3556_v8, %v11393_v12  ;;  %v11395_v25 = vld [vmem:[#allocation51_spill] sm:$0xff] }
0x1148   : > { %v3580_v41 = vpop.f32.mrf.mxu0  ;;  %v3547_v0 = vadd.f32 %v3546_v21, %v11395_v25 }
0x1149   : > { %v3581_v17 = vadd.f32 %v3580_v41, %v11390_v30  ;;  %v3597_v16 = vmax.f32 %v3579_v57, 0.0  ;;  %v11394_v41 = vld [vmem:[#allocation50_spill] sm:$0xff]  ;;  %v3604_v57 = vpack.c.bf16 %v3594_v39, %v3592_v55  ;;  %v3588_v6 = vmax.f32 %v3557_v37, 0.0 }
0x114a   : > { %v3551_v30 = vadd.f32 %v3550_v59, %v11394_v41  ;;  %v3549_v8 = vadd.f32 %v3548_v11, %v11394_v41  ;;  %v3587_v59 = vmax.f32 %v3555_v33, 0.0  ;;  %v3584_v7 = vmax.f32 %v3547_v0, 0.0  ;;  %v7133_v11 = vld [vmem:[%s10681_s7] sm:$0xff]  }
0x114b   : > { %v3598_v63 = vmax.f32 %v3581_v17, 0.0  ;;  %v3605_v56 = vpack.c.bf16 %v3597_v16, %v3595_v54  ;;  %v3602_v60 = vpack.c.bf16 %v3590_v45, %v3588_v6  ;;  %v3545_v17 = vadd.f32 %v3544_v43, %v11395_v25  ;;  %v7134_v43 = vld [vmem:[%s10681_s7 + $0x8] sm:$0xff]  }
0x114c   : > { %v3586_v48 = vmax.f32 %v3551_v30, 0.0  ;;  %v3585_v55 = vmax.f32 %v3549_v8, 0.0  ;;  %v7136_v30 = vld [vmem:[%s10681_s7 + $0x18] sm:$0xff]  }
0x114d   : > { %v3606_v20 = vpack.c.bf16 %v3598_v63, %v3596_v5  ;;  %v3589_v63 = vmax.f32 %v3559_v14, 0.0  ;;  %v3603_v5 = vpack.c.bf16 %v3593_v58, %v3591_v51  ;;  %v7135_v14 = vld [vmem:[%s10681_s7 + $0x10] sm:$0xff]  }
0x114e   : > { %v3600_v4 = vpack.c.bf16 %v3586_v48, %v3584_v7 }
0x114f   : > { %3615 = vmatprep.subr.bf16.mxu1 %v3606_v20  ;;  %v3601_v39 = vpack.c.bf16 %v3589_v63, %v3587_v59  ;;  %v11398_v59 = vld [vmem:[#allocation52_spill] sm:$0xff] }
0x1150   : > { %3616 = vmatpush1.bf16.msra.mxu1 %v3605_v56  ;;  %v3583_v56 = vmax.f32 %v3545_v17, 0.0 }
0x1151   : > { %3617 = vmatprep.subr.bf16.mxu1 %v3604_v57 }
0x1152   : > { %v3599_v21 = vpack.c.bf16 %v3585_v55, %v3583_v56 }
0x1154   : > { %3618 = vmatpush1.bf16.msra.mxu1 %v3603_v5  ;;  %v11396_v5 = vld [vmem:[#allocation54_spill] sm:$0xff] }
0x1155   : > { %3619 = vmatprep.subr.bf16.mxu1 %v3602_v60  ;;  %v11397_v60 = vld [vmem:[#allocation53_spill] sm:$0xff] }
0x1158   : > { %3620 = vmatpush1.bf16.msra.mxu1 %v3601_v39 }
0x1159   : > { %3621 = vmatprep.subr.bf16.mxu1 %v3600_v4  ;;  %v11399_v4 = vld [vmem:[#allocation55_spill] sm:$0xff] }
0x115c   : > { %3622 = vmatpush1.bf16.msra.mxu1 %v3599_v21 }
0x115f   : > { %6938 = vmatmul.mubr.msk.bf16.vlgmr.msra.gmra.mxu1 %vm977_vm0, %v7133_v11 }
0x1160   : > { %3649 = vmatprep.mubr.bf16.mxu1 %v11377_v36 }
0x1167   : > { %6939 = vmatmul.mubr.msk.bf16.gmra.mxu1 %vm977_vm0, %v7134_v43 }
0x1168   : > { %3659 = vmatprep.mubr.bf16.mxu1 %v11377_v36 }
0x116f   : > { %6940 = vmatmul.mubr.msk.bf16.gmra.mxu1 %vm977_vm0, %v7135_v14  ;;  %v11400_v14 = vld [vmem:[#allocation56_spill] sm:$0xff] }
0x1170   : > { %3669 = vmatprep.mubr.bf16.mxu1 %v11377_v36 }
0x1177   : > { %6941 = vmatmul.mubr.msk.bf16.gmra.mxu1 %vm977_vm0, %v7136_v30 }
0x1178   : > { %3833 = vmatprep.mubr.bf16.mxu1 %v11377_v36 }
0x121f   : > { %v3641_v16 = vpop.f32.mrf.mxu1 }
0x1221   : > { %v3643_v47 = vpop.f32.mrf.mxu1 }
0x1223   : > { %v3645_v31 = vpop.f32.mrf.mxu1 }
0x1225   : > { %v3647_v54 = vpop.f32.mrf.mxu1 }
0x1227   : > { %v3651_v37 = vpop.f32.mrf.mxu1 }
0x1229   : > { %v3653_v20 = vpop.f32.mrf.mxu1 }
0x122b   : > { %v3655_v58 = vpop.f32.mrf.mxu1 }
0x122d   : > { %v3657_v45 = vpop.f32.mrf.mxu1 }
0x122e   : > { %v3658_v30 = vadd.f32 %v3657_v45, %v11400_v14  ;;  %v3652_v45 = vadd.f32 %v3651_v37, %v11401_v61 }
0x122f   : > { %v3661_v57 = vpop.f32.mrf.mxu1 }
0x1231   : > { %v3663_v33 = vpop.f32.mrf.mxu1 }
0x1232   : > { %v3664_v56 = vadd.f32 %v3663_v33, %v11399_v4 }
0x1233   : > { %v3665_v51 = vpop.f32.mrf.mxu1 }
0x1234   : > { %v3666_v11 = vadd.f32 %v3665_v51, %v11396_v5  ;;  %v3689_v29 = vmax.f32 %v3664_v56, 0.0  ;;  %v3687_v51 = vmax.f32 %v3658_v30, 0.0 }
0x1235   : > { %v3667_v0 = vpop.f32.mrf.mxu1 }
0x1236   : > { %v3668_v48 = vadd.f32 %v3667_v0, %v11396_v5  ;;  %v3662_v0 = vadd.f32 %v3661_v57, %v11399_v4  ;;  %v3690_v33 = vmax.f32 %v3666_v11, 0.0 }
0x1237   : > { %v3671_v6 = vpop.f32.mrf.mxu1 }
0x1238   : > { %v3672_v55 = vadd.f32 %v3671_v6, %v11397_v60  ;;  %v3691_v25 = vmax.f32 %v3668_v48, 0.0  ;;  %v3688_v48 = vmax.f32 %v3662_v0, 0.0 }
0x1239   : > { %v3673_v8 = vpop.f32.mrf.mxu1 }
0x123a   : > { %v3674_v17 = vadd.f32 %v3673_v8, %v11397_v60  ;;  %v3692_v8 = vmax.f32 %v3672_v55, 0.0  ;;  %v3656_v60 = vadd.f32 %v3655_v58, %v11400_v14  ;;  %v11409_v14 = vld [vmem:[#allocation65_spill] sm:$0xff] }
0x123b   : > { %v3675_v63 = vpop.f32.mrf.mxu1 }
0x123c   : > { %v3676_v7 = vadd.f32 %v3675_v63, %v11398_v59  ;;  %v3693_v41 = vmax.f32 %v3674_v17, 0.0  ;;  %v3654_v63 = vadd.f32 %v3653_v20, %v11401_v61  ;;  %v11403_v17 = vld [vmem:[#allocation59_spill] sm:$0xff] }
0x123d   : > { %v3677_v39 = vpop.f32.mrf.mxu1  ;;  %v3644_v57 = vadd.f32 %v3643_v47, %v11403_v17 }
0x123e   : > { %v3678_v21 = vadd.f32 %v3677_v39, %v11398_v59  ;;  %v3694_v43 = vmax.f32 %v3676_v7, 0.0  ;;  %v11402_v39 = vld [vmem:[#allocation58_spill] sm:$0xff]  ;;  %v3701_v7 = vpack.c.bf16 %v3691_v25, %v3689_v29  ;;  %v3685_v55 = vmax.f32 %v3654_v63, 0.0 }
0x123f   : > { %v3648_v59 = vadd.f32 %v3647_v54, %v11402_v39  ;;  %v3646_v20 = vadd.f32 %v3645_v31, %v11402_v39  ;;  %v3684_v54 = vmax.f32 %v3652_v45, 0.0  ;;  %v3681_v11 = vmax.f32 %v3644_v57, 0.0  ;;  %v7137_v31 = vld [vmem:[%s10683_s9] sm:$0xff]  }
0x1240   : > { %v3695_v12 = vmax.f32 %v3678_v21, 0.0  ;;  %v3702_v35 = vpack.c.bf16 %v3694_v43, %v3692_v8  ;;  %v3699_v56 = vpack.c.bf16 %v3687_v51, %v3685_v55  ;;  %v3642_v21 = vadd.f32 %v3641_v16, %v11403_v17  ;;  %v7138_v16 = vld [vmem:[%s10683_s9 + $0x8] sm:$0xff]  }
0x1241   : > { %v3683_v58 = vmax.f32 %v3648_v59, 0.0  ;;  %v3682_v29 = vmax.f32 %v3646_v20, 0.0  ;;  %v7140_v59 = vld [vmem:[%s10683_s9 + $0x18] sm:$0xff]  }
0x1242   : > { %v3703_v6 = vpack.c.bf16 %v3695_v12, %v3693_v41  ;;  %v3686_v12 = vmax.f32 %v3656_v60, 0.0  ;;  %v3700_v41 = vpack.c.bf16 %v3690_v33, %v3688_v48  ;;  %v7139_v60 = vld [vmem:[%s10683_s9 + $0x10] sm:$0xff]  }
0x1243   : > { %v3697_v37 = vpack.c.bf16 %v3683_v58, %v3681_v11 }
0x1244   : > { %3712 = vmatprep.subr.bf16.mxu0 %v3703_v6  ;;  %v3698_v25 = vpack.c.bf16 %v3686_v12, %v3684_v54  ;;  %v11406_v54 = vld [vmem:[#allocation60_spill] sm:$0xff] }
0x1245   : > { %3713 = vmatpush1.bf16.msra.mxu0 %v3702_v35  ;;  %v3680_v35 = vmax.f32 %v3642_v21, 0.0 }
0x1246   : > { %3714 = vmatprep.subr.bf16.mxu0 %v3701_v7 }
0x1247   : > { %v3696_v47 = vpack.c.bf16 %v3682_v29, %v3680_v35 }
0x1249   : > { %3715 = vmatpush1.bf16.msra.mxu0 %v3700_v41  ;;  %v11404_v41 = vld [vmem:[#allocation62_spill] sm:$0xff] }
0x124a   : > { %3716 = vmatprep.subr.bf16.mxu0 %v3699_v56  ;;  %v11405_v56 = vld [vmem:[#allocation61_spill] sm:$0xff] }
0x124d   : > { %3717 = vmatpush1.bf16.msra.mxu0 %v3698_v25 }
0x124e   : > { %3718 = vmatprep.subr.bf16.mxu0 %v3697_v37  ;;  %v11407_v37 = vld [vmem:[#allocation63_spill] sm:$0xff] }
0x1251   : > { %3719 = vmatpush1.bf16.msra.mxu0 %v3696_v47 }
0x1254   : > { %6942 = vmatmul.mubr.msk.bf16.vlgmr.msra.gmra.mxu0 %vm977_vm0, %v7137_v31 }
0x1255   : > { %3746 = vmatprep.mubr.bf16.mxu0 %v11377_v36 }
0x125c   : > { %6943 = vmatmul.mubr.msk.bf16.gmra.mxu0 %vm977_vm0, %v7138_v16 }
0x125d   : > { %3756 = vmatprep.mubr.bf16.mxu0 %v11377_v36 }
0x1264   : > { %6944 = vmatmul.mubr.msk.bf16.gmra.mxu0 %vm977_vm0, %v7139_v60  ;;  %v11408_v60 = vld [vmem:[#allocation64_spill] sm:$0xff] }
0x1265   : > { %3766 = vmatprep.mubr.bf16.mxu0 %v11377_v36 }
0x126c   : > { %6945 = vmatmul.mubr.msk.bf16.gmra.mxu0 %vm977_vm0, %v7140_v59 }
0x126d   : > { %3930 = vmatprep.mubr.bf16.mxu0 %v11377_v36 }
0x1314   : > { %v3738_v43 = vpop.f32.mrf.mxu0 }
0x1316   : > { %v3740_v30 = vpop.f32.mrf.mxu0 }
0x1318   : > { %v3742_v0 = vpop.f32.mrf.mxu0 }
0x131a   : > { %v3744_v8 = vpop.f32.mrf.mxu0 }
0x131c   : > { %v3748_v63 = vpop.f32.mrf.mxu0 }
0x131e   : > { %v3750_v6 = vpop.f32.mrf.mxu0 }
0x1320   : > { %v3752_v33 = vpop.f32.mrf.mxu0 }
0x1322   : > { %v3754_v51 = vpop.f32.mrf.mxu0 }
0x1323   : > { %v3755_v59 = vadd.f32 %v3754_v51, %v11408_v60  ;;  %v3749_v51 = vadd.f32 %v3748_v63, %v11409_v14 }
0x1324   : > { %v3758_v7 = vpop.f32.mrf.mxu0 }
0x1326   : > { %v3760_v45 = vpop.f32.mrf.mxu0 }
0x1327   : > { %v3761_v35 = vadd.f32 %v3760_v45, %v11407_v37 }
0x1328   : > { %v3762_v48 = vpop.f32.mrf.mxu0 }
0x1329   : > { %v3763_v31 = vadd.f32 %v3762_v48, %v11404_v41  ;;  %v3786_v4 = vmax.f32 %v3761_v35, 0.0  ;;  %v3784_v48 = vmax.f32 %v3755_v59, 0.0 }
0x132a   : > { %v3764_v57 = vpop.f32.mrf.mxu0 }
0x132b   : > { %v3765_v58 = vadd.f32 %v3764_v57, %v11404_v41  ;;  %v3759_v57 = vadd.f32 %v3758_v7, %v11407_v37  ;;  %v3787_v45 = vmax.f32 %v3763_v31, 0.0  ;;  %v11424_v41 = vld [vmem:[#allocation23_spill] sm:$0xff] }
0x132c   : > { %v3768_v55 = vpop.f32.mrf.mxu0 }
0x132d   : > { %v3769_v29 = vadd.f32 %v3768_v55, %v11405_v56  ;;  %v3788_v17 = vmax.f32 %v3765_v58, 0.0  ;;  %v3785_v58 = vmax.f32 %v3759_v57, 0.0 }
0x132e   : > { %v3770_v20 = vpop.f32.mrf.mxu0 }
0x132f   : > { %v3771_v21 = vadd.f32 %v3770_v20, %v11405_v56  ;;  %v3789_v20 = vmax.f32 %v3769_v29, 0.0  ;;  %v3753_v56 = vadd.f32 %v3752_v33, %v11408_v60 }
0x1330   : > { %v3772_v12 = vpop.f32.mrf.mxu0 }
0x1331   : > { %v3773_v11 = vadd.f32 %v3772_v12, %v11406_v54  ;;  %v3790_v39 = vmax.f32 %v3771_v21, 0.0  ;;  %v3751_v12 = vadd.f32 %v3750_v6, %v11409_v14  ;;  %v11411_v21 = vld [vmem:[#allocation67_spill] sm:$0xff] }
0x1332   : > { %v3774_v25 = vpop.f32.mrf.mxu0  ;;  %v3741_v7 = vadd.f32 %v3740_v30, %v11411_v21 }
0x1333   : > { %v3775_v47 = vadd.f32 %v3774_v25, %v11406_v54  ;;  %v3791_v16 = vmax.f32 %v3773_v11, 0.0  ;;  %v11410_v25 = vld [vmem:[#allocation66_spill] sm:$0xff]  ;;  %v3798_v11 = vpack.c.bf16 %v3788_v17, %v3786_v4  ;;  %v3782_v29 = vmax.f32 %v3751_v12, 0.0 }
0x1334   : > { %v3745_v54 = vadd.f32 %v3744_v8, %v11410_v25  ;;  %v3743_v6 = vadd.f32 %v3742_v0, %v11410_v25  ;;  %v3781_v8 = vmax.f32 %v3749_v51, 0.0  ;;  %v3778_v31 = vmax.f32 %v3741_v7, 0.0  ;;  %v7141_v0 = vld [vmem:[%s10685_s11] sm:$0xff]   ;;  %v11415_v7 = vld [vmem:[#allocation12_spill] sm:$0xff] }
0x1335   : > { %v3792_v61 = vmax.f32 %v3775_v47, 0.0  ;;  %v3799_v5 = vpack.c.bf16 %v3791_v16, %v3789_v20  ;;  %v3796_v35 = vpack.c.bf16 %v3784_v48, %v3782_v29  ;;  %v3739_v47 = vadd.f32 %v3738_v43, %v11411_v21  ;;  %v7142_v43 = vld [vmem:[%s10685_s11 + $0x8] sm:$0xff]   ;;  %v3946_v16 = vld [vmem:[%s7511_s28 + $0x20] sm:$0x77] }
0x1336   : > { %v3780_v33 = vmax.f32 %v3745_v54, 0.0  ;;  %v3779_v4 = vmax.f32 %v3743_v6, 0.0  ;;  %v7144_v54 = vld [vmem:[%s10685_s11 + $0x18] sm:$0xff]   ;;  %v11412_v20 = vld [vmem:[#allocation11_spill] sm:$0xff]  ;;  %v11414_v51 = vld [vmem:[#allocation10_spill] sm:$0xff] }
0x1337   : > { %v3800_v55 = vpack.c.bf16 %v3792_v61, %v3790_v39  ;;  %v3783_v61 = vmax.f32 %v3753_v56, 0.0  ;;  %v3797_v39 = vpack.c.bf16 %v3787_v45, %v3785_v58  ;;  %v7143_v56 = vld [vmem:[%s10685_s11 + $0x10] sm:$0xff]   ;;  %v3955_v12 = vrot.slane %v3946_v16, %v11412_v20  ;;  %v11422_v20 = vld [vmem:[#allocation3_spill] sm:$0xff] }
0x1338   : > { %v3794_v63 = vpack.c.bf16 %v3780_v33, %v3778_v31  ;;  %v11416_v6 = vld [vmem:[#allocation16_spill] sm:$0xff]  ;;  %v3985_v33 = vrot.slane %v3946_v16, %v11415_v7 }
0x1339   : > { %3809 = vmatprep.subr.bf16.mxu1 %v3800_v55  ;;  %v3795_v17 = vpack.c.bf16 %v3783_v61, %v3781_v8  ;;  %v11413_v55 = vld [vmem:[#allocation13_spill] sm:$0xff]  ;;  %v9168_v58 = vrot.slane %v3955_v12, %v11414_v51  ;;  %v4039_v61 = vrot.slane %v3946_v16, %v11416_v6  ;;  %v11418_v31 = vld [vmem:[#allocation20_spill] sm:$0xff] }
0x133a   : > { %3810 = vmatpush1.bf16.msra.mxu1 %v3799_v5  ;;  %v3777_v5 = vmax.f32 %v3739_v47, 0.0  ;;  %v3989_v45 = vrot.slane %v3946_v16, %v11413_v55  ;;  %v11417_v47 = vld [vmem:[#allocation18_spill] sm:$0xff]  ;;  %v9195_v12 = vrot.slane %v3985_v33, %v11415_v7 }
0x133b   : > { %3811 = vmatprep.subr.bf16.mxu1 %v3798_v11  ;;  %v3979_v8 = vmul.f32 %v9168_v58, %v11417_v47 }
0x133c   : > { %v3793_v30 = vpack.c.bf16 %v3779_v4, %v3777_v5  ;;  %v9171_v29 = vrot.slane %v3989_v45, %v11415_v7  ;;  %v3981_v4 = vmul.f32 %v9168_v58, %v11418_v31 }
0x133e   : > { %3812 = vmatpush1.bf16.msra.mxu1 %v3797_v39  ;;  %v3951_v39 = vrot.slane %v3946_v16, %v11414_v51 }
0x133f   : > { %3813 = vmatprep.subr.bf16.mxu1 %v3796_v35 }
0x1342   : > { %3814 = vmatpush1.bf16.msra.mxu1 %v3795_v17 }
0x1343   : > { %3815 = vmatprep.subr.bf16.mxu1 %v3794_v63  ;;  %v11419_v63 = vld [vmem:[#allocation2_spill] sm:$0xff] }
0x1344   : > { %v4013_v5 = vmul.f32 %v9171_v29, %v11419_v63 }
0x1346   : > { %3816 = vmatpush1.bf16.msra.mxu1 %v3793_v30  ;;  %v11420_v30 = vld [vmem:[#allocation15_spill] sm:$0xff]  ;;  %v4029_v55 = vadd.f32 %v4013_v5, %v3979_v8 }
0x1347   : > { %v4035_v45 = vrot.slane %v3946_v16, %v11420_v30  ;;  %v4012_v16 = vmul.f32 %v9195_v12, %v11419_v63 }
0x1349   : > { %6946 = vmatmul.mubr.msk.bf16.vlgmr.msra.gmra.mxu1 %vm977_vm0, %v7141_v0  ;;  %v9187_v0 = vrot.slane %v4039_v61, %v11420_v30  ;;  %v9213_v5 = vrot.slane %v4035_v45, %v11420_v30 }
0x134a   : > { %3843 = vmatprep.mubr.bf16.mxu1 %v11377_v36 }
0x134b   : > { %v4063_v21 = vmul.f32 %v9187_v0, %v11422_v20 }
0x1351   : > { %6947 = vmatmul.mubr.msk.bf16.gmra.mxu1 %vm977_vm0, %v7142_v43  ;;  %v11421_v43 = vld [vmem:[#allocation4_spill] sm:$0xff] }
0x1352   : > { %3853 = vmatprep.mubr.bf16.mxu1 %v11377_v36  ;;  %v4014_v8 = vmul.f32 %v9195_v12, %v11421_v43 }
0x1359   : > { %6948 = vmatmul.mubr.msk.bf16.gmra.mxu1 %vm977_vm0, %v7143_v56  ;;  %v4015_v56 = vmul.f32 %v9171_v29, %v11421_v43 }
0x135a   : > { %3863 = vmatprep.mubr.bf16.mxu1 %v11377_v36 }
0x135b   : > { %v4031_v25 = vadd.f32 %v4015_v56, %v3981_v4  ;;  %v4079_v56 = vadd.f32 %v4063_v21, %v4029_v55  ;;  %v11427_v55 = vld [vmem:[#allocation9_spill] sm:$0xff] }
0x135d   : > { %v4095_v15 = vadd.f32 %v4079_v56, %v11424_v41 }
0x1361   : > { %6949 = vmatmul.mubr.msk.bf16.gmra.mxu1 %vm977_vm0, %v7144_v54  ;;  %v9192_v54 = vrot.slane %v3951_v39, %v11414_v51  ;;  %v11423_v51 = vld [vmem:[#allocation7_spill] sm:$0xff] }
0x1362   : > { %4251 = vmatprep.mubr.bf16.mxu1 %v11377_v36  ;;  %v4065_v33 = vmul.f32 %v9187_v0, %v11423_v51  ;;  %v4064_v63 = vmul.f32 %v9213_v5, %v11423_v51  ;;  %v11426_v36 = vld [vmem:[#allocation17_spill] sm:$0xff]  ;;  %v4011_v51 = vmul.f32 %v9171_v29, %v11283_v19 }
0x1363   : > { %v3978_v61 = vmul.f32 %v9192_v54, %v11417_v47  ;;  %v3980_v14 = vmul.f32 %v9192_v54, %v11418_v31  ;;  %v4062_v31 = vmul.f32 %v9213_v5, %v11422_v20  ;;  %v4009_v45 = vmul.f32 %v9171_v29, %v11426_v36 }
0x1364   : > { %v4081_v7 = vadd.f32 %v4065_v33, %v4031_v25  ;;  %v4111_v33 = vmax.f32 %v4095_v15, 0.0  ;;  %v4008_v34 = vmul.f32 %v9195_v12, %v11426_v36 }
0x1365   : > { %v4028_v47 = vadd.f32 %v4012_v16, %v3978_v61  ;;  %v4030_v60 = vadd.f32 %v4014_v8, %v3980_v14  ;;  %v3975_v14 = vmul.f32 %v9168_v58, %v11427_v55  ;;  %v3977_v61 = vmul.f32 %v9168_v58, %v7601_v42 }
0x1366   : > { %v4097_v24 = vadd.f32 %v4081_v7, %v11425_v9 }
0x1367   : > { %v4078_v30 = vadd.f32 %v4062_v31, %v4028_v47  ;;  %v4080_v21 = vadd.f32 %v4064_v63, %v4030_v60  ;;  %v4025_v20 = vadd.f32 %v4009_v45, %v3975_v14  ;;  %v11428_v47 = vld [vmem:[#allocation5_spill] sm:$0xff]  ;;  %v4027_v63 = vadd.f32 %v4011_v51, %v3977_v61 }
0x1368   : > { %v4113_v16 = vmax.f32 %v4097_v24, 0.0  ;;  %v4059_v60 = vmul.f32 %v9187_v0, %v11428_v47  ;;  %v3974_v45 = vmul.f32 %v9192_v54, %v11427_v55  ;;  %v3976_v14 = vmul.f32 %v9192_v54, %v7601_v42 }
0x1369   : > { %v4094_v7 = vadd.f32 %v4078_v30, %v11424_v41  ;;  %v4096_v8 = vadd.f32 %v4080_v21, %v11425_v9  ;;  %v4061_v30 = vmul.f32 %v9187_v0, %v11294_v52  ;;  %v4010_v51 = vmul.f32 %v9195_v12, %v11283_v19 }
0x136a   : > { %v9235_v50 = vpack.c.bf16 %v4113_v16, %v4111_v33  ;;  %v4075_v9 = vadd.f32 %v4059_v60, %v4025_v20  ;;  %v11430_v16 = vld [vmem:[#allocation68_spill] sm:$0xff]  ;;  %v4024_v42 = vadd.f32 %v4008_v34, %v3974_v45 }
0x136b   : > { %v4110_v24 = vmax.f32 %v4094_v7, 0.0  ;;  %v4112_v15 = vmax.f32 %v4096_v8, 0.0  ;;  %v4058_v8 = vmul.f32 %v9213_v5, %v11428_v47  ;;  %v4077_v41 = vadd.f32 %v4061_v30, %v4027_v63 }
0x136c   : > { %11429 = vst [vmem:[#allocation71_spill] sm:$0xff] %v9235_v50  ;;  %v9252_v55 = vadd.f32 %v4075_v9, %v11228_v13  ;;  %v4026_v50 = vadd.f32 %v4010_v51, %v3976_v14 }
0x1409   : > { %v9157_v59 = vpop.f32.mrf.mxu1 }
0x140b   : > { %v9159_v57 = vpop.f32.mrf.mxu1 }
0x140d   : > { %v9163_v48 = vpop.f32.mrf.mxu1 }
0x140f   : > { %v9165_v11 = vpop.f32.mrf.mxu1 }
0x1411   : > { %v9176_v35 = vpop.f32.mrf.mxu1 }
0x1413   : > { %v9182_v17 = vpop.f32.mrf.mxu1 }
0x1415   : > { %v9198_v6 = vpop.f32.mrf.mxu1 }
0x1417   : > { %v3851_v39 = vpop.f32.mrf.mxu1 }
0x1418   : > { %v3852_v9 = vadd.f32 %v3851_v39, %v8098_v3  ;;  %v3850_v39 = vadd.f32 %v9198_v6, %v8098_v3  ;;  %v4055_v6 = vmul.f32 %v9187_v0, %v7637_v32 }
0x1419   : > { %v3855_v4 = vpop.f32.mrf.mxu1 }
0x141b   : > { %v3857_v37 = vpop.f32.mrf.mxu1 }
0x141c   : > { %v3858_v36 = vadd.f32 %v3857_v37, %v8070_v53  ;;  %v3856_v37 = vadd.f32 %v3855_v4, %v8070_v53 }
0x141d   : > { %v3859_v43 = vpop.f32.mrf.mxu1 }
0x141e   : > { %v3883_v14 = vmax.f32 %v3858_v36, 0.0  ;;  %v3846_v36 = vadd.f32 %v9176_v35, %v8106_v26  ;;  %v3840_v35 = vadd.f32 %v9163_v48, %v8119_v18 }
0x141f   : > { %v3861_v25 = vpop.f32.mrf.mxu1 }
0x1420   : > { %v3862_v61 = vadd.f32 %v3861_v25, %v8054_v1  ;;  %v9256_v25 = vpack.c.bf16 %v4112_v15, %v4110_v24  ;;  %v9266_v24 = vadd.f32 %v4077_v41, %v11225_v62  ;;  %v3973_v15 = vmul.f32 %v9168_v58, %v7623_v23 }
0x1421   : > { %v3865_v56 = vpop.f32.mrf.mxu1  ;;  %v3842_v41 = vadd.f32 %v9165_v11, %v8119_v18 }
0x1422   : > { %v3866_v20 = vadd.f32 %v3865_v56, %v11364_v40  ;;  %v3971_v56 = vmul.f32 %v9168_v58, %v7618_v10  ;;  %v3885_v63 = vmax.f32 %v3862_v61, 0.0  ;;  %v4109_v11 = vmax.f32 %v9266_v24, 0.0 }
0x1423   : > { %v3867_v31 = vpop.f32.mrf.mxu1  ;;  %v3878_v24 = vmax.f32 %v3846_v36, 0.0 }
0x1424   : > { %v3868_v33 = vadd.f32 %v3867_v31, %v11364_v40  ;;  %v4060_v31 = vmul.f32 %v9213_v5, %v11294_v52  ;;  %v3886_v45 = vmax.f32 %v3866_v20, 0.0  ;;  %v3881_v20 = vmax.f32 %v3852_v9, 0.0 }
0x1425   : > { %v3869_v21 = vpop.f32.mrf.mxu1 }
0x1426   : > { %v3870_v7 = vadd.f32 %v3869_v21, %v11430_v16  ;;  %v3860_v21 = vadd.f32 %v3859_v43, %v8054_v1  ;;  %v3887_v34 = vmax.f32 %v3868_v33, 0.0  ;;  %v3848_v43 = vadd.f32 %v9182_v17, %v8106_v26  ;;  %v11431_v33 = vld [vmem:[#allocation8_spill] sm:$0xff] }
0x1427   : > { %v3871_v60 = vpop.f32.mrf.mxu1  ;;  %v4005_v4 = vmul.f32 %v9171_v29, %v11431_v33  ;;  %v4076_v53 = vadd.f32 %v4060_v31, %v4026_v50  ;;  %v3882_v17 = vmax.f32 %v3856_v37, 0.0  ;;  %v3880_v31 = vmax.f32 %v3850_v39, 0.0 }
0x1428   : > { %v3872_v19 = vadd.f32 %v3871_v60, %v11430_v16  ;;  %v3888_v47 = vmax.f32 %v3870_v7, 0.0  ;;  %v4074_v7 = vadd.f32 %v4058_v8, %v4024_v42  ;;  %v3884_v61 = vmax.f32 %v3860_v21, 0.0  ;;  %v11432_v21 = vld [vmem:[#allocation6_spill] sm:$0xff] }
0x1429   : > { %v3895_v60 = vpack.c.bf16 %v3885_v63, %v3883_v14  ;;  %v4007_v42 = vmul.f32 %v9171_v29, %v7631_v28  ;;  %v3879_v8 = vmax.f32 %v3848_v43, 0.0  ;;  %v4057_v50 = vmul.f32 %v9187_v0, %v11432_v21 }
0x142a   : > { %v3889_v30 = vmax.f32 %v3872_v19, 0.0  ;;  %v3896_v19 = vpack.c.bf16 %v3888_v47, %v3886_v45  ;;  %v3838_v47 = vadd.f32 %v9159_v57, %v8127_v44  ;;  %v3894_v9 = vpack.c.bf16 %v3884_v61, %v3882_v17 }
0x142b   : > { %v4021_v63 = vadd.f32 %v4005_v4, %v3971_v56  ;;  %v3970_v37 = vmul.f32 %v9192_v54, %v7618_v10  ;;  %v4006_v57 = vmul.f32 %v9195_v12, %v7631_v28  ;;  %v3836_v45 = vadd.f32 %v9157_v59, %v8127_v44 }
0x142c   : > { %v3897_v51 = vpack.c.bf16 %v3889_v30, %v3887_v34  ;;  %v3877_v34 = vmax.f32 %v3842_v41, 0.0  ;;  %v3893_v30 = vpack.c.bf16 %v3881_v20, %v3879_v8  ;;  %v4023_v43 = vadd.f32 %v4007_v42, %v3973_v15 }
0x142d   : > { %v4004_v48 = vmul.f32 %v9195_v12, %v11431_v33  ;;  %v3875_v14 = vmax.f32 %v3838_v47, 0.0  ;;  %v4090_v56 = vadd.f32 %v4074_v7, %v11228_v13  ;;  %v3972_v39 = vmul.f32 %v9192_v54, %v7623_v23 }
0x142e   : > { %3906 = vmatprep.subr.bf16.mxu0 %v3897_v51  ;;  %v4092_v51 = vadd.f32 %v4076_v53, %v11225_v62  ;;  %v3876_v61 = vmax.f32 %v3840_v35, 0.0  ;;  %v4071_v4 = vadd.f32 %v4055_v6, %v4021_v63  ;;  %v4054_v59 = vmul.f32 %v9213_v5, %v7637_v32  ;;  %v11433_v6 = vld [vmem:[#allocation14_spill] sm:$0xff] }
0x142f   : > { %3907 = vmatpush1.bf16.msra.mxu0 %v3896_v19  ;;  %v3892_v19 = vpack.c.bf16 %v3880_v31, %v3878_v24  ;;  %v3891_v41 = vpack.c.bf16 %v3877_v34, %v3875_v14  ;;  %v4022_v15 = vadd.f32 %v4006_v57, %v3972_v39  ;;  %v3969_v20 = vmul.f32 %v9168_v58, %v11226_v49  ;;  %v11434_v24 = vld [vmem:[#allocation71_spill] sm:$0xff] }
0x1430   : > { %3908 = vmatprep.subr.bf16.mxu0 %v3895_v60  ;;  %v4001_v60 = vmul.f32 %v9171_v29, %v11227_v46  ;;  %v3874_v7 = vmax.f32 %v3836_v45, 0.0  ;;  %v4073_v53 = vadd.f32 %v4057_v50, %v4023_v43  ;;  %v4020_v36 = vadd.f32 %v4004_v48, %v3970_v37  ;;  %v11435_v48 = vld [vmem:[#allocation32_spill] sm:$0xff] }
0x1431   : > { %v4056_v17 = vmul.f32 %v9213_v5, %v11432_v21  ;;  %v3967_v42 = vmul.f32 %v9168_v58, %v11366_v2  ;;  %v4003_v47 = vmul.f32 %v9171_v29, %v11433_v6  ;;  %v4051_v8 = vmul.f32 %v9187_v0, %v11367_v27 }
0x1432   : > { %v4053_v35 = vmul.f32 %v9187_v0, %v11368_v38  ;;  %v3890_v31 = vpack.c.bf16 %v3876_v61, %v3874_v7  ;;  %v4089_v50 = vadd.f32 %v4073_v53, %v11369_v22  ;;  %v4000_v63 = vmul.f32 %v9195_v12, %v11227_v46 }
0x1433   : > { %3909 = vmatpush1.bf16.msra.mxu0 %v3894_v9  ;;  %v3968_v9 = vmul.f32 %v9192_v54, %v11226_v49  ;;  %v4070_v34 = vadd.f32 %v4054_v59, %v4020_v36  ;;  %v4072_v58 = vadd.f32 %v4056_v17, %v4022_v15  ;;  %v4019_v37 = vadd.f32 %v4003_v47, %v3969_v20  ;;  %v11436_v20 = vld [vmem:[#allocation35_spill] sm:$0xff]  ;;  %v11438_v17 = vld [vmem:[#allocation34_spill] sm:$0xff] }
0x1434   : > { %3910 = vmatprep.subr.bf16.mxu0 %v3893_v30  ;;  %v4017_v30 = vadd.f32 %v4001_v60, %v3967_v42  ;;  %v3966_v29 = vmul.f32 %v9192_v54, %v11366_v2  ;;  %v4002_v0 = vmul.f32 %v9195_v12, %v11433_v6  ;;  %v4050_v57 = vmul.f32 %v9213_v5, %v11367_v27  ;;  %v7145_v12 = vld [vmem:[%s10687_s13] sm:$0x3] }
0x1435   : > { %v4052_v45 = vmul.f32 %v9213_v5, %v11368_v38  ;;  %v4107_v43 = vmax.f32 %v9252_v55, 0.0  ;;  %v4087_v14 = vadd.f32 %v4071_v4, %v11435_v48  ;;  %v4069_v61 = vadd.f32 %v4053_v35, %v4019_v37  ;;  %v7146_v37 = vld [vmem:[%s10677_s3] sm:$0xff]  }
0x1436   : > { %v4067_v39 = vadd.f32 %v4051_v8, %v4017_v30  ;;  %v4088_v54 = vadd.f32 %v4072_v58, %v11369_v22  ;;  %v4016_v59 = vadd.f32 %v4000_v63, %v3966_v29  ;;  %v4105_v15 = vmax.f32 %v4089_v50, 0.0  ;;  %v7147_v29 = vld [vmem:[%s10677_s3 + $0x8] sm:$0xff]   ;;  %v11490_v22 = vld [vmem:[#allocation5_spill] sm:$0xff] }
0x1437   : > { %3911 = vmatpush1.bf16.msra.mxu0 %v3892_v19  ;;  %v4108_v19 = vmax.f32 %v4092_v51, 0.0  ;;  %v4119_v5 = vpack.c.bf16 %v4109_v11, %v4107_v43  ;;  %v4106_v55 = vmax.f32 %v4090_v56, 0.0  ;;  %v4086_v4 = vadd.f32 %v4070_v34, %v11435_v48 }
0x1438   : > { %3912 = vmatprep.subr.bf16.mxu0 %v3891_v41  ;;  %v4018_v41 = vadd.f32 %v4002_v0, %v3968_v9  ;;  %v4083_v60 = vadd.f32 %v4067_v39, %v11436_v20  ;;  %v4066_v51 = vadd.f32 %v4050_v57, %v4016_v59  ;;  %v11437_v53 = vmov 0   ;;  %v7148_v0 = vld [vmem:[%s10677_s3 + $0x10] sm:$0xff]   ;;  %v7149_v57 = vld [vmem:[%s10677_s3 + $0x18] sm:$0xff]  }
0x1439   : > { %v4103_v36 = vmax.f32 %v4087_v14, 0.0  ;;  %v4085_v42 = vadd.f32 %v4069_v61, %v11438_v17  ;;  %v4118_v47 = vpack.c.bf16 %v4108_v19, %v4106_v55  ;;  %v4104_v8 = vmax.f32 %v4088_v54, 0.0 }
0x143a   : > { %v4068_v7 = vadd.f32 %v4052_v45, %v4018_v41  ;;  %v4082_v11 = vadd.f32 %v4066_v51, %v11436_v20  ;;  %v4102_v50 = vmax.f32 %v4086_v4, 0.0 }
0x143b   : > { %3913 = vmatpush1.bf16.msra.mxu0 %v3890_v31  ;;  %v4117_v35 = vpack.c.bf16 %v4105_v15, %v4103_v36  ;;  %v4099_v31 = vmax.f32 %v4083_v60, 0.0  ;;  %v4101_v56 = vmax.f32 %v4085_v42, 0.0 }
0x143c   : > { %4130 = vmatprep.subr.bf16.mxu0 %v11434_v24  ;;  %v4116_v9 = vpack.c.bf16 %v4104_v8, %v4102_v50  ;;  %v4098_v63 = vmax.f32 %v4082_v11, 0.0  ;;  %v11439_v24 = vld [vmem:[#allocation26_spill] sm:$0xff] }
0x143d   : > { %v4115_v34 = vpack.c.bf16 %v4101_v56, %v4099_v31  ;;  %v11440_v50 = vld [vmem:[#allocation38_spill] sm:$0xff]  ;;  %v11441_v56 = vld [vmem:[#allocation37_spill] sm:$0xff] }
0x143e   : > { %6950 = vmatmul.mubr.msk.bf16.vlgmr.msra.gmra.mxu0 %vm977_vm0, %v7145_v12 }
0x143f   : > { %4131 = vmatpush1.bf16.msra.mxu0 %v9256_v25  ;;  %4154 = vmatprep.mubr.bf16.mxu0 %v11437_v53  ;;  %v4084_v25 = vadd.f32 %v4068_v7, %v11438_v17 }
0x1440   : > { %4132 = vmatprep.subr.bf16.mxu0 %v4119_v5 }
0x1441   : > { %v4100_v58 = vmax.f32 %v4084_v25, 0.0 }
0x1443   : > { %4133 = vmatpush1.bf16.msra.mxu0 %v4118_v47  ;;  %v4114_v30 = vpack.c.bf16 %v4100_v58, %v4098_v63  ;;  %v11442_v63 = vld [vmem:[#allocation36_spill] sm:$0xff] }
0x1444   : > { %4134 = vmatprep.subr.bf16.mxu0 %v4117_v35 }
0x1447   : > { %4135 = vmatpush1.bf16.msra.mxu0 %v4116_v9 }
0x1448   : > { %4136 = vmatprep.subr.bf16.mxu0 %v4115_v34 }
0x144b   : > { %4137 = vmatpush1.bf16.msra.mxu0 %v4114_v30 }
0x144e   : > { %6951 = vmatmul.mubr.msk.bf16.vlgmr.msra.gmra.mxu0 %vm977_vm0, %v7146_v37  ;;  %v11443_v37 = vld [vmem:[#allocation39_spill] sm:$0xff] }
0x144f   : > { %4164 = vmatprep.mubr.bf16.mxu0 %v11437_v53 }
0x1456   : > { %6952 = vmatmul.mubr.msk.bf16.gmra.mxu0 %vm977_vm0, %v7147_v29 }
0x1457   : > { %4174 = vmatprep.mubr.bf16.mxu0 %v11437_v53 }
0x145e   : > { %6953 = vmatmul.mubr.msk.bf16.gmra.mxu0 %vm977_vm0, %v7148_v0 }
0x145f   : > { %4184 = vmatprep.mubr.bf16.mxu0 %v11437_v53 }
0x1466   : > { %6954 = vmatmul.mubr.msk.bf16.gmra.mxu0 %vm977_vm0, %v7149_v57 }
0x1467   : > { %4348 = vmatprep.mubr.bf16.mxu0 %v11437_v53 }
0x14fe   : > { %v3932_v45 = vpop.f32.mrf.mxu0 }
0x14ff   : > { %v3933_v43 = vadd.f32 %v3932_v45, %v11439_v24 }
0x1500   : > { %v3934_v14 = vpop.f32.mrf.mxu0 }
0x1501   : > { %v3935_v39 = vadd.f32 %v3934_v14, %v11439_v24  ;;  %v3939_v19 = vmax.f32 %v3933_v43, 0.0  ;;  %v11444_v43 = vld [vmem:[#allocation40_spill] sm:$0xff]  ;;  %v11484_v24 = vld [vmem:[#allocation17_spill] sm:$0xff] }
0x1502   : > { %v3936_v61 = vpop.f32.mrf.mxu0 }
0x1503   : > { %v3940_v54 = vmax.f32 %v3935_v39, 0.0 }
0x1504   : > { %v3937_v59 = vpop.f32.mrf.mxu0 }
0x1505   : > { %v3943_v41 = vcombine.low %v3939_v19, %v3940_v54 }
0x1507   : > { %3945 = vst [vmem:[%s8226_s21 + $0x18] sm:$0xff] %v3943_v41  ;;  %v11445_v41 = vld [vmem:[#allocation41_spill] sm:$0xff] }
0x150e   : > { %v4156_v12 = vpop.f32.mrf.mxu0 }
0x1510   : > { %v4158_v5 = vpop.f32.mrf.mxu0 }
0x1512   : > { %v4160_v15 = vpop.f32.mrf.mxu0 }
0x1514   : > { %v4162_v60 = vpop.f32.mrf.mxu0 }
0x1516   : > { %v4166_v55 = vpop.f32.mrf.mxu0 }
0x1518   : > { %v4168_v4 = vpop.f32.mrf.mxu0 }
0x151a   : > { %v4170_v51 = vpop.f32.mrf.mxu0 }
0x151c   : > { %v4172_v7 = vpop.f32.mrf.mxu0 }
0x151d   : > { %v4173_v14 = vadd.f32 %v4172_v7, %v11444_v43  ;;  %v4167_v7 = vadd.f32 %v4166_v55, %v11445_v41 }
0x151e   : > { %v4176_v36 = vpop.f32.mrf.mxu0 }
0x151f   : > { %v4177_v54 = vadd.f32 %v4176_v36, %v11443_v37 }
0x1520   : > { %v4178_v42 = vpop.f32.mrf.mxu0 }
0x1521   : > { %v4179_v29 = vadd.f32 %v4178_v42, %v11443_v37 }
0x1522   : > { %v4180_v47 = vpop.f32.mrf.mxu0 }
0x1523   : > { %v4181_v57 = vadd.f32 %v4180_v47, %v11440_v50  ;;  %v4202_v47 = vmax.f32 %v4173_v14, 0.0 }
0x1524   : > { %v4182_v8 = vpop.f32.mrf.mxu0 }
0x1525   : > { %v4183_v25 = vadd.f32 %v4182_v8, %v11440_v50  ;;  %v4169_v8 = vadd.f32 %v4168_v4, %v11445_v41  ;;  %v4205_v42 = vmax.f32 %v4181_v57, 0.0 }
0x1526   : > { %v4186_v11 = vpop.f32.mrf.mxu0 }
0x1527   : > { %v4187_v58 = vadd.f32 %v4186_v11, %v11441_v56  ;;  %v4206_v39 = vmax.f32 %v4183_v25, 0.0  ;;  %v4203_v25 = vmax.f32 %v4177_v54, 0.0 }
0x1528   : > { %v4188_v35 = vpop.f32.mrf.mxu0 }
0x1529   : > { %v4189_v9 = vadd.f32 %v4188_v35, %v11441_v56  ;;  %v4207_v59 = vmax.f32 %v4187_v58, 0.0  ;;  %v4204_v35 = vmax.f32 %v4179_v29, 0.0  ;;  %v4200_v58 = vmax.f32 %v4169_v8, 0.0 }
0x152a   : > { %v4190_v31 = vpop.f32.mrf.mxu0 }
0x152b   : > { %v4191_v34 = vadd.f32 %v4190_v31, %v11442_v63  ;;  %v4208_v61 = vmax.f32 %v4189_v9, 0.0  ;;  %v4171_v31 = vadd.f32 %v4170_v51, %v11444_v43  ;;  %v11447_v9 = vld [vmem:[#allocation43_spill] sm:$0xff]  ;;  %v4214_v57 = vpack.c.bf16 %v4202_v47, %v4200_v58  ;;  %v11453_v43 = vld [vmem:[#allocation49_spill] sm:$0xff] }
0x152c   : > { %v4192_v30 = vpop.f32.mrf.mxu0  ;;  %v4159_v36 = vadd.f32 %v4158_v5, %v11447_v9 }
0x152d   : > { %v4193_v0 = vadd.f32 %v4192_v30, %v11442_v63  ;;  %v4209_v45 = vmax.f32 %v4191_v34, 0.0  ;;  %v11446_v30 = vld [vmem:[#allocation42_spill] sm:$0xff]  ;;  %v4216_v34 = vpack.c.bf16 %v4206_v39, %v4204_v35  ;;  %v4201_v29 = vmax.f32 %v4171_v31, 0.0 }
0x152e   : > { %v4163_v63 = vadd.f32 %v4162_v60, %v11446_v30  ;;  %v4161_v4 = vadd.f32 %v4160_v15, %v11446_v30  ;;  %v4199_v60 = vmax.f32 %v4167_v7, 0.0  ;;  %v4196_v14 = vmax.f32 %v4159_v36, 0.0  ;;  %v7150_v15 = vld [vmem:[%s10679_s5] sm:$0xff]  }
0x152f   : > { %v4210_v19 = vmax.f32 %v4193_v0, 0.0  ;;  %v4217_v56 = vpack.c.bf16 %v4209_v45, %v4207_v59  ;;  %v4215_v0 = vpack.c.bf16 %v4205_v42, %v4203_v25  ;;  %v4157_v45 = vadd.f32 %v4156_v12, %v11447_v9  ;;  %v7151_v12 = vld [vmem:[%s10679_s5 + $0x8] sm:$0xff]  }
0x1530   : > { %v4198_v51 = vmax.f32 %v4163_v63, 0.0  ;;  %v4197_v39 = vmax.f32 %v4161_v4, 0.0  ;;  %v4213_v55 = vpack.c.bf16 %v4201_v29, %v4199_v60  ;;  %v7152_v63 = vld [vmem:[%s10679_s5 + $0x10] sm:$0xff]  }
0x1531   : > { %v4218_v11 = vpack.c.bf16 %v4210_v19, %v4208_v61  ;;  %v7153_v19 = vld [vmem:[%s10679_s5 + $0x18] sm:$0xff]   ;;  %v11450_v60 = vld [vmem:[#allocation44_spill] sm:$0xff] }
0x1532   : > { %v4212_v61 = vpack.c.bf16 %v4198_v51, %v4196_v14 }
0x1533   : > { %4227 = vmatprep.subr.bf16.mxu1 %v4218_v11 }
0x1534   : > { %4228 = vmatpush1.bf16.msra.mxu1 %v4217_v56  ;;  %v4195_v56 = vmax.f32 %v4157_v45, 0.0 }
0x1535   : > { %4229 = vmatprep.subr.bf16.mxu1 %v4216_v34 }
0x1536   : > { %v4211_v5 = vpack.c.bf16 %v4197_v39, %v4195_v56 }
0x1538   : > { %4230 = vmatpush1.bf16.msra.mxu1 %v4215_v0  ;;  %v11448_v0 = vld [vmem:[#allocation46_spill] sm:$0xff] }
0x1539   : > { %4231 = vmatprep.subr.bf16.mxu1 %v4214_v57  ;;  %v11449_v57 = vld [vmem:[#allocation45_spill] sm:$0xff] }
0x153c   : > { %4232 = vmatpush1.bf16.msra.mxu1 %v4213_v55 }
0x153d   : > { %4233 = vmatprep.subr.bf16.mxu1 %v4212_v61  ;;  %v11451_v61 = vld [vmem:[#allocation47_spill] sm:$0xff] }
0x1540   : > { %4234 = vmatpush1.bf16.msra.mxu1 %v4211_v5 }
0x1543   : > { %6955 = vmatmul.mubr.msk.bf16.vlgmr.msra.gmra.mxu1 %vm977_vm0, %v7150_v15 }
0x1544   : > { %4261 = vmatprep.mubr.bf16.mxu1 %v11437_v53 }
0x154b   : > { %6956 = vmatmul.mubr.msk.bf16.gmra.mxu1 %vm977_vm0, %v7151_v12 }
0x154c   : > { %4271 = vmatprep.mubr.bf16.mxu1 %v11437_v53 }
0x1553   : > { %6957 = vmatmul.mubr.msk.bf16.gmra.mxu1 %vm977_vm0, %v7152_v63  ;;  %v11452_v63 = vld [vmem:[#allocation48_spill] sm:$0xff] }
0x1554   : > { %4281 = vmatprep.mubr.bf16.mxu1 %v11437_v53 }
0x155b   : > { %6958 = vmatmul.mubr.msk.bf16.gmra.mxu1 %vm977_vm0, %v7153_v19 }
0x155c   : > { %4445 = vmatprep.mubr.bf16.mxu1 %v11437_v53 }
0x1603   : > { %v4253_v54 = vpop.f32.mrf.mxu1 }
0x1605   : > { %v4255_v59 = vpop.f32.mrf.mxu1 }
0x1607   : > { %v4257_v8 = vpop.f32.mrf.mxu1 }
0x1609   : > { %v4259_v35 = vpop.f32.mrf.mxu1 }
0x160b   : > { %v4263_v11 = vpop.f32.mrf.mxu1 }
0x160d   : > { %v4265_v31 = vpop.f32.mrf.mxu1 }
0x160f   : > { %v4267_v42 = vpop.f32.mrf.mxu1 }
0x1611   : > { %v4269_v47 = vpop.f32.mrf.mxu1 }
0x1612   : > { %v4270_v19 = vadd.f32 %v4269_v47, %v11452_v63  ;;  %v4264_v47 = vadd.f32 %v4263_v11, %v11453_v43 }
0x1613   : > { %v4273_v34 = vpop.f32.mrf.mxu1 }
0x1615   : > { %v4275_v7 = vpop.f32.mrf.mxu1 }
0x1616   : > { %v4276_v56 = vadd.f32 %v4275_v7, %v11451_v61 }
0x1617   : > { %v4277_v25 = vpop.f32.mrf.mxu1 }
0x1618   : > { %v4278_v15 = vadd.f32 %v4277_v25, %v11448_v0  ;;  %v4301_v37 = vmax.f32 %v4276_v56, 0.0  ;;  %v4299_v25 = vmax.f32 %v4270_v19, 0.0 }
0x1619   : > { %v4279_v36 = vpop.f32.mrf.mxu1 }
0x161a   : > { %v4280_v51 = vadd.f32 %v4279_v36, %v11448_v0  ;;  %v4274_v36 = vadd.f32 %v4273_v34, %v11451_v61  ;;  %v4302_v7 = vmax.f32 %v4278_v15, 0.0 }
0x161b   : > { %v4283_v58 = vpop.f32.mrf.mxu1 }
0x161c   : > { %v4284_v39 = vadd.f32 %v4283_v58, %v11449_v57  ;;  %v4303_v9 = vmax.f32 %v4280_v51, 0.0  ;;  %v4300_v51 = vmax.f32 %v4274_v36, 0.0 }
0x161d   : > { %v4285_v4 = vpop.f32.mrf.mxu1 }
0x161e   : > { %v4286_v45 = vadd.f32 %v4285_v4, %v11449_v57  ;;  %v4304_v4 = vmax.f32 %v4284_v39, 0.0  ;;  %v4268_v57 = vadd.f32 %v4267_v42, %v11452_v63  ;;  %v11461_v63 = vld [vmem:[#allocation57_spill] sm:$0xff] }
0x161f   : > { %v4287_v29 = vpop.f32.mrf.mxu1 }
0x1620   : > { %v4288_v14 = vadd.f32 %v4287_v29, %v11450_v60  ;;  %v4305_v30 = vmax.f32 %v4286_v45, 0.0  ;;  %v4266_v29 = vadd.f32 %v4265_v31, %v11453_v43  ;;  %v11455_v45 = vld [vmem:[#allocation51_spill] sm:$0xff] }
0x1621   : > { %v4289_v55 = vpop.f32.mrf.mxu1  ;;  %v4256_v34 = vadd.f32 %v4255_v59, %v11455_v45 }
0x1622   : > { %v4290_v5 = vadd.f32 %v4289_v55, %v11450_v60  ;;  %v4306_v12 = vmax.f32 %v4288_v14, 0.0  ;;  %v11454_v55 = vld [vmem:[#allocation50_spill] sm:$0xff]  ;;  %v4313_v14 = vpack.c.bf16 %v4303_v9, %v4301_v37  ;;  %v4297_v39 = vmax.f32 %v4266_v29, 0.0 }
0x1623   : > { %v4260_v60 = vadd.f32 %v4259_v35, %v11454_v55  ;;  %v4258_v31 = vadd.f32 %v4257_v8, %v11454_v55  ;;  %v4296_v35 = vmax.f32 %v4264_v47, 0.0  ;;  %v4293_v15 = vmax.f32 %v4256_v34, 0.0  ;;  %v7154_v8 = vld [vmem:[%s10681_s7] sm:$0xff]  }
0x1624   : > { %v4307_v41 = vmax.f32 %v4290_v5, 0.0  ;;  %v4314_v50 = vpack.c.bf16 %v4306_v12, %v4304_v4  ;;  %v4311_v56 = vpack.c.bf16 %v4299_v25, %v4297_v39  ;;  %v4254_v5 = vadd.f32 %v4253_v54, %v11455_v45  ;;  %v7155_v54 = vld [vmem:[%s10681_s7 + $0x8] sm:$0xff]  }
0x1625   : > { %v4295_v42 = vmax.f32 %v4260_v60, 0.0  ;;  %v4294_v37 = vmax.f32 %v4258_v31, 0.0  ;;  %v7157_v60 = vld [vmem:[%s10681_s7 + $0x18] sm:$0xff]  }
0x1626   : > { %v4315_v58 = vpack.c.bf16 %v4307_v41, %v4305_v30  ;;  %v4298_v41 = vmax.f32 %v4268_v57, 0.0  ;;  %v4312_v30 = vpack.c.bf16 %v4302_v7, %v4300_v51  ;;  %v7156_v57 = vld [vmem:[%s10681_s7 + $0x10] sm:$0xff]  }
0x1627   : > { %v4309_v11 = vpack.c.bf16 %v4295_v42, %v4293_v15 }
0x1628   : > { %4324 = vmatprep.subr.bf16.mxu0 %v4315_v58  ;;  %v4310_v9 = vpack.c.bf16 %v4298_v41, %v4296_v35  ;;  %v11458_v35 = vld [vmem:[#allocation52_spill] sm:$0xff] }
0x1629   : > { %4325 = vmatpush1.bf16.msra.mxu0 %v4314_v50  ;;  %v4292_v50 = vmax.f32 %v4254_v5, 0.0 }
0x162a   : > { %4326 = vmatprep.subr.bf16.mxu0 %v4313_v14 }
0x162b   : > { %v4308_v59 = vpack.c.bf16 %v4294_v37, %v4292_v50 }
0x162d   : > { %4327 = vmatpush1.bf16.msra.mxu0 %v4312_v30  ;;  %v11456_v30 = vld [vmem:[#allocation54_spill] sm:$0xff] }
0x162e   : > { %4328 = vmatprep.subr.bf16.mxu0 %v4311_v56  ;;  %v11457_v56 = vld [vmem:[#allocation53_spill] sm:$0xff] }
0x1631   : > { %4329 = vmatpush1.bf16.msra.mxu0 %v4310_v9 }
0x1632   : > { %4330 = vmatprep.subr.bf16.mxu0 %v4309_v11  ;;  %v11459_v11 = vld [vmem:[#allocation55_spill] sm:$0xff] }
0x1635   : > { %4331 = vmatpush1.bf16.msra.mxu0 %v4308_v59 }
0x1638   : > { %6959 = vmatmul.mubr.msk.bf16.vlgmr.msra.gmra.mxu0 %vm977_vm0, %v7154_v8 }
0x1639   : > { %4358 = vmatprep.mubr.bf16.mxu0 %v11437_v53 }
0x1640   : > { %6960 = vmatmul.mubr.msk.bf16.gmra.mxu0 %vm977_vm0, %v7155_v54 }
0x1641   : > { %4368 = vmatprep.mubr.bf16.mxu0 %v11437_v53 }
0x1648   : > { %6961 = vmatmul.mubr.msk.bf16.gmra.mxu0 %vm977_vm0, %v7156_v57  ;;  %v11460_v57 = vld [vmem:[#allocation56_spill] sm:$0xff] }
0x1649   : > { %4378 = vmatprep.mubr.bf16.mxu0 %v11437_v53 }
0x1650   : > { %6962 = vmatmul.mubr.msk.bf16.gmra.mxu0 %vm977_vm0, %v7157_v60 }
0x1651   : > { %4542 = vmatprep.mubr.bf16.mxu0 %v11437_v53 }
0x16f8   : > { %v4350_v12 = vpop.f32.mrf.mxu0 }
0x16fa   : > { %v4352_v19 = vpop.f32.mrf.mxu0 }
0x16fc   : > { %v4354_v36 = vpop.f32.mrf.mxu0 }
0x16fe   : > { %v4356_v4 = vpop.f32.mrf.mxu0 }
0x1700   : > { %v4360_v29 = vpop.f32.mrf.mxu0 }
0x1702   : > { %v4362_v58 = vpop.f32.mrf.mxu0 }
0x1704   : > { %v4364_v7 = vpop.f32.mrf.mxu0 }
0x1706   : > { %v4366_v25 = vpop.f32.mrf.mxu0 }
0x1707   : > { %v4367_v60 = vadd.f32 %v4366_v25, %v11460_v57  ;;  %v4361_v25 = vadd.f32 %v4360_v29, %v11461_v63 }
0x1708   : > { %v4370_v14 = vpop.f32.mrf.mxu0 }
0x170a   : > { %v4372_v47 = vpop.f32.mrf.mxu0 }
0x170b   : > { %v4373_v50 = vadd.f32 %v4372_v47, %v11459_v11 }
0x170c   : > { %v4374_v51 = vpop.f32.mrf.mxu0 }
0x170d   : > { %v4375_v8 = vadd.f32 %v4374_v51, %v11456_v30  ;;  %v4398_v61 = vmax.f32 %v4373_v50, 0.0  ;;  %v4396_v51 = vmax.f32 %v4367_v60, 0.0 }
0x170e   : > { %v4376_v34 = vpop.f32.mrf.mxu0 }
0x170f   : > { %v4377_v42 = vadd.f32 %v4376_v34, %v11456_v30  ;;  %v4371_v34 = vadd.f32 %v4370_v14, %v11459_v11  ;;  %v4399_v47 = vmax.f32 %v4375_v8, 0.0 }
0x1710   : > { %v4380_v39 = vpop.f32.mrf.mxu0 }
0x1711   : > { %v4381_v37 = vadd.f32 %v4380_v39, %v11457_v56  ;;  %v4400_v45 = vmax.f32 %v4377_v42, 0.0  ;;  %v4397_v42 = vmax.f32 %v4371_v34, 0.0 }
0x1712   : > { %v4382_v31 = vpop.f32.mrf.mxu0 }
0x1713   : > { %v4383_v5 = vadd.f32 %v4382_v31, %v11457_v56  ;;  %v4401_v31 = vmax.f32 %v4381_v37, 0.0  ;;  %v4365_v56 = vadd.f32 %v4364_v7, %v11460_v57  ;;  %v11469_v57 = vld [vmem:[#allocation65_spill] sm:$0xff] }
0x1714   : > { %v4384_v41 = vpop.f32.mrf.mxu0 }
0x1715   : > { %v4385_v15 = vadd.f32 %v4384_v41, %v11458_v35  ;;  %v4402_v55 = vmax.f32 %v4383_v5, 0.0  ;;  %v4363_v41 = vadd.f32 %v4362_v58, %v11461_v63  ;;  %v11463_v5 = vld [vmem:[#allocation59_spill] sm:$0xff] }
0x1716   : > { %v4386_v9 = vpop.f32.mrf.mxu0  ;;  %v4353_v14 = vadd.f32 %v4352_v19, %v11463_v5 }
0x1717   : > { %v4387_v59 = vadd.f32 %v4386_v9, %v11458_v35  ;;  %v4403_v54 = vmax.f32 %v4385_v15, 0.0  ;;  %v11462_v9 = vld [vmem:[#allocation58_spill] sm:$0xff]  ;;  %v4410_v15 = vpack.c.bf16 %v4400_v45, %v4398_v61  ;;  %v4394_v37 = vmax.f32 %v4363_v41, 0.0 }
0x1718   : > { %v4357_v35 = vadd.f32 %v4356_v4, %v11462_v9  ;;  %v4355_v58 = vadd.f32 %v4354_v36, %v11462_v9  ;;  %v4393_v4 = vmax.f32 %v4361_v25, 0.0  ;;  %v4390_v8 = vmax.f32 %v4353_v14, 0.0  ;;  %v7158_v36 = vld [vmem:[%s10683_s9] sm:$0xff]  }
0x1719   : > { %v4404_v43 = vmax.f32 %v4387_v59, 0.0  ;;  %v4411_v0 = vpack.c.bf16 %v4403_v54, %v4401_v31  ;;  %v4408_v50 = vpack.c.bf16 %v4396_v51, %v4394_v37  ;;  %v4351_v59 = vadd.f32 %v4350_v12, %v11463_v5  ;;  %v7159_v12 = vld [vmem:[%s10683_s9 + $0x8] sm:$0xff]  }
0x171a   : > { %v4392_v7 = vmax.f32 %v4357_v35, 0.0  ;;  %v4391_v61 = vmax.f32 %v4355_v58, 0.0  ;;  %v7161_v35 = vld [vmem:[%s10683_s9 + $0x18] sm:$0xff]  }
0x171b   : > { %v4412_v39 = vpack.c.bf16 %v4404_v43, %v4402_v55  ;;  %v4395_v43 = vmax.f32 %v4365_v56, 0.0  ;;  %v4409_v55 = vpack.c.bf16 %v4399_v47, %v4397_v42  ;;  %v7160_v56 = vld [vmem:[%s10683_s9 + $0x10] sm:$0xff]  }
0x171c   : > { %v4406_v29 = vpack.c.bf16 %v4392_v7, %v4390_v8 }
0x171d   : > { %4421 = vmatprep.subr.bf16.mxu1 %v4412_v39  ;;  %v4407_v45 = vpack.c.bf16 %v4395_v43, %v4393_v4  ;;  %v11466_v4 = vld [vmem:[#allocation60_spill] sm:$0xff] }
0x171e   : > { %4422 = vmatpush1.bf16.msra.mxu1 %v4411_v0  ;;  %v4389_v0 = vmax.f32 %v4351_v59, 0.0 }
0x171f   : > { %4423 = vmatprep.subr.bf16.mxu1 %v4410_v15 }
0x1720   : > { %v4405_v19 = vpack.c.bf16 %v4391_v61, %v4389_v0 }
0x1722   : > { %4424 = vmatpush1.bf16.msra.mxu1 %v4409_v55  ;;  %v11464_v55 = vld [vmem:[#allocation62_spill] sm:$0xff] }
0x1723   : > { %4425 = vmatprep.subr.bf16.mxu1 %v4408_v50  ;;  %v11465_v50 = vld [vmem:[#allocation61_spill] sm:$0xff] }
0x1726   : > { %4426 = vmatpush1.bf16.msra.mxu1 %v4407_v45 }
0x1727   : > { %4427 = vmatprep.subr.bf16.mxu1 %v4406_v29  ;;  %v11467_v29 = vld [vmem:[#allocation63_spill] sm:$0xff] }
0x172a   : > { %4428 = vmatpush1.bf16.msra.mxu1 %v4405_v19 }
0x172d   : > { %6963 = vmatmul.mubr.msk.bf16.vlgmr.msra.gmra.mxu1 %vm977_vm0, %v7158_v36 }
0x172e   : > { %4455 = vmatprep.mubr.bf16.mxu1 %v11437_v53 }
0x1735   : > { %6964 = vmatmul.mubr.msk.bf16.gmra.mxu1 %vm977_vm0, %v7159_v12 }
0x1736   : > { %4465 = vmatprep.mubr.bf16.mxu1 %v11437_v53 }
0x173d   : > { %6965 = vmatmul.mubr.msk.bf16.gmra.mxu1 %vm977_vm0, %v7160_v56  ;;  %v11468_v56 = vld [vmem:[#allocation64_spill] sm:$0xff] }
0x173e   : > { %4475 = vmatprep.mubr.bf16.mxu1 %v11437_v53 }
0x1745   : > { %6966 = vmatmul.mubr.msk.bf16.gmra.mxu1 %vm977_vm0, %v7161_v35 }
0x1746   : > { %4639 = vmatprep.mubr.bf16.mxu1 %v11437_v53 }
0x17ed   : > { %v4447_v54 = vpop.f32.mrf.mxu1 }
0x17ef   : > { %v4449_v60 = vpop.f32.mrf.mxu1 }
0x17f1   : > { %v4451_v34 = vpop.f32.mrf.mxu1 }
0x17f3   : > { %v4453_v31 = vpop.f32.mrf.mxu1 }
0x17f5   : > { %v4457_v41 = vpop.f32.mrf.mxu1 }
0x17f7   : > { %v4459_v39 = vpop.f32.mrf.mxu1 }
0x17f9   : > { %v4461_v47 = vpop.f32.mrf.mxu1 }
0x17fb   : > { %v4463_v51 = vpop.f32.mrf.mxu1 }
0x17fc   : > { %v4464_v35 = vadd.f32 %v4463_v51, %v11468_v56  ;;  %v4458_v51 = vadd.f32 %v4457_v41, %v11469_v57 }
0x17fd   : > { %v4467_v15 = vpop.f32.mrf.mxu1 }
0x17ff   : > { %v4469_v25 = vpop.f32.mrf.mxu1 }
0x1800   : > { %v4470_v0 = vadd.f32 %v4469_v25, %v11467_v29 }
0x1801   : > { %v4471_v42 = vpop.f32.mrf.mxu1 }
0x1802   : > { %v4472_v36 = vadd.f32 %v4471_v42, %v11464_v55  ;;  %v4495_v11 = vmax.f32 %v4470_v0, 0.0  ;;  %v4493_v42 = vmax.f32 %v4464_v35, 0.0  ;;  %v4655_v35 = vld [vmem:[%s7511_s28 + $0x28] sm:$0x77] }
0x1803   : > { %v4473_v14 = vpop.f32.mrf.mxu1 }
0x1804   : > { %v4474_v7 = vadd.f32 %v4473_v14, %v11464_v55  ;;  %v4468_v14 = vadd.f32 %v4467_v15, %v11467_v29  ;;  %v4496_v25 = vmax.f32 %v4472_v36, 0.0 }
0x1805   : > { %v4477_v37 = vpop.f32.mrf.mxu1 }
0x1806   : > { %v4478_v61 = vadd.f32 %v4477_v37, %v11465_v50  ;;  %v4497_v5 = vmax.f32 %v4474_v7, 0.0  ;;  %v4494_v7 = vmax.f32 %v4468_v14, 0.0 }
0x1807   : > { %v4479_v58 = vpop.f32.mrf.mxu1 }
0x1808   : > { %v4480_v59 = vadd.f32 %v4479_v58, %v11465_v50  ;;  %v4498_v58 = vmax.f32 %v4478_v61, 0.0  ;;  %v4462_v50 = vadd.f32 %v4461_v47, %v11468_v56 }
0x1809   : > { %v4481_v43 = vpop.f32.mrf.mxu1 }
0x180a   : > { %v4482_v8 = vadd.f32 %v4481_v43, %v11466_v4  ;;  %v4499_v9 = vmax.f32 %v4480_v59, 0.0  ;;  %v4460_v43 = vadd.f32 %v4459_v39, %v11469_v57  ;;  %v11471_v59 = vld [vmem:[#allocation67_spill] sm:$0xff] }
0x180b   : > { %v4483_v45 = vpop.f32.mrf.mxu1  ;;  %v4450_v15 = vadd.f32 %v4449_v60, %v11471_v59 }
0x180c   : > { %v4484_v19 = vadd.f32 %v4483_v45, %v11466_v4  ;;  %v4500_v12 = vmax.f32 %v4482_v8, 0.0  ;;  %v11470_v45 = vld [vmem:[#allocation66_spill] sm:$0xff]  ;;  %v4507_v8 = vpack.c.bf16 %v4497_v5, %v4495_v11  ;;  %v4491_v61 = vmax.f32 %v4460_v43, 0.0 }
0x180d   : > { %v4454_v4 = vadd.f32 %v4453_v31, %v11470_v45  ;;  %v4452_v39 = vadd.f32 %v4451_v34, %v11470_v45  ;;  %v4490_v31 = vmax.f32 %v4458_v51, 0.0  ;;  %v4487_v36 = vmax.f32 %v4450_v15, 0.0  ;;  %v7162_v34 = vld [vmem:[%s10685_s11] sm:$0xff]   ;;  %v11475_v15 = vld [vmem:[#allocation12_spill] sm:$0xff] }
0x180e   : > { %v4501_v63 = vmax.f32 %v4484_v19, 0.0  ;;  %v4508_v30 = vpack.c.bf16 %v4500_v12, %v4498_v58  ;;  %v4505_v0 = vpack.c.bf16 %v4493_v42, %v4491_v61  ;;  %v4448_v19 = vadd.f32 %v4447_v54, %v11471_v59  ;;  %v7163_v54 = vld [vmem:[%s10685_s11 + $0x8] sm:$0xff]   ;;  %v11474_v51 = vld [vmem:[#allocation10_spill] sm:$0xff] }
0x180f   : > { %v4489_v47 = vmax.f32 %v4454_v4, 0.0  ;;  %v4488_v11 = vmax.f32 %v4452_v39, 0.0  ;;  %v7165_v4 = vld [vmem:[%s10685_s11 + $0x18] sm:$0xff]   ;;  %v11472_v58 = vld [vmem:[#allocation11_spill] sm:$0xff]  ;;  %v11476_v39 = vld [vmem:[#allocation16_spill] sm:$0xff] }
0x1810   : > { %v4509_v37 = vpack.c.bf16 %v4501_v63, %v4499_v9  ;;  %v4492_v63 = vmax.f32 %v4462_v50, 0.0  ;;  %v4506_v9 = vpack.c.bf16 %v4496_v25, %v4494_v7  ;;  %v7164_v50 = vld [vmem:[%s10685_s11 + $0x10] sm:$0xff]   ;;  %v4664_v43 = vrot.slane %v4655_v35, %v11472_v58  ;;  %v11483_v59 = vld [vmem:[#allocation7_spill] sm:$0xff] }
0x1811   : > { %v4503_v41 = vpack.c.bf16 %v4489_v47, %v4487_v36  ;;  %v11477_v47 = vld [vmem:[#allocation18_spill] sm:$0xff] }
0x1812   : > { %4518 = vmatprep.subr.bf16.mxu0 %v4509_v37  ;;  %v4504_v5 = vpack.c.bf16 %v4492_v63, %v4490_v31  ;;  %v11473_v37 = vld [vmem:[#allocation13_spill] sm:$0xff]  ;;  %v9526_v7 = vrot.slane %v4664_v43, %v11474_v51  ;;  %v4748_v63 = vrot.slane %v4655_v35, %v11476_v39  ;;  %v11482_v39 = vld [vmem:[#allocation3_spill] sm:$0xff] }
0x1813   : > { %4519 = vmatpush1.bf16.msra.mxu0 %v4508_v30  ;;  %v4486_v30 = vmax.f32 %v4448_v19, 0.0  ;;  %v4698_v25 = vrot.slane %v4655_v35, %v11473_v37  ;;  %v11478_v19 = vld [vmem:[#allocation20_spill] sm:$0xff] }
0x1814   : > { %4520 = vmatprep.subr.bf16.mxu0 %v4507_v8  ;;  %v4690_v31 = vmul.f32 %v9526_v7, %v11478_v19 }
0x1815   : > { %v4502_v60 = vpack.c.bf16 %v4488_v11, %v4486_v30  ;;  %v9529_v61 = vrot.slane %v4698_v25, %v11475_v15  ;;  %v4660_v11 = vrot.slane %v4655_v35, %v11474_v51  ;;  %v11480_v30 = vld [vmem:[#allocation4_spill] sm:$0xff] }
0x1817   : > { %4521 = vmatpush1.bf16.msra.mxu0 %v4506_v9  ;;  %v9558_v57 = vrot.slane %v4660_v11, %v11474_v51  ;;  %v4718_v11 = vmul.f32 %v9529_v61, %v11484_v24  ;;  %v11485_v51 = vld [vmem:[#allocation23_spill] sm:$0xff] }
0x1818   : > { %4522 = vmatprep.subr.bf16.mxu0 %v4505_v0  ;;  %v4688_v0 = vmul.f32 %v9526_v7, %v11477_v47 }
0x1819   : > { %v4689_v55 = vmul.f32 %v9558_v57, %v11478_v19 }
0x181b   : > { %4523 = vmatpush1.bf16.msra.mxu0 %v4504_v5  ;;  %v11479_v5 = vld [vmem:[#allocation2_spill] sm:$0xff] }
0x181c   : > { %4524 = vmatprep.subr.bf16.mxu0 %v4503_v41  ;;  %v4722_v41 = vmul.f32 %v9529_v61, %v11479_v5 }
0x181e   : > { %v4738_v43 = vadd.f32 %v4722_v41, %v4688_v0  ;;  %v4687_v41 = vmul.f32 %v9558_v57, %v11477_v47  ;;  %v11488_v47 = vld [vmem:[#allocation22_spill] sm:$0xff] }
0x181f   : > { %4525 = vmatpush1.bf16.msra.mxu0 %v4502_v60  ;;  %v4724_v60 = vmul.f32 %v9529_v61, %v11480_v30 }
0x1821   : > { %v4740_v25 = vadd.f32 %v4724_v60, %v4690_v31 }
0x1822   : > { %6967 = vmatmul.mubr.msk.bf16.vlgmr.msra.gmra.mxu0 %vm977_vm0, %v7162_v34  ;;  %v11481_v34 = vld [vmem:[#allocation15_spill] sm:$0xff] }
0x1823   : > { %4552 = vmatprep.mubr.bf16.mxu0 %v11437_v53  ;;  %v4744_v56 = vrot.slane %v4655_v35, %v11481_v34 }
0x182a   : > { %6968 = vmatmul.mubr.msk.bf16.gmra.mxu0 %vm977_vm0, %v7163_v54  ;;  %v9546_v54 = vrot.slane %v4748_v63, %v11481_v34 }
0x182b   : > { %4562 = vmatprep.mubr.bf16.mxu0 %v11437_v53 }
0x182c   : > { %v4772_v37 = vmul.f32 %v9546_v54, %v11482_v39  ;;  %v4774_v45 = vmul.f32 %v9546_v54, %v11483_v59  ;;  %v4768_v38 = vmul.f32 %v9546_v54, %v11490_v22 }
0x182e   : > { %v4788_v0 = vadd.f32 %v4772_v37, %v4738_v43  ;;  %v4790_v31 = vadd.f32 %v4774_v45, %v4740_v25  ;;  %v9577_v37 = vrot.slane %v4744_v56, %v11481_v34  ;;  %v11487_v25 = vld [vmem:[#allocation9_spill] sm:$0xff] }
0x182f   : > { %v4684_v19 = vmul.f32 %v9526_v7, %v11487_v25 }
0x1830   : > { %v4804_v17 = vadd.f32 %v4788_v0, %v11485_v51  ;;  %v4771_v0 = vmul.f32 %v9577_v37, %v11482_v39  ;;  %v4773_v2 = vmul.f32 %v9577_v37, %v11483_v59 }
0x1831   : > { %v4734_v34 = vadd.f32 %v4718_v11, %v4684_v19  ;;  %v4685_v19 = vmul.f32 %v9558_v57, %v11488_v47 }
0x1832   : > { %6969 = vmatmul.mubr.msk.bf16.gmra.mxu0 %vm977_vm0, %v7164_v50  ;;  %v4694_v50 = vrot.slane %v4655_v35, %v11475_v15 }
0x1833   : > { %4572 = vmatprep.mubr.bf16.mxu0 %v11437_v53 }
0x1834   : > { %v9561_v63 = vrot.slane %v4694_v50, %v11475_v15  ;;  %v11486_v50 = vld [vmem:[#allocation24_spill] sm:$0xff] }
0x1835   : > { %v4806_v15 = vadd.f32 %v4790_v31, %v11486_v50 }
0x1836   : > { %v4721_v35 = vmul.f32 %v9561_v63, %v11479_v5  ;;  %v4723_v43 = vmul.f32 %v9561_v63, %v11480_v30  ;;  %v11489_v5 = vld [vmem:[#allocation19_spill] sm:$0xff]  ;;  %v4820_v30 = vmax.f32 %v4804_v17, 0.0  ;;  %v4717_v11 = vmul.f32 %v9561_v63, %v11484_v24 }
0x1837   : > { %v4720_v56 = vmul.f32 %v9529_v61, %v11489_v5  ;;  %v4822_v27 = vmax.f32 %v4806_v15, 0.0 }
0x1838   : > { %v4737_v20 = vadd.f32 %v4721_v35, %v4687_v41  ;;  %v4739_v48 = vadd.f32 %v4723_v43, %v4689_v55  ;;  %v4770_v35 = vmul.f32 %v9546_v54, %v11294_v52  ;;  %v4784_v43 = vadd.f32 %v4768_v38, %v4734_v34 }
0x1839   : > { %v9599_v17 = vpack.c.bf16 %v4822_v27, %v4820_v30 }
0x183a   : > { %6970 = vmatmul.mubr.msk.bf16.gmra.mxu0 %vm977_vm0, %v7165_v4  ;;  %v4787_v41 = vadd.f32 %v4771_v0, %v4737_v20  ;;  %v4789_v55 = vadd.f32 %v4773_v2, %v4739_v48  ;;  %v4683_v20 = vmul.f32 %v9558_v57, %v11487_v25  ;;  %v9610_v38 = vadd.f32 %v4784_v43, %v11228_v13 }
0x183b   : > { %4960 = vmatprep.mubr.bf16.mxu0 %v11437_v53  ;;  %v4686_v53 = vmul.f32 %v9526_v7, %v11488_v47  ;;  %v4719_v48 = vmul.f32 %v9561_v63, %v11489_v5  ;;  %v11491_v47 = vld [vmem:[#allocation70_spill] sm:$0xff] }
0x183c   : > { %v9602_v15 = vadd.f32 %v4787_v41, %v11485_v51  ;;  %v9607_v0 = vadd.f32 %v4789_v55, %v11486_v50 }
0x183d   : > { %v4736_v46 = vadd.f32 %v4720_v56, %v4686_v53  ;;  %v4767_v56 = vmul.f32 %v9577_v37, %v11490_v22  ;;  %v4735_v43 = vadd.f32 %v4719_v48, %v4685_v19 }
0x183f   : > { %v4786_v2 = vadd.f32 %v4770_v35, %v4736_v46  ;;  %v4733_v35 = vadd.f32 %v4717_v11, %v4683_v20 }
0x1841   : > { %v9621_v46 = vadd.f32 %v4786_v2, %v11225_v62 }
0x18e2   : > { %v9514_v12 = vpop.f32.mrf.mxu0 }
0x18e4   : > { %v9517_v14 = vpop.f32.mrf.mxu0 }
0x18e6   : > { %v9521_v42 = vpop.f32.mrf.mxu0 }
0x18e8   : > { %v9523_v8 = vpop.f32.mrf.mxu0 }
0x18ea   : > { %v9532_v9 = vpop.f32.mrf.mxu0 }
0x18ec   : > { %v9538_v36 = vpop.f32.mrf.mxu0 }
0x18ee   : > { %v9549_v4 = vpop.f32.mrf.mxu0 }
0x18f0   : > { %v9553_v58 = vpop.f32.mrf.mxu0 }
0x18f1   : > { %v4561_v11 = vadd.f32 %v9553_v58, %v8098_v3  ;;  %v4559_v58 = vadd.f32 %v9549_v4, %v8098_v3 }
0x18f2   : > { %v9564_v29 = vpop.f32.mrf.mxu0 }
0x18f3   : > { %v4565_v2 = vadd.f32 %v9564_v29, %v11491_v47  ;;  %v4714_v29 = vmul.f32 %v9529_v61, %v11431_v33 }
0x18f4   : > { %v4566_v60 = vpop.f32.mrf.mxu0 }
0x18f5   : > { %v4567_v50 = vadd.f32 %v4566_v60, %v11491_v47 }
0x18f6   : > { %v4568_v45 = vpop.f32.mrf.mxu0 }
0x18f8   : > { %v4570_v31 = vpop.f32.mrf.mxu0 }
0x18f9   : > { %v4571_v27 = vadd.f32 %v4570_v31, %v8054_v1  ;;  %v4783_v31 = vadd.f32 %v4767_v56, %v4733_v35  ;;  %v4591_v56 = vmax.f32 %v4565_v2, 0.0  ;;  %v4547_v35 = vadd.f32 %v9517_v14, %v8127_v44 }
0x18fa   : > { %v4574_v6 = vpop.f32.mrf.mxu0  ;;  %v4715_v14 = vmul.f32 %v9561_v63, %v7631_v28  ;;  %v4679_v2 = vmul.f32 %v9558_v57, %v7618_v10 }
0x18fb   : > { %v4575_v41 = vadd.f32 %v4574_v6, %v11364_v40  ;;  %v4594_v19 = vmax.f32 %v4571_v27, 0.0  ;;  %v4592_v6 = vmax.f32 %v4567_v50, 0.0  ;;  %v4555_v50 = vadd.f32 %v9532_v9, %v8106_v26 }
0x18fc   : > { %v4576_v39 = vpop.f32.mrf.mxu0  ;;  %v4549_v9 = vadd.f32 %v9521_v42, %v8119_v18  ;;  %v4713_v42 = vmul.f32 %v9561_v63, %v11431_v33 }
0x18fd   : > { %v4577_v30 = vadd.f32 %v4576_v39, %v11364_v40  ;;  %v4769_v39 = vmul.f32 %v9577_v37, %v11294_v52  ;;  %v4595_v48 = vmax.f32 %v4575_v41, 0.0  ;;  %v4590_v41 = vmax.f32 %v4561_v11, 0.0 }
0x18fe   : > { %v4578_v53 = vpop.f32.mrf.mxu0 }
0x18ff   : > { %v4579_v34 = vadd.f32 %v4578_v53, %v11430_v16  ;;  %v4569_v53 = vadd.f32 %v4568_v45, %v8054_v1  ;;  %v4596_v20 = vmax.f32 %v4577_v30, 0.0  ;;  %v4680_v45 = vmul.f32 %v9526_v7, %v7618_v10 }
0x1900   : > { %v4580_v55 = vpop.f32.mrf.mxu0  ;;  %v4551_v30 = vadd.f32 %v9523_v8, %v8119_v18  ;;  %v4785_v4 = vadd.f32 %v4769_v39, %v4735_v43  ;;  %v4764_v8 = vmul.f32 %v9546_v54, %v7637_v32 }
0x1901   : > { %v4581_v5 = vadd.f32 %v4580_v55, %v11430_v16  ;;  %v4597_v22 = vmax.f32 %v4579_v34, 0.0  ;;  %v4557_v34 = vadd.f32 %v9538_v36, %v8106_v26  ;;  %v4593_v27 = vmax.f32 %v4569_v53, 0.0 }
0x1902   : > { %v4604_v55 = vpack.c.bf16 %v4594_v19, %v4592_v6  ;;  %v4716_v36 = vmul.f32 %v9529_v61, %v7631_v28  ;;  %v4589_v6 = vmax.f32 %v4559_v58, 0.0  ;;  %v4730_v43 = vadd.f32 %v4714_v29, %v4680_v45 }
0x1903   : > { %v4598_v60 = vmax.f32 %v4581_v5, 0.0  ;;  %v4605_v5 = vpack.c.bf16 %v4597_v22, %v4595_v48  ;;  %v4682_v22 = vmul.f32 %v9526_v7, %v7623_v23  ;;  %v4588_v53 = vmax.f32 %v4557_v34, 0.0 }
0x1904   : > { %v4603_v11 = vpack.c.bf16 %v4593_v27, %v4591_v56  ;;  %v4586_v39 = vmax.f32 %v4551_v30, 0.0  ;;  %v4584_v48 = vmax.f32 %v4547_v35, 0.0  ;;  %v4766_v45 = vmul.f32 %v9546_v54, %v11432_v21 }
0x1905   : > { %v4606_v40 = vpack.c.bf16 %v4598_v60, %v4596_v20  ;;  %v4602_v19 = vpack.c.bf16 %v4590_v41, %v4588_v53  ;;  %v4732_v20 = vadd.f32 %v4716_v36, %v4682_v22  ;;  %v4545_v60 = vadd.f32 %v9514_v12, %v8127_v44  ;;  %v11492_v36 = vld [vmem:[#allocation28_spill] sm:$0xff]  ;;  %v11493_v53 = vld [vmem:[#allocation29_spill] sm:$0xff] }
0x1906   : > { %v4681_v34 = vmul.f32 %v9558_v57, %v7623_v23  ;;  %v4585_v58 = vmax.f32 %v4549_v9, 0.0  ;;  %v4780_v27 = vadd.f32 %v4764_v8, %v4730_v43  ;;  %v4600_v29 = vpack.c.bf16 %v4586_v39, %v4584_v48  ;;  %v11494_v9 = vld [vmem:[#allocation14_spill] sm:$0xff]  ;;  %v11496_v39 = vld [vmem:[#allocation31_spill] sm:$0xff] }
0x1907   : > { %4615 = vmatprep.subr.bf16.mxu1 %v4606_v40  ;;  %v9655_v40 = vadd.f32 %v4783_v31, %v11228_v13  ;;  %v4587_v31 = vmax.f32 %v4555_v50, 0.0  ;;  %v4678_v41 = vmul.f32 %v9526_v7, %v11226_v49  ;;  %v4710_v50 = vmul.f32 %v9529_v61, %v11492_v36 }
0x1908   : > { %4616 = vmatpush1.bf16.msra.mxu1 %v4605_v5  ;;  %v4763_v5 = vmul.f32 %v9577_v37, %v7637_v32  ;;  %v4731_v30 = vadd.f32 %v4715_v14, %v4681_v34  ;;  %v4583_v56 = vmax.f32 %v4545_v60, 0.0  ;;  %v4729_v22 = vadd.f32 %v4713_v42, %v4679_v2  ;;  %v11497_v60 = vld [vmem:[#allocation33_spill] sm:$0xff] }
0x1909   : > { %4617 = vmatprep.subr.bf16.mxu1 %v4604_v55  ;;  %v4801_v55 = vadd.f32 %v4785_v4, %v11225_v62  ;;  %v4601_v12 = vpack.c.bf16 %v4589_v6, %v4587_v31  ;;  %v4782_v4 = vadd.f32 %v4766_v45, %v4732_v20  ;;  %v4765_v35 = vmul.f32 %v9577_v37, %v11432_v21 }
0x190a   : > { %v4676_v8 = vmul.f32 %v9526_v7, %v11493_v53  ;;  %v4712_v6 = vmul.f32 %v9529_v61, %v11494_v9  ;;  %v4599_v14 = vpack.c.bf16 %v4585_v58, %v4583_v56  ;;  %v4677_v31 = vmul.f32 %v9558_v57, %v11226_v49 }
0x190b   : > { %v4798_v20 = vadd.f32 %v4782_v4, %v11497_v60  ;;  %v4709_v2 = vmul.f32 %v9561_v63, %v11492_v36  ;;  %v4779_v42 = vadd.f32 %v4763_v5, %v4729_v22  ;;  %v4781_v7 = vadd.f32 %v4765_v35, %v4731_v30  ;;  %v11500_v30 = vld [vmem:[#allocation32_spill] sm:$0xff] }
0x190c   : > { %4618 = vmatpush1.bf16.msra.mxu1 %v4603_v11  ;;  %v11495_v11 = vld [vmem:[#allocation30_spill] sm:$0xff]  ;;  %v4726_v48 = vadd.f32 %v4710_v50, %v4676_v8  ;;  %v4728_v45 = vadd.f32 %v4712_v6, %v4678_v41  ;;  %v4675_v61 = vmul.f32 %v9558_v57, %v11493_v53  ;;  %v4761_v58 = vmul.f32 %v9577_v37, %v11496_v39 }
0x190d   : > { %4619 = vmatprep.subr.bf16.mxu1 %v4602_v19  ;;  %v4760_v43 = vmul.f32 %v9546_v54, %v11495_v11  ;;  %v4762_v19 = vmul.f32 %v9546_v54, %v11496_v39  ;;  %v4711_v54 = vmul.f32 %v9561_v63, %v11494_v9  ;;  %v4759_v34 = vmul.f32 %v9577_v37, %v11495_v11  ;;  %v7166_v37 = vld [vmem:[%s10687_s13] sm:$0x3] }
0x190e   : > { %v11499_v5 = vmax.f32 %v9607_v0, 0.0  ;;  %v4796_v41 = vadd.f32 %v4780_v27, %v11500_v30  ;;  %v4817_v56 = vmax.f32 %v4801_v55, 0.0  ;;  %v4797_v63 = vadd.f32 %v4781_v7, %v11497_v60  ;;  %v11503_v27 = vld [vmem:[#allocation35_spill] sm:$0xff] }
0x190f   : > { %v4776_v50 = vadd.f32 %v4760_v43, %v4726_v48  ;;  %v4778_v57 = vadd.f32 %v4762_v19, %v4728_v45  ;;  %v4725_v4 = vadd.f32 %v4709_v2, %v4675_v61  ;;  %v4727_v22 = vadd.f32 %v4711_v54, %v4677_v31  ;;  %v11505_v2 = vld [vmem:[#allocation34_spill] sm:$0xff] }
0x1910   : > { %4620 = vmatpush1.bf16.msra.mxu1 %v4601_v12  ;;  %v11498_v12 = vmax.f32 %v9602_v15, 0.0  ;;  %v11502_v15 = vmax.f32 %v9621_v46, 0.0  ;;  %v4814_v35 = vmax.f32 %v4798_v20, 0.0  ;;  %v4815_v55 = vmax.f32 %v9655_v40, 0.0 }
0x1911   : > { %4621 = vmatprep.subr.bf16.mxu1 %v4600_v29  ;;  %v4792_v8 = vadd.f32 %v4776_v50, %v11503_v27  ;;  %v4795_v6 = vadd.f32 %v4779_v42, %v11500_v30  ;;  %v4775_v43 = vadd.f32 %v4759_v34, %v4725_v4  ;;  %v4777_v19 = vadd.f32 %v4761_v58, %v4727_v22  ;;  %v7169_v50 = vld [vmem:[%s10677_s3 + $0x10] sm:$0xff]  }
0x1912   : > { %v4829_v29 = vpack.c.bf16 %v11499_v5, %v11498_v12  ;;  %v4812_v31 = vmax.f32 %v4796_v41, 0.0  ;;  %v4794_v7 = vadd.f32 %v4778_v57, %v11505_v2  ;;  %v4813_v48 = vmax.f32 %v4797_v63, 0.0  ;;  %v7168_v41 = vld [vmem:[%s10677_s3 + $0x8] sm:$0xff]   ;;  %v7170_v57 = vld [vmem:[%s10677_s3 + $0x18] sm:$0xff]   ;;  %v11506_v63 = vld [vmem:[#allocation26_spill] sm:$0xff] }
0x1913   : > { %v4791_v46 = vadd.f32 %v4775_v43, %v11503_v27  ;;  %v4808_v45 = vmax.f32 %v4792_v8, 0.0  ;;  %v4811_v61 = vmax.f32 %v4795_v6, 0.0  ;;  %v4793_v40 = vadd.f32 %v4777_v19, %v11505_v2  ;;  %v11512_v2 = vld [vmem:[#allocation41_spill] sm:$0xff] }
0x1914   : > { %4622 = vmatpush1.bf16.msra.mxu1 %v4599_v14  ;;  %v11504_v14 = vmov 0   ;;  %v4826_v20 = vpack.c.bf16 %v4814_v35, %v4812_v31  ;;  %v4810_v42 = vmax.f32 %v4794_v7, 0.0 }
0x1915   : > { %4839 = vmatprep.subr.bf16.mxu1 %v9599_v17  ;;  %v11501_v17 = vmax.f32 %v9610_v38, 0.0  ;;  %v4827_v38 = vpack.c.bf16 %v4817_v56, %v4815_v55  ;;  %v4825_v54 = vpack.c.bf16 %v4813_v48, %v4811_v61  ;;  %v4807_v34 = vmax.f32 %v4791_v46, 0.0 }
0x1916   : > { %v4824_v58 = vpack.c.bf16 %v4810_v42, %v4808_v45  ;;  %v4809_v12 = vmax.f32 %v4793_v40, 0.0 }
0x1917   : > { %6971 = vmatmul.mubr.msk.bf16.vlgmr.msra.gmra.mxu1 %vm977_vm0, %v7166_v37  ;;  %v4828_v0 = vpack.c.bf16 %v11502_v15, %v11501_v17 }
0x1918   : > { %4840 = vmatpush1.bf16.msra.mxu1 %v4829_v29  ;;  %4863 = vmatprep.mubr.bf16.mxu1 %v11504_v14  ;;  %v4823_v5 = vpack.c.bf16 %v4809_v12, %v4807_v34  ;;  %v7167_v29 = vld [vmem:[%s10677_s3] sm:$0xff]   ;;  %v11508_v12 = vld [vmem:[#allocation37_spill] sm:$0xff] }
0x1919   : > { %4841 = vmatprep.subr.bf16.mxu1 %v4828_v0  ;;  %v11507_v34 = vld [vmem:[#allocation38_spill] sm:$0xff] }
0x191c   : > { %4842 = vmatpush1.bf16.msra.mxu1 %v4827_v38 }
0x191d   : > { %4843 = vmatprep.subr.bf16.mxu1 %v4826_v20 }
0x1920   : > { %4844 = vmatpush1.bf16.msra.mxu1 %v4825_v54 }
0x1921   : > { %4845 = vmatprep.subr.bf16.mxu1 %v4824_v58 }
0x1924   : > { %4846 = vmatpush1.bf16.msra.mxu1 %v4823_v5 }
0x1927   : > { %6972 = vmatmul.mubr.msk.bf16.vlgmr.msra.gmra.mxu1 %vm977_vm0, %v7167_v29  ;;  %v11509_v29 = vld [vmem:[#allocation36_spill] sm:$0xff] }
0x1928   : > { %4873 = vmatprep.mubr.bf16.mxu1 %v11504_v14 }
0x192f   : > { %6973 = vmatmul.mubr.msk.bf16.gmra.mxu1 %vm977_vm0, %v7168_v41 }
0x1930   : > { %4883 = vmatprep.mubr.bf16.mxu1 %v11504_v14 }
0x1937   : > { %6974 = vmatmul.mubr.msk.bf16.gmra.mxu1 %vm977_vm0, %v7169_v50 }
0x1938   : > { %4893 = vmatprep.mubr.bf16.mxu1 %v11504_v14 }
0x193f   : > { %6975 = vmatmul.mubr.msk.bf16.gmra.mxu1 %vm977_vm0, %v7170_v57 }
0x1940   : > { %5057 = vmatprep.mubr.bf16.mxu1 %v11504_v14 }
0x19d7   : > { %v4641_v56 = vpop.f32.mrf.mxu1 }
0x19d8   : > { %v4642_v4 = vadd.f32 %v4641_v56, %v11506_v63  ;;  %v11510_v56 = vld [vmem:[#allocation39_spill] sm:$0xff] }
0x19d9   : > { %v4643_v22 = vpop.f32.mrf.mxu1 }
0x19da   : > { %v4644_v37 = vadd.f32 %v4643_v22, %v11506_v63  ;;  %v4648_v15 = vmax.f32 %v4642_v4, 0.0 }
0x19db   : > { %v4645_v17 = vpop.f32.mrf.mxu1 }
0x19dc   : > { %v4649_v0 = vmax.f32 %v4644_v37, 0.0 }
0x19dd   : > { %v4646_v35 = vpop.f32.mrf.mxu1 }
0x19de   : > { %v4652_v8 = vcombine.low %v4648_v15, %v4649_v0  ;;  %v11511_v15 = vld [vmem:[#allocation40_spill] sm:$0xff] }
0x19e0   : > { %4654 = vst [vmem:[%s8226_s21 + $0x20] sm:$0xff] %v4652_v8 }
0x19e7   : > { %v4865_v55 = vpop.f32.mrf.mxu1 }
0x19e9   : > { %v4867_v6 = vpop.f32.mrf.mxu1 }
0x19eb   : > { %v4869_v43 = vpop.f32.mrf.mxu1 }
0x19ed   : > { %v4871_v19 = vpop.f32.mrf.mxu1 }
0x19ef   : > { %v4875_v31 = vpop.f32.mrf.mxu1 }
0x19f1   : > { %v4877_v7 = vpop.f32.mrf.mxu1 }
0x19f3   : > { %v4879_v38 = vpop.f32.mrf.mxu1 }
0x19f5   : > { %v4881_v48 = vpop.f32.mrf.mxu1 }
0x19f6   : > { %v4882_v0 = vadd.f32 %v4881_v48, %v11511_v15  ;;  %v4876_v48 = vadd.f32 %v4875_v31, %v11512_v2 }
0x19f7   : > { %v4885_v46 = vpop.f32.mrf.mxu1 }
0x19f9   : > { %v4887_v20 = vpop.f32.mrf.mxu1 }
0x19fa   : > { %v4888_v4 = vadd.f32 %v4887_v20, %v11510_v56 }
0x19fb   : > { %v4889_v45 = vpop.f32.mrf.mxu1 }
0x19fc   : > { %v4890_v37 = vadd.f32 %v4889_v45, %v11507_v34  ;;  %v4913_v27 = vmax.f32 %v4888_v4, 0.0  ;;  %v4911_v45 = vmax.f32 %v4882_v0, 0.0 }
0x19fd   : > { %v4891_v61 = vpop.f32.mrf.mxu1 }
0x19fe   : > { %v4892_v58 = vadd.f32 %v4891_v61, %v11507_v34  ;;  %v4886_v61 = vadd.f32 %v4885_v46, %v11510_v56  ;;  %v4914_v20 = vmax.f32 %v4890_v37, 0.0 }
0x19ff   : > { %v4895_v40 = vpop.f32.mrf.mxu1 }
0x1a00   : > { %v4896_v50 = vadd.f32 %v4895_v40, %v11508_v12  ;;  %v4915_v35 = vmax.f32 %v4892_v58, 0.0  ;;  %v4912_v58 = vmax.f32 %v4886_v61, 0.0 }
0x1a01   : > { %v4897_v42 = vpop.f32.mrf.mxu1 }
0x1a02   : > { %v4898_v5 = vadd.f32 %v4897_v42, %v11508_v12  ;;  %v4916_v42 = vmax.f32 %v4896_v50, 0.0  ;;  %v4880_v12 = vadd.f32 %v4879_v38, %v11511_v15  ;;  %v4924_v4 = vpack.c.bf16 %v4914_v20, %v4912_v58  ;;  %v11520_v15 = vld [vmem:[#allocation49_spill] sm:$0xff] }
0x1a03   : > { %v4899_v54 = vpop.f32.mrf.mxu1 }
0x1a04   : > { %v4900_v41 = vadd.f32 %v4899_v54, %v11509_v29  ;;  %v4917_v8 = vmax.f32 %v4898_v5, 0.0  ;;  %v4878_v54 = vadd.f32 %v4877_v7, %v11512_v2  ;;  %v11514_v5 = vld [vmem:[#allocation43_spill] sm:$0xff] }
0x1a05   : > { %v4901_v57 = vpop.f32.mrf.mxu1  ;;  %v4868_v46 = vadd.f32 %v4867_v6, %v11514_v5  ;;  %v4866_v37 = vadd.f32 %v4865_v55, %v11514_v5  ;;  %v7172_v55 = vld [vmem:[%s10679_s5 + $0x8] sm:$0xff]  }
0x1a06   : > { %v4902_v22 = vadd.f32 %v4901_v57, %v11509_v29  ;;  %v4918_v17 = vmax.f32 %v4900_v41, 0.0  ;;  %v11513_v57 = vld [vmem:[#allocation42_spill] sm:$0xff]  ;;  %v4925_v41 = vpack.c.bf16 %v4915_v35, %v4913_v27  ;;  %v4909_v50 = vmax.f32 %v4878_v54, 0.0 }
0x1a07   : > { %v4872_v29 = vadd.f32 %v4871_v19, %v11513_v57  ;;  %v4870_v7 = vadd.f32 %v4869_v43, %v11513_v57  ;;  %v4908_v19 = vmax.f32 %v4876_v48, 0.0  ;;  %v7171_v43 = vld [vmem:[%s10679_s5] sm:$0xff]  }
0x1a08   : > { %v4919_v63 = vmax.f32 %v4902_v22, 0.0  ;;  %v4926_v30 = vpack.c.bf16 %v4918_v17, %v4916_v42  ;;  %v4923_v22 = vpack.c.bf16 %v4911_v45, %v4909_v50  ;;  %v4905_v17 = vmax.f32 %v4868_v46, 0.0 }
0x1a09   : > { %v4907_v38 = vmax.f32 %v4872_v29, 0.0  ;;  %v4906_v27 = vmax.f32 %v4870_v7, 0.0  ;;  %v7174_v29 = vld [vmem:[%s10679_s5 + $0x18] sm:$0xff]  }
0x1a0a   : > { %v4927_v40 = vpack.c.bf16 %v4919_v63, %v4917_v8  ;;  %v4910_v63 = vmax.f32 %v4880_v12, 0.0  ;;  %v7173_v12 = vld [vmem:[%s10679_s5 + $0x10] sm:$0xff]  }
0x1a0b   : > { %v4921_v0 = vpack.c.bf16 %v4907_v38, %v4905_v17 }
0x1a0c   : > { %4936 = vmatprep.subr.bf16.mxu0 %v4927_v40  ;;  %v4922_v31 = vpack.c.bf16 %v4910_v63, %v4908_v19  ;;  %v11517_v19 = vld [vmem:[#allocation44_spill] sm:$0xff] }
0x1a0d   : > { %4937 = vmatpush1.bf16.msra.mxu0 %v4926_v30  ;;  %v4904_v30 = vmax.f32 %v4866_v37, 0.0 }
0x1a0e   : > { %4938 = vmatprep.subr.bf16.mxu0 %v4925_v41 }
0x1a0f   : > { %v4920_v6 = vpack.c.bf16 %v4906_v27, %v4904_v30 }
0x1a11   : > { %4939 = vmatpush1.bf16.msra.mxu0 %v4924_v4  ;;  %v11515_v4 = vld [vmem:[#allocation46_spill] sm:$0xff] }
0x1a12   : > { %4940 = vmatprep.subr.bf16.mxu0 %v4923_v22  ;;  %v11516_v22 = vld [vmem:[#allocation45_spill] sm:$0xff] }
0x1a15   : > { %4941 = vmatpush1.bf16.msra.mxu0 %v4922_v31 }
0x1a16   : > { %4942 = vmatprep.subr.bf16.mxu0 %v4921_v0  ;;  %v11518_v0 = vld [vmem:[#allocation47_spill] sm:$0xff] }
0x1a19   : > { %4943 = vmatpush1.bf16.msra.mxu0 %v4920_v6 }
0x1a1c   : > { %6976 = vmatmul.mubr.msk.bf16.vlgmr.msra.gmra.mxu0 %vm977_vm0, %v7171_v43 }
0x1a1d   : > { %4970 = vmatprep.mubr.bf16.mxu0 %v11504_v14 }
0x1a24   : > { %6977 = vmatmul.mubr.msk.bf16.gmra.mxu0 %vm977_vm0, %v7172_v55 }
0x1a25   : > { %4980 = vmatprep.mubr.bf16.mxu0 %v11504_v14 }
0x1a2c   : > { %6978 = vmatmul.mubr.msk.bf16.gmra.mxu0 %vm977_vm0, %v7173_v12  ;;  %v11519_v12 = vld [vmem:[#allocation48_spill] sm:$0xff] }
0x1a2d   : > { %4990 = vmatprep.mubr.bf16.mxu0 %v11504_v14 }
0x1a34   : > { %6979 = vmatmul.mubr.msk.bf16.gmra.mxu0 %vm977_vm0, %v7174_v29 }
0x1a35   : > { %5154 = vmatprep.mubr.bf16.mxu0 %v11504_v14 }
0x1adc   : > { %v4962_v35 = vpop.f32.mrf.mxu0 }
0x1ade   : > { %v4964_v8 = vpop.f32.mrf.mxu0 }
0x1ae0   : > { %v4966_v61 = vpop.f32.mrf.mxu0 }
0x1ae2   : > { %v4968_v42 = vpop.f32.mrf.mxu0 }
0x1ae4   : > { %v4972_v54 = vpop.f32.mrf.mxu0 }
0x1ae6   : > { %v4974_v40 = vpop.f32.mrf.mxu0 }
0x1ae8   : > { %v4976_v20 = vpop.f32.mrf.mxu0 }
0x1aea   : > { %v4978_v45 = vpop.f32.mrf.mxu0 }
0x1aeb   : > { %v4979_v29 = vadd.f32 %v4978_v45, %v11519_v12  ;;  %v4973_v45 = vadd.f32 %v4972_v54, %v11520_v15 }
0x1aec   : > { %v4982_v41 = vpop.f32.mrf.mxu0 }
0x1aee   : > { %v4984_v48 = vpop.f32.mrf.mxu0 }
0x1aef   : > { %v4985_v30 = vadd.f32 %v4984_v48, %v11518_v0 }
0x1af0   : > { %v4986_v58 = vpop.f32.mrf.mxu0 }
0x1af1   : > { %v4987_v43 = vadd.f32 %v4986_v58, %v11515_v4  ;;  %v5010_v56 = vmax.f32 %v4985_v30, 0.0  ;;  %v5008_v58 = vmax.f32 %v4979_v29, 0.0 }
0x1af2   : > { %v4988_v46 = vpop.f32.mrf.mxu0 }
0x1af3   : > { %v4989_v38 = vadd.f32 %v4988_v46, %v11515_v4  ;;  %v4983_v46 = vadd.f32 %v4982_v41, %v11518_v0  ;;  %v5011_v48 = vmax.f32 %v4987_v43, 0.0 }
0x1af4   : > { %v4992_v50 = vpop.f32.mrf.mxu0 }
0x1af5   : > { %v4993_v27 = vadd.f32 %v4992_v50, %v11516_v22  ;;  %v5012_v5 = vmax.f32 %v4989_v38, 0.0  ;;  %v5009_v38 = vmax.f32 %v4983_v46, 0.0 }
0x1af6   : > { %v4994_v7 = vpop.f32.mrf.mxu0 }
0x1af7   : > { %v4995_v37 = vadd.f32 %v4994_v7, %v11516_v22  ;;  %v5013_v7 = vmax.f32 %v4993_v27, 0.0  ;;  %v4977_v22 = vadd.f32 %v4976_v20, %v11519_v12  ;;  %v11528_v12 = vld [vmem:[#allocation57_spill] sm:$0xff] }
0x1af8   : > { %v4996_v63 = vpop.f32.mrf.mxu0 }
0x1af9   : > { %v4997_v17 = vadd.f32 %v4996_v63, %v11517_v19  ;;  %v5014_v57 = vmax.f32 %v4995_v37, 0.0  ;;  %v4975_v63 = vadd.f32 %v4974_v40, %v11520_v15  ;;  %v11522_v37 = vld [vmem:[#allocation51_spill] sm:$0xff] }
0x1afa   : > { %v4998_v31 = vpop.f32.mrf.mxu0  ;;  %v4965_v41 = vadd.f32 %v4964_v8, %v11522_v37 }
0x1afb   : > { %v4999_v6 = vadd.f32 %v4998_v31, %v11517_v19  ;;  %v5015_v55 = vmax.f32 %v4997_v17, 0.0  ;;  %v11521_v31 = vld [vmem:[#allocation50_spill] sm:$0xff]  ;;  %v5022_v17 = vpack.c.bf16 %v5012_v5, %v5010_v56  ;;  %v5006_v27 = vmax.f32 %v4975_v63, 0.0 }
0x1afc   : > { %v4969_v19 = vadd.f32 %v4968_v42, %v11521_v31  ;;  %v4967_v40 = vadd.f32 %v4966_v61, %v11521_v31  ;;  %v5005_v42 = vmax.f32 %v4973_v45, 0.0  ;;  %v5002_v56 = vmax.f32 %v4965_v41, 0.0  ;;  %v7175_v61 = vld [vmem:[%s10681_s7] sm:$0xff]  }
0x1afd   : > { %v5016_v2 = vmax.f32 %v4999_v6, 0.0  ;;  %v5023_v34 = vpack.c.bf16 %v5015_v55, %v5013_v7  ;;  %v5020_v30 = vpack.c.bf16 %v5008_v58, %v5006_v27  ;;  %v4963_v6 = vadd.f32 %v4962_v35, %v11522_v37  ;;  %v7176_v35 = vld [vmem:[%s10681_s7 + $0x8] sm:$0xff]  }
0x1afe   : > { %v5004_v20 = vmax.f32 %v4969_v19, 0.0  ;;  %v5003_v5 = vmax.f32 %v4967_v40, 0.0  ;;  %v7178_v19 = vld [vmem:[%s10681_s7 + $0x18] sm:$0xff]  }
0x1aff   : > { %v5024_v50 = vpack.c.bf16 %v5016_v2, %v5014_v57  ;;  %v5007_v2 = vmax.f32 %v4977_v22, 0.0  ;;  %v5021_v57 = vpack.c.bf16 %v5011_v48, %v5009_v38  ;;  %v7177_v22 = vld [vmem:[%s10681_s7 + $0x10] sm:$0xff]  }
0x1b00   : > { %v5018_v43 = vpack.c.bf16 %v5004_v20, %v5002_v56 }
0x1b01   : > { %5033 = vmatprep.subr.bf16.mxu1 %v5024_v50  ;;  %v5019_v54 = vpack.c.bf16 %v5007_v2, %v5005_v42  ;;  %v11525_v42 = vld [vmem:[#allocation52_spill] sm:$0xff] }
0x1b02   : > { %5034 = vmatpush1.bf16.msra.mxu1 %v5023_v34  ;;  %v5001_v34 = vmax.f32 %v4963_v6, 0.0 }
0x1b03   : > { %5035 = vmatprep.subr.bf16.mxu1 %v5022_v17 }
0x1b04   : > { %v5017_v8 = vpack.c.bf16 %v5003_v5, %v5001_v34 }
0x1b06   : > { %5036 = vmatpush1.bf16.msra.mxu1 %v5021_v57  ;;  %v11523_v57 = vld [vmem:[#allocation54_spill] sm:$0xff] }
0x1b07   : > { %5037 = vmatprep.subr.bf16.mxu1 %v5020_v30  ;;  %v11524_v30 = vld [vmem:[#allocation53_spill] sm:$0xff] }
0x1b0a   : > { %5038 = vmatpush1.bf16.msra.mxu1 %v5019_v54 }
0x1b0b   : > { %5039 = vmatprep.subr.bf16.mxu1 %v5018_v43  ;;  %v11526_v43 = vld [vmem:[#allocation55_spill] sm:$0xff] }
0x1b0e   : > { %5040 = vmatpush1.bf16.msra.mxu1 %v5017_v8 }
0x1b11   : > { %6980 = vmatmul.mubr.msk.bf16.vlgmr.msra.gmra.mxu1 %vm977_vm0, %v7175_v61 }
0x1b12   : > { %5067 = vmatprep.mubr.bf16.mxu1 %v11504_v14 }
0x1b19   : > { %6981 = vmatmul.mubr.msk.bf16.gmra.mxu1 %vm977_vm0, %v7176_v35 }
0x1b1a   : > { %5077 = vmatprep.mubr.bf16.mxu1 %v11504_v14 }
0x1b21   : > { %6982 = vmatmul.mubr.msk.bf16.gmra.mxu1 %vm977_vm0, %v7177_v22  ;;  %v11527_v22 = vld [vmem:[#allocation56_spill] sm:$0xff] }
0x1b22   : > { %5087 = vmatprep.mubr.bf16.mxu1 %v11504_v14 }
0x1b29   : > { %6983 = vmatmul.mubr.msk.bf16.gmra.mxu1 %vm977_vm0, %v7178_v19 }
0x1b2a   : > { %5251 = vmatprep.mubr.bf16.mxu1 %v11504_v14 }
0x1bd1   : > { %v5059_v55 = vpop.f32.mrf.mxu1 }
0x1bd3   : > { %v5061_v29 = vpop.f32.mrf.mxu1 }
0x1bd5   : > { %v5063_v46 = vpop.f32.mrf.mxu1 }
0x1bd7   : > { %v5065_v7 = vpop.f32.mrf.mxu1 }
0x1bd9   : > { %v5069_v63 = vpop.f32.mrf.mxu1 }
0x1bdb   : > { %v5071_v50 = vpop.f32.mrf.mxu1 }
0x1bdd   : > { %v5073_v48 = vpop.f32.mrf.mxu1 }
0x1bdf   : > { %v5075_v58 = vpop.f32.mrf.mxu1 }
0x1be0   : > { %v5076_v19 = vadd.f32 %v5075_v58, %v11527_v22  ;;  %v5070_v58 = vadd.f32 %v5069_v63, %v11528_v12 }
0x1be1   : > { %v5079_v17 = vpop.f32.mrf.mxu1 }
0x1be3   : > { %v5081_v45 = vpop.f32.mrf.mxu1 }
0x1be4   : > { %v5082_v34 = vadd.f32 %v5081_v45, %v11526_v43 }
0x1be5   : > { %v5083_v38 = vpop.f32.mrf.mxu1 }
0x1be6   : > { %v5084_v61 = vadd.f32 %v5083_v38, %v11523_v57  ;;  %v5107_v0 = vmax.f32 %v5082_v34, 0.0  ;;  %v5105_v38 = vmax.f32 %v5076_v19, 0.0 }
0x1be7   : > { %v5085_v41 = vpop.f32.mrf.mxu1 }
0x1be8   : > { %v5086_v20 = vadd.f32 %v5085_v41, %v11523_v57  ;;  %v5080_v41 = vadd.f32 %v5079_v17, %v11526_v43  ;;  %v5108_v45 = vmax.f32 %v5084_v61, 0.0 }
0x1be9   : > { %v5089_v27 = vpop.f32.mrf.mxu1 }
0x1bea   : > { %v5090_v5 = vadd.f32 %v5089_v27, %v11524_v30  ;;  %v5109_v37 = vmax.f32 %v5086_v20, 0.0  ;;  %v5106_v20 = vmax.f32 %v5080_v41, 0.0 }
0x1beb   : > { %v5091_v40 = vpop.f32.mrf.mxu1 }
0x1bec   : > { %v5092_v6 = vadd.f32 %v5091_v40, %v11524_v30  ;;  %v5110_v40 = vmax.f32 %v5090_v5, 0.0  ;;  %v5074_v30 = vadd.f32 %v5073_v48, %v11527_v22  ;;  %v11536_v22 = vld [vmem:[#allocation65_spill] sm:$0xff] }
0x1bed   : > { %v5093_v2 = vpop.f32.mrf.mxu1 }
0x1bee   : > { %v5094_v56 = vadd.f32 %v5093_v2, %v11525_v42  ;;  %v5111_v31 = vmax.f32 %v5092_v6, 0.0  ;;  %v5072_v2 = vadd.f32 %v5071_v50, %v11528_v12  ;;  %v11530_v6 = vld [vmem:[#allocation59_spill] sm:$0xff] }
0x1bef   : > { %v5095_v54 = vpop.f32.mrf.mxu1  ;;  %v5062_v17 = vadd.f32 %v5061_v29, %v11530_v6 }
0x1bf0   : > { %v5096_v8 = vadd.f32 %v5095_v54, %v11525_v42  ;;  %v5112_v35 = vmax.f32 %v5094_v56, 0.0  ;;  %v11529_v54 = vld [vmem:[#allocation58_spill] sm:$0xff]  ;;  %v5119_v56 = vpack.c.bf16 %v5109_v37, %v5107_v0  ;;  %v5103_v5 = vmax.f32 %v5072_v2, 0.0 }
0x1bf1   : > { %v5066_v42 = vadd.f32 %v5065_v7, %v11529_v54  ;;  %v5064_v50 = vadd.f32 %v5063_v46, %v11529_v54  ;;  %v5102_v7 = vmax.f32 %v5070_v58, 0.0  ;;  %v5099_v0 = vmax.f32 %v5062_v17, 0.0  ;;  %v7179_v46 = vld [vmem:[%s10683_s9] sm:$0xff]  }
0x1bf2   : > { %v5113_v15 = vmax.f32 %v5096_v8, 0.0  ;;  %v5120_v4 = vpack.c.bf16 %v5112_v35, %v5110_v40  ;;  %v5117_v34 = vpack.c.bf16 %v5105_v38, %v5103_v5  ;;  %v5060_v8 = vadd.f32 %v5059_v55, %v11530_v6  ;;  %v7180_v55 = vld [vmem:[%s10683_s9 + $0x8] sm:$0xff]  }
0x1bf3   : > { %v5101_v48 = vmax.f32 %v5066_v42, 0.0  ;;  %v5100_v37 = vmax.f32 %v5064_v50, 0.0  ;;  %v7182_v42 = vld [vmem:[%s10683_s9 + $0x18] sm:$0xff]  }
0x1bf4   : > { %v5121_v27 = vpack.c.bf16 %v5113_v15, %v5111_v31  ;;  %v5104_v15 = vmax.f32 %v5074_v30, 0.0  ;;  %v5118_v31 = vpack.c.bf16 %v5108_v45, %v5106_v20  ;;  %v7181_v30 = vld [vmem:[%s10683_s9 + $0x10] sm:$0xff]  }
0x1bf5   : > { %v5115_v61 = vpack.c.bf16 %v5101_v48, %v5099_v0 }
0x1bf6   : > { %5130 = vmatprep.subr.bf16.mxu0 %v5121_v27  ;;  %v5116_v63 = vpack.c.bf16 %v5104_v15, %v5102_v7  ;;  %v11533_v7 = vld [vmem:[#allocation60_spill] sm:$0xff] }
0x1bf7   : > { %5131 = vmatpush1.bf16.msra.mxu0 %v5120_v4  ;;  %v5098_v4 = vmax.f32 %v5060_v8, 0.0 }
0x1bf8   : > { %5132 = vmatprep.subr.bf16.mxu0 %v5119_v56 }
0x1bf9   : > { %v5114_v29 = vpack.c.bf16 %v5100_v37, %v5098_v4 }
0x1bfb   : > { %5133 = vmatpush1.bf16.msra.mxu0 %v5118_v31  ;;  %v11531_v31 = vld [vmem:[#allocation62_spill] sm:$0xff] }
0x1bfc   : > { %5134 = vmatprep.subr.bf16.mxu0 %v5117_v34  ;;  %v11532_v34 = vld [vmem:[#allocation61_spill] sm:$0xff] }
0x1bff   : > { %5135 = vmatpush1.bf16.msra.mxu0 %v5116_v63 }
0x1c00   : > { %5136 = vmatprep.subr.bf16.mxu0 %v5115_v61  ;;  %v11534_v61 = vld [vmem:[#allocation63_spill] sm:$0xff] }
0x1c03   : > { %5137 = vmatpush1.bf16.msra.mxu0 %v5114_v29 }
0x1c06   : > { %6984 = vmatmul.mubr.msk.bf16.vlgmr.msra.gmra.mxu0 %vm977_vm0, %v7179_v46 }
0x1c07   : > { %5164 = vmatprep.mubr.bf16.mxu0 %v11504_v14 }
0x1c0e   : > { %6985 = vmatmul.mubr.msk.bf16.gmra.mxu0 %vm977_vm0, %v7180_v55 }
0x1c0f   : > { %5174 = vmatprep.mubr.bf16.mxu0 %v11504_v14 }
0x1c16   : > { %6986 = vmatmul.mubr.msk.bf16.gmra.mxu0 %vm977_vm0, %v7181_v30  ;;  %v11535_v30 = vld [vmem:[#allocation64_spill] sm:$0xff] }
0x1c17   : > { %5184 = vmatprep.mubr.bf16.mxu0 %v11504_v14 }
0x1c1e   : > { %6987 = vmatmul.mubr.msk.bf16.gmra.mxu0 %vm977_vm0, %v7182_v42 }
0x1c1f   : > { %5348 = vmatprep.mubr.bf16.mxu0 %v11504_v14 }
0x1cc6   : > { %v5156_v35 = vpop.f32.mrf.mxu0 }
0x1cc8   : > { %v5158_v19 = vpop.f32.mrf.mxu0 }
0x1cca   : > { %v5160_v41 = vpop.f32.mrf.mxu0 }
0x1ccc   : > { %v5162_v40 = vpop.f32.mrf.mxu0 }
0x1cce   : > { %v5166_v2 = vpop.f32.mrf.mxu0 }
0x1cd0   : > { %v5168_v27 = vpop.f32.mrf.mxu0 }
0x1cd2   : > { %v5170_v45 = vpop.f32.mrf.mxu0 }
0x1cd4   : > { %v5172_v38 = vpop.f32.mrf.mxu0 }
0x1cd5   : > { %v5173_v42 = vadd.f32 %v5172_v38, %v11535_v30  ;;  %v5167_v38 = vadd.f32 %v5166_v2, %v11536_v22 }
0x1cd6   : > { %v5176_v56 = vpop.f32.mrf.mxu0 }
0x1cd8   : > { %v5178_v58 = vpop.f32.mrf.mxu0 }
0x1cd9   : > { %v5179_v4 = vadd.f32 %v5178_v58, %v11534_v61 }
0x1cda   : > { %v5180_v20 = vpop.f32.mrf.mxu0 }
0x1cdb   : > { %v5181_v46 = vadd.f32 %v5180_v20, %v11531_v31  ;;  %v5204_v43 = vmax.f32 %v5179_v4, 0.0  ;;  %v5202_v20 = vmax.f32 %v5173_v42, 0.0  ;;  %v5364_v42 = vld [vmem:[%s7511_s28 + $0x30] sm:$0x77] }
0x1cdc   : > { %v5182_v17 = vpop.f32.mrf.mxu0 }
0x1cdd   : > { %v5183_v48 = vadd.f32 %v5182_v17, %v11531_v31  ;;  %v5177_v17 = vadd.f32 %v5176_v56, %v11534_v61  ;;  %v5205_v58 = vmax.f32 %v5181_v46, 0.0 }
0x1cde   : > { %v5186_v5 = vpop.f32.mrf.mxu0 }
0x1cdf   : > { %v5187_v37 = vadd.f32 %v5186_v5, %v11532_v34  ;;  %v5206_v6 = vmax.f32 %v5183_v48, 0.0  ;;  %v5203_v48 = vmax.f32 %v5177_v17, 0.0 }
0x1ce0   : > { %v5188_v50 = vpop.f32.mrf.mxu0 }
0x1ce1   : > { %v5189_v8 = vadd.f32 %v5188_v50, %v11532_v34  ;;  %v5207_v50 = vmax.f32 %v5187_v37, 0.0  ;;  %v5171_v34 = vadd.f32 %v5170_v45, %v11535_v30 }
0x1ce2   : > { %v5190_v15 = vpop.f32.mrf.mxu0 }
0x1ce3   : > { %v5191_v0 = vadd.f32 %v5190_v15, %v11533_v7  ;;  %v5208_v54 = vmax.f32 %v5189_v8, 0.0  ;;  %v5169_v15 = vadd.f32 %v5168_v27, %v11536_v22  ;;  %v11538_v8 = vld [vmem:[#allocation67_spill] sm:$0xff] }
0x1ce4   : > { %v5192_v63 = vpop.f32.mrf.mxu0  ;;  %v5159_v56 = vadd.f32 %v5158_v19, %v11538_v8 }
0x1ce5   : > { %v5193_v29 = vadd.f32 %v5192_v63, %v11533_v7  ;;  %v5209_v55 = vmax.f32 %v5191_v0, 0.0  ;;  %v11537_v63 = vld [vmem:[#allocation66_spill] sm:$0xff]  ;;  %v5216_v0 = vpack.c.bf16 %v5206_v6, %v5204_v43  ;;  %v5200_v37 = vmax.f32 %v5169_v15, 0.0  ;;  %v11539_v15 = vld [vmem:[#allocation11_spill] sm:$0xff] }
0x1ce6   : > { %v5163_v7 = vadd.f32 %v5162_v40, %v11537_v63  ;;  %v5161_v27 = vadd.f32 %v5160_v41, %v11537_v63  ;;  %v5199_v40 = vmax.f32 %v5167_v38, 0.0  ;;  %v5196_v43 = vmax.f32 %v5159_v56, 0.0  ;;  %v7183_v41 = vld [vmem:[%s10685_s11] sm:$0xff]  }
0x1ce7   : > { %v5210_v12 = vmax.f32 %v5193_v29, 0.0  ;;  %v5217_v57 = vpack.c.bf16 %v5209_v55, %v5207_v50  ;;  %v5214_v4 = vpack.c.bf16 %v5202_v20, %v5200_v37  ;;  %v5157_v29 = vadd.f32 %v5156_v35, %v11538_v8  ;;  %v7184_v35 = vld [vmem:[%s10685_s11 + $0x8] sm:$0xff]   ;;  %v11542_v37 = vld [vmem:[#allocation12_spill] sm:$0xff] }
0x1ce8   : > { %v5198_v45 = vmax.f32 %v5163_v7, 0.0  ;;  %v5197_v6 = vmax.f32 %v5161_v27, 0.0  ;;  %v7186_v7 = vld [vmem:[%s10685_s11 + $0x18] sm:$0xff]   ;;  %v11549_v8 = vld [vmem:[#allocation3_spill] sm:$0xff] }
0x1ce9   : > { %v5218_v5 = vpack.c.bf16 %v5210_v12, %v5208_v54  ;;  %v5201_v12 = vmax.f32 %v5171_v34, 0.0  ;;  %v5215_v54 = vpack.c.bf16 %v5205_v58, %v5203_v48  ;;  %v7185_v34 = vld [vmem:[%s10685_s11 + $0x10] sm:$0xff]   ;;  %v11540_v58 = vld [vmem:[#allocation13_spill] sm:$0xff]  ;;  %v11541_v48 = vld [vmem:[#allocation10_spill] sm:$0xff] }
0x1cea   : > { %v5212_v46 = vpack.c.bf16 %v5198_v45, %v5196_v43  ;;  %v5407_v20 = vrot.slane %v5364_v42, %v11540_v58  ;;  %v5369_v45 = vrot.slane %v5364_v42, %v11541_v48 }
0x1ceb   : > { %5227 = vmatprep.subr.bf16.mxu1 %v5218_v5  ;;  %v5213_v2 = vpack.c.bf16 %v5201_v12, %v5199_v40  ;;  %v5373_v5 = vrot.slane %v5364_v42, %v11539_v15  ;;  %v11543_v12 = vld [vmem:[#allocation16_spill] sm:$0xff]  ;;  %v11544_v40 = vld [vmem:[#allocation18_spill] sm:$0xff] }
0x1cec   : > { %5228 = vmatpush1.bf16.msra.mxu1 %v5217_v57  ;;  %v5195_v57 = vmax.f32 %v5157_v29, 0.0  ;;  %v9909_v27 = vrot.slane %v5407_v20, %v11542_v37 }
0x1ced   : > { %5229 = vmatprep.subr.bf16.mxu1 %v5216_v0  ;;  %v9906_v56 = vrot.slane %v5373_v5, %v11541_v48  ;;  %v9930_v5 = vrot.slane %v5369_v45, %v11541_v48 }
0x1cee   : > { %v5211_v19 = vpack.c.bf16 %v5197_v6, %v5195_v57  ;;  %v11545_v6 = vld [vmem:[#allocation20_spill] sm:$0xff]  ;;  %v11546_v57 = vld [vmem:[#allocation2_spill] sm:$0xff] }
0x1cef   : > { %v5397_v43 = vmul.f32 %v9906_v56, %v11544_v40  ;;  %v5396_v30 = vmul.f32 %v9930_v5, %v11544_v40  ;;  %v5393_v61 = vmul.f32 %v9906_v56, %v11487_v25 }
0x1cf0   : > { %5230 = vmatpush1.bf16.msra.mxu1 %v5215_v54  ;;  %v5457_v54 = vrot.slane %v5364_v42, %v11543_v12 }
0x1cf1   : > { %5231 = vmatprep.subr.bf16.mxu1 %v5214_v4  ;;  %v5403_v4 = vrot.slane %v5364_v42, %v11542_v37 }
0x1cf3   : > { %v9933_v20 = vrot.slane %v5403_v4, %v11542_v37  ;;  %v5398_v4 = vmul.f32 %v9930_v5, %v11545_v6 }
0x1cf4   : > { %5232 = vmatpush1.bf16.msra.mxu1 %v5213_v2  ;;  %v5399_v2 = vmul.f32 %v9906_v56, %v11545_v6 }
0x1cf5   : > { %5233 = vmatprep.subr.bf16.mxu1 %v5212_v46 }
0x1cf8   : > { %5234 = vmatpush1.bf16.msra.mxu1 %v5211_v19  ;;  %v5431_v19 = vmul.f32 %v9909_v27, %v11546_v57 }
0x1cfa   : > { %v5447_v58 = vadd.f32 %v5431_v19, %v5397_v43  ;;  %v5430_v43 = vmul.f32 %v9933_v20, %v11546_v57  ;;  %v11550_v57 = vld [vmem:[#allocation24_spill] sm:$0xff] }
0x1cfb   : > { %6988 = vmatmul.mubr.msk.bf16.vlgmr.msra.gmra.mxu1 %vm977_vm0, %v7183_v41  ;;  %v11547_v41 = vld [vmem:[#allocation4_spill] sm:$0xff] }
0x1cfc   : > { %5261 = vmatprep.mubr.bf16.mxu1 %v11504_v14  ;;  %v5432_v40 = vmul.f32 %v9933_v20, %v11547_v41  ;;  %v5446_v48 = vadd.f32 %v5430_v43, %v5396_v30  ;;  %v11553_v43 = vld [vmem:[#allocation5_spill] sm:$0xff] }
0x1d03   : > { %6989 = vmatmul.mubr.msk.bf16.gmra.mxu1 %vm977_vm0, %v7184_v35  ;;  %v5433_v35 = vmul.f32 %v9909_v27, %v11547_v41 }
0x1d04   : > { %5271 = vmatprep.mubr.bf16.mxu1 %v11504_v14 }
0x1d05   : > { %v5449_v15 = vadd.f32 %v5433_v35, %v5399_v2 }
0x1d0b   : > { %6990 = vmatmul.mubr.msk.bf16.gmra.mxu1 %vm977_vm0, %v7185_v34  ;;  %v11548_v34 = vld [vmem:[#allocation15_spill] sm:$0xff] }
0x1d0c   : > { %5281 = vmatprep.mubr.bf16.mxu1 %v11504_v14  ;;  %v5453_v22 = vrot.slane %v5364_v42, %v11548_v34  ;;  %v5427_v42 = vmul.f32 %v9909_v27, %v11484_v24 }
0x1d0e   : > { %v9951_v37 = vrot.slane %v5453_v22, %v11548_v34  ;;  %v11551_v22 = vld [vmem:[#allocation22_spill] sm:$0xff]  ;;  %v5443_v30 = vadd.f32 %v5427_v42, %v5393_v61  ;;  %v5426_v42 = vmul.f32 %v9933_v20, %v11484_v24 }
0x1d13   : > { %6991 = vmatmul.mubr.msk.bf16.gmra.mxu1 %vm977_vm0, %v7186_v7  ;;  %v9927_v7 = vrot.slane %v5457_v54, %v11548_v34  ;;  %v11552_v34 = vld [vmem:[#allocation19_spill] sm:$0xff] }
0x1d14   : > { %5669 = vmatprep.mubr.bf16.mxu1 %v11504_v14  ;;  %v5429_v41 = vmul.f32 %v9909_v27, %v11552_v34 }
0x1d15   : > { %v5481_v63 = vmul.f32 %v9927_v7, %v11549_v8  ;;  %v5483_v45 = vmul.f32 %v9927_v7, %v11483_v59  ;;  %v5477_v60 = vmul.f32 %v9927_v7, %v11553_v43 }
0x1d17   : > { %v5497_v19 = vadd.f32 %v5481_v63, %v5447_v58  ;;  %v5499_v35 = vadd.f32 %v5483_v45, %v5449_v15  ;;  %v5480_v63 = vmul.f32 %v9951_v37, %v11549_v8  ;;  %v5395_v15 = vmul.f32 %v9906_v56, %v11551_v22 }
0x1d18   : > { %v5448_v58 = vadd.f32 %v5432_v40, %v5398_v4  ;;  %v5479_v4 = vmul.f32 %v9927_v7, %v11294_v52  ;;  %v5493_v61 = vadd.f32 %v5477_v60, %v5443_v30  ;;  %v5428_v60 = vmul.f32 %v9933_v20, %v11552_v34 }
0x1d19   : > { %v5513_v31 = vadd.f32 %v5497_v19, %v11485_v51  ;;  %v5515_v14 = vadd.f32 %v5499_v35, %v11550_v57  ;;  %v5482_v19 = vmul.f32 %v9951_v37, %v11483_v59  ;;  %v5496_v9 = vadd.f32 %v5480_v63, %v5446_v48 }
0x1d1a   : > { %v5445_v8 = vadd.f32 %v5429_v41, %v5395_v15  ;;  %v9988_v63 = vadd.f32 %v5493_v61, %v11228_v13 }
0x1d1b   : > { %v5529_v35 = vmax.f32 %v5513_v31, 0.0  ;;  %v5531_v11 = vmax.f32 %v5515_v14, 0.0  ;;  %v5498_v53 = vadd.f32 %v5482_v19, %v5448_v58  ;;  %v9972_v40 = vadd.f32 %v5496_v9, %v11485_v51 }
0x1d1c   : > { %v5392_v14 = vmul.f32 %v9930_v5, %v11487_v25  ;;  %v5394_v31 = vmul.f32 %v9930_v5, %v11551_v22  ;;  %v5495_v9 = vadd.f32 %v5479_v4, %v5445_v8  ;;  %v5476_v19 = vmul.f32 %v9951_v37, %v11553_v43 }
0x1d1d   : > { %v9979_v49 = vadd.f32 %v5498_v53, %v11550_v57  ;;  %v9985_v41 = vpack.c.bf16 %v5531_v11, %v5529_v35  ;;  %v11554_v53 = vld [vmem:[#allocation69_spill] sm:$0xff] }
0x1d1e   : > { %v10000_v35 = vadd.f32 %v5495_v9, %v11225_v62  ;;  %v5442_v4 = vadd.f32 %v5426_v42, %v5392_v14 }
0x1dbb   : > { %v9892_v55 = vpop.f32.mrf.mxu1 }
0x1dbd   : > { %v9895_v17 = vpop.f32.mrf.mxu1 }
0x1dbf   : > { %v9897_v50 = vpop.f32.mrf.mxu1 }
0x1dc1   : > { %v9901_v0 = vpop.f32.mrf.mxu1 }
0x1dc3   : > { %v9903_v38 = vpop.f32.mrf.mxu1 }
0x1dc5   : > { %v9914_v29 = vpop.f32.mrf.mxu1 }
0x1dc7   : > { %v9920_v46 = vpop.f32.mrf.mxu1 }
0x1dc9   : > { %v9935_v12 = vpop.f32.mrf.mxu1 }
0x1dca   : > { %v5270_v9 = vadd.f32 %v9935_v12, %v8098_v3  ;;  %v5268_v12 = vadd.f32 %v9920_v46, %v8098_v3 }
0x1dcb   : > { %v9942_v54 = vpop.f32.mrf.mxu1 }
0x1dcd   : > { %v5275_v2 = vpop.f32.mrf.mxu1 }
0x1dce   : > { %v5276_v61 = vadd.f32 %v5275_v2, %v11491_v47  ;;  %v5274_v2 = vadd.f32 %v9942_v54, %v11491_v47  ;;  %v5423_v54 = vmul.f32 %v9909_v27, %v11431_v33 }
0x1dcf   : > { %v5277_v6 = vpop.f32.mrf.mxu1 }
0x1dd0   : > { %v5278_v43 = vadd.f32 %v5277_v6, %v8054_v1  ;;  %v5266_v6 = vadd.f32 %v9914_v29, %v8106_v26  ;;  %v5425_v29 = vmul.f32 %v9909_v27, %v7631_v28 }
0x1dd1   : > { %v5279_v45 = vpop.f32.mrf.mxu1 }
0x1dd2   : > { %v5280_v15 = vadd.f32 %v5279_v45, %v8054_v1 }
0x1dd3   : > { %v5283_v39 = vpop.f32.mrf.mxu1 }
0x1dd4   : > { %v5284_v22 = vadd.f32 %v5283_v39, %v11554_v53  ;;  %v5525_v39 = vmax.f32 %v9988_v63, 0.0  ;;  %v5303_v8 = vmax.f32 %v5280_v15, 0.0  ;;  %v5302_v15 = vmax.f32 %v5278_v43, 0.0 }
0x1dd5   : > { %v5285_v36 = vpop.f32.mrf.mxu1  ;;  %v5256_v43 = vadd.f32 %v9895_v17, %v8127_v44  ;;  %v5424_v17 = vmul.f32 %v9933_v20, %v7631_v28 }
0x1dd6   : > { %v5286_v58 = vadd.f32 %v5285_v36, %v11554_v53  ;;  %v5444_v53 = vadd.f32 %v5428_v60, %v5394_v31  ;;  %v5492_v60 = vadd.f32 %v5476_v19, %v5442_v4  ;;  %v5264_v19 = vadd.f32 %v9903_v38, %v8106_v26 }
0x1dd7   : > { %v5287_v48 = vpop.f32.mrf.mxu1  ;;  %v5300_v4 = vmax.f32 %v5274_v2, 0.0  ;;  %v5258_v38 = vadd.f32 %v9897_v50, %v8119_v18  ;;  %v5422_v50 = vmul.f32 %v9933_v20, %v11431_v33 }
0x1dd8   : > { %v5288_v30 = vadd.f32 %v5287_v48, %v11430_v16  ;;  %v5478_v48 = vmul.f32 %v9951_v37, %v11294_v52  ;;  %v5305_v42 = vmax.f32 %v5286_v58, 0.0 }
0x1dd9   : > { %v5289_v11 = vpop.f32.mrf.mxu1 }
0x1dda   : > { %v5290_v45 = vadd.f32 %v5289_v11, %v11430_v16  ;;  %v5306_v34 = vmax.f32 %v5288_v30, 0.0  ;;  %v5304_v11 = vmax.f32 %v5284_v22, 0.0  ;;  %v5389_v16 = vmul.f32 %v9906_v56, %v7618_v10 }
0x1ddb   : > { %v5301_v30 = vmax.f32 %v5276_v61, 0.0  ;;  %v5260_v22 = vadd.f32 %v9901_v0, %v8119_v18  ;;  %v5494_v46 = vadd.f32 %v5478_v48, %v5444_v53  ;;  %v5297_v61 = vmax.f32 %v5266_v6, 0.0 }
0x1ddc   : > { %v5307_v14 = vmax.f32 %v5290_v45, 0.0  ;;  %v5314_v58 = vpack.c.bf16 %v5306_v34, %v5304_v11  ;;  %v5299_v45 = vmax.f32 %v5270_v9, 0.0  ;;  %v5391_v34 = vmul.f32 %v9906_v56, %v7623_v23 }
0x1ddd   : > { %v5313_v36 = vpack.c.bf16 %v5303_v8, %v5301_v30  ;;  %v10033_v0 = vadd.f32 %v5492_v60, %v11228_v13  ;;  %v5473_v8 = vmul.f32 %v9927_v7, %v7637_v32  ;;  %v5298_v9 = vmax.f32 %v5268_v12, 0.0 }
0x1dde   : > { %v5315_v31 = vpack.c.bf16 %v5307_v14, %v5305_v42  ;;  %v5312_v42 = vpack.c.bf16 %v5302_v15, %v5300_v4  ;;  %v5439_v53 = vadd.f32 %v5423_v54, %v5389_v16  ;;  %v5295_v48 = vmax.f32 %v5260_v22, 0.0 }
0x1ddf   : > { %v5311_v14 = vpack.c.bf16 %v5299_v45, %v5297_v61  ;;  %v5441_v2 = vadd.f32 %v5425_v29, %v5391_v34  ;;  %v5296_v11 = vmax.f32 %v5264_v19, 0.0  ;;  %v5388_v6 = vmul.f32 %v9930_v5, %v7618_v10  ;;  %v11555_v45 = vld [vmem:[#allocation27_spill] sm:$0xff]  ;;  %v11556_v19 = vld [vmem:[#allocation28_spill] sm:$0xff] }
0x1de0   : > { %5324 = vmatprep.subr.bf16.mxu0 %v5315_v31  ;;  %v5293_v30 = vmax.f32 %v5256_v43, 0.0  ;;  %v5510_v16 = vadd.f32 %v5494_v46, %v11225_v62  ;;  %v5475_v31 = vmul.f32 %v9927_v7, %v11432_v21  ;;  %v5390_v60 = vmul.f32 %v9930_v5, %v7623_v23 }
0x1de1   : > { %5325 = vmatpush1.bf16.msra.mxu0 %v5314_v58  ;;  %v5294_v12 = vmax.f32 %v5258_v38, 0.0  ;;  %v5489_v15 = vadd.f32 %v5473_v8, %v5439_v53  ;;  %v5472_v58 = vmul.f32 %v9951_v37, %v7637_v32  ;;  %v5387_v29 = vmul.f32 %v9906_v56, %v11555_v45  ;;  %v11557_v8 = vld [vmem:[#allocation29_spill] sm:$0xff]  ;;  %v11559_v53 = vld [vmem:[#allocation30_spill] sm:$0xff] }
0x1de2   : > { %5326 = vmatprep.subr.bf16.mxu0 %v5313_v36  ;;  %v5254_v36 = vadd.f32 %v9892_v55, %v8127_v44  ;;  %v5310_v55 = vpack.c.bf16 %v5298_v9, %v5296_v11  ;;  %v5309_v54 = vpack.c.bf16 %v5295_v48, %v5293_v30  ;;  %v5440_v22 = vadd.f32 %v5424_v17, %v5390_v60  ;;  %v11558_v9 = vld [vmem:[#allocation14_spill] sm:$0xff]  ;;  %v11561_v11 = vld [vmem:[#allocation33_spill] sm:$0xff] }
0x1de3   : > { %v5419_v4 = vmul.f32 %v9909_v27, %v11556_v19  ;;  %v5491_v34 = vadd.f32 %v5475_v31, %v5441_v2  ;;  %v5438_v43 = vadd.f32 %v5422_v50, %v5388_v6  ;;  %v5474_v61 = vmul.f32 %v9951_v37, %v11432_v21 }
0x1de4   : > { %v5292_v46 = vmax.f32 %v5254_v36, 0.0  ;;  %v5385_v38 = vmul.f32 %v9906_v56, %v11557_v8  ;;  %v5469_v48 = vmul.f32 %v9927_v7, %v11559_v53  ;;  %v5386_v6 = vmul.f32 %v9930_v5, %v11555_v45 }
0x1de5   : > { %5327 = vmatpush1.bf16.msra.mxu0 %v5312_v42  ;;  %v5421_v42 = vmul.f32 %v9909_v27, %v11558_v9  ;;  %v5507_v2 = vadd.f32 %v5491_v34, %v11561_v11  ;;  %v5418_v50 = vmul.f32 %v9933_v20, %v11556_v19  ;;  %v5488_v30 = vadd.f32 %v5472_v58, %v5438_v43 }
0x1de6   : > { %5328 = vmatprep.subr.bf16.mxu0 %v5311_v14  ;;  %v11560_v14 = vld [vmem:[#allocation31_spill] sm:$0xff]  ;;  %v5308_v36 = vpack.c.bf16 %v5294_v12, %v5292_v46  ;;  %v5490_v56 = vadd.f32 %v5474_v61, %v5440_v22  ;;  %v5435_v31 = vadd.f32 %v5419_v4, %v5385_v38  ;;  %v5384_v27 = vmul.f32 %v9930_v5, %v11557_v8 }
0x1de7   : > { %v5471_v17 = vmul.f32 %v9927_v7, %v11560_v14  ;;  %v5437_v60 = vadd.f32 %v5421_v42, %v5387_v29  ;;  %v5420_v7 = vmul.f32 %v9933_v20, %v11558_v9  ;;  %v5468_v12 = vmul.f32 %v9951_v37, %v11559_v53  ;;  %v11564_v29 = vld [vmem:[#allocation32_spill] sm:$0xff] }
0x1de8   : > { %v11562_v58 = vmax.f32 %v9972_v40, 0.0  ;;  %v5505_v4 = vadd.f32 %v5489_v15, %v11564_v29  ;;  %v5485_v46 = vadd.f32 %v5469_v48, %v5435_v31  ;;  %v5526_v34 = vmax.f32 %v5510_v16, 0.0  ;;  %v11566_v15 = vld [vmem:[#allocation35_spill] sm:$0xff] }
0x1de9   : > { %5329 = vmatpush1.bf16.msra.mxu0 %v5310_v55  ;;  %v5470_v55 = vmul.f32 %v9951_v37, %v11560_v14  ;;  %v5487_v5 = vadd.f32 %v5471_v17, %v5437_v60  ;;  %v5506_v20 = vadd.f32 %v5490_v56, %v11561_v11  ;;  %v5434_v43 = vadd.f32 %v5418_v50, %v5384_v27  ;;  %v7187_v37 = vld [vmem:[%s10687_s13] sm:$0x3] }
0x1dea   : > { %5330 = vmatprep.subr.bf16.mxu0 %v5309_v54  ;;  %v11563_v54 = vmax.f32 %v9979_v49, 0.0  ;;  %v5436_v61 = vadd.f32 %v5420_v7, %v5386_v6  ;;  %v11565_v49 = vmax.f32 %v10000_v35, 0.0  ;;  %v5501_v38 = vadd.f32 %v5485_v46, %v11566_v15  ;;  %v11568_v50 = vld [vmem:[#allocation34_spill] sm:$0xff]  ;;  %v7191_v46 = vld [vmem:[%s10677_s3 + $0x18] sm:$0xff]  }
0x1deb   : > { %v5524_v16 = vmax.f32 %v10033_v0, 0.0  ;;  %v5504_v42 = vadd.f32 %v5488_v30, %v11564_v29  ;;  %v5484_v48 = vadd.f32 %v5468_v12, %v5434_v43  ;;  %v5521_v6 = vmax.f32 %v5505_v4, 0.0  ;;  %v7190_v4 = vld [vmem:[%s10677_s3 + $0x10] sm:$0xff]  }
0x1dec   : > { %v5538_v22 = vpack.c.bf16 %v11563_v54, %v11562_v58  ;;  %v5537_v40 = vpack.c.bf16 %v11565_v49, %v5525_v39  ;;  %v5486_v17 = vadd.f32 %v5470_v55, %v5436_v61  ;;  %v5503_v56 = vadd.f32 %v5487_v5, %v11568_v50  ;;  %v7188_v54 = vld [vmem:[%s10677_s3] sm:$0xff]  }
0x1ded   : > { %5331 = vmatpush1.bf16.msra.mxu0 %v5308_v36  ;;  %v11567_v36 = vmov 0   ;;  %v5536_v63 = vpack.c.bf16 %v5526_v34, %v5524_v16  ;;  %v5522_v31 = vmax.f32 %v5506_v20, 0.0  ;;  %v5500_v35 = vadd.f32 %v5484_v48, %v11566_v15  ;;  %v11569_v34 = vld [vmem:[#allocation26_spill] sm:$0xff] }
0x1dee   : > { %5548 = vmatprep.subr.bf16.mxu0 %v9985_v41  ;;  %v5523_v41 = vmax.f32 %v5507_v2, 0.0  ;;  %v5517_v2 = vmax.f32 %v5501_v38, 0.0  ;;  %v5520_v60 = vmax.f32 %v5504_v42, 0.0  ;;  %v5502_v0 = vadd.f32 %v5486_v17, %v11568_v50  ;;  %v11575_v50 = vld [vmem:[#allocation41_spill] sm:$0xff] }
0x1def   : > { %v5519_v30 = vmax.f32 %v5503_v56, 0.0  ;;  %v5516_v7 = vmax.f32 %v5500_v35, 0.0 }
0x1df0   : > { %6992 = vmatmul.mubr.msk.bf16.vlgmr.msra.gmra.mxu0 %vm977_vm0, %v7187_v37  ;;  %v5535_v39 = vpack.c.bf16 %v5523_v41, %v5521_v6  ;;  %v5534_v27 = vpack.c.bf16 %v5522_v31, %v5520_v60  ;;  %v5518_v55 = vmax.f32 %v5502_v0, 0.0 }
0x1df1   : > { %5549 = vmatpush1.bf16.msra.mxu0 %v5538_v22  ;;  %5572 = vmatprep.mubr.bf16.mxu0 %v11567_v36  ;;  %v5533_v12 = vpack.c.bf16 %v5519_v30, %v5517_v2  ;;  %v7189_v22 = vld [vmem:[%s10677_s3 + $0x8] sm:$0xff]  }
0x1df2   : > { %5550 = vmatprep.subr.bf16.mxu0 %v5537_v40  ;;  %v5532_v58 = vpack.c.bf16 %v5518_v55, %v5516_v7  ;;  %v11570_v7 = vld [vmem:[#allocation38_spill] sm:$0xff]  ;;  %v11571_v55 = vld [vmem:[#allocation37_spill] sm:$0xff] }
0x1df5   : > { %5551 = vmatpush1.bf16.msra.mxu0 %v5536_v63 }
0x1df6   : > { %5552 = vmatprep.subr.bf16.mxu0 %v5535_v39 }
0x1df9   : > { %5553 = vmatpush1.bf16.msra.mxu0 %v5534_v27 }
0x1dfa   : > { %5554 = vmatprep.subr.bf16.mxu0 %v5533_v12 }
0x1dfd   : > { %5555 = vmatpush1.bf16.msra.mxu0 %v5532_v58 }
0x1e00   : > { %6993 = vmatmul.mubr.msk.bf16.vlgmr.msra.gmra.mxu0 %vm977_vm0, %v7188_v54  ;;  %v11572_v54 = vld [vmem:[#allocation36_spill] sm:$0xff] }
0x1e01   : > { %5582 = vmatprep.mubr.bf16.mxu0 %v11567_v36 }
0x1e08   : > { %6994 = vmatmul.mubr.msk.bf16.gmra.mxu0 %vm977_vm0, %v7189_v22 }
0x1e09   : > { %5592 = vmatprep.mubr.bf16.mxu0 %v11567_v36 }
0x1e10   : > { %6995 = vmatmul.mubr.msk.bf16.gmra.mxu0 %vm977_vm0, %v7190_v4 }
0x1e11   : > { %5602 = vmatprep.mubr.bf16.mxu0 %v11567_v36 }
0x1e18   : > { %6996 = vmatmul.mubr.msk.bf16.gmra.mxu0 %vm977_vm0, %v7191_v46 }
0x1e19   : > { %5766 = vmatprep.mubr.bf16.mxu0 %v11567_v36 }
0x1eb0   : > { %v5350_v5 = vpop.f32.mrf.mxu0 }
0x1eb1   : > { %v5351_v20 = vadd.f32 %v5350_v5, %v11569_v34  ;;  %v11573_v5 = vld [vmem:[#allocation39_spill] sm:$0xff] }
0x1eb2   : > { %v5352_v43 = vpop.f32.mrf.mxu0 }
0x1eb3   : > { %v5353_v61 = vadd.f32 %v5352_v43, %v11569_v34  ;;  %v5357_v49 = vmax.f32 %v5351_v20, 0.0 }
0x1eb4   : > { %v5354_v37 = vpop.f32.mrf.mxu0 }
0x1eb5   : > { %v5358_v40 = vmax.f32 %v5353_v61, 0.0 }
0x1eb6   : > { %v5355_v41 = vpop.f32.mrf.mxu0 }
0x1eb7   : > { %v5361_v38 = vcombine.low %v5357_v49, %v5358_v40  ;;  %v11574_v49 = vld [vmem:[#allocation40_spill] sm:$0xff] }
0x1eb9   : > { %5363 = vst [vmem:[%s8226_s21 + $0x28] sm:$0xff] %v5361_v38 }
0x1ec0   : > { %v5574_v16 = vpop.f32.mrf.mxu0 }
0x1ec2   : > { %v5576_v42 = vpop.f32.mrf.mxu0 }
0x1ec4   : > { %v5578_v48 = vpop.f32.mrf.mxu0 }
0x1ec6   : > { %v5580_v17 = vpop.f32.mrf.mxu0 }
0x1ec8   : > { %v5584_v6 = vpop.f32.mrf.mxu0 }
0x1eca   : > { %v5586_v56 = vpop.f32.mrf.mxu0 }
0x1ecc   : > { %v5588_v63 = vpop.f32.mrf.mxu0 }
0x1ece   : > { %v5590_v31 = vpop.f32.mrf.mxu0 }
0x1ecf   : > { %v5591_v40 = vadd.f32 %v5590_v31, %v11574_v49  ;;  %v5585_v31 = vadd.f32 %v5584_v6, %v11575_v50 }
0x1ed0   : > { %v5594_v35 = vpop.f32.mrf.mxu0 }
0x1ed2   : > { %v5596_v39 = vpop.f32.mrf.mxu0 }
0x1ed3   : > { %v5597_v20 = vadd.f32 %v5596_v39, %v11573_v5 }
0x1ed4   : > { %v5598_v2 = vpop.f32.mrf.mxu0 }
0x1ed5   : > { %v5599_v61 = vadd.f32 %v5598_v2, %v11570_v7  ;;  %v5622_v15 = vmax.f32 %v5597_v20, 0.0  ;;  %v5620_v2 = vmax.f32 %v5591_v40, 0.0 }
0x1ed6   : > { %v5600_v60 = vpop.f32.mrf.mxu0 }
0x1ed7   : > { %v5601_v12 = vadd.f32 %v5600_v60, %v11570_v7  ;;  %v5595_v60 = vadd.f32 %v5594_v35, %v11573_v5  ;;  %v5623_v39 = vmax.f32 %v5599_v61, 0.0 }
0x1ed8   : > { %v5604_v0 = vpop.f32.mrf.mxu0 }
0x1ed9   : > { %v5605_v4 = vadd.f32 %v5604_v0, %v11571_v55  ;;  %v5624_v41 = vmax.f32 %v5601_v12, 0.0  ;;  %v5621_v12 = vmax.f32 %v5595_v60, 0.0 }
0x1eda   : > { %v5606_v30 = vpop.f32.mrf.mxu0 }
0x1edb   : > { %v5607_v58 = vadd.f32 %v5606_v30, %v11571_v55  ;;  %v5625_v30 = vmax.f32 %v5605_v4, 0.0  ;;  %v5589_v55 = vadd.f32 %v5588_v63, %v11574_v49  ;;  %v5633_v20 = vpack.c.bf16 %v5623_v39, %v5621_v12  ;;  %v11583_v49 = vld [vmem:[#allocation49_spill] sm:$0xff] }
0x1edc   : > { %v5608_v27 = vpop.f32.mrf.mxu0 }
0x1edd   : > { %v5609_v22 = vadd.f32 %v5608_v27, %v11572_v54  ;;  %v5626_v38 = vmax.f32 %v5607_v58, 0.0  ;;  %v5587_v27 = vadd.f32 %v5586_v56, %v11575_v50  ;;  %v11577_v58 = vld [vmem:[#allocation43_spill] sm:$0xff] }
0x1ede   : > { %v5610_v46 = vpop.f32.mrf.mxu0  ;;  %v5577_v35 = vadd.f32 %v5576_v42, %v11577_v58  ;;  %v5575_v61 = vadd.f32 %v5574_v16, %v11577_v58  ;;  %v7193_v16 = vld [vmem:[%s10679_s5 + $0x8] sm:$0xff]  }
0x1edf   : > { %v5611_v43 = vadd.f32 %v5610_v46, %v11572_v54  ;;  %v5627_v37 = vmax.f32 %v5609_v22, 0.0  ;;  %v11576_v46 = vld [vmem:[#allocation42_spill] sm:$0xff]  ;;  %v5634_v22 = vpack.c.bf16 %v5624_v41, %v5622_v15  ;;  %v5618_v4 = vmax.f32 %v5587_v27, 0.0 }
0x1ee0   : > { %v5581_v54 = vadd.f32 %v5580_v17, %v11576_v46  ;;  %v5579_v56 = vadd.f32 %v5578_v48, %v11576_v46  ;;  %v5617_v17 = vmax.f32 %v5585_v31, 0.0  ;;  %v5614_v15 = vmax.f32 %v5577_v35, 0.0  ;;  %v7192_v48 = vld [vmem:[%s10679_s5] sm:$0xff]  }
0x1ee1   : > { %v5628_v34 = vmax.f32 %v5611_v43, 0.0  ;;  %v5635_v29 = vpack.c.bf16 %v5627_v37, %v5625_v30  ;;  %v5632_v43 = vpack.c.bf16 %v5620_v2, %v5618_v4 }
0x1ee2   : > { %v5616_v63 = vmax.f32 %v5581_v54, 0.0  ;;  %v5615_v37 = vmax.f32 %v5579_v56, 0.0  ;;  %v7195_v54 = vld [vmem:[%s10679_s5 + $0x18] sm:$0xff]  }
0x1ee3   : > { %v5636_v0 = vpack.c.bf16 %v5628_v34, %v5626_v38  ;;  %v5619_v34 = vmax.f32 %v5589_v55, 0.0  ;;  %v7194_v55 = vld [vmem:[%s10679_s5 + $0x10] sm:$0xff]  }
0x1ee4   : > { %v5630_v40 = vpack.c.bf16 %v5616_v63, %v5614_v15 }
0x1ee5   : > { %5645 = vmatprep.subr.bf16.mxu1 %v5636_v0  ;;  %v5631_v6 = vpack.c.bf16 %v5619_v34, %v5617_v17  ;;  %v11580_v17 = vld [vmem:[#allocation44_spill] sm:$0xff] }
0x1ee6   : > { %5646 = vmatpush1.bf16.msra.mxu1 %v5635_v29  ;;  %v5613_v29 = vmax.f32 %v5575_v61, 0.0 }
0x1ee7   : > { %5647 = vmatprep.subr.bf16.mxu1 %v5634_v22 }
0x1ee8   : > { %v5629_v42 = vpack.c.bf16 %v5615_v37, %v5613_v29 }
0x1eea   : > { %5648 = vmatpush1.bf16.msra.mxu1 %v5633_v20  ;;  %v11578_v20 = vld [vmem:[#allocation46_spill] sm:$0xff] }
0x1eeb   : > { %5649 = vmatprep.subr.bf16.mxu1 %v5632_v43  ;;  %v11579_v43 = vld [vmem:[#allocation45_spill] sm:$0xff] }
0x1eee   : > { %5650 = vmatpush1.bf16.msra.mxu1 %v5631_v6 }
0x1eef   : > { %5651 = vmatprep.subr.bf16.mxu1 %v5630_v40  ;;  %v11581_v40 = vld [vmem:[#allocation47_spill] sm:$0xff] }
0x1ef2   : > { %5652 = vmatpush1.bf16.msra.mxu1 %v5629_v42 }
0x1ef5   : > { %6997 = vmatmul.mubr.msk.bf16.vlgmr.msra.gmra.mxu1 %vm977_vm0, %v7192_v48 }
0x1ef6   : > { %5679 = vmatprep.mubr.bf16.mxu1 %v11567_v36 }
0x1efd   : > { %6998 = vmatmul.mubr.msk.bf16.gmra.mxu1 %vm977_vm0, %v7193_v16 }
0x1efe   : > { %5689 = vmatprep.mubr.bf16.mxu1 %v11567_v36 }
0x1f05   : > { %6999 = vmatmul.mubr.msk.bf16.gmra.mxu1 %vm977_vm0, %v7194_v55  ;;  %v11582_v55 = vld [vmem:[#allocation48_spill] sm:$0xff] }
0x1f06   : > { %5699 = vmatprep.mubr.bf16.mxu1 %v11567_v36 }
0x1f0d   : > { %7000 = vmatmul.mubr.msk.bf16.gmra.mxu1 %vm977_vm0, %v7195_v54 }
0x1f0e   : > { %5863 = vmatprep.mubr.bf16.mxu1 %v11567_v36 }
0x1fb5   : > { %v5671_v41 = vpop.f32.mrf.mxu1 }
0x1fb7   : > { %v5673_v38 = vpop.f32.mrf.mxu1 }
0x1fb9   : > { %v5675_v60 = vpop.f32.mrf.mxu1 }
0x1fbb   : > { %v5677_v30 = vpop.f32.mrf.mxu1 }
0x1fbd   : > { %v5681_v27 = vpop.f32.mrf.mxu1 }
0x1fbf   : > { %v5683_v0 = vpop.f32.mrf.mxu1 }
0x1fc1   : > { %v5685_v39 = vpop.f32.mrf.mxu1 }
0x1fc3   : > { %v5687_v2 = vpop.f32.mrf.mxu1 }
0x1fc4   : > { %v5688_v54 = vadd.f32 %v5687_v2, %v11582_v55  ;;  %v5682_v2 = vadd.f32 %v5681_v27, %v11583_v49 }
0x1fc5   : > { %v5691_v22 = vpop.f32.mrf.mxu1 }
0x1fc7   : > { %v5693_v31 = vpop.f32.mrf.mxu1 }
0x1fc8   : > { %v5694_v29 = vadd.f32 %v5693_v31, %v11581_v40 }
0x1fc9   : > { %v5695_v12 = vpop.f32.mrf.mxu1 }
0x1fca   : > { %v5696_v48 = vadd.f32 %v5695_v12, %v11578_v20  ;;  %v5719_v5 = vmax.f32 %v5694_v29, 0.0  ;;  %v5717_v12 = vmax.f32 %v5688_v54, 0.0 }
0x1fcb   : > { %v5697_v35 = vpop.f32.mrf.mxu1 }
0x1fcc   : > { %v5698_v63 = vadd.f32 %v5697_v35, %v11578_v20  ;;  %v5692_v35 = vadd.f32 %v5691_v22, %v11581_v40  ;;  %v5720_v31 = vmax.f32 %v5696_v48, 0.0 }
0x1fcd   : > { %v5701_v4 = vpop.f32.mrf.mxu1 }
0x1fce   : > { %v5702_v37 = vadd.f32 %v5701_v4, %v11579_v43  ;;  %v5721_v58 = vmax.f32 %v5698_v63, 0.0  ;;  %v5718_v63 = vmax.f32 %v5692_v35, 0.0 }
0x1fcf   : > { %v5703_v56 = vpop.f32.mrf.mxu1 }
0x1fd0   : > { %v5704_v61 = vadd.f32 %v5703_v56, %v11579_v43  ;;  %v5722_v56 = vmax.f32 %v5702_v37, 0.0  ;;  %v5686_v43 = vadd.f32 %v5685_v39, %v11582_v55  ;;  %v11591_v55 = vld [vmem:[#allocation57_spill] sm:$0xff] }
0x1fd1   : > { %v5705_v34 = vpop.f32.mrf.mxu1 }
0x1fd2   : > { %v5706_v15 = vadd.f32 %v5705_v34, %v11580_v17  ;;  %v5723_v46 = vmax.f32 %v5704_v61, 0.0  ;;  %v5684_v34 = vadd.f32 %v5683_v0, %v11583_v49  ;;  %v11585_v61 = vld [vmem:[#allocation51_spill] sm:$0xff] }
0x1fd3   : > { %v5707_v6 = vpop.f32.mrf.mxu1  ;;  %v5674_v22 = vadd.f32 %v5673_v38, %v11585_v61 }
0x1fd4   : > { %v5708_v42 = vadd.f32 %v5707_v6, %v11580_v17  ;;  %v5724_v16 = vmax.f32 %v5706_v15, 0.0  ;;  %v11584_v6 = vld [vmem:[#allocation50_spill] sm:$0xff]  ;;  %v5731_v15 = vpack.c.bf16 %v5721_v58, %v5719_v5  ;;  %v5715_v37 = vmax.f32 %v5684_v34, 0.0 }
0x1fd5   : > { %v5678_v17 = vadd.f32 %v5677_v30, %v11584_v6  ;;  %v5676_v0 = vadd.f32 %v5675_v60, %v11584_v6  ;;  %v5714_v30 = vmax.f32 %v5682_v2, 0.0  ;;  %v5711_v5 = vmax.f32 %v5674_v22, 0.0  ;;  %v7196_v60 = vld [vmem:[%s10681_s7] sm:$0xff]  }
0x1fd6   : > { %v5725_v50 = vmax.f32 %v5708_v42, 0.0  ;;  %v5732_v7 = vpack.c.bf16 %v5724_v16, %v5722_v56  ;;  %v5729_v29 = vpack.c.bf16 %v5717_v12, %v5715_v37  ;;  %v5672_v42 = vadd.f32 %v5671_v41, %v11585_v61  ;;  %v7197_v41 = vld [vmem:[%s10681_s7 + $0x8] sm:$0xff]  }
0x1fd7   : > { %v5713_v39 = vmax.f32 %v5678_v17, 0.0  ;;  %v5712_v58 = vmax.f32 %v5676_v0, 0.0  ;;  %v7199_v17 = vld [vmem:[%s10681_s7 + $0x18] sm:$0xff]  }
0x1fd8   : > { %v5733_v4 = vpack.c.bf16 %v5725_v50, %v5723_v46  ;;  %v5716_v50 = vmax.f32 %v5686_v43, 0.0  ;;  %v5730_v46 = vpack.c.bf16 %v5720_v31, %v5718_v63  ;;  %v7198_v43 = vld [vmem:[%s10681_s7 + $0x10] sm:$0xff]  }
0x1fd9   : > { %v5727_v48 = vpack.c.bf16 %v5713_v39, %v5711_v5 }
0x1fda   : > { %5742 = vmatprep.subr.bf16.mxu0 %v5733_v4  ;;  %v5728_v27 = vpack.c.bf16 %v5716_v50, %v5714_v30  ;;  %v11588_v30 = vld [vmem:[#allocation52_spill] sm:$0xff] }
0x1fdb   : > { %5743 = vmatpush1.bf16.msra.mxu0 %v5732_v7  ;;  %v5710_v7 = vmax.f32 %v5672_v42, 0.0 }
0x1fdc   : > { %5744 = vmatprep.subr.bf16.mxu0 %v5731_v15 }
0x1fdd   : > { %v5726_v38 = vpack.c.bf16 %v5712_v58, %v5710_v7 }
0x1fdf   : > { %5745 = vmatpush1.bf16.msra.mxu0 %v5730_v46  ;;  %v11586_v46 = vld [vmem:[#allocation54_spill] sm:$0xff] }
0x1fe0   : > { %5746 = vmatprep.subr.bf16.mxu0 %v5729_v29  ;;  %v11587_v29 = vld [vmem:[#allocation53_spill] sm:$0xff] }
0x1fe3   : > { %5747 = vmatpush1.bf16.msra.mxu0 %v5728_v27 }
0x1fe4   : > { %5748 = vmatprep.subr.bf16.mxu0 %v5727_v48  ;;  %v11589_v48 = vld [vmem:[#allocation55_spill] sm:$0xff] }
0x1fe7   : > { %5749 = vmatpush1.bf16.msra.mxu0 %v5726_v38 }
0x1fea   : > { %7001 = vmatmul.mubr.msk.bf16.vlgmr.msra.gmra.mxu0 %vm977_vm0, %v7196_v60 }
0x1feb   : > { %5776 = vmatprep.mubr.bf16.mxu0 %v11567_v36 }
0x1ff2   : > { %7002 = vmatmul.mubr.msk.bf16.gmra.mxu0 %vm977_vm0, %v7197_v41 }
0x1ff3   : > { %5786 = vmatprep.mubr.bf16.mxu0 %v11567_v36 }
0x1ffa   : > { %7003 = vmatmul.mubr.msk.bf16.gmra.mxu0 %vm977_vm0, %v7198_v43  ;;  %v11590_v43 = vld [vmem:[#allocation56_spill] sm:$0xff] }
0x1ffb   : > { %5796 = vmatprep.mubr.bf16.mxu0 %v11567_v36 }
0x2002   : > { %7004 = vmatmul.mubr.msk.bf16.gmra.mxu0 %vm977_vm0, %v7199_v17 }
0x2003   : > { %5960 = vmatprep.mubr.bf16.mxu0 %v11567_v36 }
0x20aa   : > { %v5768_v16 = vpop.f32.mrf.mxu0 }
0x20ac   : > { %v5770_v54 = vpop.f32.mrf.mxu0 }
0x20ae   : > { %v5772_v35 = vpop.f32.mrf.mxu0 }
0x20b0   : > { %v5774_v56 = vpop.f32.mrf.mxu0 }
0x20b2   : > { %v5778_v34 = vpop.f32.mrf.mxu0 }
0x20b4   : > { %v5780_v4 = vpop.f32.mrf.mxu0 }
0x20b6   : > { %v5782_v31 = vpop.f32.mrf.mxu0 }
0x20b8   : > { %v5784_v12 = vpop.f32.mrf.mxu0 }
0x20b9   : > { %v5785_v17 = vadd.f32 %v5784_v12, %v11590_v43  ;;  %v5779_v12 = vadd.f32 %v5778_v34, %v11591_v55 }
0x20ba   : > { %v5788_v15 = vpop.f32.mrf.mxu0 }
0x20bc   : > { %v5790_v2 = vpop.f32.mrf.mxu0 }
0x20bd   : > { %v5791_v7 = vadd.f32 %v5790_v2, %v11589_v48 }
0x20be   : > { %v5792_v63 = vpop.f32.mrf.mxu0 }
0x20bf   : > { %v5793_v60 = vadd.f32 %v5792_v63, %v11586_v46  ;;  %v5816_v40 = vmax.f32 %v5791_v7, 0.0  ;;  %v5814_v63 = vmax.f32 %v5785_v17, 0.0 }
0x20c0   : > { %v5794_v22 = vpop.f32.mrf.mxu0 }
0x20c1   : > { %v5795_v39 = vadd.f32 %v5794_v22, %v11586_v46  ;;  %v5789_v22 = vadd.f32 %v5788_v15, %v11589_v48  ;;  %v5817_v2 = vmax.f32 %v5793_v60, 0.0 }
0x20c2   : > { %v5798_v37 = vpop.f32.mrf.mxu0 }
0x20c3   : > { %v5799_v58 = vadd.f32 %v5798_v37, %v11587_v29  ;;  %v5818_v61 = vmax.f32 %v5795_v39, 0.0  ;;  %v5815_v39 = vmax.f32 %v5789_v22, 0.0 }
0x20c4   : > { %v5800_v0 = vpop.f32.mrf.mxu0 }
0x20c5   : > { %v5801_v42 = vadd.f32 %v5800_v0, %v11587_v29  ;;  %v5819_v0 = vmax.f32 %v5799_v58, 0.0  ;;  %v5783_v29 = vadd.f32 %v5782_v31, %v11590_v43  ;;  %v11599_v43 = vld [vmem:[#allocation65_spill] sm:$0xff] }
0x20c6   : > { %v5802_v50 = vpop.f32.mrf.mxu0 }
0x20c7   : > { %v5803_v5 = vadd.f32 %v5802_v50, %v11588_v30  ;;  %v5820_v6 = vmax.f32 %v5801_v42, 0.0  ;;  %v5781_v50 = vadd.f32 %v5780_v4, %v11591_v55  ;;  %v11593_v42 = vld [vmem:[#allocation59_spill] sm:$0xff] }
0x20c8   : > { %v5804_v27 = vpop.f32.mrf.mxu0  ;;  %v5771_v15 = vadd.f32 %v5770_v54, %v11593_v42 }
0x20c9   : > { %v5805_v38 = vadd.f32 %v5804_v27, %v11588_v30  ;;  %v5821_v41 = vmax.f32 %v5803_v5, 0.0  ;;  %v11592_v27 = vld [vmem:[#allocation58_spill] sm:$0xff]  ;;  %v5828_v5 = vpack.c.bf16 %v5818_v61, %v5816_v40  ;;  %v5812_v58 = vmax.f32 %v5781_v50, 0.0 }
0x20ca   : > { %v5775_v30 = vadd.f32 %v5774_v56, %v11592_v27  ;;  %v5773_v4 = vadd.f32 %v5772_v35, %v11592_v27  ;;  %v5811_v56 = vmax.f32 %v5779_v12, 0.0  ;;  %v5808_v40 = vmax.f32 %v5771_v15, 0.0  ;;  %v7200_v35 = vld [vmem:[%s10683_s9] sm:$0xff]  }
0x20cb   : > { %v5822_v49 = vmax.f32 %v5805_v38, 0.0  ;;  %v5829_v20 = vpack.c.bf16 %v5821_v41, %v5819_v0  ;;  %v5826_v7 = vpack.c.bf16 %v5814_v63, %v5812_v58  ;;  %v5769_v38 = vadd.f32 %v5768_v16, %v11593_v42  ;;  %v7201_v16 = vld [vmem:[%s10683_s9 + $0x8] sm:$0xff]  }
0x20cc   : > { %v5810_v31 = vmax.f32 %v5775_v30, 0.0  ;;  %v5809_v61 = vmax.f32 %v5773_v4, 0.0  ;;  %v7203_v30 = vld [vmem:[%s10683_s9 + $0x18] sm:$0xff]  }
0x20cd   : > { %v5830_v37 = vpack.c.bf16 %v5822_v49, %v5820_v6  ;;  %v5813_v49 = vmax.f32 %v5783_v29, 0.0  ;;  %v5827_v6 = vpack.c.bf16 %v5817_v2, %v5815_v39  ;;  %v7202_v29 = vld [vmem:[%s10683_s9 + $0x10] sm:$0xff]  }
0x20ce   : > { %v5824_v60 = vpack.c.bf16 %v5810_v31, %v5808_v40 }
0x20cf   : > { %5839 = vmatprep.subr.bf16.mxu1 %v5830_v37  ;;  %v5825_v34 = vpack.c.bf16 %v5813_v49, %v5811_v56  ;;  %v11596_v56 = vld [vmem:[#allocation60_spill] sm:$0xff] }
0x20d0   : > { %5840 = vmatpush1.bf16.msra.mxu1 %v5829_v20  ;;  %v5807_v20 = vmax.f32 %v5769_v38, 0.0 }
0x20d1   : > { %5841 = vmatprep.subr.bf16.mxu1 %v5828_v5 }
0x20d2   : > { %v5823_v54 = vpack.c.bf16 %v5809_v61, %v5807_v20 }
0x20d4   : > { %5842 = vmatpush1.bf16.msra.mxu1 %v5827_v6  ;;  %v11594_v6 = vld [vmem:[#allocation62_spill] sm:$0xff] }
0x20d5   : > { %5843 = vmatprep.subr.bf16.mxu1 %v5826_v7  ;;  %v11595_v7 = vld [vmem:[#allocation61_spill] sm:$0xff] }
0x20d8   : > { %5844 = vmatpush1.bf16.msra.mxu1 %v5825_v34 }
0x20d9   : > { %5845 = vmatprep.subr.bf16.mxu1 %v5824_v60  ;;  %v11597_v60 = vld [vmem:[#allocation63_spill] sm:$0xff] }
0x20dc   : > { %5846 = vmatpush1.bf16.msra.mxu1 %v5823_v54 }
0x20df   : > { %7005 = vmatmul.mubr.msk.bf16.vlgmr.msra.gmra.mxu1 %vm977_vm0, %v7200_v35 }
0x20e0   : > { %5873 = vmatprep.mubr.bf16.mxu1 %v11567_v36 }
0x20e7   : > { %7006 = vmatmul.mubr.msk.bf16.gmra.mxu1 %vm977_vm0, %v7201_v16 }
0x20e8   : > { %5883 = vmatprep.mubr.bf16.mxu1 %v11567_v36 }
0x20ef   : > { %7007 = vmatmul.mubr.msk.bf16.gmra.mxu1 %vm977_vm0, %v7202_v29  ;;  %v11598_v29 = vld [vmem:[#allocation64_spill] sm:$0xff] }
0x20f0   : > { %5893 = vmatprep.mubr.bf16.mxu1 %v11567_v36 }
0x20f7   : > { %7008 = vmatmul.mubr.msk.bf16.gmra.mxu1 %vm977_vm0, %v7203_v30 }
0x20f8   : > { %6057 = vmatprep.mubr.bf16.mxu1 %v11567_v36 }
0x219f   : > { %v5865_v41 = vpop.f32.mrf.mxu1 }
0x21a1   : > { %v5867_v17 = vpop.f32.mrf.mxu1 }
0x21a3   : > { %v5869_v22 = vpop.f32.mrf.mxu1 }
0x21a5   : > { %v5871_v0 = vpop.f32.mrf.mxu1 }
0x21a7   : > { %v5875_v50 = vpop.f32.mrf.mxu1 }
0x21a9   : > { %v5877_v37 = vpop.f32.mrf.mxu1 }
0x21ab   : > { %v5879_v2 = vpop.f32.mrf.mxu1 }
0x21ad   : > { %v5881_v63 = vpop.f32.mrf.mxu1 }
0x21ae   : > { %v5882_v30 = vadd.f32 %v5881_v63, %v11598_v29  ;;  %v5876_v63 = vadd.f32 %v5875_v50, %v11599_v43 }
0x21af   : > { %v5885_v5 = vpop.f32.mrf.mxu1 }
0x21b1   : > { %v5887_v12 = vpop.f32.mrf.mxu1 }
0x21b2   : > { %v5888_v20 = vadd.f32 %v5887_v12, %v11597_v60 }
0x21b3   : > { %v5889_v39 = vpop.f32.mrf.mxu1 }
0x21b4   : > { %v5890_v35 = vadd.f32 %v5889_v39, %v11594_v6  ;;  %v5913_v48 = vmax.f32 %v5888_v20, 0.0  ;;  %v5911_v39 = vmax.f32 %v5882_v30, 0.0  ;;  %v6073_v30 = vld [vmem:[%s7511_s28 + $0x38] sm:$0x77] }
0x21b5   : > { %v5891_v15 = vpop.f32.mrf.mxu1 }
0x21b6   : > { %v5892_v31 = vadd.f32 %v5891_v15, %v11594_v6  ;;  %v5886_v15 = vadd.f32 %v5885_v5, %v11597_v60  ;;  %v5914_v12 = vmax.f32 %v5890_v35, 0.0 }
0x21b7   : > { %v5895_v58 = vpop.f32.mrf.mxu1 }
0x21b8   : > { %v5896_v61 = vadd.f32 %v5895_v58, %v11595_v7  ;;  %v5915_v42 = vmax.f32 %v5892_v31, 0.0  ;;  %v5912_v31 = vmax.f32 %v5886_v15, 0.0 }
0x21b9   : > { %v5897_v4 = vpop.f32.mrf.mxu1 }
0x21ba   : > { %v5898_v38 = vadd.f32 %v5897_v4, %v11595_v7  ;;  %v5916_v4 = vmax.f32 %v5896_v61, 0.0  ;;  %v5880_v7 = vadd.f32 %v5879_v2, %v11598_v29 }
0x21bb   : > { %v5899_v49 = vpop.f32.mrf.mxu1 }
0x21bc   : > { %v5900_v40 = vadd.f32 %v5899_v49, %v11596_v56  ;;  %v5917_v27 = vmax.f32 %v5898_v38, 0.0  ;;  %v5878_v49 = vadd.f32 %v5877_v37, %v11599_v43  ;;  %v11601_v38 = vld [vmem:[#allocation67_spill] sm:$0xff] }
0x21bd   : > { %v5901_v34 = vpop.f32.mrf.mxu1  ;;  %v5868_v5 = vadd.f32 %v5867_v17, %v11601_v38 }
0x21be   : > { %v5902_v54 = vadd.f32 %v5901_v34, %v11596_v56  ;;  %v5918_v16 = vmax.f32 %v5900_v40, 0.0  ;;  %v11600_v34 = vld [vmem:[#allocation66_spill] sm:$0xff]  ;;  %v5925_v40 = vpack.c.bf16 %v5915_v42, %v5913_v48  ;;  %v5909_v61 = vmax.f32 %v5878_v49, 0.0  ;;  %v11602_v49 = vld [vmem:[#allocation11_spill] sm:$0xff] }
0x21bf   : > { %v5872_v56 = vadd.f32 %v5871_v0, %v11600_v34  ;;  %v5870_v37 = vadd.f32 %v5869_v22, %v11600_v34  ;;  %v5908_v0 = vmax.f32 %v5876_v63, 0.0  ;;  %v5905_v48 = vmax.f32 %v5868_v5, 0.0  ;;  %v7204_v22 = vld [vmem:[%s10685_s11] sm:$0xff]  }
0x21c0   : > { %v5919_v55 = vmax.f32 %v5902_v54, 0.0  ;;  %v5926_v46 = vpack.c.bf16 %v5918_v16, %v5916_v4  ;;  %v5923_v20 = vpack.c.bf16 %v5911_v39, %v5909_v61  ;;  %v5866_v54 = vadd.f32 %v5865_v41, %v11601_v38  ;;  %v7205_v41 = vld [vmem:[%s10685_s11 + $0x8] sm:$0xff]   ;;  %v11605_v61 = vld [vmem:[#allocation12_spill] sm:$0xff] }
0x21c1   : > { %v5907_v2 = vmax.f32 %v5872_v56, 0.0  ;;  %v5906_v42 = vmax.f32 %v5870_v37, 0.0  ;;  %v7207_v56 = vld [vmem:[%s10685_s11 + $0x18] sm:$0xff]   ;;  %v11612_v38 = vld [vmem:[#allocation3_spill] sm:$0xff] }
0x21c2   : > { %v5927_v58 = vpack.c.bf16 %v5919_v55, %v5917_v27  ;;  %v5910_v55 = vmax.f32 %v5880_v7, 0.0  ;;  %v5924_v27 = vpack.c.bf16 %v5914_v12, %v5912_v31  ;;  %v7206_v7 = vld [vmem:[%s10685_s11 + $0x10] sm:$0xff]   ;;  %v11603_v12 = vld [vmem:[#allocation13_spill] sm:$0xff]  ;;  %v11604_v31 = vld [vmem:[#allocation10_spill] sm:$0xff] }
0x21c3   : > { %v5921_v35 = vpack.c.bf16 %v5907_v2, %v5905_v48  ;;  %v6116_v39 = vrot.slane %v6073_v30, %v11603_v12  ;;  %v6078_v2 = vrot.slane %v6073_v30, %v11604_v31 }
0x21c4   : > { %5936 = vmatprep.subr.bf16.mxu0 %v5927_v58  ;;  %v5922_v50 = vpack.c.bf16 %v5910_v55, %v5908_v0  ;;  %v6082_v58 = vrot.slane %v6073_v30, %v11602_v49  ;;  %v11606_v55 = vld [vmem:[#allocation16_spill] sm:$0xff]  ;;  %v11607_v0 = vld [vmem:[#allocation18_spill] sm:$0xff] }
0x21c5   : > { %5937 = vmatpush1.bf16.msra.mxu0 %v5926_v46  ;;  %v5904_v46 = vmax.f32 %v5866_v54, 0.0  ;;  %v10287_v37 = vrot.slane %v6116_v39, %v11605_v61  ;;  %v10308_v49 = vrot.slane %v6078_v2, %v11604_v31 }
0x21c6   : > { %5938 = vmatprep.subr.bf16.mxu0 %v5925_v40  ;;  %v10284_v5 = vrot.slane %v6082_v58, %v11604_v31 }
0x21c7   : > { %v5920_v17 = vpack.c.bf16 %v5906_v42, %v5904_v46  ;;  %v11608_v42 = vld [vmem:[#allocation20_spill] sm:$0xff]  ;;  %v11609_v46 = vld [vmem:[#allocation2_spill] sm:$0xff]  ;;  %v6105_v29 = vmul.f32 %v10308_v49, %v11607_v0 }
0x21c8   : > { %v6106_v48 = vmul.f32 %v10284_v5, %v11607_v0  ;;  %v6102_v60 = vmul.f32 %v10284_v5, %v11487_v25 }
0x21c9   : > { %5939 = vmatpush1.bf16.msra.mxu0 %v5924_v27  ;;  %v6166_v27 = vrot.slane %v6073_v30, %v11606_v55 }
0x21ca   : > { %5940 = vmatprep.subr.bf16.mxu0 %v5923_v20  ;;  %v6112_v20 = vrot.slane %v6073_v30, %v11605_v61 }
0x21cc   : > { %v10311_v58 = vrot.slane %v6112_v20, %v11605_v61  ;;  %v6107_v61 = vmul.f32 %v10308_v49, %v11608_v42 }
0x21cd   : > { %5941 = vmatpush1.bf16.msra.mxu0 %v5922_v50  ;;  %v6108_v50 = vmul.f32 %v10284_v5, %v11608_v42 }
0x21ce   : > { %5942 = vmatprep.subr.bf16.mxu0 %v5921_v35  ;;  %v6139_v2 = vmul.f32 %v10311_v58, %v11609_v46 }
0x21d1   : > { %5943 = vmatpush1.bf16.msra.mxu0 %v5920_v17  ;;  %v6140_v17 = vmul.f32 %v10287_v37, %v11609_v46 }
0x21d3   : > { %v6156_v39 = vadd.f32 %v6140_v17, %v6106_v48 }
0x21d4   : > { %7009 = vmatmul.mubr.msk.bf16.vlgmr.msra.gmra.mxu0 %vm977_vm0, %v7204_v22  ;;  %v11610_v22 = vld [vmem:[#allocation4_spill] sm:$0xff] }
0x21d5   : > { %5970 = vmatprep.mubr.bf16.mxu0 %v11567_v36  ;;  %v6141_v0 = vmul.f32 %v10311_v58, %v11610_v22 }
0x21dc   : > { %7010 = vmatmul.mubr.msk.bf16.gmra.mxu0 %vm977_vm0, %v7205_v41  ;;  %v6142_v41 = vmul.f32 %v10287_v37, %v11610_v22 }
0x21dd   : > { %5980 = vmatprep.mubr.bf16.mxu0 %v11567_v36 }
0x21de   : > { %v6158_v55 = vadd.f32 %v6142_v41, %v6108_v50  ;;  %v6155_v41 = vadd.f32 %v6139_v2, %v6105_v29  ;;  %v11615_v2 = vld [vmem:[#allocation5_spill] sm:$0xff] }
0x21e4   : > { %7011 = vmatmul.mubr.msk.bf16.gmra.mxu0 %vm977_vm0, %v7206_v7  ;;  %v11611_v7 = vld [vmem:[#allocation15_spill] sm:$0xff] }
0x21e5   : > { %5990 = vmatprep.mubr.bf16.mxu0 %v11567_v36  ;;  %v6162_v43 = vrot.slane %v6073_v30, %v11611_v7  ;;  %v6136_v30 = vmul.f32 %v10287_v37, %v11484_v24 }
0x21e7   : > { %v10329_v17 = vrot.slane %v6162_v43, %v11611_v7  ;;  %v11613_v43 = vld [vmem:[#allocation22_spill] sm:$0xff]  ;;  %v6152_v29 = vadd.f32 %v6136_v30, %v6102_v60  ;;  %v6135_v30 = vmul.f32 %v10311_v58, %v11484_v24 }
0x21ec   : > { %7012 = vmatmul.mubr.msk.bf16.gmra.mxu0 %vm977_vm0, %v7207_v56  ;;  %v10305_v56 = vrot.slane %v6166_v27, %v11611_v7  ;;  %v6104_v7 = vmul.f32 %v10284_v5, %v11613_v43 }
0x21ed   : > { %6378 = vmatprep.mubr.bf16.mxu0 %v11567_v36 }
0x21ee   : > { %v6190_v34 = vmul.f32 %v10305_v56, %v11612_v38  ;;  %v6192_v31 = vmul.f32 %v10305_v56, %v11483_v59  ;;  %v6186_v36 = vmul.f32 %v10305_v56, %v11615_v2 }
0x21f0   : > { %v6206_v48 = vadd.f32 %v6190_v34, %v6156_v39  ;;  %v6208_v50 = vadd.f32 %v6192_v31, %v6158_v55  ;;  %v6189_v34 = vmul.f32 %v10329_v17, %v11612_v38  ;;  %v6157_v39 = vadd.f32 %v6141_v0, %v6107_v61  ;;  %v11614_v31 = vld [vmem:[#allocation19_spill] sm:$0xff] }
0x21f1   : > { %v6138_v22 = vmul.f32 %v10287_v37, %v11614_v31  ;;  %v6188_v0 = vmul.f32 %v10305_v56, %v11294_v52  ;;  %v6202_v60 = vadd.f32 %v6186_v36, %v6152_v29  ;;  %v6137_v36 = vmul.f32 %v10311_v58, %v11614_v31 }
0x21f2   : > { %v6222_v6 = vadd.f32 %v6206_v48, %v11485_v51  ;;  %v6224_v46 = vadd.f32 %v6208_v50, %v11550_v57  ;;  %v6191_v48 = vmul.f32 %v10329_v17, %v11483_v59  ;;  %v6205_v53 = vadd.f32 %v6189_v34, %v6155_v41  ;;  %v11617_v34 = vld [vmem:[#allocation68_spill] sm:$0xff] }
0x21f3   : > { %v6154_v38 = vadd.f32 %v6138_v22, %v6104_v7  ;;  %v6101_v59 = vmul.f32 %v10308_v49, %v11487_v25  ;;  %v6185_v25 = vmul.f32 %v10329_v17, %v11615_v2 }
0x21f4   : > { %v6238_v50 = vmax.f32 %v6222_v6, 0.0  ;;  %v6240_v14 = vmax.f32 %v6224_v46, 0.0  ;;  %v6207_v9 = vadd.f32 %v6191_v48, %v6157_v39  ;;  %v10350_v61 = vadd.f32 %v6205_v53, %v11485_v51 }
0x21f5   : > { %v6103_v6 = vmul.f32 %v10308_v49, %v11613_v43  ;;  %v6204_v51 = vadd.f32 %v6188_v0, %v6154_v38  ;;  %v10366_v53 = vadd.f32 %v6202_v60, %v11228_v13  ;;  %v6151_v29 = vadd.f32 %v6135_v30, %v6101_v59 }
0x21f6   : > { %v10357_v19 = vadd.f32 %v6207_v9, %v11550_v57  ;;  %v10363_v46 = vpack.c.bf16 %v6240_v14, %v6238_v50  ;;  %v11616_v57 = vld [vmem:[#allocation69_spill] sm:$0xff]  ;;  %v6237_v39 = vmax.f32 %v10350_v61, 0.0  ;;  %v6187_v48 = vmul.f32 %v10329_v17, %v11294_v52 }
0x21f7   : > { %v10378_v22 = vadd.f32 %v6204_v51, %v11225_v62  ;;  %v6153_v38 = vadd.f32 %v6137_v36, %v6103_v6  ;;  %v6098_v52 = vmul.f32 %v10284_v5, %v7618_v10  ;;  %v6201_v36 = vadd.f32 %v6185_v25, %v6151_v29 }
0x21f9   : > { %v6236_v51 = vmax.f32 %v10378_v22, 0.0 }
0x2294   : > { %v10270_v16 = vpop.f32.mrf.mxu0 }
0x2296   : > { %v10273_v15 = vpop.f32.mrf.mxu0 }
0x2298   : > { %v10275_v4 = vpop.f32.mrf.mxu0 }
0x229a   : > { %v10279_v40 = vpop.f32.mrf.mxu0 }
0x229c   : > { %v10281_v63 = vpop.f32.mrf.mxu0 }
0x229d   : > { %v5973_v25 = vadd.f32 %v10281_v63, %v8106_v26  ;;  %v5967_v63 = vadd.f32 %v10275_v4, %v8119_v18  ;;  %v6131_v4 = vmul.f32 %v10311_v58, %v11431_v33 }
0x229e   : > { %v10292_v54 = vpop.f32.mrf.mxu0 }
0x22a0   : > { %v10298_v35 = vpop.f32.mrf.mxu0 }
0x22a2   : > { %v10313_v12 = vpop.f32.mrf.mxu0 }
0x22a3   : > { %v5979_v0 = vadd.f32 %v10313_v12, %v8098_v3  ;;  %v5977_v12 = vadd.f32 %v10298_v35, %v8098_v3  ;;  %v6203_v35 = vadd.f32 %v6187_v48, %v6153_v38 }
0x22a4   : > { %v10320_v27 = vpop.f32.mrf.mxu0 }
0x22a6   : > { %v5984_v20 = vpop.f32.mrf.mxu0 }
0x22a7   : > { %v5985_v31 = vadd.f32 %v5984_v20, %v11491_v47  ;;  %v5983_v20 = vadd.f32 %v10320_v27, %v11491_v47  ;;  %v6132_v27 = vmul.f32 %v10287_v37, %v11431_v33  ;;  %v6096_v33 = vmul.f32 %v10284_v5, %v11555_v45 }
0x22a8   : > { %v5986_v42 = vpop.f32.mrf.mxu0 }
0x22a9   : > { %v5987_v2 = vadd.f32 %v5986_v42, %v8054_v1  ;;  %v5975_v42 = vadd.f32 %v10292_v54, %v8106_v26  ;;  %v6134_v54 = vmul.f32 %v10287_v37, %v7631_v28  ;;  %v6009_v29 = vmax.f32 %v5983_v20, 0.0 }
0x22aa   : > { %v5988_v55 = vpop.f32.mrf.mxu0  ;;  %v6148_v48 = vadd.f32 %v6132_v27, %v6098_v52  ;;  %v6219_v52 = vadd.f32 %v6203_v35, %v11225_v62  ;;  %v11618_v27 = vld [vmem:[#allocation28_spill] sm:$0xff]  ;;  %v11621_v35 = vld [vmem:[#allocation30_spill] sm:$0xff] }
0x22ab   : > { %v5989_v24 = vadd.f32 %v5988_v55, %v8054_v1  ;;  %v6128_v62 = vmul.f32 %v10287_v37, %v11618_v27 }
0x22ac   : > { %v5992_v11 = vpop.f32.mrf.mxu0 }
0x22ad   : > { %v5993_v43 = vadd.f32 %v5992_v11, %v11616_v57  ;;  %v6234_v11 = vmax.f32 %v10366_v53, 0.0  ;;  %v6012_v60 = vmax.f32 %v5989_v24, 0.0  ;;  %v6011_v24 = vmax.f32 %v5987_v2, 0.0 }
0x22ae   : > { %v5994_v8 = vpop.f32.mrf.mxu0  ;;  %v5965_v2 = vadd.f32 %v10273_v15, %v8127_v44  ;;  %v6133_v15 = vmul.f32 %v10311_v58, %v7631_v28  ;;  %v6099_v28 = vmul.f32 %v10308_v49, %v7623_v23 }
0x22af   : > { %v5995_v9 = vadd.f32 %v5994_v8, %v11616_v57  ;;  %v6239_v8 = vmax.f32 %v10357_v19, 0.0  ;;  %v6246_v19 = vpack.c.bf16 %v6236_v51, %v6234_v11 }
0x22b0   : > { %v5996_v41 = vpop.f32.mrf.mxu0 }
0x22b1   : > { %v5997_v7 = vadd.f32 %v5996_v41, %v11617_v34  ;;  %v6014_v30 = vmax.f32 %v5995_v9, 0.0  ;;  %v6013_v41 = vmax.f32 %v5993_v43, 0.0  ;;  %v5969_v43 = vadd.f32 %v10279_v40, %v8119_v18 }
0x22b2   : > { %v5998_v14 = vpop.f32.mrf.mxu0  ;;  %v10411_v40 = vadd.f32 %v6201_v36, %v11228_v13  ;;  %v6005_v13 = vmax.f32 %v5973_v25, 0.0  ;;  %v6003_v36 = vmax.f32 %v5967_v63, 0.0  ;;  %v11623_v63 = vld [vmem:[#allocation33_spill] sm:$0xff] }
0x22b3   : > { %v5999_v55 = vadd.f32 %v5998_v14, %v11617_v34  ;;  %v6015_v50 = vmax.f32 %v5997_v7, 0.0  ;;  %v6010_v7 = vmax.f32 %v5985_v31, 0.0  ;;  %v6008_v14 = vmax.f32 %v5979_v0, 0.0 }
0x22b4   : > { %v6100_v31 = vmul.f32 %v10284_v5, %v7623_v23  ;;  %v6182_v0 = vmul.f32 %v10305_v56, %v7637_v32  ;;  %v6004_v38 = vmax.f32 %v5969_v43, 0.0  ;;  %v6183_v23 = vmul.f32 %v10329_v17, %v11432_v21 }
0x22b5   : > { %v6016_v59 = vmax.f32 %v5999_v55, 0.0  ;;  %v6023_v9 = vpack.c.bf16 %v6015_v50, %v6013_v41  ;;  %v6022_v55 = vpack.c.bf16 %v6012_v60, %v6010_v7  ;;  %v6006_v50 = vmax.f32 %v5975_v42, 0.0 }
0x22b6   : > { %v6007_v60 = vmax.f32 %v5977_v12, 0.0  ;;  %v6150_v20 = vadd.f32 %v6134_v54, %v6100_v31  ;;  %v5963_v41 = vadd.f32 %v10270_v16, %v8127_v44  ;;  %v6097_v42 = vmul.f32 %v10308_v49, %v7618_v10  ;;  %v11619_v54 = vld [vmem:[#allocation29_spill] sm:$0xff] }
0x22b7   : > { %v6024_v6 = vpack.c.bf16 %v6016_v59, %v6014_v30  ;;  %v6021_v30 = vpack.c.bf16 %v6011_v24, %v6009_v29  ;;  %v6020_v59 = vpack.c.bf16 %v6008_v14, %v6006_v50  ;;  %v6002_v7 = vmax.f32 %v5965_v2, 0.0  ;;  %v11622_v2 = vld [vmem:[#allocation31_spill] sm:$0xff] }
0x22b8   : > { %v6019_v16 = vpack.c.bf16 %v6007_v60, %v6005_v13  ;;  %v6198_v12 = vadd.f32 %v6182_v0, %v6148_v48  ;;  %v6181_v24 = vmul.f32 %v10329_v17, %v7637_v32  ;;  %v6001_v43 = vmax.f32 %v5963_v41, 0.0  ;;  %v11620_v32 = vld [vmem:[#allocation14_spill] sm:$0xff]  ;;  %v11624_v41 = vld [vmem:[#allocation32_spill] sm:$0xff] }
0x22b9   : > { %6033 = vmatprep.subr.bf16.mxu1 %v6024_v6  ;;  %v6184_v6 = vmul.f32 %v10305_v56, %v11432_v21  ;;  %v6018_v10 = vpack.c.bf16 %v6004_v38, %v6002_v7  ;;  %v6094_v25 = vmul.f32 %v10284_v5, %v11619_v54  ;;  %v6130_v29 = vmul.f32 %v10287_v37, %v11620_v32 }
0x22ba   : > { %6034 = vmatpush1.bf16.msra.mxu1 %v6023_v9  ;;  %v6149_v9 = vadd.f32 %v6133_v15, %v6099_v28  ;;  %v6178_v31 = vmul.f32 %v10305_v56, %v11621_v35  ;;  %v6180_v50 = vmul.f32 %v10305_v56, %v11622_v2  ;;  %v6017_v0 = vpack.c.bf16 %v6003_v36, %v6001_v43 }
0x22bb   : > { %6035 = vmatprep.subr.bf16.mxu1 %v6022_v55  ;;  %v6200_v14 = vadd.f32 %v6184_v6, %v6150_v20  ;;  %v6147_v55 = vadd.f32 %v6131_v4, %v6097_v42  ;;  %v6127_v21 = vmul.f32 %v10311_v58, %v11618_v27  ;;  %v6144_v38 = vadd.f32 %v6128_v62, %v6094_v25  ;;  %v7210_v25 = vld [vmem:[%s10677_s3 + $0x8] sm:$0xff]  }
0x22bc   : > { %v6199_v5 = vadd.f32 %v6183_v23, %v6149_v9  ;;  %v6093_v37 = vmul.f32 %v10308_v49, %v11619_v54  ;;  %v6129_v56 = vmul.f32 %v10311_v58, %v11620_v32  ;;  %v6177_v20 = vmul.f32 %v10329_v17, %v11621_v35  ;;  %v7209_v54 = vld [vmem:[%s10677_s3] sm:$0xff]   ;;  %v7211_v32 = vld [vmem:[%s10677_s3 + $0x10] sm:$0xff]  }
0x22bd   : > { %v6216_v60 = vadd.f32 %v6200_v14, %v11623_v63  ;;  %v6197_v48 = vadd.f32 %v6181_v24, %v6147_v55  ;;  %v6247_v15 = vpack.c.bf16 %v6239_v8, %v6237_v39  ;;  %v6214_v13 = vadd.f32 %v6198_v12, %v11624_v41  ;;  %v11627_v24 = vld [vmem:[#allocation34_spill] sm:$0xff] }
0x22be   : > { %6036 = vmatpush1.bf16.msra.mxu1 %v6021_v30  ;;  %v6095_v30 = vmul.f32 %v10308_v49, %v11555_v45  ;;  %v6179_v45 = vmul.f32 %v10329_v17, %v11622_v2  ;;  %v6194_v42 = vadd.f32 %v6178_v31, %v6144_v38  ;;  %v6235_v4 = vmax.f32 %v6219_v52, 0.0  ;;  %v10469_v17 = vld [vmem:[%s10687_s13] sm:$0x3] }
0x22bf   : > { %6037 = vmatprep.subr.bf16.mxu1 %v6020_v59  ;;  %v6146_v59 = vadd.f32 %v6130_v29, %v6096_v33  ;;  %v6215_v58 = vadd.f32 %v6199_v5, %v11623_v63  ;;  %v6143_v7 = vadd.f32 %v6127_v21, %v6093_v37  ;;  %v6232_v61 = vmax.f32 %v6216_v60, 0.0  ;;  %v7212_v29 = vld [vmem:[%s10677_s3 + $0x18] sm:$0xff]   ;;  %v11628_v31 = vld [vmem:[#allocation26_spill] sm:$0xff] }
0x22c0   : > { %v6145_v6 = vadd.f32 %v6129_v56, %v6095_v30  ;;  %v6233_v8 = vmax.f32 %v10411_v40, 0.0  ;;  %v6213_v52 = vadd.f32 %v6197_v48, %v11624_v41  ;;  %v6230_v12 = vmax.f32 %v6214_v13, 0.0 }
0x22c1   : > { %v6196_v49 = vadd.f32 %v6180_v50, %v6146_v59  ;;  %v6193_v28 = vadd.f32 %v6177_v20, %v6143_v7  ;;  %v6231_v9 = vmax.f32 %v6215_v58, 0.0 }
0x22c2   : > { %6038 = vmatpush1.bf16.msra.mxu1 %v6019_v16  ;;  %v6195_v36 = vadd.f32 %v6179_v45, %v6145_v6  ;;  %v11626_v16 = vmov 0   ;;  %v6245_v53 = vpack.c.bf16 %v6235_v4, %v6233_v8  ;;  %v6244_v11 = vpack.c.bf16 %v6232_v61, %v6230_v12  ;;  %v11629_v6 = vld [vmem:[#allocation38_spill] sm:$0xff]  ;;  %v11630_v61 = vld [vmem:[#allocation37_spill] sm:$0xff] }
0x22c3   : > { %6039 = vmatprep.subr.bf16.mxu1 %v6018_v10  ;;  %v6212_v10 = vadd.f32 %v6196_v49, %v11627_v24  ;;  %v6229_v33 = vmax.f32 %v6213_v52, 0.0 }
0x22c4   : > { %v6211_v40 = vadd.f32 %v6195_v36, %v11627_v24  ;;  %v11632_v36 = vld [vmem:[#allocation39_spill] sm:$0xff] }
0x22c5   : > { %v6228_v27 = vmax.f32 %v6212_v10, 0.0  ;;  %v6243_v62 = vpack.c.bf16 %v6231_v9, %v6229_v33  ;;  %v11633_v9 = vld [vmem:[#allocation40_spill] sm:$0xff] }
0x22c6   : > { %6040 = vmatpush1.bf16.msra.mxu1 %v6017_v0  ;;  %v6227_v55 = vmax.f32 %v6211_v40, 0.0 }
0x22c7   : > { %6257 = vmatprep.subr.bf16.mxu1 %v10363_v46  ;;  %v11625_v46 = vld [vmem:[#allocation35_spill] sm:$0xff] }
0x22c8   : > { %v6210_v39 = vadd.f32 %v6194_v42, %v11625_v46  ;;  %v6209_v22 = vadd.f32 %v6193_v28, %v11625_v46 }
0x22c9   : > { %7013 = vmatmul.mubr.msk.bf16.vlgmr.msra.gmra.mxu1 %vm977_vm0, %v10469_v17 }
0x22ca   : > { %6258 = vmatpush1.bf16.msra.mxu1 %v6247_v15  ;;  %6281 = vmatprep.mubr.bf16.mxu1 %v11626_v16  ;;  %v6226_v51 = vmax.f32 %v6210_v39, 0.0  ;;  %v6225_v43 = vmax.f32 %v6209_v22, 0.0  ;;  %v11631_v39 = vld [vmem:[#allocation36_spill] sm:$0xff] }
0x22cb   : > { %6259 = vmatprep.subr.bf16.mxu1 %v6246_v19 }
0x22cc   : > { %v6242_v14 = vpack.c.bf16 %v6228_v27, %v6226_v51  ;;  %v6241_v23 = vpack.c.bf16 %v6227_v55, %v6225_v43 }
0x22ce   : > { %6260 = vmatpush1.bf16.msra.mxu1 %v6245_v53 }
0x22cf   : > { %6261 = vmatprep.subr.bf16.mxu1 %v6244_v11 }
0x22d2   : > { %6262 = vmatpush1.bf16.msra.mxu1 %v6243_v62  ;;  %v11634_v62 = vld [vmem:[#allocation41_spill] sm:$0xff] }
0x22d3   : > { %6263 = vmatprep.subr.bf16.mxu1 %v6242_v14 }
0x22d6   : > { %6264 = vmatpush1.bf16.msra.mxu1 %v6241_v23 }
0x22d9   : > { %7014 = vmatmul.mubr.msk.bf16.vlgmr.msra.gmra.mxu1 %vm977_vm0, %v7209_v54 }
0x22da   : > { %6291 = vmatprep.mubr.bf16.mxu1 %v11626_v16 }
0x22e1   : > { %7015 = vmatmul.mubr.msk.bf16.gmra.mxu1 %vm977_vm0, %v7210_v25 }
0x22e2   : > { %6301 = vmatprep.mubr.bf16.mxu1 %v11626_v16 }
0x22e9   : > { %7016 = vmatmul.mubr.msk.bf16.gmra.mxu1 %vm977_vm0, %v7211_v32  ;;  %v11635_v32 = vld [vmem:[#allocation42_spill] sm:$0xff] }
0x22ea   : > { %6311 = vmatprep.mubr.bf16.mxu1 %v11626_v16 }
0x22f1   : > { %7017 = vmatmul.mubr.msk.bf16.gmra.mxu1 %vm977_vm0, %v7212_v29 }
0x22f2   : > { %6475 = vmatprep.mubr.bf16.mxu1 %v11626_v16 }
0x2389   : > { %v6059_v35 = vpop.f32.mrf.mxu1 }
0x238a   : > { %v6060_v2 = vadd.f32 %v6059_v35, %v11628_v31 }
0x238b   : > { %v6061_v50 = vpop.f32.mrf.mxu1 }
0x238c   : > { %v6062_v0 = vadd.f32 %v6061_v50, %v11628_v31  ;;  %v6066_v60 = vmax.f32 %v6060_v2, 0.0 }
0x238d   : > { %v6063_v63 = vpop.f32.mrf.mxu1 }
0x238e   : > { %v6067_v30 = vmax.f32 %v6062_v0, 0.0  ;;  %v11636_v63 = vld [vmem:[#allocation43_spill] sm:$0xff] }
0x238f   : > { %v6064_v21 = vpop.f32.mrf.mxu1 }
0x2390   : > { %v6070_v48 = vcombine.low %v6066_v60, %v6067_v30 }
0x2392   : > { %6072 = vst [vmem:[%s8226_s21 + $0x30] sm:$0xff] %v6070_v48 }
0x2399   : > { %v6283_v5 = vpop.f32.mrf.mxu1 }
0x239b   : > { %v6285_v38 = vpop.f32.mrf.mxu1 }
0x239c   : > { %v6286_v60 = vadd.f32 %v6285_v38, %v11636_v63 }
0x239d   : > { %v6287_v59 = vpop.f32.mrf.mxu1 }
0x239e   : > { %v6288_v21 = vadd.f32 %v6287_v59, %v11635_v32  ;;  %v7213_v59 = vld [vmem:[%s10679_s5] sm:$0xff]  }
0x239f   : > { %v6289_v37 = vpop.f32.mrf.mxu1 }
0x23a0   : > { %v6290_v29 = vadd.f32 %v6289_v37, %v11635_v32 }
0x23a1   : > { %v6293_v56 = vpop.f32.mrf.mxu1 }
0x23a2   : > { %v6294_v50 = vadd.f32 %v6293_v56, %v11634_v62 }
0x23a3   : > { %v6295_v20 = vpop.f32.mrf.mxu1 }
0x23a4   : > { %v6296_v43 = vadd.f32 %v6295_v20, %v11634_v62  ;;  %v6326_v37 = vmax.f32 %v6294_v50, 0.0 }
0x23a5   : > { %v6297_v45 = vpop.f32.mrf.mxu1 }
0x23a6   : > { %v6298_v23 = vadd.f32 %v6297_v45, %v11633_v9  ;;  %v6327_v30 = vmax.f32 %v6296_v43, 0.0  ;;  %v6325_v45 = vmax.f32 %v6290_v29, 0.0  ;;  %v11641_v29 = vld [vmem:[#allocation48_spill] sm:$0xff] }
0x23a7   : > { %v6299_v15 = vpop.f32.mrf.mxu1 }
0x23a8   : > { %v6300_v22 = vadd.f32 %v6299_v15, %v11633_v9  ;;  %v6328_v48 = vmax.f32 %v6298_v23, 0.0 }
0x23a9   : > { %v6303_v41 = vpop.f32.mrf.mxu1 }
0x23aa   : > { %v6304_v40 = vadd.f32 %v6303_v41, %v11632_v36  ;;  %v6329_v35 = vmax.f32 %v6300_v22, 0.0  ;;  %v6284_v41 = vadd.f32 %v6283_v5, %v11636_v63  ;;  %v6340_v56 = vpack.c.bf16 %v6328_v48, %v6326_v37  ;;  %v7214_v5 = vld [vmem:[%s10679_s5 + $0x8] sm:$0xff]   ;;  %v11643_v37 = vld [vmem:[#allocation50_spill] sm:$0xff] }
0x23ab   : > { %v6305_v13 = vpop.f32.mrf.mxu1 }
0x23ac   : > { %v6306_v12 = vadd.f32 %v6305_v13, %v11632_v36  ;;  %v6330_v0 = vmax.f32 %v6304_v40, 0.0  ;;  %v6341_v15 = vpack.c.bf16 %v6329_v35, %v6327_v30  ;;  %v6323_v13 = vmax.f32 %v6286_v60, 0.0  ;;  %v11642_v30 = vld [vmem:[#allocation49_spill] sm:$0xff] }
0x23ad   : > { %v6307_v42 = vpop.f32.mrf.mxu1 }
0x23ae   : > { %v6308_v10 = vadd.f32 %v6307_v42, %v11629_v6  ;;  %v6331_v14 = vmax.f32 %v6306_v12, 0.0  ;;  %v6324_v42 = vmax.f32 %v6288_v21, 0.0 }
0x23af   : > { %v6309_v49 = vpop.f32.mrf.mxu1 }
0x23b0   : > { %v6310_v19 = vadd.f32 %v6309_v49, %v11629_v6  ;;  %v6332_v54 = vmax.f32 %v6308_v10, 0.0  ;;  %v6339_v49 = vpack.c.bf16 %v6325_v45, %v6323_v13 }
0x23b1   : > { %v6313_v4 = vpop.f32.mrf.mxu1 }
0x23b2   : > { %v6314_v52 = vadd.f32 %v6313_v4, %v11630_v61  ;;  %v6333_v11 = vmax.f32 %v6310_v19, 0.0  ;;  %v6342_v20 = vpack.c.bf16 %v6332_v54, %v6330_v0  ;;  %v6322_v4 = vmax.f32 %v6284_v41, 0.0 }
0x23b3   : > { %v6315_v58 = vpop.f32.mrf.mxu1 }
0x23b4   : > { %v6316_v46 = vadd.f32 %v6315_v58, %v11630_v61  ;;  %v6334_v27 = vmax.f32 %v6314_v52, 0.0  ;;  %v6343_v2 = vpack.c.bf16 %v6333_v11, %v6331_v14  ;;  %v6338_v38 = vpack.c.bf16 %v6324_v42, %v6322_v4  ;;  %v7215_v58 = vld [vmem:[%s10679_s5 + $0x10] sm:$0xff]   ;;  %v11637_v11 = vld [vmem:[#allocation46_spill] sm:$0xff] }
0x23b5   : > { %v6317_v7 = vpop.f32.mrf.mxu1 }
0x23b6   : > { %v6318_v8 = vadd.f32 %v6317_v7, %v11631_v39  ;;  %v6335_v51 = vmax.f32 %v6316_v46, 0.0  ;;  %v7216_v7 = vld [vmem:[%s10679_s5 + $0x18] sm:$0xff]  }
0x23b7   : > { %v6319_v28 = vpop.f32.mrf.mxu1 }
0x23b8   : > { %v6320_v24 = vadd.f32 %v6319_v28, %v11631_v39  ;;  %v6336_v53 = vmax.f32 %v6318_v8, 0.0 }
0x23ba   : > { %v6337_v33 = vmax.f32 %v6320_v24, 0.0  ;;  %v6344_v25 = vpack.c.bf16 %v6336_v53, %v6334_v27  ;;  %v11639_v27 = vld [vmem:[#allocation44_spill] sm:$0xff] }
0x23bc   : > { %v6345_v55 = vpack.c.bf16 %v6337_v33, %v6335_v51  ;;  %v11638_v33 = vld [vmem:[#allocation45_spill] sm:$0xff] }
0x23be   : > { %6354 = vmatprep.subr.bf16.mxu0 %v6345_v55  ;;  %v11640_v55 = vld [vmem:[#allocation47_spill] sm:$0xff] }
0x23bf   : > { %6355 = vmatpush1.bf16.msra.mxu0 %v6344_v25 }
0x23c0   : > { %6356 = vmatprep.subr.bf16.mxu0 %v6343_v2 }
0x23c3   : > { %6357 = vmatpush1.bf16.msra.mxu0 %v6342_v20 }
0x23c4   : > { %6358 = vmatprep.subr.bf16.mxu0 %v6341_v15 }
0x23c7   : > { %6359 = vmatpush1.bf16.msra.mxu0 %v6340_v56 }
0x23c8   : > { %6360 = vmatprep.subr.bf16.mxu0 %v6339_v49 }
0x23cb   : > { %6361 = vmatpush1.bf16.msra.mxu0 %v6338_v38  ;;  %v11644_v38 = vld [vmem:[#allocation51_spill] sm:$0xff] }
0x23ce   : > { %7018 = vmatmul.mubr.msk.bf16.vlgmr.msra.gmra.mxu0 %vm977_vm0, %v7213_v59 }
0x23cf   : > { %6388 = vmatprep.mubr.bf16.mxu0 %v11626_v16 }
0x23d6   : > { %7019 = vmatmul.mubr.msk.bf16.gmra.mxu0 %vm977_vm0, %v7214_v5 }
0x23d7   : > { %6398 = vmatprep.mubr.bf16.mxu0 %v11626_v16 }
0x23de   : > { %7020 = vmatmul.mubr.msk.bf16.gmra.mxu0 %vm977_vm0, %v7215_v58 }
0x23df   : > { %6408 = vmatprep.mubr.bf16.mxu0 %v11626_v16 }
0x23e6   : > { %7021 = vmatmul.mubr.msk.bf16.gmra.mxu0 %vm977_vm0, %v7216_v7 }
0x23e7   : > { %6572 = vmatprep.mubr.bf16.mxu0 %v11626_v16 }
0x248e   : > { %v6380_v6 = vpop.f32.mrf.mxu0 }
0x2490   : > { %v6382_v19 = vpop.f32.mrf.mxu0 }
0x2491   : > { %v6383_v59 = vadd.f32 %v6382_v19, %v11644_v38 }
0x2492   : > { %v6384_v61 = vpop.f32.mrf.mxu0 }
0x2493   : > { %v6385_v58 = vadd.f32 %v6384_v61, %v11643_v37  ;;  %v7217_v61 = vld [vmem:[%s10681_s7] sm:$0xff]  }
0x2494   : > { %v6386_v46 = vpop.f32.mrf.mxu0 }
0x2495   : > { %v6387_v13 = vadd.f32 %v6386_v46, %v11643_v37 }
0x2496   : > { %v6390_v39 = vpop.f32.mrf.mxu0 }
0x2497   : > { %v6391_v49 = vadd.f32 %v6390_v39, %v11642_v30 }
0x2498   : > { %v6392_v8 = vpop.f32.mrf.mxu0 }
0x2499   : > { %v6393_v21 = vadd.f32 %v6392_v8, %v11642_v30  ;;  %v6423_v46 = vmax.f32 %v6391_v49, 0.0 }
0x249a   : > { %v6394_v52 = vpop.f32.mrf.mxu0 }
0x249b   : > { %v6395_v45 = vadd.f32 %v6394_v52, %v11641_v29  ;;  %v6424_v5 = vmax.f32 %v6393_v21, 0.0  ;;  %v6422_v52 = vmax.f32 %v6387_v13, 0.0  ;;  %v11649_v13 = vld [vmem:[#allocation56_spill] sm:$0xff] }
0x249c   : > { %v6396_v28 = vpop.f32.mrf.mxu0 }
0x249d   : > { %v6397_v35 = vadd.f32 %v6396_v28, %v11641_v29  ;;  %v6425_v7 = vmax.f32 %v6395_v45, 0.0 }
0x249e   : > { %v6400_v36 = vpop.f32.mrf.mxu0 }
0x249f   : > { %v6401_v63 = vadd.f32 %v6400_v36, %v11640_v55  ;;  %v6426_v42 = vmax.f32 %v6397_v35, 0.0  ;;  %v6381_v36 = vadd.f32 %v6380_v6, %v11644_v38  ;;  %v6437_v39 = vpack.c.bf16 %v6425_v7, %v6423_v46  ;;  %v7218_v6 = vld [vmem:[%s10681_s7 + $0x8] sm:$0xff]   ;;  %v11651_v46 = vld [vmem:[#allocation58_spill] sm:$0xff] }
0x24a0   : > { %v6402_v12 = vpop.f32.mrf.mxu0 }
0x24a1   : > { %v6403_v23 = vadd.f32 %v6402_v12, %v11640_v55  ;;  %v6427_v4 = vmax.f32 %v6401_v63, 0.0  ;;  %v6438_v28 = vpack.c.bf16 %v6426_v42, %v6424_v5  ;;  %v6420_v12 = vmax.f32 %v6383_v59, 0.0  ;;  %v11650_v5 = vld [vmem:[#allocation57_spill] sm:$0xff] }
0x24a2   : > { %v6404_v24 = vpop.f32.mrf.mxu0 }
0x24a3   : > { %v6405_v25 = vadd.f32 %v6404_v24, %v11637_v11  ;;  %v6428_v48 = vmax.f32 %v6403_v23, 0.0  ;;  %v6421_v24 = vmax.f32 %v6385_v58, 0.0 }
0x24a4   : > { %v6406_v10 = vpop.f32.mrf.mxu0 }
0x24a5   : > { %v6407_v51 = vadd.f32 %v6406_v10, %v11637_v11  ;;  %v6429_v15 = vmax.f32 %v6405_v25, 0.0  ;;  %v6436_v10 = vpack.c.bf16 %v6422_v52, %v6420_v12 }
0x24a6   : > { %v6410_v53 = vpop.f32.mrf.mxu0 }
0x24a7   : > { %v6411_v43 = vadd.f32 %v6410_v53, %v11638_v33  ;;  %v6430_v2 = vmax.f32 %v6407_v51, 0.0  ;;  %v6439_v8 = vpack.c.bf16 %v6429_v15, %v6427_v4  ;;  %v6419_v53 = vmax.f32 %v6381_v36, 0.0 }
0x24a8   : > { %v6412_v9 = vpop.f32.mrf.mxu0 }
0x24a9   : > { %v6413_v40 = vadd.f32 %v6412_v9, %v11638_v33  ;;  %v6431_v60 = vmax.f32 %v6411_v43, 0.0  ;;  %v6440_v56 = vpack.c.bf16 %v6430_v2, %v6428_v48  ;;  %v6435_v19 = vpack.c.bf16 %v6421_v24, %v6419_v53  ;;  %v7219_v9 = vld [vmem:[%s10681_s7 + $0x10] sm:$0xff]   ;;  %v11645_v2 = vld [vmem:[#allocation54_spill] sm:$0xff] }
0x24aa   : > { %v6414_v22 = vpop.f32.mrf.mxu0 }
0x24ab   : > { %v6415_v62 = vadd.f32 %v6414_v22, %v11639_v27  ;;  %v6432_v50 = vmax.f32 %v6413_v40, 0.0  ;;  %v7220_v22 = vld [vmem:[%s10681_s7 + $0x18] sm:$0xff]  }
0x24ac   : > { %v6416_v14 = vpop.f32.mrf.mxu0 }
0x24ad   : > { %v6417_v54 = vadd.f32 %v6416_v14, %v11639_v27  ;;  %v6433_v32 = vmax.f32 %v6415_v62, 0.0 }
0x24af   : > { %v6434_v0 = vmax.f32 %v6417_v54, 0.0  ;;  %v6441_v41 = vpack.c.bf16 %v6433_v32, %v6431_v60  ;;  %v11647_v60 = vld [vmem:[#allocation52_spill] sm:$0xff] }
0x24b1   : > { %v6442_v20 = vpack.c.bf16 %v6434_v0, %v6432_v50  ;;  %v11646_v0 = vld [vmem:[#allocation53_spill] sm:$0xff] }
0x24b3   : > { %6451 = vmatprep.subr.bf16.mxu1 %v6442_v20  ;;  %v11648_v20 = vld [vmem:[#allocation55_spill] sm:$0xff] }
0x24b4   : > { %6452 = vmatpush1.bf16.msra.mxu1 %v6441_v41 }
0x24b5   : > { %6453 = vmatprep.subr.bf16.mxu1 %v6440_v56 }
0x24b8   : > { %6454 = vmatpush1.bf16.msra.mxu1 %v6439_v8 }
0x24b9   : > { %6455 = vmatprep.subr.bf16.mxu1 %v6438_v28 }
0x24bc   : > { %6456 = vmatpush1.bf16.msra.mxu1 %v6437_v39 }
0x24bd   : > { %6457 = vmatprep.subr.bf16.mxu1 %v6436_v10 }
0x24c0   : > { %6458 = vmatpush1.bf16.msra.mxu1 %v6435_v19  ;;  %v11652_v19 = vld [vmem:[#allocation59_spill] sm:$0xff] }
0x24c3   : > { %7022 = vmatmul.mubr.msk.bf16.vlgmr.msra.gmra.mxu1 %vm977_vm0, %v7217_v61 }
0x24c4   : > { %6485 = vmatprep.mubr.bf16.mxu1 %v11626_v16 }
0x24cb   : > { %7023 = vmatmul.mubr.msk.bf16.gmra.mxu1 %vm977_vm0, %v7218_v6 }
0x24cc   : > { %6495 = vmatprep.mubr.bf16.mxu1 %v11626_v16 }
0x24d3   : > { %7024 = vmatmul.mubr.msk.bf16.gmra.mxu1 %vm977_vm0, %v7219_v9 }
0x24d4   : > { %6505 = vmatprep.mubr.bf16.mxu1 %v11626_v16 }
0x24db   : > { %7025 = vmatmul.mubr.msk.bf16.gmra.mxu1 %vm977_vm0, %v7220_v22 }
0x24dc   : > { %6669 = vmatprep.mubr.bf16.mxu1 %v11626_v16 }
0x2583   : > { %v6477_v11 = vpop.f32.mrf.mxu1 }
0x2585   : > { %v6479_v51 = vpop.f32.mrf.mxu1 }
0x2586   : > { %v6480_v61 = vadd.f32 %v6479_v51, %v11652_v19 }
0x2587   : > { %v6481_v33 = vpop.f32.mrf.mxu1 }
0x2588   : > { %v6482_v9 = vadd.f32 %v6481_v33, %v11651_v46  ;;  %v7221_v33 = vld [vmem:[%s10683_s9] sm:$0xff]  }
0x2589   : > { %v6483_v40 = vpop.f32.mrf.mxu1 }
0x258a   : > { %v6484_v12 = vadd.f32 %v6483_v40, %v11651_v46 }
0x258b   : > { %v6487_v27 = vpop.f32.mrf.mxu1 }
0x258c   : > { %v6488_v10 = vadd.f32 %v6487_v27, %v11650_v5 }
0x258d   : > { %v6489_v62 = vpop.f32.mrf.mxu1 }
0x258e   : > { %v6490_v58 = vadd.f32 %v6489_v62, %v11650_v5  ;;  %v6520_v40 = vmax.f32 %v6488_v10, 0.0 }
0x258f   : > { %v6491_v43 = vpop.f32.mrf.mxu1 }
0x2590   : > { %v6492_v52 = vadd.f32 %v6491_v43, %v11649_v13  ;;  %v6521_v6 = vmax.f32 %v6490_v58, 0.0  ;;  %v6519_v43 = vmax.f32 %v6484_v12, 0.0  ;;  %v11657_v12 = vld [vmem:[#allocation64_spill] sm:$0xff] }
0x2591   : > { %v6493_v14 = vpop.f32.mrf.mxu1 }
0x2592   : > { %v6494_v42 = vadd.f32 %v6493_v14, %v11649_v13  ;;  %v6522_v22 = vmax.f32 %v6492_v52, 0.0 }
0x2593   : > { %v6497_v55 = vpop.f32.mrf.mxu1 }
0x2594   : > { %v6498_v38 = vadd.f32 %v6497_v55, %v11648_v20  ;;  %v6523_v24 = vmax.f32 %v6494_v42, 0.0  ;;  %v6478_v55 = vadd.f32 %v6477_v11, %v11652_v19  ;;  %v6534_v27 = vpack.c.bf16 %v6522_v22, %v6520_v40  ;;  %v7222_v11 = vld [vmem:[%s10683_s9 + $0x8] sm:$0xff]   ;;  %v11659_v40 = vld [vmem:[#allocation66_spill] sm:$0xff] }
0x2595   : > { %v6499_v23 = vpop.f32.mrf.mxu1 }
0x2596   : > { %v6500_v45 = vadd.f32 %v6499_v23, %v11648_v20  ;;  %v6524_v53 = vmax.f32 %v6498_v38, 0.0  ;;  %v6535_v14 = vpack.c.bf16 %v6523_v24, %v6521_v6  ;;  %v6517_v23 = vmax.f32 %v6480_v61, 0.0  ;;  %v11658_v6 = vld [vmem:[#allocation65_spill] sm:$0xff] }
0x2597   : > { %v6501_v54 = vpop.f32.mrf.mxu1 }
0x2598   : > { %v6502_v41 = vadd.f32 %v6501_v54, %v11645_v2  ;;  %v6525_v7 = vmax.f32 %v6500_v45, 0.0  ;;  %v6518_v54 = vmax.f32 %v6482_v9, 0.0 }
0x2599   : > { %v6503_v25 = vpop.f32.mrf.mxu1 }
0x259a   : > { %v6504_v50 = vadd.f32 %v6503_v25, %v11645_v2  ;;  %v6526_v28 = vmax.f32 %v6502_v41, 0.0  ;;  %v6533_v25 = vpack.c.bf16 %v6519_v43, %v6517_v23 }
0x259b   : > { %v6507_v32 = vpop.f32.mrf.mxu1 }
0x259c   : > { %v6508_v21 = vadd.f32 %v6507_v32, %v11646_v0  ;;  %v6527_v56 = vmax.f32 %v6504_v50, 0.0  ;;  %v6536_v62 = vpack.c.bf16 %v6526_v28, %v6524_v53  ;;  %v6516_v32 = vmax.f32 %v6478_v55, 0.0 }
0x259d   : > { %v6509_v29 = vpop.f32.mrf.mxu1 }
0x259e   : > { %v6510_v63 = vadd.f32 %v6509_v29, %v11646_v0  ;;  %v6528_v59 = vmax.f32 %v6508_v21, 0.0  ;;  %v6537_v39 = vpack.c.bf16 %v6527_v56, %v6525_v7  ;;  %v6532_v51 = vpack.c.bf16 %v6518_v54, %v6516_v32  ;;  %v7223_v29 = vld [vmem:[%s10683_s9 + $0x10] sm:$0xff]   ;;  %v11653_v56 = vld [vmem:[#allocation62_spill] sm:$0xff] }
0x259f   : > { %v6511_v35 = vpop.f32.mrf.mxu1 }
0x25a0   : > { %v6512_v30 = vadd.f32 %v6511_v35, %v11647_v60  ;;  %v6529_v49 = vmax.f32 %v6510_v63, 0.0  ;;  %v7224_v35 = vld [vmem:[%s10683_s9 + $0x18] sm:$0xff]  }
0x25a1   : > { %v6513_v48 = vpop.f32.mrf.mxu1 }
0x25a2   : > { %v6514_v15 = vadd.f32 %v6513_v48, %v11647_v60  ;;  %v6530_v37 = vmax.f32 %v6512_v30, 0.0 }
0x25a4   : > { %v6531_v4 = vmax.f32 %v6514_v15, 0.0  ;;  %v6538_v36 = vpack.c.bf16 %v6530_v37, %v6528_v59  ;;  %v11655_v59 = vld [vmem:[#allocation60_spill] sm:$0xff] }
0x25a6   : > { %v6539_v8 = vpack.c.bf16 %v6531_v4, %v6529_v49  ;;  %v11654_v4 = vld [vmem:[#allocation61_spill] sm:$0xff] }
0x25a8   : > { %6548 = vmatprep.subr.bf16.mxu0 %v6539_v8  ;;  %v11656_v8 = vld [vmem:[#allocation63_spill] sm:$0xff] }
0x25a9   : > { %6549 = vmatpush1.bf16.msra.mxu0 %v6538_v36 }
0x25aa   : > { %6550 = vmatprep.subr.bf16.mxu0 %v6537_v39 }
0x25ad   : > { %6551 = vmatpush1.bf16.msra.mxu0 %v6536_v62 }
0x25ae   : > { %6552 = vmatprep.subr.bf16.mxu0 %v6535_v14 }
0x25b1   : > { %6553 = vmatpush1.bf16.msra.mxu0 %v6534_v27 }
0x25b2   : > { %6554 = vmatprep.subr.bf16.mxu0 %v6533_v25 }
0x25b5   : > { %6555 = vmatpush1.bf16.msra.mxu0 %v6532_v51  ;;  %v11660_v51 = vld [vmem:[#allocation67_spill] sm:$0xff] }
0x25b8   : > { %7026 = vmatmul.mubr.msk.bf16.vlgmr.msra.gmra.mxu0 %vm977_vm0, %v7221_v33 }
0x25b9   : > { %6582 = vmatprep.mubr.bf16.mxu0 %v11626_v16 }
0x25c0   : > { %7027 = vmatmul.mubr.msk.bf16.gmra.mxu0 %vm977_vm0, %v7222_v11 }
0x25c1   : > { %6592 = vmatprep.mubr.bf16.mxu0 %v11626_v16 }
0x25c8   : > { %7028 = vmatmul.mubr.msk.bf16.gmra.mxu0 %vm977_vm0, %v7223_v29 }
0x25c9   : > { %6602 = vmatprep.mubr.bf16.mxu0 %v11626_v16 }
0x25d0   : > { %7029 = vmatmul.mubr.msk.bf16.gmra.mxu0 %vm977_vm0, %v7224_v35 }
0x25d1   : > { %6766 = vmatprep.mubr.bf16.mxu0 %v11626_v16 }
0x2678   : > { %v6574_v2 = vpop.f32.mrf.mxu0 }
0x267a   : > { %v6576_v50 = vpop.f32.mrf.mxu0 }
0x267b   : > { %v6577_v33 = vadd.f32 %v6576_v50, %v11660_v51 }
0x267c   : > { %v6578_v0 = vpop.f32.mrf.mxu0 }
0x267d   : > { %v6579_v29 = vadd.f32 %v6578_v0, %v11659_v40  ;;  %v7225_v0 = vld [vmem:[%s10685_s11] sm:$0xff]  }
0x267e   : > { %v6580_v63 = vpop.f32.mrf.mxu0 }
0x267f   : > { %v6581_v23 = vadd.f32 %v6580_v63, %v11659_v40 }
0x2680   : > { %v6584_v60 = vpop.f32.mrf.mxu0 }
0x2681   : > { %v6585_v25 = vadd.f32 %v6584_v60, %v11658_v6 }
0x2682   : > { %v6586_v30 = vpop.f32.mrf.mxu0 }
0x2683   : > { %v6587_v9 = vadd.f32 %v6586_v30, %v11658_v6  ;;  %v6617_v63 = vmax.f32 %v6585_v25, 0.0 }
0x2684   : > { %v6588_v21 = vpop.f32.mrf.mxu0 }
0x2685   : > { %v6589_v43 = vadd.f32 %v6588_v21, %v11657_v12  ;;  %v6618_v11 = vmax.f32 %v6587_v9, 0.0  ;;  %v6616_v21 = vmax.f32 %v6581_v23, 0.0 }
0x2686   : > { %v6590_v48 = vpop.f32.mrf.mxu0 }
0x2687   : > { %v6591_v24 = vadd.f32 %v6590_v48, %v11657_v12  ;;  %v6619_v35 = vmax.f32 %v6589_v43, 0.0 }
0x2688   : > { %v6594_v20 = vpop.f32.mrf.mxu0 }
0x2689   : > { %v6595_v19 = vadd.f32 %v6594_v20, %v11656_v8  ;;  %v6620_v54 = vmax.f32 %v6591_v24, 0.0  ;;  %v6575_v20 = vadd.f32 %v6574_v2, %v11660_v51  ;;  %v6631_v60 = vpack.c.bf16 %v6619_v35, %v6617_v63  ;;  %v7226_v2 = vld [vmem:[%s10685_s11 + $0x8] sm:$0xff]  }
0x268a   : > { %v6596_v45 = vpop.f32.mrf.mxu0 }
0x268b   : > { %v6597_v52 = vadd.f32 %v6596_v45, %v11656_v8  ;;  %v6621_v32 = vmax.f32 %v6595_v19, 0.0  ;;  %v6632_v48 = vpack.c.bf16 %v6620_v54, %v6618_v11  ;;  %v6614_v45 = vmax.f32 %v6577_v33, 0.0 }
0x268c   : > { %v6598_v15 = vpop.f32.mrf.mxu0 }
0x268d   : > { %v6599_v36 = vadd.f32 %v6598_v15, %v11653_v56  ;;  %v6622_v22 = vmax.f32 %v6597_v52, 0.0  ;;  %v6615_v15 = vmax.f32 %v6579_v29, 0.0 }
0x268e   : > { %v6600_v41 = vpop.f32.mrf.mxu0 }
0x268f   : > { %v6601_v49 = vadd.f32 %v6600_v41, %v11653_v56  ;;  %v6623_v14 = vmax.f32 %v6599_v36, 0.0  ;;  %v6630_v41 = vpack.c.bf16 %v6616_v21, %v6614_v45 }
0x2690   : > { %v6604_v37 = vpop.f32.mrf.mxu0 }
0x2691   : > { %v6605_v58 = vadd.f32 %v6604_v37, %v11654_v4  ;;  %v6624_v39 = vmax.f32 %v6601_v49, 0.0  ;;  %v6633_v30 = vpack.c.bf16 %v6623_v14, %v6621_v32  ;;  %v6613_v37 = vmax.f32 %v6575_v20, 0.0 }
0x2692   : > { %v6606_v13 = vpop.f32.mrf.mxu0 }
0x2693   : > { %v6607_v38 = vadd.f32 %v6606_v13, %v11654_v4  ;;  %v6625_v61 = vmax.f32 %v6605_v58, 0.0  ;;  %v6634_v27 = vpack.c.bf16 %v6624_v39, %v6622_v22  ;;  %v6629_v50 = vpack.c.bf16 %v6615_v15, %v6613_v37  ;;  %v7227_v13 = vld [vmem:[%s10685_s11 + $0x10] sm:$0xff]  }
0x2694   : > { %v6608_v42 = vpop.f32.mrf.mxu0 }
0x2695   : > { %v6609_v5 = vadd.f32 %v6608_v42, %v11655_v59  ;;  %v6626_v10 = vmax.f32 %v6607_v38, 0.0  ;;  %v7228_v42 = vld [vmem:[%s10685_s11 + $0x18] sm:$0xff]  }
0x2696   : > { %v6610_v7 = vpop.f32.mrf.mxu0 }
0x2697   : > { %v6611_v28 = vadd.f32 %v6610_v7, %v11655_v59  ;;  %v6627_v46 = vmax.f32 %v6609_v5, 0.0 }
0x2699   : > { %v6628_v53 = vmax.f32 %v6611_v28, 0.0  ;;  %v6635_v55 = vpack.c.bf16 %v6627_v46, %v6625_v61 }
0x269b   : > { %v6636_v62 = vpack.c.bf16 %v6628_v53, %v6626_v10 }
0x269d   : > { %6645 = vmatprep.subr.bf16.mxu1 %v6636_v62 }
0x269e   : > { %6646 = vmatpush1.bf16.msra.mxu1 %v6635_v55 }
0x269f   : > { %6647 = vmatprep.subr.bf16.mxu1 %v6634_v27 }
0x26a2   : > { %6648 = vmatpush1.bf16.msra.mxu1 %v6633_v30 }
0x26a3   : > { %6649 = vmatprep.subr.bf16.mxu1 %v6632_v48 }
0x26a6   : > { %6650 = vmatpush1.bf16.msra.mxu1 %v6631_v60 }
0x26a7   : > { %6651 = vmatprep.subr.bf16.mxu1 %v6630_v41 }
0x26aa   : > { %6652 = vmatpush1.bf16.msra.mxu1 %v6629_v50 }
0x26ad   : > { %7030 = vmatmul.mubr.msk.bf16.vlgmr.msra.gmra.mxu1 %vm977_vm0, %v7225_v0 }
0x26ae   : > { %6679 = vmatprep.mubr.bf16.mxu1 %v11626_v16 }
0x26b5   : > { %7031 = vmatmul.mubr.msk.bf16.gmra.mxu1 %vm977_vm0, %v7226_v2 }
0x26b6   : > { %6689 = vmatprep.mubr.bf16.mxu1 %v11626_v16 }
0x26bd   : > { %7032 = vmatmul.mubr.msk.bf16.gmra.mxu1 %vm977_vm0, %v7227_v13 }
0x26be   : > { %6699 = vmatprep.mubr.bf16.mxu1 %v11626_v16 }
0x26c5   : > { %7033 = vmatmul.mubr.msk.bf16.gmra.mxu1 %vm977_vm0, %v7228_v42 }
0x276d   : > { %v6671_v56 = vpop.f32.mrf.mxu1 }
0x276e   : > { %v6672_v63 = vadd.f32 %v6671_v56, %v8127_v44 }
0x276f   : > { %v6673_v49 = vpop.f32.mrf.mxu1 }
0x2770   : > { %v6710_v37 = vmax.f32 %v6672_v63, 0.0 }
0x2771   : > { %v6675_v4 = vpop.f32.mrf.mxu1 }
0x2772   : > { %v6676_v30 = vadd.f32 %v6675_v4, %v8119_v18 }
0x2773   : > { %v6677_v38 = vpop.f32.mrf.mxu1 }
0x2774   : > { %v6712_v60 = vmax.f32 %v6676_v30, 0.0 }
0x2775   : > { %v6681_v59 = vpop.f32.mrf.mxu1 }
0x2776   : > { %v6682_v11 = vadd.f32 %v6681_v59, %v8106_v26  ;;  %v6726_v50 = vpack.c.bf16 %v6712_v60, %v6710_v37 }
0x2777   : > { %v6683_v5 = vpop.f32.mrf.mxu1 }
0x2778   : > { %v6684_v54 = vadd.f32 %v6683_v5, %v8106_v26  ;;  %v6714_v45 = vmax.f32 %v6682_v11, 0.0 }
0x2779   : > { %v6685_v58 = vpop.f32.mrf.mxu1 }
0x277a   : > { %v6686_v25 = vadd.f32 %v6685_v58, %v8098_v3  ;;  %v6715_v35 = vmax.f32 %v6684_v54, 0.0 }
0x277b   : > { %v6687_v7 = vpop.f32.mrf.mxu1 }
0x277c   : > { %v6688_v62 = vadd.f32 %v6687_v7, %v8098_v3  ;;  %v6716_v21 = vmax.f32 %v6686_v25, 0.0 }
0x277d   : > { %v6691_v8 = vpop.f32.mrf.mxu1 }
0x277e   : > { %v6692_v40 = vadd.f32 %v6691_v8, %v11491_v47  ;;  %v6728_v26 = vpack.c.bf16 %v6716_v21, %v6714_v45 }
0x277f   : > { %v6693_v52 = vpop.f32.mrf.mxu1 }
0x2780   : > { %v6694_v61 = vadd.f32 %v6693_v52, %v11491_v47  ;;  %v6718_v29 = vmax.f32 %v6692_v40, 0.0  ;;  %v6674_v47 = vadd.f32 %v6673_v49, %v8127_v44 }
0x2781   : > { %v6695_v28 = vpop.f32.mrf.mxu1 }
0x2782   : > { %v6696_v9 = vadd.f32 %v6695_v28, %v8054_v1  ;;  %v6719_v27 = vmax.f32 %v6694_v61, 0.0  ;;  %v6711_v15 = vmax.f32 %v6674_v47, 0.0 }
0x2783   : > { %v6697_v36 = vpop.f32.mrf.mxu1 }
0x2784   : > { %v6698_v24 = vadd.f32 %v6697_v36, %v8054_v1  ;;  %v6720_v32 = vmax.f32 %v6696_v9, 0.0  ;;  %v6717_v1 = vmax.f32 %v6688_v62, 0.0 }
0x2785   : > { %v6701_v46 = vpop.f32.mrf.mxu1 }
0x2786   : > { %v6702_v53 = vadd.f32 %v6701_v46, %v11616_v57  ;;  %v6721_v43 = vmax.f32 %v6698_v24, 0.0  ;;  %v6730_v48 = vpack.c.bf16 %v6720_v32, %v6718_v29  ;;  %v6729_v20 = vpack.c.bf16 %v6717_v1, %v6715_v35 }
0x2787   : > { %v6703_v16 = vpop.f32.mrf.mxu1 }
0x2788   : > { %v6704_v39 = vadd.f32 %v6703_v16, %v11616_v57  ;;  %v6722_v23 = vmax.f32 %v6702_v53, 0.0  ;;  %v6731_v33 = vpack.c.bf16 %v6721_v43, %v6719_v27 }
0x2789   : > { %v6705_v12 = vpop.f32.mrf.mxu1 }
0x278a   : > { %v6706_v10 = vadd.f32 %v6705_v12, %v11617_v34  ;;  %v6723_v14 = vmax.f32 %v6704_v39, 0.0 }
0x278b   : > { %v6707_v19 = vpop.f32.mrf.mxu1 }
0x278c   : > { %v6708_v6 = vadd.f32 %v6707_v19, %v11617_v34  ;;  %v6724_v22 = vmax.f32 %v6706_v10, 0.0  ;;  %v6678_v34 = vadd.f32 %v6677_v38, %v8119_v18 }
0x278e   : > { %v6725_v55 = vmax.f32 %v6708_v6, 0.0  ;;  %v6732_v51 = vpack.c.bf16 %v6724_v22, %v6722_v23  ;;  %v6713_v3 = vmax.f32 %v6678_v34, 0.0 }
0x2790   : > { %v6733_v57 = vpack.c.bf16 %v6725_v55, %v6723_v14  ;;  %v6727_v41 = vpack.c.bf16 %v6713_v3, %v6711_v15 }
0x2792   : > { %6742 = vmatprep.subr.bf16.mxu0 %v6733_v57 }
0x2793   : > { %6743 = vmatpush1.bf16.msra.mxu0 %v6732_v51 }
0x2794   : > { %6744 = vmatprep.subr.bf16.mxu0 %v6731_v33 }
0x2797   : > { %6745 = vmatpush1.bf16.msra.mxu0 %v6730_v48 }
0x2798   : > { %6746 = vmatprep.subr.bf16.mxu0 %v6729_v20 }
0x279b   : > { %6747 = vmatpush1.bf16.msra.mxu0 %v6728_v26 }
0x279c   : > { %6748 = vmatprep.subr.bf16.mxu0 %v6727_v41 }
0x279f   : > { %6749 = vmatpush1.bf16.msra.mxu0 %v6726_v50 }
0x27a2   : > { %7034 = vmatmul.mubr.msk.bf16.vlgmr.msra.gmra.mxu0 %vm977_vm0, %v10469_v17 }
0x2862   : > { %v6768_v18 = vpop.f32.mrf.mxu0 }
0x2863   : > { %v6769_v0 = vadd.f32 %v6768_v18, %v11628_v31 }
0x2864   : > { %v6770_v44 = vpop.f32.mrf.mxu0 }
0x2865   : > { %v6771_v2 = vadd.f32 %v6770_v44, %v11628_v31  ;;  %v6775_v42 = vmax.f32 %v6769_v0, 0.0 }
0x2866   : > { %v6772_v13 = vpop.f32.mrf.mxu0 }
0x2867   : > { %v6776_v56 = vmax.f32 %v6771_v2, 0.0 }
0x2868   : > { %v6773_v49 = vpop.f32.mrf.mxu0 }
0x2869   : > { %v6779_v4 = vcombine.low %v6775_v42, %v6776_v56 }
0x286b   : > { %6781 = vst [vmem:[%s8226_s21 + $0x38] sm:$0xff] %v6779_v4 }
0x286c PF: > { %s25_s18 = sadd.s32 1, %s7235_s18  }
0x286d   : > { %p22_p4 = scmp.ge.s32.totalorder %s25_s18, 4  }
0x286f   :  { %24 = sbr.rel (!%p22_p4) target bundleno = 1 (0x1), region = 110 }

</bundles_post_ra>
